<compile_context>
chip_gen: v7x
topology: tpu7x:2x2x1
jax: 0.10.0
libtpu: 0.0.40
codegen_flags: <defaults>
</compile_context>

<pallas_src>
import functools

import jax
import jax.numpy as jnp
from jax.experimental import pallas as pl
from jax.experimental.pallas import tpu as pltpu

EMBED_DIM = 128
NUM_HEADS = 4
HEAD_DIM = EMBED_DIM // NUM_HEADS
HIDDEN_DIM = 32           # FFN hidden dim of the PyTorch module
HIDDEN_PAD = 128          # zero-padded hidden dim -> lane-dense FFN matmuls
LN_EPS = 1e-5


def _layernorm(v, gamma, beta):
    mu = jnp.mean(v, axis=-1, keepdims=True)
    var = jnp.mean((v - mu) ** 2, axis=-1, keepdims=True)
    return (v - mu) * jax.lax.rsqrt(var + LN_EPS) * gamma + beta


def encoder_stack_kernel(
    x_ref,
    g1_ref, be1_ref,
    wqkv_ref, bqkv_ref,
    wo_ref, bo_ref,
    g2_ref, be2_ref,
    w1_ref, bf1_ref,
    w2_ref, bf2_ref,
    out_ref,
):
    bt, n, e = x_ref.shape
    rows = bt * n
    d = e // NUM_HEADS
    cd = wqkv_ref.dtype                              # matmul compute dtype
    approx = jnp.dtype(cd) == jnp.dtype(jnp.bfloat16)

    # First layer of this batch tile: seed the resident activation block.
    @pl.when(pl.program_id(1) == 0)
    def _():
        out_ref[...] = x_ref[...]

    x = out_ref[...].astype(jnp.float32).reshape(rows, e)

    # ---- sub-layer 1: pre-LN fused-QKV multi-head self-attention ----
    xn = _layernorm(x, g1_ref[0], be1_ref[0]).astype(cd)
    qkv = jnp.dot(xn, wqkv_ref[0], preferred_element_type=jnp.float32) + bqkv_ref[0]
    q = qkv[:, 0 * e:1 * e].reshape(bt, n, e)        # scale folded into Wq / bq
    k = qkv[:, 1 * e:2 * e].reshape(bt, n, e)
    v = qkv[:, 2 * e:3 * e].reshape(bt, n, e)

    heads = []
    for h in range(NUM_HEADS):                       # static unroll over heads
        qh = q[:, :, h * d:(h + 1) * d].astype(cd)
        kh = k[:, :, h * d:(h + 1) * d].astype(cd)
        vh = v[:, :, h * d:(h + 1) * d].astype(cd)
        s = jnp.einsum("bqd,bkd->bqk", qh, kh, preferred_element_type=jnp.float32)
        s = s - jnp.max(s, axis=-1, keepdims=True)
        p = jnp.exp(s)
        p = p * pl.reciprocal(jnp.sum(p, axis=-1, keepdims=True), approx=approx)
        oh = jnp.einsum("bqk,bkd->bqd", p.astype(cd), vh,
                        preferred_element_type=jnp.float32)
        heads.append(oh.reshape(rows, d))

    o = jnp.concatenate(heads, axis=-1)              # (rows, E) lane-dense
    attn = jnp.dot(o.astype(cd), wo_ref[0],
                   preferred_element_type=jnp.float32) + bo_ref[0]

    # residual: re-read the resident activation (dropout = identity)
    x1 = out_ref[...].astype(jnp.float32).reshape(rows, e) + attn

    # ---- sub-layer 2: pre-LN feed-forward (hidden padded to 128 lanes) ----
    xn2 = _layernorm(x1, g2_ref[0], be2_ref[0]).astype(cd)
    hid = jnp.dot(xn2, w1_ref[0], preferred_element_type=jnp.float32) + bf1_ref[0]
    hid = jnp.maximum(hid, 0.0)                      # ReLU (dropout = identity)
    ff = jnp.dot(hid.astype(cd), w2_ref[0],
                 preferred_element_type=jnp.float32) + bf2_ref[0]

    out_ref[...] = (x1 + ff).reshape(bt, n, e).astype(out_ref.dtype)


def _pick_batch_tile(B, N, target_rows=512, max_rows=1024):
    divisors = [d for d in range(1, B + 1) if B % d == 0]
    ok = [d for d in divisors if d * N <= max_rows] or [1]
    for d in ok:
        if d * N >= target_rows:
            return d
    return ok[-1]


@functools.lru_cache(maxsize=None)
def _build_encoder_call(B, N, L, Bt, cd_name):
    E, HP = EMBED_DIM, HIDDEN_PAD

    def wspec(shape):
        return pl.BlockSpec(shape, lambda b, l: (l, 0, 0))

    in_specs = [
        pl.BlockSpec((Bt, N, E), lambda b, l: (b, 0, 0)),    # x
        wspec((1, 1, E)), wspec((1, 1, E)),                  # ln1 gamma, beta
        wspec((1, E, 3 * E)), wspec((1, 1, 3 * E)),          # Wqkv, bqkv
        wspec((1, E, E)), wspec((1, 1, E)),                  # Wo, bo
        wspec((1, 1, E)), wspec((1, 1, E)),                  # ln2 gamma, beta
        wspec((1, E, HP)), wspec((1, 1, HP)),                # W1 (padded), b1
        wspec((1, HP, E)), wspec((1, 1, E)),                 # W2 (padded), b2
    ]
    out_spec = pl.BlockSpec((Bt, N, E), lambda b, l: (b, 0, 0))

    itemsize = jnp.dtype(cd_name).itemsize
    w_bytes = (E * 3 * E + E * E + 2 * E * HP) * itemsize + (9 * E + 2 * HP) * 4
    act_bytes = Bt * N * E * 4
    vmem_limit = int(min(48 << 20, max(16 << 20, 4 * act_bytes + 2 * w_bytes + (8 << 20))))

    return pl.pallas_call(
        encoder_stack_kernel,
        out_shape=jax.ShapeDtypeStruct((B, N, E), jnp.float32),
        grid_spec=pltpu.PrefetchScalarGridSpec(
            num_scalar_prefetch=0,
            grid=(B // Bt, L),                                # layer axis innermost
            in_specs=in_specs,
            out_specs=out_spec,
        ),
        compiler_params=pltpu.CompilerParams(
            dimension_semantics=("parallel", "arbitrary"),
            vmem_limit_bytes=vmem_limit,
        ),
    )


def _prepare_layer(p, compute_dtype):
    E, HID, HP, D = EMBED_DIM, HIDDEN_DIM, HIDDEN_PAD, HEAD_DIM
    scale = D ** (-0.5)
    wqkv = jnp.concatenate([p["wq"] * scale, p["wk"], p["wv"]], axis=1).astype(compute_dtype)
    bqkv = jnp.concatenate([p["bq"] * scale, p["bk"], p["bv"]], axis=1).astype(jnp.float32)
    w1p = jnp.zeros((E, HP), compute_dtype).at[:, :HID].set(p["w1"].astype(compute_dtype))
    b1p = jnp.zeros((1, HP), jnp.float32).at[:, :HID].set(p["bf1"].astype(jnp.float32))
    w2p = jnp.zeros((HP, E), compute_dtype).at[:HID, :].set(p["w2"].astype(compute_dtype))
    return (
        p["g1"].astype(jnp.float32), p["be1"].astype(jnp.float32),
        wqkv, bqkv,
        p["wo"].astype(compute_dtype), p["bo"].astype(jnp.float32),
        p["g2"].astype(jnp.float32), p["be2"].astype(jnp.float32),
        w1p, b1p, w2p, p["bf2"].astype(jnp.float32),
    )


def prepare_stacked_params(layers_params, compute_dtype=jnp.bfloat16):
    """One-time prep: fuse QKV, fold scale, pad FFN, cast, stack on a layer axis."""
    per = [_prepare_layer(p, compute_dtype) for p in layers_params]
    return tuple(jnp.stack([lp[i] for lp in per], axis=0) for i in range(len(per[0])))


def transformer_encoder(x, stacked_params, *, batch_tile=None):
    """x: (B, N, E) float32. stacked_params: output of prepare_stacked_params."""
    B, N, E = x.shape
    assert E == EMBED_DIM
    L = stacked_params[0].shape[0]
    Bt = batch_tile or _pick_batch_tile(B, N)
    assert B % Bt == 0
    cd_name = jnp.dtype(stacked_params[2].dtype).name
    fn = _build_encoder_call(B, N, L, Bt, cd_name)
    return fn(x, *stacked_params)


def reference_layer(x, p):
    """Pure-JAX reference matching the PyTorch forward (eval mode)."""
    def ln(v, g, b):
        mu = jnp.mean(v, axis=-1, keepdims=True)
        var = jnp.mean((v - mu) ** 2, axis=-1, keepdims=True)
        return (v - mu) / jnp.sqrt(var + LN_EPS) * g + b

    B, N, E = x.shape
    xn = ln(x, p["g1"], p["be1"])
    q = xn @ p["wq"] + p["bq"]
    k = xn @ p["wk"] + p["bk"]
    v = xn @ p["wv"] + p["bv"]
    q = q.reshape(B, N, NUM_HEADS, HEAD_DIM).transpose(0, 2, 1, 3) * HEAD_DIM ** (-0.5)
    k = k.reshape(B, N, NUM_HEADS, HEAD_DIM).transpose(0, 2, 1, 3)
    v = v.reshape(B, N, NUM_HEADS, HEAD_DIM).transpose(0, 2, 1, 3)
    s = jnp.einsum("bhqd,bhkd->bhqk", q, k)
    w = jax.nn.softmax(s, axis=-1)
    ao = jnp.einsum("bhqk,bhkd->bhqd", w, v)
    ao = ao.transpose(0, 2, 1, 3).reshape(B, N, E)
    ao = ao @ p["wo"] + p["bo"]
    x1 = x + ao
    xn2 = ln(x1, p["g2"], p["be2"])
    h = jnp.maximum(xn2 @ p["w1"] + p["bf1"], 0.0)
    return x1 + h @ p["w2"] + p["bf2"]


def init_params(key):
    keys = jax.random.split(key, 8)
    E, H = EMBED_DIM, HIDDEN_DIM
    scale = 0.05
    return {
        "g1": 1.0 + 0.01 * jax.random.normal(keys[0], (1, E), jnp.float32),
        "be1": 0.01 * jax.random.normal(keys[1], (1, E), jnp.float32),
        "g2": 1.0 + 0.01 * jax.random.normal(keys[2], (1, E), jnp.float32),
        "be2": 0.01 * jax.random.normal(keys[3], (1, E), jnp.float32),
        # Attention projections stored as (in, out) = W^T of the PyTorch weight.
        "wq": scale * jax.random.normal(keys[4], (E, E), jnp.float32),
        "wk": scale * jax.random.normal(keys[5], (E, E), jnp.float32),
        "wv": scale * jax.random.normal(keys[6], (E, E), jnp.float32),
        "wo": scale * jax.random.normal(keys[7], (E, E), jnp.float32),
        "bq": jnp.zeros((1, E), jnp.float32),
        "bk": jnp.zeros((1, E), jnp.float32),
        "bv": jnp.zeros((1, E), jnp.float32),
        "bo": jnp.zeros((1, E), jnp.float32),
        # Feed-forward stored as (in, out).
        "w1": scale * jax.random.normal(jax.random.fold_in(key, 100), (E, H), jnp.float32),
        "bf1": 0.01 * jnp.ones((1, H), jnp.float32),
        "w2": scale * jax.random.normal(jax.random.fold_in(key, 101), (H, E), jnp.float32),
        "bf2": 0.01 * jnp.ones((1, E), jnp.float32),
    }


if __name__ == "__main__":
    key = jax.random.PRNGKey(0)
    kx, kp = jax.random.split(key)

    B, N = 8, 32                 # small shapes (real ViT encoder: N = 65 patches+CLS)
    NUM_LAYERS = 2
    x = jax.random.normal(kx, (B, N, EMBED_DIM), jnp.float32)
    layers = [init_params(k) for k in jax.random.split(kp, NUM_LAYERS)]

    ref = x
    for p in layers:
        ref = reference_layer(ref, p)

    encoder = jax.jit(transformer_encoder)

    # f32 validation path: strict check against the pure-JAX reference.
    out_f32 = jax.block_until_ready(encoder(x, prepare_stacked_params(layers, jnp.float32)))
    assert out_f32.shape == (B, N, EMBED_DIM)
    err = float(jnp.max(jnp.abs(out_f32 - ref)))
    assert jnp.allclose(out_f32, ref, atol=1e-4, rtol=1e-4), err

    # bf16 default fast path (MXU headline rate on v5e/v6e/v7x), f32 accumulation.
    out_bf16 = jax.block_until_ready(encoder(x, prepare_stacked_params(layers, jnp.bfloat16)))
    err_bf16 = float(jnp.max(jnp.abs(out_bf16 - ref)))
    assert jnp.allclose(out_bf16, ref, atol=5e-2, rtol=5e-2), err_bf16

    print("KERNEL_OK")
</pallas_src>

<mosaic_0001>
module attributes {stable_mosaic.version = 11 : i64} {
  func.func @encoder_stack_kernel(%arg0: i32, %arg1: i32, %arg2: memref<8x32x128xf32, #tpu.memory_space<vmem>>, %arg3: memref<1x1x128xf32, #tpu.memory_space<vmem>>, %arg4: memref<1x1x128xf32, #tpu.memory_space<vmem>>, %arg5: memref<1x128x384xf32, #tpu.memory_space<vmem>>, %arg6: memref<1x1x384xf32, #tpu.memory_space<vmem>>, %arg7: memref<1x128x128xf32, #tpu.memory_space<vmem>>, %arg8: memref<1x1x128xf32, #tpu.memory_space<vmem>>, %arg9: memref<1x1x128xf32, #tpu.memory_space<vmem>>, %arg10: memref<1x1x128xf32, #tpu.memory_space<vmem>>, %arg11: memref<1x128x128xf32, #tpu.memory_space<vmem>>, %arg12: memref<1x1x128xf32, #tpu.memory_space<vmem>>, %arg13: memref<1x128x128xf32, #tpu.memory_space<vmem>>, %arg14: memref<1x1x128xf32, #tpu.memory_space<vmem>>, %arg15: memref<8x32x128xf32, #tpu.memory_space<vmem>>) attributes {dimension_semantics = [#tpu.dimension_semantics<parallel>, #tpu.dimension_semantics<arbitrary>], iteration_bounds = array<i64: 1, 2>, scalar_prefetch = 0 : i64, scratch_operands = 0 : i64, tpu.core_type = #tpu.core_type<tc>, window_params = [{transform_indices = @transform_0, window_bounds = array<i64: 8, 32, 128>}, {transform_indices = @transform_1, window_bounds = array<i64: 1, 1, 128>}, {transform_indices = @transform_2, window_bounds = array<i64: 1, 1, 128>}, {transform_indices = @transform_3, window_bounds = array<i64: 1, 128, 384>}, {transform_indices = @transform_4, window_bounds = array<i64: 1, 1, 384>}, {transform_indices = @transform_5, window_bounds = array<i64: 1, 128, 128>}, {transform_indices = @transform_6, window_bounds = array<i64: 1, 1, 128>}, {transform_indices = @transform_7, window_bounds = array<i64: 1, 1, 128>}, {transform_indices = @transform_8, window_bounds = array<i64: 1, 1, 128>}, {transform_indices = @transform_9, window_bounds = array<i64: 1, 128, 128>}, {transform_indices = @transform_10, window_bounds = array<i64: 1, 1, 128>}, {transform_indices = @transform_11, window_bounds = array<i64: 1, 128, 128>}, {transform_indices = @transform_12, window_bounds = array<i64: 1, 1, 128>}, {transform_indices = @transform_13, window_bounds = array<i64: 8, 32, 128>}]} {
    %c0_i32 = arith.constant 0 : i32
    %0 = arith.cmpi eq, %arg1, %c0_i32 : i32
    %1 = arith.extui %0 : i1 to i32
    %c0_i32_0 = arith.constant 0 : i32
    %2 = arith.cmpi ne, %1, %c0_i32_0 : i32
    scf.if %2 {
      %c0_75 = arith.constant 0 : index
      %c0_76 = arith.constant 0 : index
      %c0_77 = arith.constant 0 : index
      %164 = vector.load %arg2[%c0_75, %c0_76, %c0_77] : memref<8x32x128xf32, #tpu.memory_space<vmem>>, vector<8x32x128xf32>
      %c0_78 = arith.constant 0 : index
      %c0_79 = arith.constant 0 : index
      %c0_80 = arith.constant 0 : index
      %165 = vector.load %arg15[%c0_78, %c0_79, %c0_80] : memref<8x32x128xf32, #tpu.memory_space<vmem>>, vector<8x32x128xf32>
      tpu.vector_store %arg15[%c0_78, %c0_79, %c0_80], %164 {strides = array<i32>} : memref<8x32x128xf32, #tpu.memory_space<vmem>>, vector<8x32x128xf32>,
    } else {
    }
    %c0 = arith.constant 0 : index
    %c0_1 = arith.constant 0 : index
    %c0_2 = arith.constant 0 : index
    %3 = vector.load %arg15[%c0, %c0_1, %c0_2] : memref<8x32x128xf32, #tpu.memory_space<vmem>>, vector<8x32x128xf32>
    %4 = vector.shape_cast %3 : vector<8x32x128xf32> to vector<256x128xf32>
    %c0_3 = arith.constant 0 : index
    %c0_4 = arith.constant 0 : index
    %c0_5 = arith.constant 0 : index
    %5 = vector.load %arg3[%c0_3, %c0_4, %c0_5] : memref<1x1x128xf32, #tpu.memory_space<vmem>>, vector<1x1x128xf32>
    %6 = vector.shape_cast %5 : vector<1x1x128xf32> to vector<1x128xf32>
    %c0_6 = arith.constant 0 : index
    %c0_7 = arith.constant 0 : index
    %c0_8 = arith.constant 0 : index
    %7 = vector.load %arg4[%c0_6, %c0_7, %c0_8] : memref<1x1x128xf32, #tpu.memory_space<vmem>>, vector<1x1x128xf32>
    %8 = vector.shape_cast %7 : vector<1x1x128xf32> to vector<1x128xf32>
    %cst = arith.constant dense<0.000000e+00> : vector<256xf32>
    %9 = vector.multi_reduction <add>, %4, %cst [1] : vector<256x128xf32> to vector<256xf32>
    %10 = vector.shape_cast %9 : vector<256xf32> to vector<256x1xf32>
    %cst_9 = arith.constant 1.280000e+02 : f32
    %11 = vector.broadcast %cst_9 : f32 to vector<256x1xf32>
    %12 = arith.divf %10, %11 : vector<256x1xf32>
    %13 = vector.broadcast %12 : vector<256x1xf32> to vector<256x128xf32>
    %14 = arith.subf %4, %13 : vector<256x128xf32>
    %15 = arith.mulf %14, %14 : vector<256x128xf32>
    %cst_10 = arith.constant dense<0.000000e+00> : vector<256xf32>
    %16 = vector.multi_reduction <add>, %15, %cst_10 [1] : vector<256x128xf32> to vector<256xf32>
    %17 = vector.shape_cast %16 : vector<256xf32> to vector<256x1xf32>
    %cst_11 = arith.constant 1.280000e+02 : f32
    %18 = vector.broadcast %cst_11 : f32 to vector<256x1xf32>
    %19 = arith.divf %17, %18 : vector<256x1xf32>
    %20 = vector.broadcast %12 : vector<256x1xf32> to vector<256x128xf32>
    %21 = arith.subf %4, %20 : vector<256x128xf32>
    %cst_12 = arith.constant 9.99999974E-6 : f32
    %22 = vector.broadcast %cst_12 : f32 to vector<256x1xf32>
    %23 = arith.addf %19, %22 : vector<256x1xf32>
    %24 = math.rsqrt %23 : vector<256x1xf32>
    %25 = vector.broadcast %24 : vector<256x1xf32> to vector<256x128xf32>
    %26 = arith.mulf %21, %25 : vector<256x128xf32>
    %27 = vector.broadcast %6 : vector<1x128xf32> to vector<256x128xf32>
    %28 = arith.mulf %26, %27 : vector<256x128xf32>
    %29 = vector.broadcast %8 : vector<1x128xf32> to vector<256x128xf32>
    %30 = arith.addf %28, %29 : vector<256x128xf32>
    %c0_13 = arith.constant 0 : index
    %c0_14 = arith.constant 0 : index
    %c0_15 = arith.constant 0 : index
    %31 = vector.load %arg5[%c0_13, %c0_14, %c0_15] : memref<1x128x384xf32, #tpu.memory_space<vmem>>, vector<1x128x384xf32>
    %32 = vector.shape_cast %31 : vector<1x128x384xf32> to vector<128x384xf32>
    %cst_16 = arith.constant dense<0.000000e+00> : vector<256x384xf32>
    %33 = tpu.matmul %30, %32, %cst_16 {dimension_numbers = #tpu.dot_dimension_numbers<[1], [0], [0], [1], [0, 0, 1, 1], [], []>} : vector<256x128xf32>, vector<128x384xf32>, vector<256x384xf32> -> vector<256x384xf32>
    %c0_17 = arith.constant 0 : index
    %c0_18 = arith.constant 0 : index
    %c0_19 = arith.constant 0 : index
    %34 = vector.load %arg6[%c0_17, %c0_18, %c0_19] : memref<1x1x384xf32, #tpu.memory_space<vmem>>, vector<1x1x384xf32>
    %35 = vector.shape_cast %34 : vector<1x1x384xf32> to vector<1x384xf32>
    %36 = vector.broadcast %35 : vector<1x384xf32> to vector<256x384xf32>
    %37 = arith.addf %33, %36 : vector<256x384xf32>
    %38 = vector.extract_strided_slice %37 {offsets = [0, 0], sizes = [256, 128], strides = [1, 1]} : vector<256x384xf32> to vector<256x128xf32>
    %39 = vector.shape_cast %38 : vector<256x128xf32> to vector<8x32x128xf32>
    %40 = vector.extract_strided_slice %37 {offsets = [0, 128], sizes = [256, 128], strides = [1, 1]} : vector<256x384xf32> to vector<256x128xf32>
    %41 = vector.shape_cast %40 : vector<256x128xf32> to vector<8x32x128xf32>
    %42 = vector.extract_strided_slice %37 {offsets = [0, 256], sizes = [256, 128], strides = [1, 1]} : vector<256x384xf32> to vector<256x128xf32>
    %43 = vector.shape_cast %42 : vector<256x128xf32> to vector<8x32x128xf32>
    %44 = vector.extract_strided_slice %39 {offsets = [0, 0, 0], sizes = [8, 32, 32], strides = [1, 1, 1]} : vector<8x32x128xf32> to vector<8x32x32xf32>
    %45 = vector.extract_strided_slice %41 {offsets = [0, 0, 0], sizes = [8, 32, 32], strides = [1, 1, 1]} : vector<8x32x128xf32> to vector<8x32x32xf32>
    %46 = vector.extract_strided_slice %43 {offsets = [0, 0, 0], sizes = [8, 32, 32], strides = [1, 1, 1]} : vector<8x32x128xf32> to vector<8x32x32xf32>
    "tpu.trace_start"() <{level = 10 : i32, message = "bqd,bkd->bqk"}> : () -> ()
    %cst_20 = arith.constant dense<0.000000e+00> : vector<8x32x32xf32>
    %47 = tpu.matmul %44, %45, %cst_20 {dimension_numbers = #tpu.dot_dimension_numbers<[2], [2], [1], [1], [0, 0, 0, 1, 1, 1], [0], [0]>} : vector<8x32x32xf32>, vector<8x32x32xf32>, vector<8x32x32xf32> -> vector<8x32x32xf32>
    "tpu.trace_stop"() : () -> ()
    %cst_21 = arith.constant dense<0xFF800000> : vector<8x32xf32>
    %48 = vector.multi_reduction <maximumf>, %47, %cst_21 [2] : vector<8x32x32xf32> to vector<8x32xf32>
    %49 = vector.shape_cast %48 : vector<8x32xf32> to vector<8x32x1xf32>
    %50 = vector.broadcast %49 : vector<8x32x1xf32> to vector<8x32x32xf32>
    %51 = arith.subf %47, %50 : vector<8x32x32xf32>
    %52 = math.exp %51 : vector<8x32x32xf32>
    %cst_22 = arith.constant dense<0.000000e+00> : vector<8x32xf32>
    %53 = vector.multi_reduction <add>, %52, %cst_22 [2] : vector<8x32x32xf32> to vector<8x32xf32>
    %54 = vector.shape_cast %53 : vector<8x32xf32> to vector<8x32x1xf32>
    %55 = tpu.reciprocal %54 : vector<8x32x1xf32> -> vector<8x32x1xf32>
    %56 = vector.broadcast %55 : vector<8x32x1xf32> to vector<8x32x32xf32>
    %57 = arith.mulf %52, %56 : vector<8x32x32xf32>
    "tpu.trace_start"() <{level = 10 : i32, message = "bqk,bkd->bqd"}> : () -> ()
    %cst_23 = arith.constant dense<0.000000e+00> : vector<8x32x32xf32>
    %58 = tpu.matmul %57, %46, %cst_23 {dimension_numbers = #tpu.dot_dimension_numbers<[2], [1], [1], [2], [0, 0, 0, 1, 1, 2], [0], [0]>} : vector<8x32x32xf32>, vector<8x32x32xf32>, vector<8x32x32xf32> -> vector<8x32x32xf32>
    "tpu.trace_stop"() : () -> ()
    %59 = vector.shape_cast %58 : vector<8x32x32xf32> to vector<256x32xf32>
    %60 = vector.extract_strided_slice %39 {offsets = [0, 0, 32], sizes = [8, 32, 32], strides = [1, 1, 1]} : vector<8x32x128xf32> to vector<8x32x32xf32>
    %61 = vector.extract_strided_slice %41 {offsets = [0, 0, 32], sizes = [8, 32, 32], strides = [1, 1, 1]} : vector<8x32x128xf32> to vector<8x32x32xf32>
    %62 = vector.extract_strided_slice %43 {offsets = [0, 0, 32], sizes = [8, 32, 32], strides = [1, 1, 1]} : vector<8x32x128xf32> to vector<8x32x32xf32>
    "tpu.trace_start"() <{level = 10 : i32, message = "bqd,bkd->bqk"}> : () -> ()
    %cst_24 = arith.constant dense<0.000000e+00> : vector<8x32x32xf32>
    %63 = tpu.matmul %60, %61, %cst_24 {dimension_numbers = #tpu.dot_dimension_numbers<[2], [2], [1], [1], [0, 0, 0, 1, 1, 1], [0], [0]>} : vector<8x32x32xf32>, vector<8x32x32xf32>, vector<8x32x32xf32> -> vector<8x32x32xf32>
    "tpu.trace_stop"() : () -> ()
    %cst_25 = arith.constant dense<0xFF800000> : vector<8x32xf32>
    %64 = vector.multi_reduction <maximumf>, %63, %cst_25 [2] : vector<8x32x32xf32> to vector<8x32xf32>
    %65 = vector.shape_cast %64 : vector<8x32xf32> to vector<8x32x1xf32>
    %66 = vector.broadcast %65 : vector<8x32x1xf32> to vector<8x32x32xf32>
    %67 = arith.subf %63, %66 : vector<8x32x32xf32>
    %68 = math.exp %67 : vector<8x32x32xf32>
    %cst_26 = arith.constant dense<0.000000e+00> : vector<8x32xf32>
    %69 = vector.multi_reduction <add>, %68, %cst_26 [2] : vector<8x32x32xf32> to vector<8x32xf32>
    %70 = vector.shape_cast %69 : vector<8x32xf32> to vector<8x32x1xf32>
    %71 = tpu.reciprocal %70 : vector<8x32x1xf32> -> vector<8x32x1xf32>
    %72 = vector.broadcast %71 : vector<8x32x1xf32> to vector<8x32x32xf32>
    %73 = arith.mulf %68, %72 : vector<8x32x32xf32>
    "tpu.trace_start"() <{level = 10 : i32, message = "bqk,bkd->bqd"}> : () -> ()
    %cst_27 = arith.constant dense<0.000000e+00> : vector<8x32x32xf32>
    %74 = tpu.matmul %73, %62, %cst_27 {dimension_numbers = #tpu.dot_dimension_numbers<[2], [1], [1], [2], [0, 0, 0, 1, 1, 2], [0], [0]>} : vector<8x32x32xf32>, vector<8x32x32xf32>, vector<8x32x32xf32> -> vector<8x32x32xf32>
    "tpu.trace_stop"() : () -> ()
    %75 = vector.shape_cast %74 : vector<8x32x32xf32> to vector<256x32xf32>
    %76 = vector.extract_strided_slice %39 {offsets = [0, 0, 64], sizes = [8, 32, 32], strides = [1, 1, 1]} : vector<8x32x128xf32> to vector<8x32x32xf32>
    %77 = vector.extract_strided_slice %41 {offsets = [0, 0, 64], sizes = [8, 32, 32], strides = [1, 1, 1]} : vector<8x32x128xf32> to vector<8x32x32xf32>
    %78 = vector.extract_strided_slice %43 {offsets = [0, 0, 64], sizes = [8, 32, 32], strides = [1, 1, 1]} : vector<8x32x128xf32> to vector<8x32x32xf32>
    "tpu.trace_start"() <{level = 10 : i32, message = "bqd,bkd->bqk"}> : () -> ()
    %cst_28 = arith.constant dense<0.000000e+00> : vector<8x32x32xf32>
    %79 = tpu.matmul %76, %77, %cst_28 {dimension_numbers = #tpu.dot_dimension_numbers<[2], [2], [1], [1], [0, 0, 0, 1, 1, 1], [0], [0]>} : vector<8x32x32xf32>, vector<8x32x32xf32>, vector<8x32x32xf32> -> vector<8x32x32xf32>
    "tpu.trace_stop"() : () -> ()
    %cst_29 = arith.constant dense<0xFF800000> : vector<8x32xf32>
    %80 = vector.multi_reduction <maximumf>, %79, %cst_29 [2] : vector<8x32x32xf32> to vector<8x32xf32>
    %81 = vector.shape_cast %80 : vector<8x32xf32> to vector<8x32x1xf32>
    %82 = vector.broadcast %81 : vector<8x32x1xf32> to vector<8x32x32xf32>
    %83 = arith.subf %79, %82 : vector<8x32x32xf32>
    %84 = math.exp %83 : vector<8x32x32xf32>
    %cst_30 = arith.constant dense<0.000000e+00> : vector<8x32xf32>
    %85 = vector.multi_reduction <add>, %84, %cst_30 [2] : vector<8x32x32xf32> to vector<8x32xf32>
    %86 = vector.shape_cast %85 : vector<8x32xf32> to vector<8x32x1xf32>
    %87 = tpu.reciprocal %86 : vector<8x32x1xf32> -> vector<8x32x1xf32>
    %88 = vector.broadcast %87 : vector<8x32x1xf32> to vector<8x32x32xf32>
    %89 = arith.mulf %84, %88 : vector<8x32x32xf32>
    "tpu.trace_start"() <{level = 10 : i32, message = "bqk,bkd->bqd"}> : () -> ()
    %cst_31 = arith.constant dense<0.000000e+00> : vector<8x32x32xf32>
    %90 = tpu.matmul %89, %78, %cst_31 {dimension_numbers = #tpu.dot_dimension_numbers<[2], [1], [1], [2], [0, 0, 0, 1, 1, 2], [0], [0]>} : vector<8x32x32xf32>, vector<8x32x32xf32>, vector<8x32x32xf32> -> vector<8x32x32xf32>
    "tpu.trace_stop"() : () -> ()
    %91 = vector.shape_cast %90 : vector<8x32x32xf32> to vector<256x32xf32>
    %92 = vector.extract_strided_slice %39 {offsets = [0, 0, 96], sizes = [8, 32, 32], strides = [1, 1, 1]} : vector<8x32x128xf32> to vector<8x32x32xf32>
    %93 = vector.extract_strided_slice %41 {offsets = [0, 0, 96], sizes = [8, 32, 32], strides = [1, 1, 1]} : vector<8x32x128xf32> to vector<8x32x32xf32>
    %94 = vector.extract_strided_slice %43 {offsets = [0, 0, 96], sizes = [8, 32, 32], strides = [1, 1, 1]} : vector<8x32x128xf32> to vector<8x32x32xf32>
    "tpu.trace_start"() <{level = 10 : i32, message = "bqd,bkd->bqk"}> : () -> ()
    %cst_32 = arith.constant dense<0.000000e+00> : vector<8x32x32xf32>
    %95 = tpu.matmul %92, %93, %cst_32 {dimension_numbers = #tpu.dot_dimension_numbers<[2], [2], [1], [1], [0, 0, 0, 1, 1, 1], [0], [0]>} : vector<8x32x32xf32>, vector<8x32x32xf32>, vector<8x32x32xf32> -> vector<8x32x32xf32>
    "tpu.trace_stop"() : () -> ()
    %cst_33 = arith.constant dense<0xFF800000> : vector<8x32xf32>
    %96 = vector.multi_reduction <maximumf>, %95, %cst_33 [2] : vector<8x32x32xf32> to vector<8x32xf32>
    %97 = vector.shape_cast %96 : vector<8x32xf32> to vector<8x32x1xf32>
    %98 = vector.broadcast %97 : vector<8x32x1xf32> to vector<8x32x32xf32>
    %99 = arith.subf %95, %98 : vector<8x32x32xf32>
    %100 = math.exp %99 : vector<8x32x32xf32>
    %cst_34 = arith.constant dense<0.000000e+00> : vector<8x32xf32>
    %101 = vector.multi_reduction <add>, %100, %cst_34 [2] : vector<8x32x32xf32> to vector<8x32xf32>
    %102 = vector.shape_cast %101 : vector<8x32xf32> to vector<8x32x1xf32>
    %103 = tpu.reciprocal %102 : vector<8x32x1xf32> -> vector<8x32x1xf32>
    %104 = vector.broadcast %103 : vector<8x32x1xf32> to vector<8x32x32xf32>
    %105 = arith.mulf %100, %104 : vector<8x32x32xf32>
    "tpu.trace_start"() <{level = 10 : i32, message = "bqk,bkd->bqd"}> : () -> ()
    %cst_35 = arith.constant dense<0.000000e+00> : vector<8x32x32xf32>
    %106 = tpu.matmul %105, %94, %cst_35 {dimension_numbers = #tpu.dot_dimension_numbers<[2], [1], [1], [2], [0, 0, 0, 1, 1, 2], [0], [0]>} : vector<8x32x32xf32>, vector<8x32x32xf32>, vector<8x32x32xf32> -> vector<8x32x32xf32>
    "tpu.trace_stop"() : () -> ()
    %107 = vector.shape_cast %106 : vector<8x32x32xf32> to vector<256x32xf32>
    %108 = tpu.concatenate %59, %75, %91, %107 in 1 : vector<256x32xf32>, vector<256x32xf32>, vector<256x32xf32>, vector<256x32xf32> -> vector<256x128xf32>
    %c0_36 = arith.constant 0 : index
    %c0_37 = arith.constant 0 : index
    %c0_38 = arith.constant 0 : index
    %109 = vector.load %arg7[%c0_36, %c0_37, %c0_38] : memref<1x128x128xf32, #tpu.memory_space<vmem>>, vector<1x128x128xf32>
    %110 = vector.shape_cast %109 : vector<1x128x128xf32> to vector<128x128xf32>
    %cst_39 = arith.constant dense<0.000000e+00> : vector<256x128xf32>
    %111 = tpu.matmul %108, %110, %cst_39 {dimension_numbers = #tpu.dot_dimension_numbers<[1], [0], [0], [1], [0, 0, 1, 1], [], []>} : vector<256x128xf32>, vector<128x128xf32>, vector<256x128xf32> -> vector<256x128xf32>
    %c0_40 = arith.constant 0 : index
    %c0_41 = arith.constant 0 : index
    %c0_42 = arith.constant 0 : index
    %112 = vector.load %arg8[%c0_40, %c0_41, %c0_42] : memref<1x1x128xf32, #tpu.memory_space<vmem>>, vector<1x1x128xf32>
    %113 = vector.shape_cast %112 : vector<1x1x128xf32> to vector<1x128xf32>
    %114 = vector.broadcast %113 : vector<1x128xf32> to vector<256x128xf32>
    %115 = arith.addf %111, %114 : vector<256x128xf32>
    %c0_43 = arith.constant 0 : index
    %c0_44 = arith.constant 0 : index
    %c0_45 = arith.constant 0 : index
    %116 = vector.load %arg15[%c0_43, %c0_44, %c0_45] : memref<8x32x128xf32, #tpu.memory_space<vmem>>, vector<8x32x128xf32>
    %117 = vector.shape_cast %116 : vector<8x32x128xf32> to vector<256x128xf32>
    %118 = arith.addf %117, %115 : vector<256x128xf32>
    %c0_46 = arith.constant 0 : index
    %c0_47 = arith.constant 0 : index
    %c0_48 = arith.constant 0 : index
    %119 = vector.load %arg9[%c0_46, %c0_47, %c0_48] : memref<1x1x128xf32, #tpu.memory_space<vmem>>, vector<1x1x128xf32>
    %120 = vector.shape_cast %119 : vector<1x1x128xf32> to vector<1x128xf32>
    %c0_49 = arith.constant 0 : index
    %c0_50 = arith.constant 0 : index
    %c0_51 = arith.constant 0 : index
    %121 = vector.load %arg10[%c0_49, %c0_50, %c0_51] : memref<1x1x128xf32, #tpu.memory_space<vmem>>, vector<1x1x128xf32>
    %122 = vector.shape_cast %121 : vector<1x1x128xf32> to vector<1x128xf32>
    %cst_52 = arith.constant dense<0.000000e+00> : vector<256xf32>
    %123 = vector.multi_reduction <add>, %118, %cst_52 [1] : vector<256x128xf32> to vector<256xf32>
    %124 = vector.shape_cast %123 : vector<256xf32> to vector<256x1xf32>
    %cst_53 = arith.constant 1.280000e+02 : f32
    %125 = vector.broadcast %cst_53 : f32 to vector<256x1xf32>
    %126 = arith.divf %124, %125 : vector<256x1xf32>
    %127 = vector.broadcast %126 : vector<256x1xf32> to vector<256x128xf32>
    %128 = arith.subf %118, %127 : vector<256x128xf32>
    %129 = arith.mulf %128, %128 : vector<256x128xf32>
    %cst_54 = arith.constant dense<0.000000e+00> : vector<256xf32>
    %130 = vector.multi_reduction <add>, %129, %cst_54 [1] : vector<256x128xf32> to vector<256xf32>
    %131 = vector.shape_cast %130 : vector<256xf32> to vector<256x1xf32>
    %cst_55 = arith.constant 1.280000e+02 : f32
    %132 = vector.broadcast %cst_55 : f32 to vector<256x1xf32>
    %133 = arith.divf %131, %132 : vector<256x1xf32>
    %134 = vector.broadcast %126 : vector<256x1xf32> to vector<256x128xf32>
    %135 = arith.subf %118, %134 : vector<256x128xf32>
    %cst_56 = arith.constant 9.99999974E-6 : f32
    %136 = vector.broadcast %cst_56 : f32 to vector<256x1xf32>
    %137 = arith.addf %133, %136 : vector<256x1xf32>
    %138 = math.rsqrt %137 : vector<256x1xf32>
    %139 = vector.broadcast %138 : vector<256x1xf32> to vector<256x128xf32>
    %140 = arith.mulf %135, %139 : vector<256x128xf32>
    %141 = vector.broadcast %120 : vector<1x128xf32> to vector<256x128xf32>
    %142 = arith.mulf %140, %141 : vector<256x128xf32>
    %143 = vector.broadcast %122 : vector<1x128xf32> to vector<256x128xf32>
    %144 = arith.addf %142, %143 : vector<256x128xf32>
    %c0_57 = arith.constant 0 : index
    %c0_58 = arith.constant 0 : index
    %c0_59 = arith.constant 0 : index
    %145 = vector.load %arg11[%c0_57, %c0_58, %c0_59] : memref<1x128x128xf32, #tpu.memory_space<vmem>>, vector<1x128x128xf32>
    %146 = vector.shape_cast %145 : vector<1x128x128xf32> to vector<128x128xf32>
    %cst_60 = arith.constant dense<0.000000e+00> : vector<256x128xf32>
    %147 = tpu.matmul %144, %146, %cst_60 {dimension_numbers = #tpu.dot_dimension_numbers<[1], [0], [0], [1], [0, 0, 1, 1], [], []>} : vector<256x128xf32>, vector<128x128xf32>, vector<256x128xf32> -> vector<256x128xf32>
    %c0_61 = arith.constant 0 : index
    %c0_62 = arith.constant 0 : index
    %c0_63 = arith.constant 0 : index
    %148 = vector.load %arg12[%c0_61, %c0_62, %c0_63] : memref<1x1x128xf32, #tpu.memory_space<vmem>>, vector<1x1x128xf32>
    %149 = vector.shape_cast %148 : vector<1x1x128xf32> to vector<1x128xf32>
    %150 = vector.broadcast %149 : vector<1x128xf32> to vector<256x128xf32>
    %151 = arith.addf %147, %150 : vector<256x128xf32>
    %cst_64 = arith.constant 0.000000e+00 : f32
    %152 = vector.broadcast %cst_64 : f32 to vector<256x128xf32>
    %153 = arith.maximumf %151, %152 : vector<256x128xf32>
    %c0_65 = arith.constant 0 : index
    %c0_66 = arith.constant 0 : index
    %c0_67 = arith.constant 0 : index
    %154 = vector.load %arg13[%c0_65, %c0_66, %c0_67] : memref<1x128x128xf32, #tpu.memory_space<vmem>>, vector<1x128x128xf32>
    %155 = vector.shape_cast %154 : vector<1x128x128xf32> to vector<128x128xf32>
    %cst_68 = arith.constant dense<0.000000e+00> : vector<256x128xf32>
    %156 = tpu.matmul %153, %155, %cst_68 {dimension_numbers = #tpu.dot_dimension_numbers<[1], [0], [0], [1], [0, 0, 1, 1], [], []>} : vector<256x128xf32>, vector<128x128xf32>, vector<256x128xf32> -> vector<256x128xf32>
    %c0_69 = arith.constant 0 : index
    %c0_70 = arith.constant 0 : index
    %c0_71 = arith.constant 0 : index
    %157 = vector.load %arg14[%c0_69, %c0_70, %c0_71] : memref<1x1x128xf32, #tpu.memory_space<vmem>>, vector<1x1x128xf32>
    %158 = vector.shape_cast %157 : vector<1x1x128xf32> to vector<1x128xf32>
    %159 = vector.broadcast %158 : vector<1x128xf32> to vector<256x128xf32>
    %160 = arith.addf %156, %159 : vector<256x128xf32>
    %161 = arith.addf %118, %160 : vector<256x128xf32>
    %162 = vector.shape_cast %161 : vector<256x128xf32> to vector<8x32x128xf32>
    %c0_72 = arith.constant 0 : index
    %c0_73 = arith.constant 0 : index
    %c0_74 = arith.constant 0 : index
    %163 = vector.load %arg15[%c0_72, %c0_73, %c0_74] : memref<8x32x128xf32, #tpu.memory_space<vmem>>, vector<8x32x128xf32>
    tpu.vector_store %arg15[%c0_72, %c0_73, %c0_74], %162 {strides = array<i32>} : memref<8x32x128xf32, #tpu.memory_space<vmem>>, vector<8x32x128xf32>,
    return
  }
  func.func @transform_0(%arg0: i32, %arg1: i32) -> (i32, i32, i32) {
    %c0_i32 = arith.constant 0 : i32
    %c0_i32_0 = arith.constant 0 : i32
    %c0_i32_1 = arith.constant 0 : i32
    return %arg0, %c0_i32, %c0_i32_0 : i32, i32, i32
  }
  func.func @transform_1(%arg0: i32, %arg1: i32) -> (i32, i32, i32) {
    %c0_i32 = arith.constant 0 : i32
    %c0_i32_0 = arith.constant 0 : i32
    %c0_i32_1 = arith.constant 0 : i32
    return %arg1, %c0_i32, %c0_i32_0 : i32, i32, i32
  }
  func.func @transform_2(%arg0: i32, %arg1: i32) -> (i32, i32, i32) {
    %c0_i32 = arith.constant 0 : i32
    %c0_i32_0 = arith.constant 0 : i32
    %c0_i32_1 = arith.constant 0 : i32
    return %arg1, %c0_i32, %c0_i32_0 : i32, i32, i32
  }
  func.func @transform_3(%arg0: i32, %arg1: i32) -> (i32, i32, i32) {
    %c0_i32 = arith.constant 0 : i32
    %c0_i32_0 = arith.constant 0 : i32
    %c0_i32_1 = arith.constant 0 : i32
    return %arg1, %c0_i32, %c0_i32_0 : i32, i32, i32
  }
  func.func @transform_4(%arg0: i32, %arg1: i32) -> (i32, i32, i32) {
    %c0_i32 = arith.constant 0 : i32
    %c0_i32_0 = arith.constant 0 : i32
    %c0_i32_1 = arith.constant 0 : i32
    return %arg1, %c0_i32, %c0_i32_0 : i32, i32, i32
  }
  func.func @transform_5(%arg0: i32, %arg1: i32) -> (i32, i32, i32) {
    %c0_i32 = arith.constant 0 : i32
    %c0_i32_0 = arith.constant 0 : i32
    %c0_i32_1 = arith.constant 0 : i32
    return %arg1, %c0_i32, %c0_i32_0 : i32, i32, i32
  }
  func.func @transform_6(%arg0: i32, %arg1: i32) -> (i32, i32, i32) {
    %c0_i32 = arith.constant 0 : i32
    %c0_i32_0 = arith.constant 0 : i32
    %c0_i32_1 = arith.constant 0 : i32
    return %arg1, %c0_i32, %c0_i32_0 : i32, i32, i32
  }
  func.func @transform_7(%arg0: i32, %arg1: i32) -> (i32, i32, i32) {
    %c0_i32 = arith.constant 0 : i32
    %c0_i32_0 = arith.constant 0 : i32
    %c0_i32_1 = arith.constant 0 : i32
    return %arg1, %c0_i32, %c0_i32_0 : i32, i32, i32
  }
  func.func @transform_8(%arg0: i32, %arg1: i32) -> (i32, i32, i32) {
    %c0_i32 = arith.constant 0 : i32
    %c0_i32_0 = arith.constant 0 : i32
    %c0_i32_1 = arith.constant 0 : i32
    return %arg1, %c0_i32, %c0_i32_0 : i32, i32, i32
  }
  func.func @transform_9(%arg0: i32, %arg1: i32) -> (i32, i32, i32) {
    %c0_i32 = arith.constant 0 : i32
    %c0_i32_0 = arith.constant 0 : i32
    %c0_i32_1 = arith.constant 0 : i32
    return %arg1, %c0_i32, %c0_i32_0 : i32, i32, i32
  }
  func.func @transform_10(%arg0: i32, %arg1: i32) -> (i32, i32, i32) {
    %c0_i32 = arith.constant 0 : i32
    %c0_i32_0 = arith.constant 0 : i32
    %c0_i32_1 = arith.constant 0 : i32
    return %arg1, %c0_i32, %c0_i32_0 : i32, i32, i32
  }
  func.func @transform_11(%arg0: i32, %arg1: i32) -> (i32, i32, i32) {
    %c0_i32 = arith.constant 0 : i32
    %c0_i32_0 = arith.constant 0 : i32
    %c0_i32_1 = arith.constant 0 : i32
    return %arg1, %c0_i32, %c0_i32_0 : i32, i32, i32
  }
  func.func @transform_12(%arg0: i32, %arg1: i32) -> (i32, i32, i32) {
    %c0_i32 = arith.constant 0 : i32
    %c0_i32_0 = arith.constant 0 : i32
    %c0_i32_1 = arith.constant 0 : i32
    return %arg1, %c0_i32, %c0_i32_0 : i32, i32, i32
  }
  func.func @transform_13(%arg0: i32, %arg1: i32) -> (i32, i32, i32) {
    %c0_i32 = arith.constant 0 : i32
    %c0_i32_0 = arith.constant 0 : i32
    %c0_i32_1 = arith.constant 0 : i32
    return %arg0, %c0_i32, %c0_i32_0 : i32, i32, i32
  }
}

</mosaic_0001>

<bundles_post_ra>
// kernel: transformer_encoder.1
= control target key start
LH: loop header
LB: loop body
LE: loop exit
PB: predicated region body
PF: predicated region fallthrough
CT: control target
= control target key end

     0   :  { %s22271_s0 = inlined_call_operand.hbm [shape: f32[8,32,128], index: 0, kind: input, shape index: {}]   ;;  %s22272_s1 = inlined_call_operand.vmem [shape: f32[2,1,128], index: 1, kind: input, shape index: {}]   ;;  %s22273_s2 = inlined_call_operand.vmem [shape: f32[2,1,128], index: 2, kind: input, shape index: {}]   ;;  %s22274_s3 = inlined_call_operand.hbm [shape: f32[2,128,384], index: 3, kind: input, shape index: {}]   ;;  %s22275_s4 = inlined_call_operand.vmem [shape: f32[2,1,384], index: 4, kind: input, shape index: {}]   ;;  %s22276_s5 = inlined_call_operand.hbm [shape: f32[2,128,128], index: 5, kind: input, shape index: {}]   ;;  %s22277_s6 = inlined_call_operand.vmem [shape: f32[2,1,128], index: 6, kind: input, shape index: {}]   ;;  %s22278_s7 = inlined_call_operand.vmem [shape: f32[2,1,128], index: 7, kind: input, shape index: {}]   ;;  %s22279_s8 = inlined_call_operand.vmem [shape: f32[2,1,128], index: 8, kind: input, shape index: {}]   ;;  %s22280_s9 = inlined_call_operand.hbm [shape: f32[2,128,128], index: 9, kind: input, shape index: {}]   ;;  %s22281_s10 = inlined_call_operand.vmem [shape: f32[2,1,128], index: 10, kind: input, shape index: {}]   ;;  %s22282_s11 = inlined_call_operand.hbm [shape: f32[2,128,128], index: 11, kind: input, shape index: {}]   ;;  %s22283_s12 = inlined_call_operand.vmem [shape: f32[2,1,128], index: 12, kind: input, shape index: {}]   ;;  %s22284_s13 = inlined_call_operand.hbm [shape: f32[8,32,128], index: 13, kind: output, shape index: {}]  }
   0x1   :  { %22518 = sst [smem:[#allocation145_spill]] %s22271_s0 }
   0x2   :  { %22519 = sst [smem:[#allocation146_spill]] %s22274_s3 }
   0x3   :  { %22520 = sst [smem:[#allocation147_spill]] %s22275_s4 }
   0x4   :  { %22521 = sst [smem:[#allocation148_spill]] %s22276_s5 }
   0x5   :  { %22522 = sst [smem:[#allocation149_spill]] %s22277_s6 }
   0x6   :  { %22523 = sst [smem:[#allocation150_spill]] %s22278_s7 }
   0x7   :  { %22524 = sst [smem:[#allocation151_spill]] %s22279_s8 }
   0x8   :  { %22525 = sst [smem:[#allocation152_spill]] %s22280_s9 }
   0x9   :  { %22526 = sst [smem:[#allocation153_spill]] %s22281_s10 }
   0xa   :  { %22527 = sst [smem:[#allocation154_spill]] %s22282_s11 }
   0xb   :  { %22528 = sst [smem:[#allocation155_spill]] %s22283_s12 }
   0xc   :  { %22529 = sst [smem:[#allocation156_spill]] %s22284_s13 }
   0xd   :  { %18 = vsyncpa [#allocation3], 0 }
   0xe   :  { %19 = vsyncpa [#allocation6], 0 }
   0xf   :  { %21 = vsyncpa [#allocation6 + $0x1], 0 }
  0x10   :  { %22 = vsyncpa [#allocation9], 0 }
  0x11   :  { %24 = vsyncpa [#allocation9 + $0x1], 0 }
  0x12   :  { %25 = vsyncpa [#allocation4], 0  ;;  %s17292_s25 = smov 0   ;;  %s17294_s26 = smov 0  }
  0x13   :  { %s17296_s27 = smov 0   ;;  %s17298_s28 = smov 0  }
  0x14   :  { %s17300_s29 = smov 0   ;;  %s17302_s30 = smov 0  }
  0x15 LB: > { %22530 = sst [smem:[#allocation16_spill]] %s17188_s26  ;;  %s40_s14 = sadd.s32 1, %s17200_s29  ;;  %s17204_s30 = sphi %s17302_s30, %s31_s30   ;;  %s17200_s29 = sphi %s17300_s29, %s23142_s29   ;;  %s17196_s28 = sphi %s17298_s28, %s23141_s28   ;;  %s17192_s27 = sphi %s17296_s27, %s23140_s27   ;;  %s17188_s26 = sphi %s17294_s26, %s23139_s26   ;;  %s17184_s25 = sphi %s17292_s25, %s23138_s25  }
  0x16   : > { %22531 = sst [smem:[#allocation17_spill]] %s17192_s27  ;;  %s128_s15 = sadd.s32 1, %s17192_s27 }
  0x17   : > { %22532 = sst [smem:[#allocation18_spill]] %s17200_s29  ;;  %p41_p0 = scmp.ge.s32.totalorder %s40_s14, 2 }
  0x18   : > { %22533 = sst [smem:[#allocation19_spill]] %s17204_s30  ;;  %p135_p1 = scmp.ne.s32.totalorder %s17192_s27, %s17188_s26 }
  0x19   : > { %p136_p2 = scmp.eq.s32.totalorder %s17204_s30, 0  ;;  %s23144_s14 = smov (%p41_p0, %s40_s14), 0 }
  0x1a   : > { %22534 = sst [smem:[#allocation20_spill]] %s23144_s14  ;;  %p15544_p4 = scmp.lt.s32.totalorder %s17204_s30, 2 }
  0x1b   : > { %p137_p3 = por %p136_p2, %p135_p1  ;;  %s125_s16 = ssub.s32 %s17200_s29, %s23144_s14 }
  0x1c   : > { %p126_p5 = scmp.eq.s32.totalorder %s125_s16, 0  ;;  %s22286_s18 = sand.u32 1, %s17192_s27  }
  0x1d   : > { %s15507_s19 = smul.u32 6144, %s17200_s29  ;;  %s22536_s3 = sld [smem:[#allocation146_spill]] }
  0x1e   : > { %s17336_s20 = scalar_select %p126_p5, %s17192_s27, %s128_s15  }
  0x1f   : > { %s15506_s21 = smul.u32 384, %s22286_s18  ;;  %p17345_p6 = pnand %p15544_p4, %p137_p3 }
  0x20   : > { %22535 = sst [smem:[#allocation21_spill]] %s17336_s20  ;;  %s22538_s15 = sand.u32 1, %s17204_s30  }
  0x21   : > { %s22537_s13 = scalar_select %p17345_p6, 1, 0 }
  0x22   : > { %s458_s16 = scalar_lea.vmem [#allocation5], %s15506_s21  ;;  %s17353_s18 = scalar_lea.sflag [#allocation6], %s22538_s15 }
  0x23   : > { %s17343_s24 = scalar_lea.hbm %s22536_s3, %s15507_s19  ;;  %s465_s17 = sshll.u32 %s458_s16, 4  ;;  %s17349_s17 = int_to_ptr.vmem [resolvable:$true] %s465_s17 }
  0x24   : > { %s16968_s14 = scalar_lea.hbm %s17343_s24, 6144  ;;  %p17359_p8 = pneg %p17345_p6 }
  0x25   : > { %p16969_p7 = scmp.ne.s32.totalorder %s17343_s24, %s16968_s14  ;;  %s16973_s21 = scalar_lea.hbm %s22536_s3, 12288 }
  0x26   : > { %s22539_s19 = scalar_select %p17359_p8, 1, 0 }
  0x27   : > { %p16971_p9 = pnand %p17359_p8, %p16969_p7  ;;  %p16974_p11 = scmp.lt.u32.totalorder %s17343_s24, %s22536_s3 }
  0x28   : > { %p16975_p12 = scmp.lt.u32.totalorder %s16973_s21, %s16968_s14  ;;  %p16977_p0 = scmp.lt.u32.totalorder %s16968_s14, %s17343_s24 }
  0x29   : > { %p16972_p10 = pneg %p16971_p9 }
  0x2a   : > { %p16976_p13 = por %p16975_p12, %p16974_p11 }
  0x2c   : > { %p16978_p1 = por %p16977_p0, %p16976_p13 }
  0x2e   : > { %p16979_p2 = pnand %p16978_p1, %p16972_p10 }
  0x30   : > { %16982 = shalt.err (!%p16979_p2)
}
  0x31   : > { %s16983_s15 = scalar_lea.vmem %s17349_s17, 6144  ;;  %s17206_s22 = smov [#allocation5]  }
  0x32   : > { %p16984_p3 = scmp.ne.s32.totalorder %s17349_s17, %s16983_s15  ;;  %s16988_s23 = sshll.u32 %s17206_s22, 4  ;;  %s16989_s23 = int_to_ptr.vmem [resolvable:$false] %s16988_s23 }
  0x33   : > { %s16990_s20 = scalar_lea.vmem %s16989_s23, 12288  ;;  %p16991_p7 = scmp.lt.s32.totalorder %s17349_s17, %s16989_s23 }
  0x34   : > { %p16986_p4 = pnand %p16984_p3, %p17359_p8  ;;  %p16992_p9 = scmp.lt.s32.totalorder %s16990_s20, %s16983_s15 }
  0x36   : > { %p16987_p5 = pneg %p16986_p4  ;;  %p16993_p11 = por %p16992_p9, %p16991_p7 }
  0x38   : > { %p16994_p12 = pnand %p16993_p11, %p16987_p5 }
  0x3a   : > { %16997 = shalt.err (!%p16994_p12)
}
  0x3b   : > { %s17207_s14 = smov 384   ;;  %s17208_s21 = smov 24  }
  0x3c   : > { %15533 = dma.hbm_to_vmem [thread:$0]  (!%p17345_p6), %s17343_s24, 6144, %s17349_s17, %s17353_s18, %s17207_s14, %s17207_s14, %s17208_s21  }
  0x3d   : > { %s22540_s16 = sand.u32 1, %s17192_s27   ;;  %s17388_s15 = sshll.u32 %s17200_s29, 11 }
  0x3e   : > { %s17385_s22 = sshll.u32 %s22540_s16, 7  ;;  %s22541_s9 = sld [smem:[#allocation152_spill]] }
  0x3f   : > { %s525_s12 = scalar_lea.vmem [#allocation8], %s17385_s22  ;;  %s22542_s17 = sand.u32 1, %s17204_s30  }
  0x40   : > { %s532_s10 = sshll.u32 %s525_s12, 4  ;;  %s17401_s24 = scalar_lea.sflag [#allocation9], %s22542_s17  ;;  %s17397_s10 = int_to_ptr.vmem [resolvable:$true] %s532_s10 }
  0x44   : > { %s17394_s3 = scalar_lea.hbm %s22541_s9, %s17388_s15  ;;  %s17003_s23 = scalar_lea.hbm %s22541_s9, 4096 }
  0x45   : > { %s16998_s14 = scalar_lea.hbm %s17394_s3, 2048  ;;  %p17004_p1 = scmp.lt.u32.totalorder %s17394_s3, %s22541_s9 }
  0x46   : > { %p16999_p10 = scmp.ne.s32.totalorder %s17394_s3, %s16998_s14  ;;  %p17005_p2 = scmp.lt.u32.totalorder %s17003_s23, %s16998_s14 }
  0x47   : > { %p17007_p4 = scmp.lt.u32.totalorder %s16998_s14, %s17394_s3 }
  0x48   : > { %p17001_p13 = pnand %p16999_p10, %p17359_p8  ;;  %p17006_p3 = por %p17005_p2, %p17004_p1 }
  0x4a   : > { %p17002_p0 = pneg %p17001_p13  ;;  %p17008_p5 = por %p17007_p4, %p17006_p3 }
  0x4c   : > { %p17009_p7 = pnand %p17008_p5, %p17002_p0 }
  0x4e   : > { %17012 = shalt.err (!%p17009_p7)
}
  0x4f   : > { %s17013_s12 = scalar_lea.vmem %s17397_s10, 2048  ;;  %s17209_s17 = smov [#allocation8]  }
  0x50   : > { %p17014_p9 = scmp.ne.s32.totalorder %s17397_s10, %s17013_s12  ;;  %s17018_s21 = sshll.u32 %s17209_s17, 4  ;;  %s17019_s21 = int_to_ptr.vmem [resolvable:$false] %s17018_s21 }
  0x51   : > { %s17020_s29 = scalar_lea.vmem %s17019_s21, 4096  ;;  %p17021_p10 = scmp.lt.s32.totalorder %s17397_s10, %s17019_s21 }
  0x52   : > { %p17016_p11 = pnand %p17014_p9, %p17359_p8  ;;  %p17022_p13 = scmp.lt.s32.totalorder %s17020_s29, %s17013_s12 }
  0x54   : > { %p17017_p12 = pneg %p17016_p11  ;;  %p17023_p1 = por %p17022_p13, %p17021_p10 }
  0x56   : > { %p17024_p2 = pnand %p17023_p1, %p17017_p12 }
  0x58   : > { %17027 = shalt.err (!%p17024_p2)
}
  0x59   : > { %s22289_s14 = smov 128   ;;  %s22291_s16 = smov 8  }
  0x5a   : > { %15539 = dma.hbm_to_vmem [thread:$0]  (!%p17345_p6), %s17394_s3, 2048, %s17397_s10, %s17401_s24, %s22289_s14, %s22289_s14, %s22291_s16  }
  0x5b   : > { %s17429_s23 = sadd.s32 4294967295, %s17204_s30   ;;  %p141_p0 = scmp.ne.s32.totalorder %s17188_s26, %s17184_s25 }
  0x5c   : > { %p22295_p3 = scmp.eq.s32.totalorder %s17429_s23, 0  ;;  %p12353_p4 = scmp.ge.s32.totalorder %s17204_s30, 1 }
  0x5d   : > { %p412_p5 = scmp.lt.s32.totalorder %s17204_s30, 3  ;;  %s17212_s3 = smov [#allocation2]  }
  0x5e   : > { %p17438_p7 = por %p22295_p3, %p141_p0  ;;  %s428_s10 = sshll.u32 %s17212_s3, 4  ;;  %s17446_s10 = int_to_ptr.vmem [resolvable:$true] %s428_s10 }
  0x5f   : > { %p17442_p9 = pnand %p12353_p4, %p412_p5  ;;  %s22545_s5 = sld [smem:[#allocation148_spill]] }
  0x60   : > { %s22543_s20 = scalar_select %p17438_p7, 1, 0 }
  0x61   : > { %s22544_s12 = scalar_select %p17442_p9, 1, 0 }
  0x62   : > { %p15526_p11 = pneg %p17442_p9  ;;  %s486_s29 = scalar_lea.vmem [#allocation7], %s17385_s22 }
  0x63   : > { %s493_s14 = sshll.u32 %s486_s29, 4  ;;  %s17463_s14 = int_to_ptr.vmem [resolvable:$true] %s493_s14 }
  0x64   : > { %p17459_p12 = pnand %p15526_p11, %p22295_p3 }
  0x65   : > { %s17454_s21 = scalar_lea.hbm %s22545_s5, %s17388_s15  ;;  %s17033_s9 = scalar_lea.hbm %s22545_s5, 4096 }
  0x66   : > { %s22546_s16 = scalar_select %p17459_p12, 1, 0 }
  0x67   : > { %s17028_s3 = scalar_lea.hbm %s17454_s21, 2048  ;;  %p17034_p2 = scmp.lt.u32.totalorder %s17454_s21, %s22545_s5 }
  0x68   : > { %p17029_p10 = scmp.ne.s32.totalorder %s17454_s21, %s17028_s3  ;;  %p17035_p0 = scmp.lt.u32.totalorder %s17033_s9, %s17028_s3 }
  0x69   : > { %p17037_p5 = scmp.lt.u32.totalorder %s17028_s3, %s17454_s21 }
  0x6a   : > { %p17031_p13 = pnand %p17029_p10, %p17359_p8  ;;  %p17036_p4 = por %p17035_p0, %p17034_p2 }
  0x6c   : > { %p17032_p1 = pneg %p17031_p13  ;;  %p17038_p11 = por %p17037_p5, %p17036_p4 }
  0x6e   : > { %p17039_p3 = pnand %p17038_p11, %p17032_p1 }
  0x70   : > { %17042 = shalt.err (!%p17039_p3)
}
  0x71   : > { %s17043_s29 = scalar_lea.vmem %s17463_s14, 2048  ;;  %s17213_s25 = smov [#allocation7]  }
  0x72   : > { %p17044_p10 = scmp.ne.s32.totalorder %s17463_s14, %s17043_s29  ;;  %s17048_s17 = sshll.u32 %s17213_s25, 4  ;;  %s17049_s17 = int_to_ptr.vmem [resolvable:$false] %s17048_s17 }
  0x73   : > { %s17050_s27 = scalar_lea.vmem %s17049_s17, 4096  ;;  %p17051_p9 = scmp.lt.s32.totalorder %s17463_s14, %s17049_s17 }
  0x74   : > { %p17046_p13 = pnand %p17044_p10, %p17359_p8  ;;  %p17052_p12 = scmp.lt.s32.totalorder %s17050_s27, %s17043_s29 }
  0x76   : > { %p17047_p7 = pneg %p17046_p13  ;;  %p17053_p2 = por %p17052_p12, %p17051_p9 }
  0x78   : > { %p17054_p0 = pnand %p17053_p2, %p17047_p7 }
  0x7a   : > { %17057 = shalt.err (!%p17054_p0)
}
  0x7b   : > { %s22547_s9 = smov 8   ;;  %s22548_s30 = smov 128  }
  0x7c   : > { %15536 = dma.hbm_to_vmem [thread:$0]  (!%p17345_p6), %s17454_s21, 2048, %s17463_s14, %s17353_s18, %s22548_s30, %s22548_s30, %s22547_s9  }
  0x7d   : > { %s22549_s11 = sld [smem:[#allocation154_spill]]  ;;  %s22550_s0 = sld [smem:[#allocation145_spill]] }
  0x7e   : > { %p22551_p7 = scmp.ne.s32.totalorder %s22546_s16, 0 }
  0x80   : > { %p17060_p9 = pneg %p22551_p7 }
  0x83   : > { %s17494_s5 = scalar_lea.hbm %s22549_s11, %s17388_s15  ;;  %s17058_s27 = scalar_lea.hbm %s22550_s0, 4096 }
  0x84   : > { %p17059_p3 = scmp.ne.s32.totalorder %s22550_s0, %s17058_s27  ;;  %p17065_p4 = scmp.lt.u32.totalorder %s17058_s27, %s22550_s0 }
  0x86   : > { %p17061_p12 = pnand %p17060_p9, %p17059_p3 }
  0x88   : > { %p17062_p1 = pneg %p17061_p12 }
  0x8a   : > { %p17067_p5 = pnand %p17065_p4, %p17062_p1 }
  0x8c   : > { %17070 = shalt.err (!%p17067_p5)
}
  0x8d   : > { %s17071_s18 = scalar_lea.vmem %s17446_s10, 4096  ;;  %p17079_p2 = scmp.lt.s32.totalorder %s17446_s10, %s17446_s10 }
  0x8e   : > { %p17072_p11 = scmp.ne.s32.totalorder %s17446_s10, %s17071_s18  ;;  %p17080_p0 = scmp.lt.s32.totalorder %s17071_s18, %s17071_s18 }
  0x90   : > { %p17074_p10 = pnand %p17072_p11, %p17060_p9  ;;  %p17081_p6 = por %p17080_p0, %p17079_p2 }
  0x92   : > { %p17075_p13 = pneg %p17074_p10 }
  0x94   : > { %p17082_p8 = pnand %p17081_p6, %p17075_p13 }
  0x96   : > { %17085 = shalt.err (!%p17082_p8)
}
  0x97   : > { %15529 = dma.hbm_to_vmem [thread:$0]  (!%p22551_p7), %s22550_s0, 4096, %s17446_s10, [#allocation3], %s22548_s30, %s22548_s30, %s22547_s9  }
  0x98   : > { %s552_s7 = scalar_lea.vmem [#allocation10], %s17385_s22  ;;  %s17086_s15 = scalar_lea.hbm %s17494_s5, 2048 }
  0x99   : > { %s559_s8 = sshll.u32 %s552_s7, 4  ;;  %p17087_p6 = scmp.ne.s32.totalorder %s17494_s5, %s17086_s15  ;;  %s17521_s8 = int_to_ptr.vmem [resolvable:$true] %s559_s8 }
  0x9a   : > { %p22552_p8 = scmp.ne.s32.totalorder %s22539_s19, 0  ;;  %s17091_s21 = scalar_lea.hbm %s22549_s11, 4096 }
  0x9b   : > { %p17092_p12 = scmp.lt.u32.totalorder %s17494_s5, %s22549_s11  ;;  %p17093_p1 = scmp.lt.u32.totalorder %s17091_s21, %s17086_s15 }
  0x9c   : > { %p17089_p3 = pnand %p17087_p6, %p22552_p8  ;;  %p17095_p7 = scmp.lt.u32.totalorder %s17086_s15, %s17494_s5 }
  0x9d   : > { %p17094_p4 = por %p17093_p1, %p17092_p12 }
  0x9e   : > { %p17090_p9 = pneg %p17089_p3 }
  0x9f   : > { %p17096_p5 = por %p17095_p7, %p17094_p4 }
  0xa1   : > { %p17097_p11 = pnand %p17096_p5, %p17090_p9 }
  0xa3   : > { %17100 = shalt.err (!%p17097_p11)
}
  0xa4   : > { %s17101_s22 = scalar_lea.vmem %s17521_s8, 2048  ;;  %s17214_s10 = smov [#allocation10]  }
  0xa5   : > { %p17102_p10 = scmp.ne.s32.totalorder %s17521_s8, %s17101_s22  ;;  %s17106_s29 = sshll.u32 %s17214_s10, 4  ;;  %s17107_s29 = int_to_ptr.vmem [resolvable:$false] %s17106_s29 }
  0xa6   : > { %s17108_s17 = scalar_lea.vmem %s17107_s29, 4096  ;;  %p17109_p0 = scmp.lt.s32.totalorder %s17521_s8, %s17107_s29 }
  0xa7   : > { %p17104_p13 = pnand %p17102_p10, %p22552_p8  ;;  %p17110_p6 = scmp.lt.s32.totalorder %s17108_s17, %s17101_s22 }
  0xa9   : > { %p17105_p2 = pneg %p17104_p13  ;;  %p17111_p3 = por %p17110_p6, %p17109_p0 }
  0xab   : > { %p17112_p12 = pnand %p17111_p3, %p17105_p2 }
  0xad   : > { %17115 = shalt.err (!%p17112_p12)
}
  0xae   : > { %p22553_p9 = scmp.ne.s32.totalorder %s22537_s13, 0  ;;  %p22554_p8 = scmp.ne.s32.totalorder %s22544_s12, 0 }
  0xb0   : > { %15542 = dma.hbm_to_vmem [thread:$0]  (!%p22553_p9), %s17494_s5, 2048, %s17521_s8, %s17401_s24, %s22548_s30, %s22548_s30, %s22547_s9  }
  0xb1   : > { %577 = sbr.rel (%p22554_p8) target bundleno = 4728 (0x1278), region = 72 }
  0xb8   : > { %p22555_p1 = scmp.eq.s32.totalorder %s17429_s23, 0 }
  0xba   : > { %17167 = dma.done.wait (%p22555_p1), [#allocation3], 4096   ;;  %p22556_p4 = pmov %p22555_p1 }
  0xbb   : > { %s583_s13 = sand.u32 1, %s17429_s23   ;;  %s585_s19 = sand.u32 1, %s17188_s26  }
  0xbc   : > { %17169 = vsyncadd (%p22556_p4), [#allocation3], 4294963200  ;;  %s15508_s27 = smul.u32 384, %s585_s19  ;;  %s584_s18 = scalar_lea.sflag [#allocation6], %s583_s13 }
  0xbd   : > { %p22557_p7 = scmp.ne.s32.totalorder %s22543_s20, 0 }
  0xbe   : > { %s17556_s4 = scalar_lea.vmem [#allocation5], %s15508_s27 }
  0xbf   : > { %17171 = dma.done.wait (%p22557_p7), %s584_s18, 8192  }
  0xc0   : > { %17173 = vsyncadd (%p22557_p7), %s584_s18, 4294959104  ;;  %s12368_s5 = sshll.u32 %s585_s19, 7  ;;  %s602_s12 = scalar_lea.sflag [#allocation9], %s583_s13 }
  0xc1   : > { %s17562_s24 = scalar_lea.vmem [#allocation7], %s12368_s5  ;;  %s17564_s9 = scalar_lea.vmem [#allocation8], %s12368_s5 }
  0xc2   : > { %17175 = dma.done.wait (%p22557_p7), %s602_s12, 4096  }
  0xc3   : > { %17177 = vsyncadd (%p22557_p7), %s602_s12, 4294963200  ;;  %p693_p5 = scmp.lt.s32.totalorder %s17196_s28, 1  ;;  %s22559_s17 = sld [smem:[#allocation150_spill]] }
  0xc4   : > { %s22560_s18 = sld [smem:[#allocation151_spill]]  ;;  %s22561_s8 = sld [smem:[#allocation147_spill]] }
  0xc5   : > { %s17572_s30 = scalar_select %p693_p5, %s17196_s28, 1 }
  0xc6   : > { %s22562_s14 = sld [smem:[#allocation153_spill]]  ;;  %s22563_s3 = sld [smem:[#allocation155_spill]] }
  0xc7   : > { %s15509_s16 = smul.u32 3, %s17572_s30  ;;  %s17608_s22 = scalar_lea.vmem [#allocation10], %s12368_s5 }
  0xc8   : > { %p12371_p11 = scmp.ne.s32.totalorder %s17196_s28, 0 }
  0xc9   : > { %s708_s13 = scalar_lea.vmem %s22559_s17, %s17572_s30  ;;  %v723_v0 = vld [vmem:[#allocation2] sm:$0xff] (!%p12371_p11)  ;;  %v724_v1 = vld [vmem:[#allocation2 + $0x8] sm:$0xff] (!%p12371_p11)  ;;  %v725_v2 = vld [vmem:[#allocation2 + $0x10] sm:$0xff] (!%p12371_p11) }
  0xca   : > { %s711_s12 = scalar_lea.vmem %s22560_s18, %s17572_s30  ;;  %s17598_s0 = scalar_lea.vmem %s22561_s8, %s15509_s16  ;;  %755 = vst [vmem:[#allocation11] sm:$0xff] (!%p12371_p11), %v723_v0  ;;  %756 = vst [vmem:[#allocation11 + $0x8] sm:$0xff] (!%p12371_p11), %v724_v1  ;;  %v726_v3 = vld [vmem:[#allocation2 + $0x18] sm:$0xff] (!%p12371_p11)  ;;  %v727_v4 = vld [vmem:[#allocation2 + $0x20] sm:$0xff] (!%p12371_p11) }
  0xcb   : > { %722 = sbr.rel (%p12371_p11) target bundleno = 218 (0xda), region = 96  ;;  %757 = vst [vmem:[#allocation11 + $0x10] sm:$0xff] (!%p12371_p11), %v725_v2  ;;  %v728_v5 = vld [vmem:[#allocation2 + $0x28] sm:$0xff] (!%p12371_p11)  ;;  %758 = vst [vmem:[#allocation11 + $0x18] sm:$0xff] (!%p12371_p11), %v726_v3  ;;  %v729_v6 = vld [vmem:[#allocation2 + $0x30] sm:$0xff] (!%p12371_p11) }
  0xcc   : > { %s714_s11 = scalar_lea.vmem %s22562_s14, %s17572_s30  ;;  %s717_s25 = scalar_lea.vmem %s22563_s3, %s17572_s30  ;;  %759 = vst [vmem:[#allocation11 + $0x20] sm:$0xff] (!%p12371_p11), %v727_v4  ;;  %760 = vst [vmem:[#allocation11 + $0x28] sm:$0xff] (!%p12371_p11), %v728_v5  ;;  %v730_v7 = vld [vmem:[#allocation2 + $0x38] sm:$0xff] (!%p12371_p11)  ;;  %v731_v8 = vld [vmem:[#allocation2 + $0x40] sm:$0xff] (!%p12371_p11) }
  0xcd   : > { %761 = vst [vmem:[#allocation11 + $0x30] sm:$0xff] (!%p12371_p11), %v729_v6  ;;  %762 = vst [vmem:[#allocation11 + $0x38] sm:$0xff] (!%p12371_p11), %v730_v7  ;;  %v732_v9 = vld [vmem:[#allocation2 + $0x48] sm:$0xff] (!%p12371_p11)  ;;  %v733_v10 = vld [vmem:[#allocation2 + $0x50] sm:$0xff] (!%p12371_p11) }
  0xce   : > { %763 = vst [vmem:[#allocation11 + $0x40] sm:$0xff] (!%p12371_p11), %v731_v8  ;;  %v734_v11 = vld [vmem:[#allocation2 + $0x58] sm:$0xff] (!%p12371_p11)  ;;  %764 = vst [vmem:[#allocation11 + $0x48] sm:$0xff] (!%p12371_p11), %v732_v9  ;;  %v735_v12 = vld [vmem:[#allocation2 + $0x60] sm:$0xff] (!%p12371_p11) }
  0xcf   : > { %765 = vst [vmem:[#allocation11 + $0x50] sm:$0xff] (!%p12371_p11), %v733_v10  ;;  %766 = vst [vmem:[#allocation11 + $0x58] sm:$0xff] (!%p12371_p11), %v734_v11  ;;  %v736_v13 = vld [vmem:[#allocation2 + $0x68] sm:$0xff] (!%p12371_p11)  ;;  %v737_v14 = vld [vmem:[#allocation2 + $0x70] sm:$0xff] (!%p12371_p11) }
  0xd0   : > { %767 = vst [vmem:[#allocation11 + $0x60] sm:$0xff] (!%p12371_p11), %v735_v12  ;;  %768 = vst [vmem:[#allocation11 + $0x68] sm:$0xff] (!%p12371_p11), %v736_v13  ;;  %v738_v15 = vld [vmem:[#allocation2 + $0x78] sm:$0xff] (!%p12371_p11)  ;;  %v739_v16 = vld [vmem:[#allocation2 + $0x80] sm:$0xff] (!%p12371_p11) }
  0xd1   : > { %769 = vst [vmem:[#allocation11 + $0x70] sm:$0xff] (!%p12371_p11), %v737_v14  ;;  %v740_v17 = vld [vmem:[#allocation2 + $0x88] sm:$0xff] (!%p12371_p11)  ;;  %770 = vst [vmem:[#allocation11 + $0x78] sm:$0xff] (!%p12371_p11), %v738_v15  ;;  %v741_v18 = vld [vmem:[#allocation2 + $0x90] sm:$0xff] (!%p12371_p11) }
  0xd2   : > { %771 = vst [vmem:[#allocation11 + $0x80] sm:$0xff] %v739_v16  ;;  %772 = vst [vmem:[#allocation11 + $0x88] sm:$0xff] %v740_v17  ;;  %v742_v19 = vld [vmem:[#allocation2 + $0x98] sm:$0xff]  ;;  %v743_v20 = vld [vmem:[#allocation2 + $0xa0] sm:$0xff] }
  0xd3   : > { %773 = vst [vmem:[#allocation11 + $0x90] sm:$0xff] %v741_v18  ;;  %774 = vst [vmem:[#allocation11 + $0x98] sm:$0xff] %v742_v19  ;;  %v744_v21 = vld [vmem:[#allocation2 + $0xa8] sm:$0xff]  ;;  %v745_v22 = vld [vmem:[#allocation2 + $0xb0] sm:$0xff] }
  0xd4   : > { %775 = vst [vmem:[#allocation11 + $0xa0] sm:$0xff] %v743_v20  ;;  %v746_v23 = vld [vmem:[#allocation2 + $0xb8] sm:$0xff]  ;;  %776 = vst [vmem:[#allocation11 + $0xa8] sm:$0xff] %v744_v21  ;;  %v747_v24 = vld [vmem:[#allocation2 + $0xc0] sm:$0xff] }
  0xd5   : > { %777 = vst [vmem:[#allocation11 + $0xb0] sm:$0xff] %v745_v22  ;;  %778 = vst [vmem:[#allocation11 + $0xb8] sm:$0xff] %v746_v23  ;;  %v748_v25 = vld [vmem:[#allocation2 + $0xc8] sm:$0xff]  ;;  %v749_v26 = vld [vmem:[#allocation2 + $0xd0] sm:$0xff] }
  0xd6   : > { %779 = vst [vmem:[#allocation11 + $0xc0] sm:$0xff] %v747_v24  ;;  %780 = vst [vmem:[#allocation11 + $0xc8] sm:$0xff] %v748_v25  ;;  %v750_v27 = vld [vmem:[#allocation2 + $0xd8] sm:$0xff]  ;;  %v751_v28 = vld [vmem:[#allocation2 + $0xe0] sm:$0xff] }
  0xd7   : > { %781 = vst [vmem:[#allocation11 + $0xd0] sm:$0xff] %v749_v26  ;;  %v752_v29 = vld [vmem:[#allocation2 + $0xe8] sm:$0xff]  ;;  %782 = vst [vmem:[#allocation11 + $0xd8] sm:$0xff] %v750_v27  ;;  %v753_v30 = vld [vmem:[#allocation2 + $0xf0] sm:$0xff] }
  0xd8   : > { %783 = vst [vmem:[#allocation11 + $0xe0] sm:$0xff] %v751_v28  ;;  %784 = vst [vmem:[#allocation11 + $0xe8] sm:$0xff] %v752_v29  ;;  %v754_v31 = vld [vmem:[#allocation2 + $0xf8] sm:$0xff] }
  0xd9   : > { %785 = vst [vmem:[#allocation11 + $0xf0] sm:$0xff] %v753_v30  ;;  %786 = vst [vmem:[#allocation11 + $0xf8] sm:$0xff] %v754_v31 }
  0xda PF: > { %v17611_v32 = vld [vmem:[#allocation11] sm:$0xff]  ;;  %v17613_v33 = vld [vmem:[#allocation11 + $0x10] sm:$0xff]  ;;  %v17617_v34 = vld [vmem:[#allocation11 + $0x8] sm:$0xff]  ;;  %s22564_s5 = scalar_lea.vmem %s22272_s1, %s17572_s30  ;;  %s22565_s16 = scalar_lea.vmem %s22273_s2, %s17572_s30  ;;  %vm1797_vm0 = vcmask 261120   ;;  %vm10726_vm2 = vcmask 523264   ;;  %vm10759_vm3 = vcmask 785408  }
  0xdb   : > { %821 = vadd.xlane.f32.xlu0 %v17611_v32  ;;  %825 = vadd.xlane.f32.xlu1 %v17613_v33  ;;  %v17619_v35 = vld [vmem:[#allocation11 + $0x18] sm:$0xff]  ;;  %v17623_v36 = vld [vmem:[#allocation11 + $0x20] sm:$0xff]  ;;  %v17625_v37 = vld [vmem:[#allocation11 + $0x28] sm:$0xff]  ;;  %s17218_s10 = smov 32   ;;  %s23098_s17 = sld [smem:[#allocation149_spill]] }
  0xdc   : > { %v17629_v38 = vld [vmem:[#allocation11 + $0x30] sm:$0xff]  ;;  %v17631_v39 = vld [vmem:[#allocation11 + $0x38] sm:$0xff]  ;;  %v17671_v52 = vld [vmem:[#allocation11 + $0xa0] sm:$0xff]  ;;  %p15546_p10 = scmp.eq.s32.totalorder %s17429_s23, 1 }
  0xdd   : > { %v17635_v40 = vld [vmem:[#allocation11 + $0x48] sm:$0xff]  ;;  %v17637_v41 = vld [vmem:[#allocation11 + $0x40] sm:$0xff]  ;;  %v17665_v50 = vld [vmem:[#allocation11 + $0x98] sm:$0xff] }
  0xde   : > { %v17641_v42 = vld [vmem:[#allocation11 + $0x58] sm:$0xff]  ;;  %v17643_v43 = vld [vmem:[#allocation11 + $0x50] sm:$0xff]  ;;  %v17673_v53 = vld [vmem:[#allocation11 + $0xc0] sm:$0xff] }
  0xdf   : > { %823 = vadd.xlane.f32.xlu0 %v17617_v34  ;;  %827 = vadd.xlane.f32.xlu1 %v17619_v35  ;;  %v17647_v44 = vld [vmem:[#allocation11 + $0x68] sm:$0xff]  ;;  %v17649_v45 = vld [vmem:[#allocation11 + $0x60] sm:$0xff]  ;;  %v17667_v51 = vld [vmem:[#allocation11 + $0x90] sm:$0xff] }
  0xe0   : > { %v17653_v46 = vld [vmem:[#allocation11 + $0x78] sm:$0xff]  ;;  %v17655_v47 = vld [vmem:[#allocation11 + $0x70] sm:$0xff]  ;;  %v17677_v54 = vld [vmem:[#allocation11 + $0xa8] sm:$0xff] }
  0xe1   : > { %v17659_v48 = vld [vmem:[#allocation11 + $0x88] sm:$0xff]  ;;  %v17661_v49 = vld [vmem:[#allocation11 + $0x80] sm:$0xff]  ;;  %v1253_v60 = vld [vmem:[%s17556_s4 + $0x18] sm:$0xff]  ;;  %s23099_s19 = scalar_lea.vmem %s23098_s17, %s17572_s30  ;;  %s17219_s30 = smov [#allocation11]  }
  0xe2   : > { %v17679_v55 = vld [vmem:[#allocation11 + $0xc8] sm:$0xff]  ;;  %v1254_v57 = vld [vmem:[%s17556_s4 + $0x20] sm:$0xff]  ;;  %v1257_v61 = vld [vmem:[%s17556_s4 + $0x38] sm:$0xff]  ;;  %s12136_s3 = sshll.u32 %s17219_s30, 4  ;;  %s12137_s3 = int_to_ptr.vmem [resolvable:$true] %s12136_s3 }
  0xe3   : > { %829 = vadd.xlane.f32.xlu0 %v17623_v36  ;;  %831 = vadd.xlane.f32.xlu1 %v17625_v37  ;;  %v1251_v56 = vld [vmem:[%s17556_s4 + $0x8] sm:$0xff]  ;;  %v1250_v58 = vld [vmem:[%s17556_s4] sm:$0xff]  ;;  %v1260_v62 = vld [vmem:[%s17556_s4 + $0x50] sm:$0xff]  ;;  %p17123_p6 = scmp.lt.s32.totalorder %s12137_s3, %s12137_s3 }
  0xe4   : > { %v14690_v59 = vpack.c.bf16 %v1254_v57, %v1251_v56  ;;  %v14692_v63 = vpack.c.bf16 %v1253_v60, %v1250_v58  ;;  %v14694_v0 = vpack.c.bf16 %v1260_v62, %v1257_v61  ;;  %v1256_v1 = vld [vmem:[%s17556_s4 + $0x30] sm:$0xff]  ;;  %v1259_v2 = vld [vmem:[%s17556_s4 + $0x48] sm:$0xff]  ;;  %v1266_v4 = vld [vmem:[%s17556_s4 + $0x80] sm:$0xff] }
  0xe5   : > { %v1263_v3 = vld [vmem:[%s17556_s4 + $0x68] sm:$0xff]  ;;  %v14696_v5 = vpack.c.bf16 %v1259_v2, %v1256_v1  ;;  %v1262_v7 = vld [vmem:[%s17556_s4 + $0x60] sm:$0xff]  ;;  %v1265_v8 = vld [vmem:[%s17556_s4 + $0x78] sm:$0xff] }
  0xe6   : > { %14691 = vmatprep.subr.bf16.mxu0 %v14690_v59  ;;  %15490 = vmatprep.subr.bf16.mxu1 %v14690_v59  ;;  %v14698_v6 = vpack.c.bf16 %v1266_v4, %v1263_v3  ;;  %v14700_v9 = vpack.c.bf16 %v1265_v8, %v1262_v7  ;;  %v17706_v22 = vld [vmem:[#allocation11 + $0xd0] sm:$0xff]  ;;  %v1269_v61 = vld [vmem:[%s17556_s4 + $0x98] sm:$0xff]  ;;  %v1271_v3 = vld [vmem:[%s17556_s4 + $0xa8] sm:$0xff] }
  0xe7   : > { %833 = vadd.xlane.f32.xlu0 %v17629_v38  ;;  %835 = vadd.xlane.f32.xlu1 %v17631_v39  ;;  %v17716_v29 = vld [vmem:[#allocation11 + $0xb0] sm:$0xff]  ;;  %v1275_v7 = vld [vmem:[%s17556_s4 + $0xc8] sm:$0xff]  ;;  %v1278_v8 = vld [vmem:[%s17556_s4 + $0xe0] sm:$0xff] }
  0xe8   : > { %14693 = vmatpush1.bf16.msra.mxu0 %v14692_v63  ;;  %15498 = vmatpush1.bf16.msra.mxu1 %v14692_v63  ;;  %v1272_v62 = vld [vmem:[%s17556_s4 + $0xb0] sm:$0xff]  ;;  %vm18203_vm1 = vmpackc.low %vm1797_vm0, %vm1797_vm0 }
  0xe9   : > { %14695 = vmatprep.subr.bf16.mxu0 %v14694_v0  ;;  %15491 = vmatprep.subr.bf16.mxu1 %v14694_v0  ;;  %v14702_v1 = vpack.c.bf16 %v1272_v62, %v1269_v61  ;;  %v1268_v2 = vld [vmem:[%s17556_s4 + $0x90] sm:$0xff]  ;;  %v1290_v61 = vld [vmem:[%s17556_s4 + $0x140] sm:$0xff] }
  0xea   : > { %v14704_v4 = vpack.c.bf16 %v1271_v3, %v1268_v2  ;;  %v17770_v62 = vld [vmem:[#allocation11 + $0xf0] sm:$0xff]  ;;  %v1286_v2 = vld [vmem:[%s17556_s4 + $0x120] sm:$0xff]  ;;  %v1289_v3 = vld [vmem:[%s17556_s4 + $0x138] sm:$0xff] }
  0xeb   : > { %839 = vadd.xlane.f32.xlu1 %v17635_v40  ;;  %837 = vadd.xlane.f32.xlu0 %v17637_v41 }
  0xec   : > { %14697 = vmatpush1.bf16.msra.mxu0 %v14696_v5  ;;  %15499 = vmatpush1.bf16.msra.mxu1 %v14696_v5 }
  0xed   : > { %14699 = vmatprep.subr.bf16.mxu0 %v14698_v6  ;;  %15492 = vmatprep.subr.bf16.mxu1 %v14698_v6 }
  0xef   : > { %843 = vadd.xlane.f32.xlu1 %v17641_v42  ;;  %841 = vadd.xlane.f32.xlu0 %v17643_v43 }
  0xf0   : > { %14701 = vmatpush1.bf16.msra.mxu0 %v14700_v9  ;;  %15500 = vmatpush1.bf16.msra.mxu1 %v14700_v9  ;;  %v17746_v9 = vld [vmem:[#allocation11 + $0xe0] sm:$0xff] }
  0xf1   : > { %14703 = vmatprep.subr.bf16.mxu0 %v14702_v1  ;;  %15493 = vmatprep.subr.bf16.mxu1 %v14702_v1 }
  0xf3   : > { %847 = vadd.xlane.f32.xlu1 %v17647_v44  ;;  %845 = vadd.xlane.f32.xlu0 %v17649_v45 }
  0xf4   : > { %14705 = vmatpush1.bf16.msra.mxu0 %v14704_v4  ;;  %15501 = vmatpush1.bf16.msra.mxu1 %v14704_v4 }
  0xf7   : > { %851 = vadd.xlane.f32.xlu1 %v17653_v46  ;;  %849 = vadd.xlane.f32.xlu0 %v17655_v47 }
  0xfb   : > { %855 = vadd.xlane.f32.xlu1 %v17659_v48  ;;  %853 = vadd.xlane.f32.xlu0 %v17661_v49 }
  0xff   : > { %859 = vadd.xlane.f32.xlu1 %v17665_v50  ;;  %857 = vadd.xlane.f32.xlu0 %v17667_v51 }
 0x103   : > { %861 = vadd.xlane.f32.xlu1 %v17671_v52  ;;  %869 = vadd.xlane.f32.xlu0 %v17673_v53 }
 0x107   : > { %863 = vadd.xlane.f32.xlu0 %v17677_v54  ;;  %871 = vadd.xlane.f32.xlu1 %v17679_v55 }
 0x168   : > { %v822_v10 = vpop.xlane.xlu0 %821  ;;  %v826_v11 = vpop.xlane.xlu1 %825 }
 0x169   : > { %v886_v12 = vmul.f32 0.0078125, %v822_v10  ;;  %v888_v14 = vmul.f32 0.0078125, %v826_v11 }
 0x16b   : > { %v17696_v13 = vsub.f32 %v17611_v32, %v886_v12  ;;  %v17704_v21 = vsub.f32 %v17613_v33, %v888_v14  ;;  %v14706_v12 = vpack.c.bf16 %v1278_v8, %v1275_v7  ;;  %v1274_v14 = vld [vmem:[%s17556_s4 + $0xc0] sm:$0xff]  ;;  %v1296_v8 = vld [vmem:[%s17556_s4 + $0x170] sm:$0xff] }
 0x16c   : > { %v824_v15 = vpop.xlane.xlu0 %823  ;;  %v828_v16 = vpop.xlane.xlu1 %827 }
 0x16d   : > { %v887_v17 = vmul.f32 0.0078125, %v824_v15  ;;  %v950_v18 = vmul.f32 %v17696_v13, %v17696_v13  ;;  %v889_v20 = vmul.f32 0.0078125, %v828_v16  ;;  %v952_v26 = vmul.f32 %v17704_v21, %v17704_v21  ;;  %v1277_v15 = vld [vmem:[%s17556_s4 + $0xd8] sm:$0xff]  ;;  %14707 = vmatprep.subr.bf16.mxu0 %v14706_v12  ;;  %15494 = vmatprep.subr.bf16.mxu1 %v14706_v12 }
 0x16e   : > { %v14708_v16 = vpack.c.bf16 %v1277_v15, %v1274_v14  ;;  %v17785_v12 = vld [vmem:[#allocation11 + $0xf8] sm:$0xff] }
 0x16f   : > { %982 = vadd.xlane.f32.xlu0 %v950_v18  ;;  %v17701_v19 = vsub.f32 %v17617_v34, %v887_v17  ;;  %v17714_v28 = vsub.f32 %v17619_v35, %v889_v20  ;;  %v17724_v35 = vld [vmem:[#allocation11 + $0xb8] sm:$0xff] }
 0x170   : > { %v830_v23 = vpop.xlane.xlu0 %829  ;;  %v832_v24 = vpop.xlane.xlu1 %831  ;;  %v1281_v20 = vld [vmem:[%s17556_s4 + $0xf8] sm:$0xff]  ;;  %14709 = vmatpush1.bf16.msra.mxu0 %v14708_v16  ;;  %15502 = vmatpush1.bf16.msra.mxu1 %v14708_v16  ;;  %v1292_v16 = vld [vmem:[%s17556_s4 + $0x150] sm:$0xff] }
 0x171   : > { %v951_v25 = vmul.f32 %v17701_v19, %v17701_v19  ;;  %v890_v27 = vmul.f32 0.0078125, %v830_v23  ;;  %v953_v32 = vmul.f32 %v17714_v28, %v17714_v28  ;;  %v891_v33 = vmul.f32 0.0078125, %v832_v24  ;;  %v1284_v23 = vld [vmem:[%s17556_s4 + $0x110] sm:$0xff]  ;;  %v17758_v24 = vld [vmem:[#allocation11 + $0xe8] sm:$0xff] }
 0x173   : > { %873 = vadd.xlane.f32.xlu0 %v17706_v22  ;;  %984 = vadd.xlane.f32.xlu1 %v951_v25  ;;  %v17722_v34 = vsub.f32 %v17623_v36, %v890_v27  ;;  %v17730_v60 = vsub.f32 %v17625_v37, %v891_v33  ;;  %v17734_v36 = vld [vmem:[#allocation11 + $0xd8] sm:$0xff]  ;;  %v1280_v27 = vld [vmem:[%s17556_s4 + $0xf0] sm:$0xff] }
 0x174   : > { %v834_v30 = vpop.xlane.xlu0 %833  ;;  %v836_v31 = vpop.xlane.xlu1 %835 }
 0x175   : > { %v954_v58 = vmul.f32 %v17722_v34, %v17722_v34  ;;  %v892_v59 = vmul.f32 0.0078125, %v834_v30  ;;  %v955_v37 = vmul.f32 %v17730_v60, %v17730_v60  ;;  %v893_v5 = vmul.f32 0.0078125, %v836_v31  ;;  %v1283_v30 = vld [vmem:[%s17556_s4 + $0x108] sm:$0xff] }
 0x177   : > { %986 = vadd.xlane.f32.xlu0 %v952_v26  ;;  %865 = vadd.xlane.f32.xlu1 %v17716_v29  ;;  %v17742_v6 = vsub.f32 %v17629_v38, %v892_v59  ;;  %v17754_v18 = vsub.f32 %v17631_v39, %v893_v5  ;;  %v14710_v26 = vpack.c.bf16 %v1284_v23, %v1281_v20  ;;  %v1287_v59 = vld [vmem:[%s17556_s4 + $0x128] sm:$0xff] }
 0x178   : > { %v840_v56 = vpop.xlane.xlu1 %839  ;;  %v838_v57 = vpop.xlane.xlu0 %837  ;;  %v14714_v1 = vpack.c.bf16 %v1290_v61, %v1287_v59 }
 0x179   : > { %v956_v38 = vmul.f32 %v17742_v6, %v17742_v6  ;;  %v894_v17 = vmul.f32 0.0078125, %v838_v57  ;;  %14711 = vmatprep.subr.bf16.mxu0 %v14710_v26  ;;  %15495 = vmatprep.subr.bf16.mxu1 %v14710_v26  ;;  %v895_v39 = vmul.f32 0.0078125, %v840_v56  ;;  %v957_v33 = vmul.f32 %v17754_v18, %v17754_v18 }
 0x17b   : > { %867 = vadd.xlane.f32.xlu0 %v17724_v35  ;;  %988 = vadd.xlane.f32.xlu1 %v953_v32  ;;  %v14712_v32 = vpack.c.bf16 %v1283_v30, %v1280_v27  ;;  %v17778_v5 = vsub.f32 %v17635_v40, %v895_v39 }
 0x17c   : > { %v844_v63 = vpop.xlane.xlu1 %843  ;;  %v842_v0 = vpop.xlane.xlu0 %841 }
 0x17d   : > { %v896_v57 = vmul.f32 0.0078125, %v842_v0  ;;  %14713 = vmatpush1.bf16.msra.mxu0 %v14712_v32  ;;  %15503 = vmatpush1.bf16.msra.mxu1 %v14712_v32  ;;  %v897_v4 = vmul.f32 0.0078125, %v844_v63  ;;  %v14716_v0 = vpack.c.bf16 %v1289_v3, %v1286_v2  ;;  %v1293_v63 = vld [vmem:[%s17556_s4 + $0x158] sm:$0xff] }
 0x17e   : > { %14715 = vmatprep.subr.bf16.mxu0 %v14714_v1  ;;  %15496 = vmatprep.subr.bf16.mxu1 %v14714_v1  ;;  %v14718_v15 = vpack.c.bf16 %v1296_v8, %v1293_v63 }
 0x17f   : > { %875 = vadd.xlane.f32.xlu1 %v17734_v36  ;;  %990 = vadd.xlane.f32.xlu0 %v954_v58  ;;  %v17766_v58 = vsub.f32 %v17637_v41, %v894_v17  ;;  %v17781_v7 = vsub.f32 %v17643_v43, %v896_v57  ;;  %v17790_v20 = vsub.f32 %v17641_v42, %v897_v4  ;;  %v17215_v42 = vmov 0.0  }
 0x180   : > { %v848_v10 = vpop.xlane.xlu1 %847  ;;  %v846_v11 = vpop.xlane.xlu0 %845  ;;  %v959_v43 = vmul.f32 %v17778_v5, %v17778_v5  ;;  %1379 = vmatprep.mubr.f32.mxu0 %v17215_v42  ;;  %1523 = vmatprep.mubr.f32.mxu1 %v17215_v42 }
 0x181   : > { %v958_v41 = vmul.f32 %v17766_v58, %v17766_v58  ;;  %14717 = vmatpush1.bf16.msra.mxu0 %v14716_v0  ;;  %15504 = vmatpush1.bf16.msra.mxu1 %v14716_v0  ;;  %v899_v17 = vmul.f32 0.0078125, %v848_v10  ;;  %v961_v27 = vmul.f32 %v17790_v20, %v17790_v20 }
 0x182   : > { %14719 = vmatprep.subr.bf16.mxu0 %v14718_v15  ;;  %15497 = vmatprep.subr.bf16.mxu1 %v14718_v15 }
 0x183   : > { %877 = vadd.xlane.f32.xlu1 %v17746_v9  ;;  %992 = vadd.xlane.f32.xlu0 %v955_v37  ;;  %v898_v37 = vmul.f32 0.0078125, %v846_v11  ;;  %v960_v11 = vmul.f32 %v17781_v7, %v17781_v7  ;;  %v17805_v30 = vsub.f32 %v17647_v44, %v899_v17 }
 0x184   : > { %v850_v25 = vpop.xlane.xlu0 %849  ;;  %v852_v31 = vpop.xlane.xlu1 %851 }
 0x185   : > { %v900_v23 = vmul.f32 0.0078125, %v850_v25  ;;  %v17798_v26 = vsub.f32 %v17649_v45, %v898_v37  ;;  %v901_v25 = vmul.f32 0.0078125, %v852_v31  ;;  %v963_v59 = vmul.f32 %v17805_v30, %v17805_v30 }
 0x187   : > { %879 = vadd.xlane.f32.xlu1 %v17758_v24  ;;  %994 = vadd.xlane.f32.xlu0 %v956_v38  ;;  %v1295_v38 = vld [vmem:[%s17556_s4 + $0x168] sm:$0xff]  ;;  %v962_v45 = vmul.f32 %v17798_v26, %v17798_v26  ;;  %v17817_v31 = vsub.f32 %v17653_v46, %v901_v25 }
 0x188   : > { %v854_v56 = vpop.xlane.xlu0 %853  ;;  %v856_v14 = vpop.xlane.xlu1 %855  ;;  %v14720_v40 = vpack.c.bf16 %v1295_v38, %v1292_v16 }
 0x189   : > { %v902_v39 = vmul.f32 0.0078125, %v854_v56  ;;  %v903_v57 = vmul.f32 0.0078125, %v856_v14  ;;  %v965_v56 = vmul.f32 %v17817_v31, %v17817_v31 }
 0x18a   : > { %14721 = vmatpush1.bf16.msra.mxu0 %v14720_v40  ;;  %15505 = vmatpush1.bf16.msra.mxu1 %v14720_v40 }
 0x18b   : > { %881 = vadd.xlane.f32.xlu1 %v17770_v62  ;;  %996 = vadd.xlane.f32.xlu0 %v957_v33  ;;  %v17810_v33 = vsub.f32 %v17655_v47, %v900_v23  ;;  %v17820_v2 = vsub.f32 %v17661_v49, %v902_v39  ;;  %v17823_v4 = vsub.f32 %v17659_v48, %v903_v57 }
 0x18c   : > { %v858_v10 = vpop.xlane.xlu0 %857  ;;  %v860_v32 = vpop.xlane.xlu1 %859 }
 0x18d   : > { %v964_v44 = vmul.f32 %v17810_v33, %v17810_v33  ;;  %v904_v1 = vmul.f32 0.0078125, %v858_v10  ;;  %v905_v47 = vmul.f32 0.0078125, %v860_v32  ;;  %v966_v0 = vmul.f32 %v17820_v2, %v17820_v2 }
 0x18e   : > { %v967_v49 = vmul.f32 %v17823_v4, %v17823_v4 }
 0x18f   : > { %883 = vadd.xlane.f32.xlu1 %v17785_v12  ;;  %998 = vadd.xlane.f32.xlu0 %v958_v41  ;;  %v17830_v46 = vsub.f32 %v17667_v51, %v904_v1  ;;  %v17835_v63 = vsub.f32 %v17665_v50, %v905_v47 }
 0x190   : > { %v870_v61 = vpop.xlane.xlu0 %869  ;;  %v862_v3 = vpop.xlane.xlu1 %861 }
 0x191   : > { %v906_v41 = vmul.f32 0.0078125, %v862_v3  ;;  %v910_v48 = vmul.f32 0.0078125, %v870_v61  ;;  %v968_v8 = vmul.f32 %v17830_v46, %v17830_v46  ;;  %v969_v51 = vmul.f32 %v17835_v63, %v17835_v63 }
 0x193   : > { %1000 = vadd.xlane.f32.xlu1 %v959_v43  ;;  %1002 = vadd.xlane.f32.xlu0 %v960_v11  ;;  %v17840_v15 = vsub.f32 %v17671_v52, %v906_v41  ;;  %v17847_v17 = vsub.f32 %v17673_v53, %v910_v48 }
 0x194   : > { %v864_v37 = vpop.xlane.xlu0 %863  ;;  %v872_v16 = vpop.xlane.xlu1 %871 }
 0x195   : > { %v907_v14 = vmul.f32 0.0078125, %v864_v37  ;;  %v970_v50 = vmul.f32 %v17840_v15, %v17840_v15  ;;  %v911_v38 = vmul.f32 0.0078125, %v872_v16  ;;  %v974_v52 = vmul.f32 %v17847_v17, %v17847_v17 }
 0x197   : > { %1004 = vadd.xlane.f32.xlu1 %v961_v27  ;;  %1006 = vadd.xlane.f32.xlu0 %v962_v45  ;;  %v17850_v40 = vsub.f32 %v17677_v54, %v907_v14  ;;  %v17857_v11 = vsub.f32 %v17679_v55, %v911_v38 }
 0x199   : > { %v971_v43 = vmul.f32 %v17850_v40, %v17850_v40  ;;  %v975_v53 = vmul.f32 %v17857_v11, %v17857_v11 }
 0x19b   : > { %1008 = vadd.xlane.f32.xlu1 %v963_v59  ;;  %1010 = vadd.xlane.f32.xlu0 %v964_v44 }
 0x19f   : > { %1012 = vadd.xlane.f32.xlu1 %v965_v56  ;;  %1014 = vadd.xlane.f32.xlu0 %v966_v0 }
 0x1a3   : > { %1016 = vadd.xlane.f32.xlu1 %v967_v49  ;;  %1018 = vadd.xlane.f32.xlu0 %v968_v8 }
 0x1a7   : > { %1020 = vadd.xlane.f32.xlu1 %v969_v51  ;;  %1022 = vadd.xlane.f32.xlu0 %v970_v50 }
 0x1ab   : > { %1030 = vadd.xlane.f32.xlu1 %v974_v52  ;;  %1024 = vadd.xlane.f32.xlu0 %v971_v43 }
 0x1af   : > { %1032 = vadd.xlane.f32.xlu1 %v975_v53 }
 0x1fc   : > { %v983_v23 = vpop.xlane.xlu0 %982 }
 0x1fd   : > { %v1046_v54 = vmul.f32 0.0078125, %v983_v23 }
 0x1ff   : > { %v1078_v10 = vadd.f32 1e-05, %v1046_v54 }
 0x200   : > { %v985_v27 = vpop.xlane.xlu1 %984  ;;  %v874_v32 = vpop.xlane.xlu0 %873 }
 0x201   : > { %16328 = vrsqrt.f32 %v1078_v10  ;;  %v1047_v25 = vmul.f32 0.0078125, %v985_v27  ;;  %v912_v45 = vmul.f32 0.0078125, %v874_v32 }
 0x203   : > { %v1079_v39 = vadd.f32 1e-05, %v1047_v25  ;;  %v17862_v57 = vsub.f32 %v17706_v22, %v912_v45 }
 0x204   : > { %v866_v55 = vpop.xlane.xlu1 %865  ;;  %v987_v59 = vpop.xlane.xlu0 %986 }
 0x205   : > { %16330 = vrsqrt.f32 %v1079_v39  ;;  %v908_v61 = vmul.f32 0.0078125, %v866_v55  ;;  %v1048_v44 = vmul.f32 0.0078125, %v987_v59  ;;  %v976_v1 = vmul.f32 %v17862_v57, %v17862_v57 }
 0x207   : > { %v1080_v3 = vadd.f32 1e-05, %v1048_v44  ;;  %1034 = vadd.xlane.f32.xlu1 %v976_v1  ;;  %v17867_v47 = vsub.f32 %v17716_v29, %v908_v61  ;;  %v17879_v29 = vld [vmem:[%s22564_s5] ss:$0 sm:$0xff] }
 0x208   : > { %v989_v56 = vpop.xlane.xlu1 %988  ;;  %v868_v0 = vpop.xlane.xlu0 %867 }
 0x209   : > { %16332 = vrsqrt.f32 %v1080_v3  ;;  %v1049_v22 = vmul.f32 0.0078125, %v989_v56  ;;  %v909_v41 = vmul.f32 0.0078125, %v868_v0  ;;  %v972_v37 = vmul.f32 %v17867_v47, %v17867_v47 }
 0x20b   : > { %v16329_v49 = vpop.eup %16328  ;;  %v1081_v48 = vadd.f32 1e-05, %v1049_v22  ;;  %1026 = vadd.xlane.f32.xlu0 %v972_v37  ;;  %v17872_v8 = vsub.f32 %v17724_v35, %v909_v41  ;;  %v17889_v35 = vld [vmem:[%s22565_s16] ss:$0 sm:$0xff] }
 0x20c   : > { %v876_v14 = vpop.xlane.xlu1 %875  ;;  %v991_v16 = vpop.xlane.xlu0 %990  ;;  %v1142_v51 = vmul.f32 %v16329_v49, %v17696_v13 }
 0x20d   : > { %16334 = vrsqrt.f32 %v1081_v48  ;;  %v913_v50 = vmul.f32 0.0078125, %v876_v14  ;;  %v1050_v38 = vmul.f32 0.0078125, %v991_v16  ;;  %v973_v52 = vmul.f32 %v17872_v8, %v17872_v8 }
 0x20e   : > { %v1180_v43 = vmul.f32 %v17879_v29, %v1142_v51 }
 0x20f   : > { %v16331_v53 = vpop.eup %16330  ;;  %v1082_v23 = vadd.f32 1e-05, %v1050_v38  ;;  %1028 = vadd.xlane.f32.xlu0 %v973_v52  ;;  %v17893_v54 = vsub.f32 %v17734_v36, %v913_v50 }
 0x210   : > { %v878_v13 = vpop.xlane.xlu1 %877  ;;  %v993_v10 = vpop.xlane.xlu0 %992  ;;  %v17896_v27 = vadd.f32 %v17889_v35, %v1180_v43  ;;  %v1143_v32 = vmul.f32 %v16331_v53, %v17701_v19 }
 0x211   : > { %16336 = vrsqrt.f32 %v1082_v23  ;;  %v914_v25 = vmul.f32 0.0078125, %v878_v13  ;;  %v1051_v45 = vmul.f32 0.0078125, %v993_v10  ;;  %v977_v39 = vmul.f32 %v17893_v54, %v17893_v54 }
 0x212   : > { %1380 = vmatmul.mubr.f32.vlgmr.msra.gmra.mrb[0].mxu0 %v17896_v27  ;;  %v1181_v55 = vmul.f32 %v17879_v29, %v1143_v32 }
 0x213   : > { %v16333_v59 = vpop.eup %16332  ;;  %v1083_v36 = vadd.f32 1e-05, %v1051_v45  ;;  %1036 = vadd.xlane.f32.xlu1 %v977_v39  ;;  %1385 = vmatprep.mubr.f32.mxu0 %v17215_v42  ;;  %v17905_v61 = vsub.f32 %v17746_v9, %v914_v25 }
 0x214   : > { %v880_v44 = vpop.xlane.xlu1 %879  ;;  %v995_v19 = vpop.xlane.xlu0 %994  ;;  %v17908_v1 = vadd.f32 %v17889_v35, %v1181_v55  ;;  %v1144_v3 = vmul.f32 %v16333_v59, %v17704_v21 }
 0x215   : > { %16338 = vrsqrt.f32 %v1083_v36  ;;  %v915_v56 = vmul.f32 0.0078125, %v880_v44  ;;  %v1052_v0 = vmul.f32 0.0078125, %v995_v19  ;;  %v978_v22 = vmul.f32 %v17905_v61, %v17905_v61 }
 0x216   : > { %1386 = vmatmul.mubr.f32.gmra.mrb[2].mxu0 %v17908_v1  ;;  %v1182_v41 = vmul.f32 %v17879_v29, %v1144_v3 }
 0x217   : > { %v16335_v37 = vpop.eup %16334  ;;  %v1084_v9 = vadd.f32 1e-05, %v1052_v0  ;;  %1038 = vadd.xlane.f32.xlu0 %v978_v22  ;;  %1391 = vmatprep.mubr.f32.mxu0 %v17215_v42  ;;  %v17917_v49 = vsub.f32 %v17758_v24, %v915_v56 }
 0x218   : > { %v882_v48 = vpop.xlane.xlu1 %881  ;;  %v997_v21 = vpop.xlane.xlu0 %996  ;;  %v17920_v14 = vadd.f32 %v17889_v35, %v1182_v41  ;;  %v1145_v16 = vmul.f32 %v16335_v37, %v17714_v28 }
 0x219   : > { %16340 = vrsqrt.f32 %v1084_v9  ;;  %v916_v51 = vmul.f32 0.0078125, %v882_v48  ;;  %v1053_v50 = vmul.f32 0.0078125, %v997_v21  ;;  %v979_v38 = vmul.f32 %v17917_v49, %v17917_v49 }
 0x21a   : > { %1392 = vmatmul.mubr.f32.gmra.mrb[4].mxu0 %v17920_v14  ;;  %v1183_v52 = vmul.f32 %v17879_v29, %v1145_v16 }
 0x21b   : > { %v16337_v43 = vpop.eup %16336  ;;  %v1085_v24 = vadd.f32 1e-05, %v1053_v50  ;;  %1040 = vadd.xlane.f32.xlu1 %v979_v38  ;;  %1397 = vmatprep.mubr.f32.mxu0 %v17215_v42  ;;  %v17929_v53 = vsub.f32 %v17770_v62, %v916_v51 }
 0x21c   : > { %v884_v23 = vpop.xlane.xlu1 %883  ;;  %v999_v28 = vpop.xlane.xlu0 %998  ;;  %v17932_v13 = vadd.f32 %v17889_v35, %v1183_v52  ;;  %v1146_v10 = vmul.f32 %v16337_v43, %v17722_v34 }
 0x21d   : > { %16342 = vrsqrt.f32 %v1085_v24  ;;  %v917_v32 = vmul.f32 0.0078125, %v884_v23  ;;  %v1054_v25 = vmul.f32 0.0078125, %v999_v28  ;;  %v980_v45 = vmul.f32 %v17929_v53, %v17929_v53 }
 0x21e   : > { %1398 = vmatmul.mubr.f32.gmra.mrb[6].mxu0 %v17932_v13  ;;  %v1184_v39 = vmul.f32 %v17879_v29, %v1146_v10 }
 0x21f   : > { %v16339_v55 = vpop.eup %16338  ;;  %v1086_v62 = vadd.f32 1e-05, %v1054_v25  ;;  %1042 = vadd.xlane.f32.xlu0 %v980_v45  ;;  %1403 = vmatprep.mubr.f32.mxu0 %v17215_v42  ;;  %v17941_v59 = vsub.f32 %v17785_v12, %v917_v32  ;;  %v1252_v32 = vld [vmem:[%s17556_s4 + $0x10] sm:$0xff]  ;;  %v1255_v25 = vld [vmem:[%s17556_s4 + $0x28] sm:$0xff] }
 0x220   : > { %v1001_v36 = vpop.xlane.xlu1 %1000  ;;  %v1003_v34 = vpop.xlane.xlu0 %1002  ;;  %v17944_v44 = vadd.f32 %v17889_v35, %v1184_v39  ;;  %v1147_v19 = vmul.f32 %v16339_v55, %v17730_v60  ;;  %v17967_v39 = vpack.c.bf16 %v1255_v25, %v1252_v32 }
 0x221   : > { %16344 = vrsqrt.f32 %v1086_v62  ;;  %v1055_v3 = vmul.f32 0.0078125, %v1001_v36  ;;  %v1056_v56 = vmul.f32 0.0078125, %v1003_v34  ;;  %v981_v0 = vmul.f32 %v17941_v59, %v17941_v59 }
 0x222   : > { %1404 = vmatmul.mubr.f32.gmra.mrb[8].mxu0 %v17944_v44  ;;  %v1185_v22 = vmul.f32 %v17879_v29, %v1147_v19  ;;  %14723 = vmatprep.subr.bf16.mxu1 %v17967_v39 }
 0x223   : > { %v16341_v41 = vpop.eup %16340  ;;  %v1087_v12 = vadd.f32 1e-05, %v1055_v3  ;;  %v1088_v37 = vadd.f32 1e-05, %v1056_v56  ;;  %1044 = vadd.xlane.f32.xlu1 %v981_v0  ;;  %1409 = vmatprep.mubr.f32.mxu0 %v17215_v42 }
 0x224   : > { %v1005_v9 = vpop.xlane.xlu1 %1004  ;;  %v1007_v48 = vpop.xlane.xlu0 %1006  ;;  %v17953_v60 = vadd.f32 %v17889_v35, %v1185_v22  ;;  %v1148_v21 = vmul.f32 %v16341_v41, %v17742_v6 }
 0x225   : > { %16346 = vrsqrt.f32 %v1087_v12  ;;  %v1057_v16 = vmul.f32 0.0078125, %v1005_v9  ;;  %v1058_v51 = vmul.f32 0.0078125, %v1007_v48 }
 0x226   : > { %16348 = vrsqrt.f32 %v1088_v37  ;;  %1410 = vmatmul.mubr.f32.gmra.mrb[10].mxu0 %v17953_v60  ;;  %v1186_v50 = vmul.f32 %v17879_v29, %v1148_v21 }
 0x227   : > { %v16343_v38 = vpop.eup %16342  ;;  %v1089_v52 = vadd.f32 1e-05, %v1057_v16  ;;  %v1090_v43 = vadd.f32 1e-05, %v1058_v51  ;;  %1415 = vmatprep.mubr.f32.mxu0 %v17215_v42 }
 0x228   : > { %v1009_v24 = vpop.xlane.xlu1 %1008  ;;  %v1011_v23 = vpop.xlane.xlu0 %1010  ;;  %v17960_v28 = vadd.f32 %v17889_v35, %v1186_v50  ;;  %v1149_v6 = vmul.f32 %v16343_v38, %v17754_v18 }
 0x229   : > { %16350 = vrsqrt.f32 %v1089_v52  ;;  %v1059_v10 = vmul.f32 0.0078125, %v1009_v24  ;;  %v1060_v36 = vmul.f32 0.0078125, %v1011_v23 }
 0x22a   : > { %1416 = vmatmul.mubr.f32.gmra.mrb[12].mxu0 %v17960_v28  ;;  %v1187_v45 = vmul.f32 %v17879_v29, %v1149_v6  ;;  %16352 = vrsqrt.f32 %v1090_v43 }
 0x22b   : > { %v16345_v55 = vpop.eup %16344  ;;  %v1091_v62 = vadd.f32 1e-05, %v1059_v10  ;;  %1421 = vmatprep.mubr.f32.mxu0 %v17215_v42  ;;  %v1092_v0 = vadd.f32 1e-05, %v1060_v36 }
 0x22c   : > { %v1013_v34 = vpop.xlane.xlu1 %1012  ;;  %v17971_v19 = vadd.f32 %v17889_v35, %v1187_v45  ;;  %v1150_v18 = vmul.f32 %v16345_v55, %v17766_v58  ;;  %v1015_v41 = vpop.xlane.xlu0 %1014 }
 0x22d   : > { %16354 = vrsqrt.f32 %v1091_v62  ;;  %v1061_v22 = vmul.f32 0.0078125, %v1013_v34  ;;  %v1062_v21 = vmul.f32 0.0078125, %v1015_v41 }
 0x22e   : > { %1422 = vmatmul.mubr.f32.gmra.mrb[14].mxu0 %v17971_v19  ;;  %v1188_v3 = vmul.f32 %v17879_v29, %v1150_v18  ;;  %16356 = vrsqrt.f32 %v1092_v0 }
 0x22f   : > { %v16347_v56 = vpop.eup %16346  ;;  %1427 = vmatprep.mubr.f32.mxu0 %v17215_v42  ;;  %v1093_v50 = vadd.f32 1e-05, %v1061_v22 }
 0x230   : > { %v16349_v12 = vpop.eup %16348  ;;  %v1017_v37 = vpop.xlane.xlu1 %1016  ;;  %v17979_v9 = vadd.f32 %v17889_v35, %v1188_v3  ;;  %v1151_v58 = vmul.f32 %v16347_v56, %v17778_v5 }
 0x231   : > { %v1152_v48 = vmul.f32 %v16349_v12, %v17781_v7  ;;  %v1094_v7 = vadd.f32 1e-05, %v1062_v21  ;;  %16358 = vrsqrt.f32 %v1093_v50  ;;  %v1063_v23 = vmul.f32 0.0078125, %v1017_v37  ;;  %v1019_v6 = vpop.xlane.xlu0 %1018 }
 0x232   : > { %1428 = vmatmul.mubr.f32.gmra.mrb[16].mxu0 %v17979_v9  ;;  %v1189_v16 = vmul.f32 %v17879_v29, %v1151_v58  ;;  %v1064_v36 = vmul.f32 0.0078125, %v1019_v6 }
 0x233   : > { %v16351_v51 = vpop.eup %16350  ;;  %1433 = vmatprep.mubr.f32.mxu0 %v17215_v42  ;;  %v1190_v43 = vmul.f32 %v17879_v29, %v1152_v48  ;;  %16360 = vrsqrt.f32 %v1094_v7 }
 0x234   : > { %v1021_v38 = vpop.xlane.xlu1 %1020  ;;  %v17987_v52 = vadd.f32 %v17889_v35, %v1189_v16  ;;  %v1153_v5 = vmul.f32 %v16351_v51, %v17790_v20  ;;  %v16353_v24 = vpop.eup %16352  ;;  %v1095_v20 = vadd.f32 1e-05, %v1063_v23  ;;  %v1096_v12 = vadd.f32 1e-05, %v1064_v36  ;;  %v1261_v36 = vld [vmem:[%s17556_s4 + $0x58] sm:$0xff] }
 0x235   : > { %v17994_v32 = vadd.f32 %v17889_v35, %v1190_v43  ;;  %v1154_v45 = vmul.f32 %v16353_v24, %v17798_v26  ;;  %v1023_v41 = vpop.xlane.xlu0 %1022  ;;  %v1065_v37 = vmul.f32 0.0078125, %v1021_v38 }
 0x236   : > { %1434 = vmatmul.mubr.f32.gmra.mrb[18].mxu0 %v17987_v52  ;;  %v1191_v25 = vmul.f32 %v17879_v29, %v1153_v5  ;;  %v1066_v50 = vmul.f32 0.0078125, %v1023_v41 }
 0x237   : > { %1439 = vmatprep.mubr.f32.mxu0 %v17215_v42  ;;  %v16355_v55 = vpop.eup %16354  ;;  %v1192_v56 = vmul.f32 %v17879_v29, %v1154_v45  ;;  %v1097_v51 = vadd.f32 1e-05, %v1065_v37  ;;  %v1264_v37 = vld [vmem:[%s17556_s4 + $0x70] sm:$0xff] }
 0x238   : > { %v1031_v10 = vpop.xlane.xlu1 %1030  ;;  %v18001_v3 = vadd.f32 %v17889_v35, %v1191_v25  ;;  %v1155_v0 = vmul.f32 %v16355_v55, %v17805_v30  ;;  %v16357_v22 = vpop.eup %16356  ;;  %v1098_v23 = vadd.f32 1e-05, %v1066_v50  ;;  %v1270_v50 = vld [vmem:[%s17556_s4 + $0xa0] sm:$0xff] }
 0x239   : > { %v1070_v62 = vmul.f32 0.0078125, %v1031_v10  ;;  %v18008_v48 = vadd.f32 %v17889_v35, %v1192_v56  ;;  %v1156_v16 = vmul.f32 %v16357_v22, %v17810_v33  ;;  %v1025_v43 = vpop.xlane.xlu0 %1024 }
 0x23a   : > { %1440 = vmatmul.mubr.f32.gmra.mrb[20].mxu0 %v17994_v32  ;;  %v1193_v21 = vmul.f32 %v17879_v29, %v1155_v0  ;;  %v1067_v6 = vmul.f32 0.0078125, %v1025_v43 }
 0x23b   : > { %v1102_v34 = vadd.f32 1e-05, %v1070_v62  ;;  %1445 = vmatprep.mubr.f32.mxu0 %v17215_v42  ;;  %v16359_v30 = vpop.eup %16358  ;;  %v1194_v24 = vmul.f32 %v17879_v29, %v1156_v16 }
 0x23c   : > { %v1033_v18 = vpop.xlane.xlu1 %1032  ;;  %v18015_v5 = vadd.f32 %v17889_v35, %v1193_v21  ;;  %v1157_v33 = vmul.f32 %v16359_v30, %v17817_v31 }
 0x23d   : > { %16362 = vrsqrt.f32 %v1102_v34  ;;  %v1071_v26 = vmul.f32 0.0078125, %v1033_v18  ;;  %v16361_v38 = vpop.eup %16360  ;;  %v18023_v25 = vadd.f32 %v17889_v35, %v1194_v24  ;;  %v1099_v18 = vadd.f32 1e-05, %v1067_v6 }
 0x23e   : > { %1446 = vmatmul.mubr.f32.gmra.mrb[22].mxu0 %v18001_v3  ;;  %16364 = vrsqrt.f32 %v1095_v20  ;;  %v1158_v10 = vmul.f32 %v16361_v38, %v17820_v2  ;;  %v1195_v45 = vmul.f32 %v17879_v29, %v1157_v33  ;;  %v1258_v20 = vld [vmem:[%s17556_s4 + $0x40] sm:$0xff]  ;;  %v1273_v38 = vld [vmem:[%s17556_s4 + $0xb8] sm:$0xff] }
 0x23f   : > { %v1103_v58 = vadd.f32 1e-05, %v1071_v26  ;;  %1451 = vmatprep.mubr.f32.mxu0 %v17215_v42  ;;  %v14726_v41 = vpack.c.bf16 %v1261_v36, %v1258_v20  ;;  %v14734_v33 = vpack.c.bf16 %v1273_v38, %v1270_v50 }
 0x240   : > { %v1196_v2 = vmul.f32 %v17879_v29, %v1158_v10  ;;  %v18034_v56 = vadd.f32 %v17889_v35, %v1195_v45 }
 0x241   : > { %16366 = vrsqrt.f32 %v1103_v58  ;;  %v1267_v58 = vld [vmem:[%s17556_s4 + $0x88] sm:$0xff] }
 0x242   : > { %1452 = vmatmul.mubr.f32.gmra.mrb[24].mxu0 %v18008_v48  ;;  %16368 = vrsqrt.f32 %v1096_v12 }
 0x243   : > { %1457 = vmatprep.mubr.f32.mxu0 %v17215_v42  ;;  %16370 = vrsqrt.f32 %v1097_v51  ;;  %v14730_v51 = vpack.c.bf16 %v1267_v58, %v1264_v37 }
 0x244   : > { %16372 = vrsqrt.f32 %v1098_v23  ;;  %v1279_v23 = vld [vmem:[%s17556_s4 + $0xe8] sm:$0xff] }
 0x245   : > { %16374 = vrsqrt.f32 %v1099_v18  ;;  %v1288_v18 = vld [vmem:[%s17556_s4 + $0x130] sm:$0xff] }
 0x246   : > { %1458 = vmatmul.mubr.f32.gmra.mrb[26].mxu0 %v18015_v5 }
 0x247   : > { %v16363_v7 = vpop.eup %16362  ;;  %1463 = vmatprep.mubr.f32.mxu0 %v17215_v42 }
 0x248   : > { %v1166_v55 = vmul.f32 %v16363_v7, %v17847_v17  ;;  %v16365_v62 = vpop.eup %16364  ;;  %v1276_v7 = vld [vmem:[%s17556_s4 + $0xd0] sm:$0xff] }
 0x249   : > { %v1159_v22 = vmul.f32 %v16365_v62, %v17823_v4  ;;  %v1282_v62 = vld [vmem:[%s17556_s4 + $0x100] sm:$0xff] }
 0x24a   : > { %1464 = vmatmul.mubr.f32.gmra.mrb[28].mxu0 %v18023_v25  ;;  %v1204_v31 = vmul.f32 %v17879_v29, %v1166_v55  ;;  %v14738_v55 = vpack.c.bf16 %v1279_v23, %v1276_v7 }
 0x24b   : > { %v16367_v34 = vpop.eup %16366  ;;  %1469 = vmatprep.mubr.f32.mxu0 %v17215_v42  ;;  %v1197_v21 = vmul.f32 %v17879_v29, %v1159_v22 }
 0x24c   : > { %v18037_v17 = vadd.f32 %v17889_v35, %v1204_v31  ;;  %v1167_v0 = vmul.f32 %v16367_v34, %v17857_v11  ;;  %v16369_v26 = vpop.eup %16368  ;;  %v18049_v11 = vadd.f32 %v17889_v35, %v1196_v2  ;;  %v1285_v31 = vld [vmem:[%s17556_s4 + $0x118] sm:$0xff]  ;;  %v1291_v2 = vld [vmem:[%s17556_s4 + $0x148] sm:$0xff] }
 0x24d   : > { %v1160_v16 = vmul.f32 %v16369_v26, %v17830_v46  ;;  %v16371_v30 = vpop.eup %16370  ;;  %v18064_v43 = vadd.f32 %v17889_v35, %v1197_v21  ;;  %v14742_v34 = vpack.c.bf16 %v1285_v31, %v1282_v62  ;;  %v14746_v26 = vpack.c.bf16 %v1291_v2, %v1288_v18 }
 0x24e   : > { %1470 = vmatmul.mubr.f32.gmra.mrb[30].mxu0 %v18034_v56  ;;  %1524 = vmatmul.mubr.f32.vlgmr.msra.gmra.mrb[0].mxu1 %v18037_v17  ;;  %v1205_v12 = vmul.f32 %v17879_v29, %v1167_v0  ;;  %v16373_v24 = vpop.eup %16372 }
 0x24f   : > { %1475 = vmatprep.mubr.f32.mxu0 %v17215_v42  ;;  %1529 = vmatprep.mubr.f32.mxu1 %v17215_v42  ;;  %v1198_v46 = vmul.f32 %v17879_v29, %v1160_v16  ;;  %v1162_v45 = vmul.f32 %v16373_v24, %v17840_v15 }
 0x250   : > { %v18052_v4 = vadd.f32 %v17889_v35, %v1205_v12  ;;  %14725 = vmatpush3.bf16.msra.mxu1 %v17967_v39  ;;  %v1161_v39 = vmul.f32 %v16371_v30, %v17835_v63  ;;  %v16375_v63 = vpop.eup %16374 }
 0x251   : > { %14727 = vmatprep.subr.bf16.mxu1 %v14726_v41  ;;  %v18073_v6 = vadd.f32 %v17889_v35, %v1198_v46  ;;  %v1200_v36 = vmul.f32 %v17879_v29, %v1162_v45  ;;  %v1163_v15 = vmul.f32 %v16375_v63, %v17850_v40  ;;  %v1294_v40 = vld [vmem:[%s17556_s4 + $0x160] sm:$0xff] }
 0x252   : > { %1476 = vmatmul.mubr.f32.gmra.mrb[32].mxu0 %v18049_v11  ;;  %1530 = vmatmul.mubr.f32.gmra.mrb[2].mxu1 %v18052_v4  ;;  %v1199_v10 = vmul.f32 %v17879_v29, %v1161_v39 }
 0x253   : > { %1481 = vmatprep.mubr.f32.mxu0 %v17215_v42  ;;  %1535 = vmatprep.mubr.f32.mxu1 %v17215_v42  ;;  %v18091_v0 = vadd.f32 %v17889_v35, %v1200_v36  ;;  %v1201_v22 = vmul.f32 %v17879_v29, %v1163_v15 }
 0x254   : > { %14729 = vmatpush3.bf16.msra.mxu1 %v14726_v41  ;;  %v18082_v20 = vadd.f32 %v17889_v35, %v1199_v10  ;;  %v1297_v41 = vld [vmem:[%s17556_s4 + $0x178] sm:$0xff]  ;;  %s17217_s4 = smov 64  }
 0x255   : > { %14731 = vmatprep.subr.bf16.mxu1 %v14730_v51  ;;  %v18099_v12 = vadd.f32 %v17889_v35, %v1201_v22  ;;  %v14750_v37 = vpack.c.bf16 %v1297_v41, %v1294_v40 }
 0x256   : > { %1482 = vmatmul.mubr.f32.gmra.mrb[34].mxu0 %v18064_v43 }
 0x257   : > { %1487 = vmatprep.mubr.f32.mxu0 %v17215_v42 }
 0x258   : > { %14733 = vmatpush3.bf16.msra.mxu1 %v14730_v51 }
 0x259   : > { %14735 = vmatprep.subr.bf16.mxu1 %v14734_v33 }
 0x25a   : > { %1488 = vmatmul.mubr.f32.gmra.mrb[36].mxu0 %v18073_v6 }
 0x25b   : > { %1493 = vmatprep.mubr.f32.mxu0 %v17215_v42 }
 0x25c   : > { %14737 = vmatpush3.bf16.msra.mxu1 %v14734_v33 }
 0x25d   : > { %14739 = vmatprep.subr.bf16.mxu1 %v14738_v55 }
 0x25e   : > { %1494 = vmatmul.mubr.f32.gmra.mrb[38].mxu0 %v18082_v20 }
 0x25f   : > { %1499 = vmatprep.mubr.f32.mxu0 %v17215_v42 }
 0x260   : > { %14741 = vmatpush3.bf16.msra.mxu1 %v14738_v55 }
 0x261   : > { %14743 = vmatprep.subr.bf16.mxu1 %v14742_v34 }
 0x262   : > { %1500 = vmatmul.mubr.f32.gmra.mrb[40].mxu0 %v18091_v0 }
 0x263   : > { %1505 = vmatprep.mubr.f32.mxu0 %v17215_v42 }
 0x264   : > { %14745 = vmatpush3.bf16.msra.mxu1 %v14742_v34 }
 0x265   : > { %14747 = vmatprep.subr.bf16.mxu1 %v14746_v26 }
 0x266   : > { %1506 = vmatmul.mubr.f32.gmra.mrb[42].mxu0 %v18099_v12 }
 0x267   : > { %1511 = vmatprep.mubr.f32.mxu0 %v17215_v42 }
 0x268   : > { %14749 = vmatpush3.bf16.msra.mxu1 %v14746_v26 }
 0x269   : > { %14751 = vmatprep.subr.bf16.mxu1 %v14750_v37 }
 0x26c   : > { %14753 = vmatpush3.bf16.msra.mxu1 %v14750_v37 }
 0x294   : > { %v1035_v58 = vpop.xlane.xlu1 %1034 }
 0x295   : > { %v1072_v21 = vmul.f32 0.0078125, %v1035_v58 }
 0x297   : > { %v1104_v16 = vadd.f32 1e-05, %v1072_v21 }
 0x298   : > { %v1027_v30 = vpop.xlane.xlu0 %1026 }
 0x299   : > { %16376 = vrsqrt.f32 %v1104_v16  ;;  %v1068_v51 = vmul.f32 0.0078125, %v1027_v30 }
 0x29b   : > { %v1100_v50 = vadd.f32 1e-05, %v1068_v51 }
 0x29c   : > { %v1029_v38 = vpop.xlane.xlu0 %1028 }
 0x29d   : > { %16378 = vrsqrt.f32 %v1100_v50  ;;  %v1069_v46 = vmul.f32 0.0078125, %v1029_v38 }
 0x29f   : > { %v1101_v39 = vadd.f32 1e-05, %v1069_v46 }
 0x2a0   : > { %v1037_v24 = vpop.xlane.xlu1 %1036 }
 0x2a1   : > { %16380 = vrsqrt.f32 %v1101_v39  ;;  %v1073_v33 = vmul.f32 0.0078125, %v1037_v24 }
 0x2a3   : > { %v16377_v7 = vpop.eup %16376  ;;  %v1105_v23 = vadd.f32 1e-05, %v1073_v33 }
 0x2a4   : > { %v1039_v10 = vpop.xlane.xlu0 %1038  ;;  %v1168_v45 = vmul.f32 %v16377_v7, %v17862_v57 }
 0x2a5   : > { %16382 = vrsqrt.f32 %v1105_v23  ;;  %v1074_v63 = vmul.f32 0.0078125, %v1039_v10 }
 0x2a6   : > { %v1206_v55 = vmul.f32 %v17879_v29, %v1168_v45 }
 0x2a7   : > { %v16379_v62 = vpop.eup %16378  ;;  %v1106_v31 = vadd.f32 1e-05, %v1074_v63 }
 0x2a8   : > { %v1041_v36 = vpop.xlane.xlu1 %1040  ;;  %v18106_v15 = vadd.f32 %v17889_v35, %v1206_v55  ;;  %v1164_v34 = vmul.f32 %v16379_v62, %v17867_v47 }
 0x2a9   : > { %16384 = vrsqrt.f32 %v1106_v31  ;;  %v1075_v18 = vmul.f32 0.0078125, %v1041_v36 }
 0x2aa   : > { %1536 = vmatmul.mubr.f32.gmra.mrb[4].mxu1 %v18106_v15  ;;  %v1202_v2 = vmul.f32 %v17879_v29, %v1164_v34 }
 0x2ab   : > { %v16381_v22 = vpop.eup %16380  ;;  %v1107_v57 = vadd.f32 1e-05, %v1075_v18  ;;  %1541 = vmatprep.mubr.f32.mxu1 %v17215_v42 }
 0x2ac   : > { %v1043_v26 = vpop.xlane.xlu0 %1042  ;;  %v18113_v40 = vadd.f32 %v17889_v35, %v1202_v2  ;;  %v1165_v41 = vmul.f32 %v16381_v22, %v17872_v8 }
 0x2ad   : > { %16386 = vrsqrt.f32 %v1107_v57  ;;  %v1076_v37 = vmul.f32 0.0078125, %v1043_v26 }
 0x2ae   : > { %1512 = vmatmul.mubr.f32.gmra.mrb[44].mxu0 %v18113_v40  ;;  %v1203_v47 = vmul.f32 %v17879_v29, %v1165_v41 }
 0x2af   : > { %v16383_v58 = vpop.eup %16382  ;;  %v1108_v21 = vadd.f32 1e-05, %v1076_v37  ;;  %1517 = vmatprep.mubr.f32.mxu0 %v17215_v42 }
 0x2b0   : > { %v1045_v16 = vpop.xlane.xlu1 %1044  ;;  %v18120_v30 = vadd.f32 %v17889_v35, %v1203_v47  ;;  %v1169_v51 = vmul.f32 %v16383_v58, %v17893_v54 }
 0x2b1   : > { %16388 = vrsqrt.f32 %v1108_v21  ;;  %v1077_v50 = vmul.f32 0.0078125, %v1045_v16 }
 0x2b2   : > { %1518 = vmatmul.mubr.f32.gmra.mrb[46].mxu0 %v18120_v30  ;;  %v1207_v8 = vmul.f32 %v17879_v29, %v1169_v51 }
 0x2b3   : > { %v16385_v38 = vpop.eup %16384  ;;  %v1109_v46 = vadd.f32 1e-05, %v1077_v50 }
 0x2b4   : > { %v18126_v39 = vadd.f32 %v17889_v35, %v1207_v8  ;;  %v1170_v24 = vmul.f32 %v16385_v38, %v17905_v61 }
 0x2b5   : > { %16390 = vrsqrt.f32 %v1109_v46 }
 0x2b6   : > { %1542 = vmatmul.mubr.f32.gmra.mrb[6].mxu1 %v18126_v39  ;;  %v1208_v33 = vmul.f32 %v17879_v29, %v1170_v24 }
 0x2b7   : > { %v16387_v7 = vpop.eup %16386  ;;  %1547 = vmatprep.mubr.f32.mxu1 %v17215_v42 }
 0x2b8   : > { %v18133_v54 = vadd.f32 %v17889_v35, %v1208_v33  ;;  %v1171_v23 = vmul.f32 %v16387_v7, %v17917_v49 }
 0x2ba   : > { %1548 = vmatmul.mubr.f32.gmra.mrb[8].mxu1 %v18133_v54  ;;  %v1209_v10 = vmul.f32 %v17879_v29, %v1171_v23 }
 0x2bb   : > { %v16389_v45 = vpop.eup %16388  ;;  %1553 = vmatprep.mubr.f32.mxu1 %v17215_v42 }
 0x2bc   : > { %v18140_v61 = vadd.f32 %v17889_v35, %v1209_v10  ;;  %v1172_v63 = vmul.f32 %v16389_v45, %v17929_v53 }
 0x2be   : > { %1554 = vmatmul.mubr.f32.gmra.mrb[10].mxu1 %v18140_v61  ;;  %v1210_v55 = vmul.f32 %v17879_v29, %v1172_v63 }
 0x2bf   : > { %v16391_v62 = vpop.eup %16390  ;;  %1559 = vmatprep.mubr.f32.mxu1 %v17215_v42 }
 0x2c0   : > { %v18147_v49 = vadd.f32 %v17889_v35, %v1210_v55  ;;  %v1173_v31 = vmul.f32 %v16391_v62, %v17941_v59 }
 0x2c2   : > { %1560 = vmatmul.mubr.f32.gmra.mrb[12].mxu1 %v18147_v49  ;;  %v1211_v36 = vmul.f32 %v17879_v29, %v1173_v31 }
 0x2c3   : > { %1565 = vmatprep.mubr.f32.mxu1 %v17215_v42  ;;  %v1300_v42 = vlaneseq }
 0x2c4   : > { %v18154_v53 = vadd.f32 %v17889_v35, %v1211_v36 }
 0x2c5   : > { %v18167_v29 = vshrl.u32 %v1300_v42, 7 }
 0x2c6   : > { %1566 = vmatmul.mubr.f32.gmra.mrb[14].mxu1 %v18154_v53 }
 0x2c7   : > { %13506 = vmatprep.mubr.f32.mxu1 %v17896_v27  ;;  %v1302_v35 = vsub.s32 0, %v18167_v29  ;;  %v18174_v27 = vld [vmem:[%s17598_s0] sm:$0x7]  ;;  %s17216_s0 = smov 96  }
 0x2ca   : > { %13507 = vmatmul.mubr.f32.vlgmr.msra.gmra.mrb[16].mxu1 %v17908_v1  ;;  %v18178_v1 = vrot.slane %v18174_v27, %v1302_v35 }
 0x2cb   : > { %13509 = vmatprep.mubr.f32.mxu1 %v17920_v14  ;;  %v1306_v14 = vsub.s32 1, %v18167_v29 }
 0x2ce   : > { %13510 = vmatmul.mubr.f32.gmra.mrb[18].mxu1 %v17932_v13 }
 0x2cf   : > { %13512 = vmatprep.mubr.f32.mxu1 %v17944_v44 }
 0x2d2   : > { %13513 = vmatmul.mubr.f32.gmra.mrb[20].mxu1 %v17953_v60  ;;  %v18187_v60 = vrot.slane %v18174_v27, %v1306_v14 }
 0x2d3   : > { %13515 = vmatprep.mubr.f32.mxu1 %v17960_v28 }
 0x2d6   : > { %13516 = vmatmul.mubr.f32.gmra.mrb[22].mxu1 %v17971_v19 }
 0x2d7   : > { %13518 = vmatprep.mubr.f32.mxu1 %v17979_v9 }
 0x2da   : > { %13519 = vmatmul.mubr.f32.gmra.mrb[24].mxu1 %v17987_v52 }
 0x2db   : > { %13521 = vmatprep.mubr.f32.mxu1 %v17994_v32 }
 0x2de   : > { %13522 = vmatmul.mubr.f32.gmra.mrb[26].mxu1 %v18001_v3  ;;  %v22568_v3 = vmov 0 }
 0x2df   : > { %13524 = vmatprep.mubr.f32.mxu1 %v18008_v48  ;;  %v22569_v3 = vsel %vm18203_vm1, 4294967295, %v22568_v3 }
 0x2e0   : > { %22570 = vst [vmem:[#allocation24_spill] sm:$0xff] %v22569_v3 }
 0x2e2   : > { %13525 = vmatmul.mubr.f32.gmra.mrb[28].mxu1 %v18015_v5 }
 0x2e3   : > { %13527 = vmatprep.mubr.f32.mxu1 %v18023_v25 }
 0x2e5   : > { %v1381_v13 = vpop.f32.mrb[0].mxu0 }
 0x2e6   : > { %v18183_v59 = vadd.f32 %v1381_v13, %v18178_v1  ;;  %v1383_v44 = vpop.f32.mrb[1].mxu0  ;;  %13528 = vmatmul.mubr.f32.gmra.mrb[30].mxu1 %v18034_v56 }
 0x2e7   : > { %13530 = vmatprep.mubr.f32.mxu1 %v18049_v11  ;;  %v1384_v52 = vadd.f32 %v1383_v44, %v18187_v60 }
 0x2e8   : > { %22566 = vst [vmem:[#allocation22_spill] sm:$0xff] %v18183_v59  ;;  %3798 = vrot.lane.b32.xlu1 %v18183_v59, %s17216_s0 }
 0x2e9   : > { %v1387_v28 = vpop.f32.mrb[2].mxu0 }
 0x2ea   : > { %v18193_v19 = vadd.f32 %v1387_v28, %v18178_v1  ;;  %v1389_v9 = vpop.f32.mrb[3].mxu0  ;;  %13531 = vmatmul.mubr.f32.gmra.mrb[32].mxu1 %v18064_v43 }
 0x2eb   : > { %v1390_v32 = vadd.f32 %v1389_v9, %v18187_v60  ;;  %13533 = vmatprep.mubr.f32.mxu1 %v18073_v6 }
 0x2ec   : > { %22567 = vst [vmem:[#allocation23_spill] sm:$0xff] %v18193_v19  ;;  %3800 = vrot.lane.b32.xlu0 %v18193_v19, %s17216_s0 }
 0x2ed   : > { %v1393_v48 = vpop.f32.mrb[4].mxu0  ;;  %v14754_v5 = vpack.c.bf16 %v1390_v32, %v1384_v52  ;;  %v18207_v25 = vpack.i.bf16 %v1390_v32, %v1384_v52 }
 0x2ee   : > { %v18210_v56 = vadd.f32 %v1393_v48, %v18178_v1  ;;  %v1395_v11 = vpop.f32.mrb[5].mxu0  ;;  %13534 = vmatmul.mubr.f32.gmra.mrb[34].mxu1 %v18082_v20 }
 0x2ef   : > { %22571 = vst [vmem:[#allocation25_spill] sm:$0xff] %v18207_v25  ;;  %13536 = vmatprep.mubr.f32.mxu1 %v18091_v0  ;;  %14756 = vmatprep.subr.msk.bf16.mxu1 %vm18203_vm1, %v14754_v5  ;;  %v1396_v20 = vadd.f32 %v1395_v11, %v18187_v60 }
 0x2f0   : > { %22572 = vst [vmem:[#allocation26_spill] sm:$0xff] %v18210_v56  ;;  %3802 = vrot.lane.b32.xlu1 %v18210_v56, %s17216_s0  ;;  %15609 = vrot.lane.b32.xlu0 %v18207_v25, %s17216_s0 }
 0x2f1   : > { %14759 = vmatpush3.bf16.xpose.msk.msra.mxu1 %vm18203_vm1, %v14754_v5  ;;  %v1399_v43 = vpop.f32.mrb[6].mxu0 }
 0x2f2   : > { %v18223_v6 = vadd.f32 %v1399_v43, %v18178_v1  ;;  %v1401_v34 = vpop.f32.mrb[7].mxu0  ;;  %13537 = vmatmul.mubr.f32.gmra.mrb[36].mxu1 %v18099_v12 }
 0x2f3   : > { %v1402_v0 = vadd.f32 %v1401_v34, %v18187_v60  ;;  %13539 = vmatprep.mubr.f32.mxu1 %v18113_v40 }
 0x2f4   : > { %22573 = vst [vmem:[#allocation27_spill] sm:$0xff] %v18223_v6  ;;  %3804 = vrot.lane.b32.xlu0 %v18223_v6, %s17216_s0 }
 0x2f5   : > { %v1405_v18 = vpop.f32.mrb[8].mxu0  ;;  %v18231_v2 = vpack.i.bf16 %v1402_v0, %v1396_v20  ;;  %v14760_v22 = vpack.c.bf16 %v1402_v0, %v1396_v20 }
 0x2f6   : > { %v1407_v57 = vpop.f32.mrb[9].mxu0  ;;  %13540 = vmatmul.mubr.f32.gmra.mrb[38].mxu1 %v18120_v30  ;;  %v18240_v12 = vadd.f32 %v1405_v18, %v18178_v1 }
 0x2f7   : > { %22574 = vst [vmem:[#allocation28_spill] sm:$0xff] %v18231_v2  ;;  %15614 = vrot.lane.b32.xlu1 %v18231_v2, %s17216_s0  ;;  %13542 = vmatprep.mubr.f32.mxu1 %v18037_v17  ;;  %v1408_v37 = vadd.f32 %v1407_v57, %v18187_v60 }
 0x2f8   : > { %14762 = vmatprep.subr.msk.bf16.mxu1 %vm18203_vm1, %v14760_v22  ;;  %22575 = vst [vmem:[#allocation29_spill] sm:$0xff] %v18240_v12 }
 0x2f9   : > { %14765 = vmatpush3.bf16.xpose.msk.msra.mxu1 %vm18203_vm1, %v14760_v22  ;;  %v1411_v26 = vpop.f32.mrb[10].mxu0 }
 0x2fa   : > { %v18245_v40 = vadd.f32 %v1411_v26, %v18178_v1  ;;  %v1413_v41 = vpop.f32.mrb[11].mxu0  ;;  %13543 = vmatmul.mubr.f32.gmra.mrb[40].mxu1 %v18052_v4 }
 0x2fb   : > { %v1414_v17 = vadd.f32 %v1413_v41, %v18187_v60  ;;  %3915 = vrot.lane.b32.xlu1 %v18240_v12, %s17216_s0  ;;  %13545 = vmatprep.mubr.f32.mxu1 %v18106_v15 }
 0x2fc   : > { %22576 = vst [vmem:[#allocation30_spill] sm:$0xff] %v18245_v40  ;;  %3917 = vrot.lane.b32.xlu0 %v18245_v40, %s17216_s0 }
 0x2fd   : > { %v1417_v47 = vpop.f32.mrb[12].mxu0  ;;  %v18255_v58 = vpack.i.bf16 %v1414_v17, %v1408_v37  ;;  %v14766_v21 = vpack.c.bf16 %v1414_v17, %v1408_v37 }
 0x2fe   : > { %v1419_v16 = vpop.f32.mrb[13].mxu0  ;;  %13546 = vmatmul.mubr.f32.gmra.mrb[42].mxu1 %v18126_v39  ;;  %v18308_v35 = vadd.f32 %v1417_v47, %v18178_v1 }
 0x2ff   : > { %22577 = vst [vmem:[#allocation31_spill] sm:$0xff] %v18255_v58  ;;  %15619 = vrot.lane.b32.xlu1 %v18255_v58, %s17216_s0  ;;  %13548 = vmatprep.mubr.f32.mxu1 %v18133_v54  ;;  %v1420_v30 = vadd.f32 %v1419_v16, %v18187_v60 }
 0x300   : > { %14768 = vmatprep.subr.msk.bf16.mxu1 %vm18203_vm1, %v14766_v21 }
 0x301   : > { %v1423_v4 = vpop.f32.mrb[14].mxu0 }
 0x302   : > { %v1425_v15 = vpop.f32.mrb[15].mxu0  ;;  %13549 = vmatmul.mubr.f32.gmra.mrb[44].mxu1 %v18140_v61  ;;  %v18321_v9 = vadd.f32 %v1423_v4, %v18178_v1 }
 0x303   : > { %v1426_v51 = vadd.f32 %v1425_v15, %v18187_v60  ;;  %13551 = vmatprep.mubr.f32.mxu1 %v18147_v49 }
 0x304   : > { %22582 = vst [vmem:[#allocation36_spill] sm:$0xff] %v18321_v9 }
 0x305   : > { %v1429_v50 = vpop.f32.mrb[16].mxu0  ;;  %v18267_v8 = vpack.i.bf16 %v1426_v51, %v1420_v30  ;;  %v14772_v38 = vpack.c.bf16 %v1426_v51, %v1420_v30 }
 0x306   : > { %v1431_v46 = vpop.f32.mrb[17].mxu0  ;;  %13552 = vmatmul.mubr.f32.gmra.mrb[46].mxu1 %v18154_v53  ;;  %v18275_v39 = vadd.f32 %v1429_v50, %v18178_v1 }
 0x307   : > { %22578 = vst [vmem:[#allocation32_spill] sm:$0xff] %v18267_v8  ;;  %15624 = vrot.lane.b32.xlu1 %v18267_v8, %s17216_s0  ;;  %13562 = vmatprep.mubr.msk.f32.mxu1 %vm1797_vm0, %v18183_v59  ;;  %v1432_v7 = vadd.f32 %v1431_v46, %v18187_v60 }
 0x308   : > { %22579 = vst [vmem:[#allocation33_spill] sm:$0xff] %v18275_v39 }
 0x309   : > { %v1435_v24 = vpop.f32.mrb[18].mxu0 }
 0x30a   : > { %v1437_v33 = vpop.f32.mrb[19].mxu0  ;;  %13563 = vmatmul.mubr.msk.f32.vlgmr.msra.gmra.mrb[48].mxu1 %vm1797_vm0, %v18193_v19  ;;  %v18353_v4 = vadd.f32 %v1435_v24, %v18178_v1 }
 0x30b   : > { %v1438_v54 = vadd.f32 %v1437_v33, %v18187_v60  ;;  %14771 = vmatpush3.bf16.xpose.msk.msra.mxu1 %vm18203_vm1, %v14766_v21  ;;  %4032 = vrot.lane.b32.xlu1 %v18275_v39, %s17216_s0 }
 0x30c   : > { %13565 = vmatprep.mubr.msk.f32.mxu1 %vm1797_vm0, %v18210_v56  ;;  %14774 = vmatprep.subr.msk.bf16.mxu1 %vm18203_vm1, %v14772_v38 }
 0x30d   : > { %v1441_v23 = vpop.f32.mrb[20].mxu0  ;;  %v18289_v10 = vpack.i.bf16 %v1438_v54, %v1432_v7  ;;  %v14778_v45 = vpack.c.bf16 %v1438_v54, %v1432_v7 }
 0x30e   : > { %v1443_v61 = vpop.f32.mrb[21].mxu0  ;;  %13566 = vmatmul.mubr.msk.f32.gmra.mrb[50].mxu1 %vm1797_vm0, %v18223_v6  ;;  %v18356_v15 = vadd.f32 %v1441_v23, %v18178_v1 }
 0x30f   : > { %22580 = vst [vmem:[#allocation34_spill] sm:$0xff] %v18289_v10  ;;  %15629 = vrot.lane.b32.xlu0 %v18289_v10, %s17216_s0  ;;  %13576 = vmatprep.mubr.msk.f32.mxu1 %vm1797_vm0, %v18240_v12  ;;  %v1444_v62 = vadd.f32 %v1443_v61, %v18187_v60 }
 0x310   : > { %22586 = vst [vmem:[#allocation40_spill] sm:$0xff] %v18356_v15 }
 0x311   : > { %v1447_v63 = vpop.f32.mrb[22].mxu0 }
 0x312   : > { %v1449_v55 = vpop.f32.mrb[23].mxu0  ;;  %v18371_v24 = vadd.f32 %v1447_v63, %v18178_v1 }
 0x313   : > { %v1450_v49 = vadd.f32 %v1449_v55, %v18187_v60  ;;  %14777 = vmatpush3.bf16.xpose.msk.msra.mxu1 %vm18203_vm1, %v14772_v38 }
 0x314   : > { %14780 = vmatprep.subr.msk.bf16.mxu1 %vm18203_vm1, %v14778_v45  ;;  %22588 = vst [vmem:[#allocation42_spill] sm:$0xff] %v18371_v24 }
 0x315   : > { %v1453_v31 = vpop.f32.mrb[24].mxu0  ;;  %v18303_v36 = vpack.i.bf16 %v1450_v49, %v1444_v62  ;;  %v14784_v53 = vpack.c.bf16 %v1450_v49, %v1444_v62 }
 0x316   : > { %v1455_v42 = vpop.f32.mrb[25].mxu0  ;;  %v18374_v7 = vadd.f32 %v1453_v31, %v18178_v1 }
 0x317   : > { %22581 = vst [vmem:[#allocation35_spill] sm:$0xff] %v18303_v36  ;;  %15634 = vrot.lane.b32.xlu1 %v18303_v36, %s17216_s0  ;;  %v1456_v44 = vadd.f32 %v1455_v42, %v18187_v60 }
 0x319   : > { %v18310_v14 = vpop.f32.mrb[26].mxu0 }
 0x31a   : > { %13577 = vmatmul.mubr.msk.f32.vlgmr.msra.gmra.mrb[52].mxu1 %vm1797_vm0, %v18245_v40  ;;  %v1461_v13 = vpop.f32.mrb[27].mxu0 }
 0x31b   : > { %v1462_v28 = vadd.f32 %v1461_v13, %v18187_v60  ;;  %13579 = vmatprep.mubr.msk.f32.mxu1 %vm1797_vm0, %v18308_v35  ;;  %14783 = vmatpush3.bf16.xpose.msk.msra.mxu1 %vm18203_vm1, %v14778_v45 }
 0x31c   : > { %14786 = vmatprep.subr.msk.bf16.mxu1 %vm18203_vm1, %v14784_v53 }
 0x31d   : > { %v1465_v52 = vpop.f32.mrb[28].mxu0  ;;  %v18325_v32 = vpack.i.bf16 %v1462_v28, %v1456_v44  ;;  %v14790_v48 = vpack.c.bf16 %v1462_v28, %v1456_v44  ;;  %v18400_v44 = vadd.f32 %v18310_v14, %v18178_v1 }
 0x31e   : > { %13580 = vmatmul.mubr.msk.f32.gmra.mrb[54].mxu1 %vm1797_vm0, %v18321_v9  ;;  %v1467_v5 = vpop.f32.mrb[29].mxu0  ;;  %v18403_v28 = vadd.f32 %v1465_v52, %v18178_v1 }
 0x31f   : > { %22583 = vst [vmem:[#allocation37_spill] sm:$0xff] %v18325_v32  ;;  %13590 = vmatprep.mubr.msk.f32.mxu1 %vm1797_vm0, %v18275_v39  ;;  %15639 = vrot.lane.b32.xlu0 %v18325_v32, %s17216_s0  ;;  %v1468_v0 = vadd.f32 %v1467_v5, %v18187_v60  ;;  %22590 = vst [vmem:[#allocation44_spill] sm:$0xff] %v18400_v44 }
 0x320   : > { %22591 = vst [vmem:[#allocation45_spill] sm:$0xff] %v18403_v28 }
 0x321   : > { %v1471_v11 = vpop.f32.mrb[30].mxu0  ;;  %v18333_v43 = vpop.f32.mrb[0].mxu1 }
 0x322   : > { %v1473_v34 = vpop.f32.mrb[31].mxu0  ;;  %v1527_v20 = vpop.f32.mrb[1].mxu1  ;;  %v18416_v14 = vadd.f32 %v1471_v11, %v18178_v1 }
 0x323   : > { %v1474_v18 = vadd.f32 %v1473_v34, %v18187_v60  ;;  %14789 = vmatpush3.bf16.xpose.msk.msra.mxu1 %vm18203_vm1, %v14784_v53  ;;  %v1528_v21 = vadd.f32 %v1527_v20, %v18187_v60 }
 0x324   : > { %14792 = vmatprep.subr.msk.bf16.mxu1 %vm18203_vm1, %v14790_v48  ;;  %22592 = vst [vmem:[#allocation46_spill] sm:$0xff] %v18416_v14 }
 0x325   : > { %v1477_v22 = vpop.f32.mrb[32].mxu0  ;;  %v18341_v57 = vpop.f32.mrb[2].mxu1  ;;  %v18343_v26 = vpack.i.bf16 %v1474_v18, %v1468_v0  ;;  %v14796_v41 = vpack.c.bf16 %v1474_v18, %v1468_v0 }
 0x326   : > { %v18346_v37 = vadd.f32 %v1477_v22, %v18178_v1  ;;  %v1479_v17 = vpop.f32.mrb[33].mxu0  ;;  %v1533_v47 = vpop.f32.mrb[3].mxu1 }
 0x327   : > { %22584 = vst [vmem:[#allocation38_spill] sm:$0xff] %v18343_v26  ;;  %v1534_v16 = vadd.f32 %v1533_v47, %v18187_v60  ;;  %15644 = vrot.lane.b32.xlu1 %v18343_v26, %s17216_s0  ;;  %v1480_v46 = vadd.f32 %v1479_v17, %v18187_v60  ;;  %v18448_v17 = vadd.f32 %v18333_v43, %v18178_v1 }
 0x328   : > { %22585 = vst [vmem:[#allocation39_spill] sm:$0xff] %v18346_v37  ;;  %13618 = vmatprep.mubr.msk.f32.mxu0 %vm1797_vm0, %v18346_v37 }
 0x329   : > { %v1483_v30 = vpop.f32.mrb[34].mxu0  ;;  %v14826_v51 = vpack.c.bf16 %v1534_v16, %v1528_v21  ;;  %v18360_v50 = vpack.i.bf16 %v1534_v16, %v1528_v21  ;;  %22598 = vst [vmem:[#allocation52_spill] sm:$0xff] %v18448_v17 }
 0x32a   : > { %13591 = vmatmul.mubr.msk.f32.vlgmr.msra.gmra.mrb[56].mxu1 %vm1797_vm0, %v18353_v4  ;;  %v1485_v38 = vpop.f32.mrb[35].mxu0  ;;  %v18424_v22 = vadd.f32 %v1483_v30, %v18178_v1 }
 0x32b   : > { %22587 = vst [vmem:[#allocation41_spill] sm:$0xff] %v18360_v50  ;;  %v1486_v33 = vadd.f32 %v1485_v38, %v18187_v60  ;;  %13593 = vmatprep.mubr.msk.f32.mxu1 %vm1797_vm0, %v18356_v15  ;;  %14795 = vmatpush3.bf16.xpose.msk.msra.mxu1 %vm18203_vm1, %v14790_v48 }
 0x32c   : > { %14798 = vmatprep.subr.msk.bf16.mxu1 %vm18203_vm1, %v14796_v41  ;;  %22595 = vst [vmem:[#allocation49_spill] sm:$0xff] %v18424_v22 }
 0x32d   : > { %v1489_v54 = vpop.f32.mrb[36].mxu0  ;;  %v18378_v23 = vpack.i.bf16 %v1486_v33, %v1480_v46  ;;  %v14802_v45 = vpack.c.bf16 %v1486_v33, %v1480_v46 }
 0x32e   : > { %13594 = vmatmul.mubr.msk.f32.gmra.mrb[58].mxu1 %vm1797_vm0, %v18371_v24  ;;  %v1491_v61 = vpop.f32.mrb[37].mxu0 }
 0x32f   : > { %22589 = vst [vmem:[#allocation43_spill] sm:$0xff] %v18378_v23  ;;  %13604 = vmatprep.mubr.msk.f32.mxu1 %vm1797_vm0, %v18374_v7  ;;  %15649 = vrot.lane.b32.xlu0 %v18378_v23, %s17216_s0  ;;  %v1492_v62 = vadd.f32 %v1491_v61, %v18187_v60 }
 0x330   : > { %14804 = vmatprep.subr.msk.bf16.mxu0 %vm18203_vm1, %v14802_v45 }
 0x331   : > { %14807 = vmatpush3.bf16.xpose.msk.msra.mxu0 %vm18203_vm1, %v14802_v45  ;;  %v1495_v63 = vpop.f32.mrb[38].mxu0 }
 0x332   : > { %v1497_v55 = vpop.f32.mrb[39].mxu0  ;;  %v18444_v11 = vadd.f32 %v1495_v63, %v18178_v1 }
 0x333   : > { %v1498_v49 = vadd.f32 %v1497_v55, %v18187_v60  ;;  %14801 = vmatpush3.bf16.xpose.msk.msra.mxu1 %vm18203_vm1, %v14796_v41  ;;  %v18429_v41 = vadd.f32 %v1489_v54, %v18178_v1 }
 0x334   : > { %22597 = vst [vmem:[#allocation51_spill] sm:$0xff] %v18444_v11 }
 0x335   : > { %v1501_v31 = vpop.f32.mrb[40].mxu0  ;;  %v14808_v53 = vpack.c.bf16 %v1498_v49, %v1492_v62  ;;  %v18394_v42 = vpack.i.bf16 %v1498_v49, %v1492_v62  ;;  %22596 = vst [vmem:[#allocation50_spill] sm:$0xff] %v18429_v41 }
 0x336   : > { %v1503_v13 = vpop.f32.mrb[41].mxu0  ;;  %v18419_v52 = vadd.f32 %v1501_v31, %v18178_v1 }
 0x337   : > { %14810 = vmatprep.subr.msk.bf16.mxu0 %vm18203_vm1, %v14808_v53  ;;  %v1504_v34 = vadd.f32 %v1503_v13, %v18187_v60 }
 0x338   : > { %22593 = vst [vmem:[#allocation47_spill] sm:$0xff] %v18419_v52 }
 0x339   : > { %14813 = vmatpush3.bf16.xpose.msk.msra.mxu0 %vm18203_vm1, %v14808_v53  ;;  %v1507_v48 = vpop.f32.mrb[42].mxu0 }
 0x33a   : > { %13605 = vmatmul.mubr.msk.f32.vlgmr.msra.gmra.mrb[60].mxu1 %vm1797_vm0, %v18400_v44  ;;  %14828 = vmatprep.subr.msk.bf16.mxu0 %vm18203_vm1, %v14826_v51  ;;  %v1509_v5 = vpop.f32.mrb[43].mxu0  ;;  %v18471_v13 = vadd.f32 %v1507_v48, %v18178_v1 }
 0x33b   : > { %v1510_v20 = vadd.f32 %v1509_v5, %v18187_v60  ;;  %13607 = vmatprep.mubr.msk.f32.mxu1 %vm1797_vm0, %v18403_v28 }
 0x33c   : > { %22601 = vst [vmem:[#allocation55_spill] sm:$0xff] %v18471_v13 }
 0x33d   : > { %v14814_v0 = vpack.c.bf16 %v1510_v20, %v1504_v34  ;;  %v18421_v18 = vpack.i.bf16 %v1510_v20, %v1504_v34 }
 0x33e   : > { %13608 = vmatmul.mubr.msk.f32.gmra.mrb[62].mxu1 %vm1797_vm0, %v18416_v14 }
 0x33f   : > { %22594 = vst [vmem:[#allocation48_spill] sm:$0xff] %v18421_v18  ;;  %13632 = vmatprep.mubr.msk.f32.mxu1 %vm1797_vm0, %v18419_v52  ;;  %14816 = vmatprep.subr.msk.bf16.mxu1 %vm18203_vm1, %v14814_v0 }
 0x340   : > { %13619 = vmatmul.mubr.msk.f32.vlgmr.msra.gmra.mrb[48].mxu0 %vm1797_vm0, %v18424_v22  ;;  %14819 = vmatpush3.bf16.xpose.msk.msra.mxu1 %vm18203_vm1, %v14814_v0 }
 0x341   : > { %13621 = vmatprep.mubr.msk.f32.mxu0 %vm1797_vm0, %v18429_v41  ;;  %14831 = vmatpush3.bf16.xpose.msk.msra.mxu0 %vm18203_vm1, %v14826_v51 }
 0x344   : > { %13622 = vmatmul.mubr.msk.f32.gmra.mrb[50].mxu0 %vm1797_vm0, %v18444_v11 }
 0x345   : > { %13646 = vmatprep.mubr.msk.f32.mxu0 %vm1797_vm0, %v18448_v17 }
 0x37d   : > { %v1537_v47 = vpop.f32.mrb[4].mxu1 }
 0x37e   : > { %v1539_v21 = vpop.f32.mrb[5].mxu1 }
 0x37f   : > { %v1540_v63 = vadd.f32 %v1539_v21, %v18187_v60 }
 0x381   : > { %v1513_v16 = vpop.f32.mrb[44].mxu0 }
 0x382   : > { %v1515_v30 = vpop.f32.mrb[45].mxu0  ;;  %v18474_v34 = vadd.f32 %v1513_v16, %v18178_v1 }
 0x383   : > { %v1516_v51 = vadd.f32 %v1515_v30, %v18187_v60  ;;  %v18482_v30 = vadd.f32 %v18341_v57, %v18178_v1 }
 0x384   : > { %22602 = vst [vmem:[#allocation56_spill] sm:$0xff] %v18474_v34 }
 0x385   : > { %v1519_v38 = vpop.f32.mrb[46].mxu0  ;;  %22603 = vst [vmem:[#allocation57_spill] sm:$0xff] %v18482_v30 }
 0x386   : > { %v1521_v46 = vpop.f32.mrb[47].mxu0 }
 0x387   : > { %v1522_v33 = vadd.f32 %v1521_v46, %v18187_v60  ;;  %v18485_v46 = vadd.f32 %v1519_v38, %v18178_v1 }
 0x389   : > { %v1543_v54 = vpop.f32.mrb[6].mxu1  ;;  %v14820_v45 = vpack.c.bf16 %v1522_v33, %v1516_v51  ;;  %v18456_v43 = vpack.i.bf16 %v1522_v33, %v1516_v51  ;;  %22604 = vst [vmem:[#allocation58_spill] sm:$0xff] %v18485_v46  ;;  %v18492_v33 = vadd.f32 %v1537_v47, %v18178_v1 }
 0x38a   : > { %v1545_v61 = vpop.f32.mrb[7].mxu1  ;;  %v18507_v57 = vadd.f32 %v1543_v54, %v18178_v1 }
 0x38b   : > { %22599 = vst [vmem:[#allocation53_spill] sm:$0xff] %v18456_v43  ;;  %v1546_v55 = vadd.f32 %v1545_v61, %v18187_v60  ;;  %14822 = vmatprep.subr.msk.bf16.mxu1 %vm18203_vm1, %v14820_v45  ;;  %22606 = vst [vmem:[#allocation60_spill] sm:$0xff] %v18492_v33  ;;  %v1310_v61 = vsub.s32 2, %v18167_v29 }
 0x38c   : > { %14825 = vmatpush3.bf16.xpose.msk.msra.mxu1 %vm18203_vm1, %v14820_v45  ;;  %22608 = vst [vmem:[#allocation62_spill] sm:$0xff] %v18507_v57 }
 0x38d   : > { %v1549_v62 = vpop.f32.mrb[8].mxu1  ;;  %v14832_v49 = vpack.c.bf16 %v1546_v55, %v1540_v63  ;;  %v18464_v31 = vpack.i.bf16 %v1546_v55, %v1540_v63  ;;  %v18514_v38 = vrot.slane %v18174_v27, %v1310_v61 }
 0x38e   : > { %v1551_v53 = vpop.f32.mrb[9].mxu1  ;;  %v18496_v63 = vadd.f32 %v1549_v62, %v18178_v1 }
 0x38f   : > { %22600 = vst [vmem:[#allocation54_spill] sm:$0xff] %v18464_v31  ;;  %14834 = vmatprep.subr.msk.bf16.mxu0 %vm18203_vm1, %v14832_v49  ;;  %v1552_v0 = vadd.f32 %v1551_v53, %v18187_v60 }
 0x390   : > { %14837 = vmatpush3.bf16.xpose.msk.msra.mxu0 %vm18203_vm1, %v14832_v49  ;;  %22607 = vst [vmem:[#allocation61_spill] sm:$0xff] %v18496_v63 }
 0x391   : > { %v1555_v5 = vpop.f32.mrb[10].mxu1 }
 0x392   : > { %v1557_v20 = vpop.f32.mrb[11].mxu1 }
 0x393   : > { %v1558_v21 = vadd.f32 %v1557_v20, %v18187_v60  ;;  %13633 = vmatmul.mubr.msk.f32.vlgmr.msra.gmra.mrb[64].mxu1 %vm1797_vm0, %v18471_v13 }
 0x394   : > { %13635 = vmatprep.mubr.msk.f32.mxu1 %vm1797_vm0, %v18474_v34  ;;  %v18711_v34 = vpop.permute.xlu1 %3798 }
 0x395   : > { %v1561_v48 = vpop.f32.mrb[12].mxu1  ;;  %v14838_v16 = vpack.c.bf16 %v1558_v21, %v1552_v0  ;;  %v18489_v51 = vpack.i.bf16 %v1558_v21, %v1552_v0  ;;  %22630 = vst [vmem:[#allocation84_spill] sm:$0xff] %v18711_v34 }
 0x396   : > { %v1563_v45 = vpop.f32.mrb[13].mxu1 }
 0x397   : > { %22605 = vst [vmem:[#allocation59_spill] sm:$0xff] %v18489_v51  ;;  %13636 = vmatmul.mubr.msk.f32.gmra.mrb[66].mxu1 %vm1797_vm0, %v18485_v46  ;;  %13647 = vmatmul.mubr.msk.f32.vlgmr.msra.gmra.mrb[52].mxu0 %vm1797_vm0, %v18482_v30  ;;  %v1564_v55 = vadd.f32 %v1563_v45, %v18187_v60 }
 0x398   : > { %14840 = vmatprep.subr.msk.bf16.mxu1 %vm18203_vm1, %v14838_v16  ;;  %13649 = vmatprep.mubr.msk.f32.mxu0 %vm1797_vm0, %v18492_v33 }
 0x399   : > { %14843 = vmatpush3.bf16.xpose.msk.msra.mxu1 %vm18203_vm1, %v14838_v16  ;;  %13660 = vmatprep.mubr.msk.f32.mxu1 %vm1797_vm0, %v18496_v63  ;;  %v1567_v29 = vpop.f32.mrb[14].mxu1 }
 0x39a   : > { %v1569_v47 = vpop.f32.mrb[15].mxu1 }
 0x39b   : > { %v1570_v62 = vadd.f32 %v1569_v47, %v18187_v60  ;;  %13650 = vmatmul.mubr.msk.f32.gmra.mrb[54].mxu0 %vm1797_vm0, %v18507_v57 }
 0x39d   : > { %v13508_v54 = vpop.f32.mrb[16].mxu1  ;;  %v14844_v49 = vpack.c.bf16 %v1570_v62, %v1564_v55  ;;  %v18520_v53 = vpack.i.bf16 %v1570_v62, %v1564_v55 }
 0x39e   : > { %v1644_v20 = vadd.f32 %v13508_v54, %v18514_v38  ;;  %v1638_v0 = vpop.f32.mrb[17].mxu1 }
 0x39f   : > { %22609 = vst [vmem:[#allocation63_spill] sm:$0xff] %v18520_v53  ;;  %v1639_v21 = vadd.f32 %v1638_v0, %v18514_v38  ;;  %14846 = vmatprep.subr.msk.bf16.mxu1 %vm18203_vm1, %v14844_v49  ;;  %v18535_v0 = vadd.f32 %v1555_v5, %v18178_v1 }
 0x3a1   : > { %14849 = vmatpush3.bf16.xpose.msk.msra.mxu1 %vm18203_vm1, %v14844_v49  ;;  %v13511_v27 = vpop.f32.mrb[18].mxu1  ;;  %v14850_v60 = vpack.c.bf16 %v1644_v20, %v1639_v21  ;;  %v18528_v16 = vpack.i.bf16 %v1644_v20, %v1639_v21  ;;  %22612 = vst [vmem:[#allocation66_spill] sm:$0xff] %v18535_v0  ;;  %v18539_v20 = vadd.f32 %v1561_v48, %v18178_v1 }
 0x3a2   : > { %v1654_v45 = vadd.f32 %v13511_v27, %v18514_v38  ;;  %v1648_v61 = vpop.f32.mrb[19].mxu1 }
 0x3a3   : > { %22610 = vst [vmem:[#allocation64_spill] sm:$0xff] %v18528_v16  ;;  %v1649_v47 = vadd.f32 %v1648_v61, %v18514_v38  ;;  %14851 = vmatprep.subr.bf16.mxu0 %v14850_v60  ;;  %22613 = vst [vmem:[#allocation67_spill] sm:$0xff] %v18539_v20 }
 0x3a4   : > { %14853 = vmatpush3.bf16.msra.mxu0 %v14850_v60 }
 0x3a5   : > { %v13514_v55 = vpop.f32.mrb[20].mxu1  ;;  %v14854_v62 = vpack.c.bf16 %v1654_v45, %v1649_v47  ;;  %v18532_v54 = vpack.i.bf16 %v1654_v45, %v1649_v47  ;;  %v18549_v45 = vadd.f32 %v1567_v29, %v18178_v1 }
 0x3a6   : > { %v1664_v49 = vadd.f32 %v13514_v55, %v18514_v38  ;;  %v1658_v39 = vpop.f32.mrb[21].mxu1 }
 0x3a7   : > { %22611 = vst [vmem:[#allocation65_spill] sm:$0xff] %v18532_v54  ;;  %v1659_v21 = vadd.f32 %v1658_v39, %v18514_v38  ;;  %14855 = vmatprep.subr.bf16.mxu0 %v14854_v62  ;;  %22615 = vst [vmem:[#allocation69_spill] sm:$0xff] %v18549_v45 }
 0x3a8   : > { %13661 = vmatmul.mubr.msk.f32.vlgmr.msra.gmra.mrb[68].mxu1 %vm1797_vm0, %v18535_v0  ;;  %14857 = vmatpush3.bf16.msra.mxu0 %v14854_v62  ;;  %v18713_v0 = vpop.permute.xlu1 %3802 }
 0x3a9   : > { %13663 = vmatprep.mubr.msk.f32.mxu1 %vm1797_vm0, %v18539_v20  ;;  %v13517_v27 = vpop.f32.mrb[22].mxu1  ;;  %v14858_v60 = vpack.c.bf16 %v1664_v49, %v1659_v21  ;;  %v18546_v5 = vpack.i.bf16 %v1664_v49, %v1659_v21  ;;  %22631 = vst [vmem:[#allocation85_spill] sm:$0xff] %v18713_v0 }
 0x3aa   : > { %v1674_v48 = vadd.f32 %v13517_v27, %v18514_v38  ;;  %v1668_v61 = vpop.f32.mrb[23].mxu1 }
 0x3ab   : > { %22614 = vst [vmem:[#allocation68_spill] sm:$0xff] %v18546_v5  ;;  %v1669_v39 = vadd.f32 %v1668_v61, %v18514_v38  ;;  %14859 = vmatprep.subr.bf16.mxu1 %v14858_v60 }
 0x3ac   : > { %13664 = vmatmul.mubr.msk.f32.gmra.mrb[70].mxu1 %vm1797_vm0, %v18549_v45 }
 0x3ad   : > { %14861 = vmatpush3.bf16.msra.mxu1 %v14858_v60  ;;  %v13520_v47 = vpop.f32.mrb[24].mxu1  ;;  %v14862_v55 = vpack.c.bf16 %v1674_v48, %v1669_v39  ;;  %v18555_v62 = vpack.i.bf16 %v1674_v48, %v1669_v39 }
 0x3ae   : > { %v1684_v49 = vadd.f32 %v13520_v47, %v18514_v38  ;;  %v1678_v21 = vpop.f32.mrb[25].mxu1 }
 0x3af   : > { %22616 = vst [vmem:[#allocation70_spill] sm:$0xff] %v18555_v62  ;;  %v1679_v1 = vadd.f32 %v1678_v21, %v18514_v38  ;;  %14863 = vmatprep.subr.bf16.mxu1 %v14862_v55 }
 0x3b1   : > { %14865 = vmatpush3.bf16.msra.mxu1 %v14862_v55  ;;  %v13523_v29 = vpop.f32.mrb[26].mxu1  ;;  %v18559_v27 = vpack.c.bf16 %v1684_v49, %v1679_v1  ;;  %v18561_v61 = vpack.i.bf16 %v1684_v49, %v1679_v1 }
 0x3b2   : > { %v1694_v23 = vadd.f32 %v13523_v29, %v18514_v38  ;;  %v1688_v26 = vpop.f32.mrb[27].mxu1 }
 0x3b3   : > { %22617 = vst [vmem:[#allocation71_spill] sm:$0xff] %v18561_v61  ;;  %v1689_v60 = vadd.f32 %v1688_v26, %v18514_v38  ;;  %14867 = vmatprep.subr.bf16.mxu0 %v18559_v27 }
 0x3b5   : > { %v13526_v48 = vpop.f32.mrb[28].mxu1  ;;  %v18566_v39 = vpack.c.bf16 %v1694_v23, %v1689_v60  ;;  %v18568_v47 = vpack.i.bf16 %v1694_v23, %v1689_v60 }
 0x3b6   : > { %v1704_v21 = vadd.f32 %v13526_v48, %v18514_v38  ;;  %v1698_v55 = vpop.f32.mrb[29].mxu1 }
 0x3b7   : > { %22618 = vst [vmem:[#allocation72_spill] sm:$0xff] %v18568_v47  ;;  %v1699_v6 = vadd.f32 %v1698_v55, %v18514_v38 }
 0x3b9   : > { %v13529_v56 = vpop.f32.mrb[30].mxu1  ;;  %v18572_v49 = vpack.c.bf16 %v1704_v21, %v1699_v6  ;;  %v18574_v1 = vpack.i.bf16 %v1704_v21, %v1699_v6 }
 0x3ba   : > { %v1714_v29 = vadd.f32 %v13529_v56, %v18514_v38  ;;  %v1708_v26 = vpop.f32.mrb[31].mxu1 }
 0x3bb   : > { %22619 = vst [vmem:[#allocation73_spill] sm:$0xff] %v18574_v1  ;;  %v1709_v40 = vadd.f32 %v1708_v26, %v18514_v38  ;;  %14875 = vmatprep.subr.bf16.mxu1 %v18572_v49 }
 0x3bd   : > { %v13532_v12 = vpop.f32.mrb[32].mxu1  ;;  %v18579_v23 = vpack.c.bf16 %v1714_v29, %v1709_v40  ;;  %v18581_v60 = vpack.i.bf16 %v1714_v29, %v1709_v40 }
 0x3be   : > { %v1724_v48 = vadd.f32 %v13532_v12, %v18514_v38  ;;  %v1718_v55 = vpop.f32.mrb[33].mxu1 }
 0x3bf   : > { %22620 = vst [vmem:[#allocation74_spill] sm:$0xff] %v18581_v60  ;;  %v1719_v32 = vadd.f32 %v1718_v55, %v18514_v38 }
 0x3c1   : > { %v13535_v36 = vpop.f32.mrb[34].mxu1  ;;  %v18585_v6 = vpack.c.bf16 %v1724_v48, %v1719_v32  ;;  %v18587_v21 = vpack.i.bf16 %v1724_v48, %v1719_v32 }
 0x3c2   : > { %v1734_v56 = vadd.f32 %v13535_v36, %v18514_v38  ;;  %v1728_v26 = vpop.f32.mrb[35].mxu1 }
 0x3c3   : > { %22621 = vst [vmem:[#allocation75_spill] sm:$0xff] %v18587_v21  ;;  %v1729_v19 = vadd.f32 %v1728_v26, %v18514_v38 }
 0x3c5   : > { %v13538_v59 = vpop.f32.mrb[36].mxu1  ;;  %v18591_v10 = vpack.c.bf16 %v1734_v56, %v1729_v19  ;;  %v18593_v40 = vpack.i.bf16 %v1734_v56, %v1729_v19 }
 0x3c6   : > { %v1744_v12 = vadd.f32 %v13538_v59, %v18514_v38  ;;  %v1738_v29 = vpop.f32.mrb[37].mxu1 }
 0x3c7   : > { %22622 = vst [vmem:[#allocation76_spill] sm:$0xff] %v18593_v40  ;;  %v1739_v55 = vadd.f32 %v1738_v29, %v18514_v38 }
 0x3c9   : > { %v13541_v8 = vpop.f32.mrb[38].mxu1  ;;  %v18597_v58 = vpack.c.bf16 %v1744_v12, %v1739_v55  ;;  %v18599_v32 = vpack.i.bf16 %v1744_v12, %v1739_v55 }
 0x3ca   : > { %v1754_v36 = vadd.f32 %v13541_v8, %v18514_v38  ;;  %v1748_v48 = vpop.f32.mrb[39].mxu1 }
 0x3cb   : > { %22623 = vst [vmem:[#allocation77_spill] sm:$0xff] %v18599_v32  ;;  %v1749_v26 = vadd.f32 %v1748_v48, %v18514_v38 }
 0x3cd   : > { %v13544_v2 = vpop.f32.mrb[40].mxu1  ;;  %v18603_v25 = vpack.c.bf16 %v1754_v36, %v1749_v26  ;;  %v18605_v19 = vpack.i.bf16 %v1754_v36, %v1749_v26 }
 0x3ce   : > { %v1764_v59 = vadd.f32 %v13544_v2, %v18514_v38  ;;  %v1758_v56 = vpop.f32.mrb[41].mxu1 }
 0x3cf   : > { %22624 = vst [vmem:[#allocation78_spill] sm:$0xff] %v18605_v19  ;;  %v1759_v29 = vadd.f32 %v1758_v56, %v18514_v38 }
 0x3d1   : > { %v13547_v60 = vpop.f32.mrb[42].mxu1  ;;  %v18609_v1 = vpack.c.bf16 %v1764_v59, %v1759_v29  ;;  %v18611_v12 = vpack.i.bf16 %v1764_v59, %v1759_v29 }
 0x3d2   : > { %v1774_v8 = vadd.f32 %v13547_v60, %v18514_v38  ;;  %v1768_v55 = vpop.f32.mrb[43].mxu1 }
 0x3d3   : > { %22625 = vst [vmem:[#allocation79_spill] sm:$0xff] %v18611_v12  ;;  %v1769_v48 = vadd.f32 %v1768_v55, %v18514_v38 }
 0x3d5   : > { %v13550_v32 = vpop.f32.mrb[44].mxu1  ;;  %v18615_v40 = vpack.c.bf16 %v1774_v8, %v1769_v48  ;;  %v18617_v36 = vpack.i.bf16 %v1774_v8, %v1769_v48 }
 0x3d6   : > { %v1784_v2 = vadd.f32 %v13550_v32, %v18514_v38  ;;  %v1778_v26 = vpop.f32.mrb[45].mxu1 }
 0x3d7   : > { %22626 = vst [vmem:[#allocation80_spill] sm:$0xff] %v18617_v36  ;;  %v1779_v56 = vadd.f32 %v1778_v26, %v18514_v38 }
 0x3d9   : > { %v13553_v19 = vpop.f32.mrb[46].mxu1  ;;  %v18621_v62 = vpack.c.bf16 %v1784_v2, %v1779_v56  ;;  %v18623_v59 = vpack.i.bf16 %v1784_v2, %v1779_v56 }
 0x3da   : > { %v1794_v60 = vadd.f32 %v13553_v19, %v18514_v38  ;;  %v1788_v29 = vpop.f32.mrb[47].mxu1 }
 0x3db   : > { %22627 = vst [vmem:[#allocation81_spill] sm:$0xff] %v18623_v59  ;;  %v1789_v55 = vadd.f32 %v1788_v29, %v18514_v38 }
 0x3dd   : > { %v18627_v12 = vpop.f32.mrb[48].mxu1  ;;  %v18629_v21 = vpack.c.bf16 %v1794_v60, %v1789_v55  ;;  %v18631_v8 = vpack.i.bf16 %v1794_v60, %v1789_v55 }
 0x3de   : > { %v18633_v32 = vpop.f32.mrb[49].mxu1  ;;  %v2673_v48 = vsel %vm1797_vm0, %v18627_v12, -inf }
 0x3df   : > { %22628 = vst [vmem:[#allocation82_spill] sm:$0xff] %v18629_v21  ;;  %22629 = vst [vmem:[#allocation83_spill] sm:$0xff] %v18631_v8  ;;  %2674 = vmax.xlane.f32.xlu1 %v2673_v48  ;;  %v2670_v2 = vsel %vm1797_vm0, %v18633_v32, -inf }
 0x3e0   : > { %2671 = vmax.xlane.f32.xlu0 %v2670_v2 }
 0x3e1   : > { %v18639_v19 = vpop.f32.mrb[50].mxu1 }
 0x3e2   : > { %v18641_v26 = vpop.f32.mrb[51].mxu1  ;;  %v2679_v38 = vsel %vm1797_vm0, %v18639_v19, -inf }
 0x3e3   : > { %2680 = vmax.xlane.f32.xlu1 %v2679_v38  ;;  %v2676_v56 = vsel %vm1797_vm0, %v18641_v26, -inf }
 0x3e4   : > { %2677 = vmax.xlane.f32.xlu0 %v2676_v56 }
 0x3ed   : > { %v18647_v60 = vpop.f32.mrb[52].mxu1 }
 0x3ee   : > { %v18649_v29 = vpop.f32.mrb[53].mxu1  ;;  %v2685_v55 = vsel %vm1797_vm0, %v18647_v60, -inf }
 0x3ef   : > { %2686 = vmax.xlane.f32.xlu0 %v2685_v55  ;;  %v2682_v8 = vsel %vm1797_vm0, %v18649_v29, -inf }
 0x3f1   : > { %v18653_v48 = vpop.f32.mrb[54].mxu1 }
 0x3f2   : > { %v18655_v2 = vpop.f32.mrb[55].mxu1  ;;  %v2691_v38 = vsel %vm1797_vm0, %v18653_v48, -inf }
 0x3f3   : > { %2683 = vmax.xlane.f32.xlu0 %v2682_v8  ;;  %v2688_v56 = vsel %vm1797_vm0, %v18655_v2, -inf }
 0x3f7   : > { %2692 = vmax.xlane.f32.xlu0 %v2691_v38 }
 0x3fb   : > { %2689 = vmax.xlane.f32.xlu0 %v2688_v56 }
 0x3fd   : > { %v18663_v36 = vpop.f32.mrb[56].mxu1 }
 0x3fe   : > { %v18665_v59 = vpop.f32.mrb[57].mxu1  ;;  %v2697_v55 = vsel %vm1797_vm0, %v18663_v36, -inf }
 0x3ff   : > { %2698 = vmax.xlane.f32.xlu1 %v2697_v55  ;;  %v2694_v8 = vsel %vm1797_vm0, %v18665_v59, -inf }
 0x401   : > { %v18669_v21 = vpop.f32.mrb[58].mxu1 }
 0x402   : > { %v18671_v5 = vpop.f32.mrb[59].mxu1  ;;  %v2703_v38 = vsel %vm1797_vm0, %v18669_v21, -inf }
 0x403   : > { %2695 = vmax.xlane.f32.xlu1 %v2694_v8  ;;  %v2700_v56 = vsel %vm1797_vm0, %v18671_v5, -inf }
 0x407   : > { %2704 = vmax.xlane.f32.xlu1 %v2703_v38 }
 0x40b   : > { %2701 = vmax.xlane.f32.xlu1 %v2700_v56 }
 0x40d   : > { %v18679_v47 = vpop.f32.mrb[60].mxu1 }
 0x40e   : > { %v18681_v16 = vpop.f32.mrb[61].mxu1  ;;  %v2709_v55 = vsel %vm1797_vm0, %v18679_v47, -inf }
 0x40f   : > { %2710 = vmax.xlane.f32.xlu0 %v2709_v55  ;;  %v2706_v8 = vsel %vm1797_vm0, %v18681_v16, -inf }
 0x411   : > { %v18685_v61 = vpop.f32.mrb[62].mxu1 }
 0x412   : > { %v18687_v20 = vpop.f32.mrb[63].mxu1  ;;  %v2715_v38 = vsel %vm1797_vm0, %v18685_v61, -inf }
 0x413   : > { %v18693_v54 = vpop.f32.mrb[48].mxu0  ;;  %2707 = vmax.xlane.f32.xlu0 %v2706_v8  ;;  %2716 = vmax.xlane.f32.xlu1 %v2715_v38  ;;  %v2712_v55 = vsel %vm1797_vm0, %v18687_v20, -inf }
 0x414   : > { %v18695_v56 = vpop.f32.mrb[49].mxu0  ;;  %v2721_v33 = vsel %vm1797_vm0, %v18693_v54, -inf }
 0x415   : > { %v2718_v57 = vsel %vm1797_vm0, %v18695_v56, -inf }
 0x417   : > { %v18701_v45 = vpop.f32.mrb[50].mxu0  ;;  %2722 = vmax.xlane.f32.xlu1 %v2721_v33  ;;  %2713 = vmax.xlane.f32.xlu0 %v2712_v55  ;;  %v18715_v33 = vpop.permute.xlu1 %15614 }
 0x418   : > { %v18703_v63 = vpop.f32.mrb[51].mxu0  ;;  %v2727_v8 = vsel %vm1797_vm0, %v18701_v45, -inf  ;;  %22632 = vst [vmem:[#allocation86_spill] sm:$0xff] %v18715_v33  ;;  %v18717_v55 = vpop.permute.xlu0 %3800 }
 0x419   : > { %v2724_v38 = vsel %vm1797_vm0, %v18703_v63, -inf  ;;  %22633 = vst [vmem:[#allocation87_spill] sm:$0xff] %v18717_v55 }
 0x41b   : > { %2719 = vmax.xlane.f32.xlu1 %v2718_v57  ;;  %v18719_v17 = vpop.permute.xlu1 %3915 }
 0x41c   : > { %22634 = vst [vmem:[#allocation88_spill] sm:$0xff] %v18719_v17  ;;  %v18721_v46 = vpop.permute.xlu0 %15609 }
 0x41f   : > { %2728 = vmax.xlane.f32.xlu1 %v2727_v8  ;;  %v18723_v57 = vpop.permute.xlu1 %15619 }
 0x420   : > { %22635 = vst [vmem:[#allocation89_spill] sm:$0xff] %v18723_v57  ;;  %v18725_v11 = vpop.permute.xlu0 %3804 }
 0x421   : > { %22636 = vst [vmem:[#allocation90_spill] sm:$0xff] %v18725_v11 }
 0x423   : > { %2725 = vmax.xlane.f32.xlu1 %v2724_v38  ;;  %v18727_v8 = vpop.permute.xlu1 %15624 }
 0x424   : > { %22637 = vst [vmem:[#allocation91_spill] sm:$0xff] %v18727_v8  ;;  %v18729_v30 = vpop.permute.xlu0 %3917 }
 0x425   : > { %22638 = vst [vmem:[#allocation92_spill] sm:$0xff] %v18729_v30 }
 0x427   : > { %v18731_v38 = vpop.permute.xlu1 %4032 }
 0x428   : > { %22639 = vst [vmem:[#allocation93_spill] sm:$0xff] %v18731_v38  ;;  %v18733_v34 = vpop.permute.xlu0 %15629 }
 0x429   : > { %22640 = vst [vmem:[#allocation94_spill] sm:$0xff] %v18733_v34 }
 0x42b   : > { %v18735_v0 = vpop.permute.xlu1 %15634 }
 0x42c   : > { %22641 = vst [vmem:[#allocation95_spill] sm:$0xff] %v18735_v0  ;;  %v18737_v33 = vpop.permute.xlu0 %15639 }
 0x42d   : > { %22642 = vst [vmem:[#allocation96_spill] sm:$0xff] %v18737_v33 }
 0x42f   : > { %v18745_v11 = vpop.permute.xlu1 %15644 }
 0x430   : > { %22643 = vst [vmem:[#allocation97_spill] sm:$0xff] %v18745_v11  ;;  %v18747_v8 = vpop.permute.xlu0 %15649 }
 0x431   : > { %22644 = vst [vmem:[#allocation98_spill] sm:$0xff] %v18747_v8 }
 0x466   : > { %v18739_v55 = vpop.f32.mrb[64].mxu1 }
 0x467   : > { %v18741_v17 = vpop.f32.mrb[65].mxu1  ;;  %v2733_v57 = vsel %vm1797_vm0, %v18739_v55, -inf }
 0x468   : > { %2734 = vmax.xlane.f32.xlu0 %v2733_v57  ;;  %v2730_v13 = vsel %vm1797_vm0, %v18741_v17, -inf }
 0x46a   : > { %v18749_v30 = vpop.f32.mrb[66].mxu1  ;;  %v18751_v38 = vpop.f32.mrb[52].mxu0 }
 0x46b   : > { %v18753_v34 = vpop.f32.mrb[67].mxu1  ;;  %v18755_v0 = vpop.f32.mrb[53].mxu0  ;;  %v2745_v33 = vsel %vm1797_vm0, %v18751_v38, -inf  ;;  %v2739_v14 = vsel %vm1797_vm0, %v18749_v30, -inf }
 0x46c   : > { %v2675_v53 = vpop.xlane.xlu1 %2674  ;;  %2746 = vmax.xlane.f32.xlu1 %v2745_v33  ;;  %2731 = vmax.xlane.f32.xlu0 %v2730_v13  ;;  %v2742_v41 = vsel %vm1797_vm0, %v18755_v0, -inf }
 0x46d   : > { %v2672_v57 = vpop.xlane.xlu0 %2671  ;;  %v2767_v8 = vsub.f32 %v18627_v12, %v2675_v53  ;;  %v2736_v12 = vsel %vm1797_vm0, %v18753_v34, -inf }
 0x46e   : > { %v18761_v11 = vpop.f32.mrb[54].mxu0  ;;  %v2766_v52 = vsub.f32 %v18633_v32, %v2672_v57 }
 0x46f   : > { %v18764_v51 = vpop.f32.mrb[55].mxu0  ;;  %v2800_v13 = vmul.f32 1.442695, %v2767_v8  ;;  %v2751_v53 = vsel %vm1797_vm0, %v18761_v11, -inf }
 0x470   : > { %v2681_v22 = vpop.xlane.xlu1 %2680  ;;  %2743 = vmax.xlane.f32.xlu0 %v2742_v41  ;;  %2740 = vmax.xlane.f32.xlu1 %v2739_v14  ;;  %v2798_v50 = vmul.f32 1.442695, %v2766_v52  ;;  %v2748_v14 = vsel %vm1797_vm0, %v18764_v51, -inf }
 0x471   : > { %v2678_v33 = vpop.xlane.xlu0 %2677  ;;  %v2769_v31 = vsub.f32 %v18639_v19, %v2681_v22  ;;  %16392 = vpow2.f32 %v2800_v13 }
 0x472   : > { %v2768_v28 = vsub.f32 %v18641_v26, %v2678_v33  ;;  %16394 = vpow2.f32 %v2798_v50 }
 0x473   : > { %v2804_v32 = vmul.f32 1.442695, %v2769_v31 }
 0x474   : > { %2752 = vmax.xlane.f32.xlu1 %v2751_v53  ;;  %2737 = vmax.xlane.f32.xlu0 %v2736_v12  ;;  %v2802_v41 = vmul.f32 1.442695, %v2768_v28 }
 0x475   : > { %16396 = vpow2.f32 %v2804_v32 }
 0x476   : > { %16398 = vpow2.f32 %v2802_v41 }
 0x478   : > { %2749 = vmax.xlane.f32.xlu0 %v2748_v14 }
 0x47b   : > { %v18779_v22 = vpop.f32.mrb[68].mxu1  ;;  %v18794_v53 = vpop.eup %16392 }
 0x47c   : > { %v18781_v19 = vpop.f32.mrb[69].mxu1  ;;  %v2687_v8 = vpop.xlane.xlu0 %2686  ;;  %v2757_v52 = vsel %vm1797_vm0, %v18779_v22, -inf }
 0x47d   : > { %v2771_v26 = vsub.f32 %v18647_v60, %v2687_v8  ;;  %2758 = vmax.xlane.f32.xlu1 %v2757_v52  ;;  %v2754_v31 = vsel %vm1797_vm0, %v18781_v19, -inf  ;;  %v18799_v32 = vpop.eup %16394  ;;  %v2865_v8 = vsel %vm1797_vm0, %v18794_v53, 0.0 }
 0x47e   : > { %2755 = vmax.xlane.f32.xlu0 %v2754_v31 }
 0x47f   : > { %v2808_v50 = vmul.f32 1.442695, %v2771_v26  ;;  %v18788_v28 = vpop.f32.mrb[70].mxu1  ;;  %v18803_v52 = vpop.eup %16396 }
 0x480   : > { %v18790_v57 = vpop.f32.mrb[71].mxu1  ;;  %v2684_v33 = vpop.xlane.xlu0 %2683  ;;  %v2763_v13 = vsel %vm1797_vm0, %v18788_v28, -inf }
 0x481   : > { %16400 = vpow2.f32 %v2808_v50  ;;  %v2770_v12 = vsub.f32 %v18649_v29, %v2684_v33  ;;  %2764 = vmax.xlane.f32.xlu1 %v2763_v13  ;;  %v2760_v60 = vsel %vm1797_vm0, %v18790_v57, -inf  ;;  %v2862_v29 = vsel %vm1797_vm0, %v18799_v32, 0.0  ;;  %v18808_v31 = vpop.eup %16398 }
 0x482   : > { %2761 = vmax.xlane.f32.xlu0 %v2760_v60  ;;  %v2871_v13 = vsel %vm1797_vm0, %v18803_v52, 0.0  ;;  %v2868_v60 = vsel %vm1797_vm0, %v18808_v31, 0.0 }
 0x483   : > { %v2806_v14 = vmul.f32 1.442695, %v2770_v12 }
 0x484   : > { %v2693_v41 = vpop.xlane.xlu0 %2692 }
 0x485   : > { %16402 = vpow2.f32 %v2806_v14  ;;  %v2773_v26 = vsub.f32 %v18653_v48, %v2693_v41  ;;  %2866 = vadd.xlane.f32.xlu1 %v2865_v8 }
 0x486   : > { %2863 = vadd.xlane.f32.xlu0 %v2862_v29 }
 0x487   : > { %v2812_v50 = vmul.f32 1.442695, %v2773_v26 }
 0x488   : > { %v2690_v33 = vpop.xlane.xlu0 %2689 }
 0x489   : > { %16404 = vpow2.f32 %v2812_v50  ;;  %v2772_v12 = vsub.f32 %v18655_v2, %v2690_v33  ;;  %2872 = vadd.xlane.f32.xlu1 %v2871_v13 }
 0x48a   : > { %2869 = vadd.xlane.f32.xlu0 %v2868_v60 }
 0x48b   : > { %v18815_v48 = vpop.eup %16400  ;;  %v2810_v14 = vmul.f32 1.442695, %v2772_v12 }
 0x48c   : > { %v2699_v41 = vpop.xlane.xlu1 %2698  ;;  %v2877_v8 = vsel %vm1797_vm0, %v18815_v48, 0.0 }
 0x48d   : > { %16406 = vpow2.f32 %v2810_v14  ;;  %v2775_v26 = vsub.f32 %v18663_v36, %v2699_v41 }
 0x48e   : > { %2878 = vadd.xlane.f32.xlu0 %v2877_v8 }
 0x48f   : > { %v18820_v29 = vpop.eup %16402  ;;  %v2816_v50 = vmul.f32 1.442695, %v2775_v26 }
 0x490   : > { %v2696_v2 = vpop.xlane.xlu1 %2695  ;;  %v2874_v33 = vsel %vm1797_vm0, %v18820_v29, 0.0 }
 0x491   : > { %16408 = vpow2.f32 %v2816_v50  ;;  %v2774_v13 = vsub.f32 %v18665_v59, %v2696_v2 }
 0x492   : > { %2875 = vadd.xlane.f32.xlu0 %v2874_v33 }
 0x493   : > { %v18825_v12 = vpop.eup %16404  ;;  %v2814_v60 = vmul.f32 1.442695, %v2774_v13 }
 0x494   : > { %v2705_v24 = vpop.xlane.xlu1 %2704  ;;  %v2883_v14 = vsel %vm1797_vm0, %v18825_v12, 0.0 }
 0x495   : > { %16410 = vpow2.f32 %v2814_v60  ;;  %v2777_v36 = vsub.f32 %v18669_v21, %v2705_v24 }
 0x496   : > { %2884 = vadd.xlane.f32.xlu0 %v2883_v14 }
 0x497   : > { %v18830_v41 = vpop.eup %16406  ;;  %v2820_v8 = vmul.f32 1.442695, %v2777_v36 }
 0x498   : > { %v2702_v26 = vpop.xlane.xlu1 %2701  ;;  %v2880_v50 = vsel %vm1797_vm0, %v18830_v41, 0.0 }
 0x499   : > { %16412 = vpow2.f32 %v2820_v8  ;;  %v2776_v59 = vsub.f32 %v18671_v5, %v2702_v26 }
 0x49a   : > { %2881 = vadd.xlane.f32.xlu0 %v2880_v50 }
 0x49b   : > { %v18835_v2 = vpop.eup %16408  ;;  %v2818_v33 = vmul.f32 1.442695, %v2776_v59 }
 0x49c   : > { %v2711_v13 = vpop.xlane.xlu0 %2710  ;;  %v2889_v60 = vsel %vm1797_vm0, %v18835_v2, 0.0 }
 0x49d   : > { %16414 = vpow2.f32 %v2818_v33  ;;  %v2779_v24 = vsub.f32 %v18679_v47, %v2711_v13  ;;  %2890 = vadd.xlane.f32.xlu1 %v2889_v60 }
 0x49f   : > { %v18840_v21 = vpop.eup %16410  ;;  %v2824_v14 = vmul.f32 1.442695, %v2779_v24 }
 0x4a0   : > { %v2717_v36 = vpop.xlane.xlu1 %2716  ;;  %v2708_v37 = vpop.xlane.xlu0 %2707  ;;  %v2886_v5 = vsel %vm1797_vm0, %v18840_v21, 0.0 }
 0x4a1   : > { %16416 = vpow2.f32 %v2824_v14  ;;  %v2781_v8 = vsub.f32 %v18685_v61, %v2717_v36  ;;  %v2778_v26 = vsub.f32 %v18681_v16, %v2708_v37  ;;  %2887 = vadd.xlane.f32.xlu1 %v2886_v5 }
 0x4a3   : > { %v18846_v50 = vpop.eup %16412  ;;  %v2828_v59 = vmul.f32 1.442695, %v2781_v8  ;;  %v2822_v33 = vmul.f32 1.442695, %v2778_v26 }
 0x4a4   : > { %v2723_v47 = vpop.xlane.xlu1 %2722  ;;  %v2714_v13 = vpop.xlane.xlu0 %2713  ;;  %v2895_v60 = vsel %vm1797_vm0, %v18846_v50, 0.0 }
 0x4a5   : > { %16418 = vpow2.f32 %v2828_v59  ;;  %v2783_v24 = vsub.f32 %v18693_v54, %v2723_v47  ;;  %v2780_v44 = vsub.f32 %v18687_v20, %v2714_v13  ;;  %2896 = vadd.xlane.f32.xlu1 %v2895_v60 }
 0x4a6   : > { %16420 = vpow2.f32 %v2822_v33 }
 0x4a7   : > { %v18852_v61 = vpop.eup %16414  ;;  %v2832_v37 = vmul.f32 1.442695, %v2783_v24  ;;  %v2826_v16 = vmul.f32 1.442695, %v2780_v44 }
 0x4a8   : > { %v2720_v14 = vpop.xlane.xlu1 %2719  ;;  %v2892_v36 = vsel %vm1797_vm0, %v18852_v61, 0.0 }
 0x4a9   : > { %16422 = vpow2.f32 %v2832_v37  ;;  %v2782_v5 = vsub.f32 %v18695_v56, %v2720_v14  ;;  %2893 = vadd.xlane.f32.xlu1 %v2892_v36 }
 0x4aa   : > { %16424 = vpow2.f32 %v2826_v16 }
 0x4ab   : > { %v18857_v8 = vpop.eup %16416  ;;  %v2830_v54 = vmul.f32 1.442695, %v2782_v5 }
 0x4ac   : > { %v2729_v26 = vpop.xlane.xlu1 %2728  ;;  %v2901_v20 = vsel %vm1797_vm0, %v18857_v8, 0.0 }
 0x4ad   : > { %16426 = vpow2.f32 %v2830_v54  ;;  %v2785_v59 = vsub.f32 %v18701_v45, %v2729_v26  ;;  %2902 = vadd.xlane.f32.xlu0 %v2901_v20 }
 0x4af   : > { %v18862_v44 = vpop.eup %16418  ;;  %v2836_v33 = vmul.f32 1.442695, %v2785_v59 }
 0x4b0   : > { %v18864_v47 = vpop.eup %16420  ;;  %v2726_v13 = vpop.xlane.xlu1 %2725  ;;  %v2907_v56 = vsel %vm1797_vm0, %v18862_v44, 0.0 }
 0x4b1   : > { %16428 = vpow2.f32 %v2836_v33  ;;  %v2784_v60 = vsub.f32 %v18703_v63, %v2726_v13  ;;  %2908 = vadd.xlane.f32.xlu1 %v2907_v56  ;;  %v2898_v24 = vsel %vm1797_vm0, %v18864_v47, 0.0 }
 0x4b2   : > { %2899 = vadd.xlane.f32.xlu0 %v2898_v24 }
 0x4b3   : > { %v18871_v37 = vpop.eup %16422  ;;  %v2834_v45 = vmul.f32 1.442695, %v2784_v60 }
 0x4b4   : > { %v18873_v16 = vpop.eup %16424  ;;  %v2913_v14 = vsel %vm1797_vm0, %v18871_v37, 0.0 }
 0x4b5   : > { %16430 = vpow2.f32 %v2834_v45  ;;  %2914 = vadd.xlane.f32.xlu1 %v2913_v14  ;;  %v2904_v36 = vsel %vm1797_vm0, %v18873_v16, 0.0 }
 0x4b6   : > { %2905 = vadd.xlane.f32.xlu0 %v2904_v36 }
 0x4b7   : > { %v18879_v63 = vpop.eup %16426 }
 0x4b8   : > { %v2910_v5 = vsel %vm1797_vm0, %v18879_v63, 0.0 }
 0x4b9   : > { %2911 = vadd.xlane.f32.xlu1 %v2910_v5 }
 0x4bb   : > { %v18883_v54 = vpop.eup %16428 }
 0x4bc   : > { %v2919_v26 = vsel %vm1797_vm0, %v18883_v54, 0.0 }
 0x4bd   : > { %2920 = vadd.xlane.f32.xlu1 %v2919_v26 }
 0x4bf   : > { %v18887_v20 = vpop.eup %16430 }
 0x4c0   : > { %v2916_v59 = vsel %vm1797_vm0, %v18887_v20, 0.0 }
 0x4c1   : > { %2917 = vadd.xlane.f32.xlu1 %v2916_v59 }
 0x4f5   : > { %v2735_v33 = vpop.xlane.xlu0 %2734 }
 0x4f6   : > { %v2787_v13 = vsub.f32 %v18739_v55, %v2735_v33 }
 0x4f8   : > { %v2840_v56 = vmul.f32 1.442695, %v2787_v13 }
 0x4f9   : > { %v2747_v60 = vpop.xlane.xlu1 %2746  ;;  %v2732_v24 = vpop.xlane.xlu0 %2731 }
 0x4fa   : > { %16432 = vpow2.f32 %v2840_v56  ;;  %v2791_v45 = vsub.f32 %v18751_v38, %v2747_v60  ;;  %v2786_v14 = vsub.f32 %v18741_v17, %v2732_v24 }
 0x4fc   : > { %v2848_v36 = vmul.f32 1.442695, %v2791_v45  ;;  %v2838_v5 = vmul.f32 1.442695, %v2786_v14 }
 0x4fd   : > { %v2741_v26 = vpop.xlane.xlu1 %2740  ;;  %v2744_v43 = vpop.xlane.xlu0 %2743 }
 0x4fe   : > { %16434 = vpow2.f32 %v2848_v36  ;;  %v2789_v18 = vsub.f32 %v18749_v30, %v2741_v26  ;;  %v2790_v59 = vsub.f32 %v18755_v0, %v2744_v43 }
 0x4ff   : > { %16436 = vpow2.f32 %v2838_v5 }
 0x500   : > { %v2844_v15 = vmul.f32 1.442695, %v2789_v18  ;;  %v2846_v55 = vmul.f32 1.442695, %v2790_v59 }
 0x501   : > { %v2753_v33 = vpop.xlane.xlu1 %2752  ;;  %v2738_v13 = vpop.xlane.xlu0 %2737 }
 0x502   : > { %16438 = vpow2.f32 %v2844_v15  ;;  %v2793_v56 = vsub.f32 %v18761_v11, %v2753_v33  ;;  %v2788_v38 = vsub.f32 %v18753_v34, %v2738_v13 }
 0x503   : > { %16440 = vpow2.f32 %v2846_v55 }
 0x504   : > { %v18898_v17 = vpop.eup %16432  ;;  %v2852_v60 = vmul.f32 1.442695, %v2793_v56  ;;  %v2842_v24 = vmul.f32 1.442695, %v2788_v38 }
 0x505   : > { %v2750_v45 = vpop.xlane.xlu0 %2749  ;;  %v2925_v30 = vsel %vm1797_vm0, %v18898_v17, 0.0 }
 0x506   : > { %16442 = vpow2.f32 %v2852_v60  ;;  %v2792_v18 = vsub.f32 %v18764_v51, %v2750_v45  ;;  %2926 = vadd.xlane.f32.xlu0 %v2925_v30 }
 0x507   : > { %16444 = vpow2.f32 %v2842_v24 }
 0x508   : > { %v18903_v43 = vpop.eup %16434  ;;  %v2850_v15 = vmul.f32 1.442695, %v2792_v18 }
 0x509   : > { %v18905_v11 = vpop.eup %16436  ;;  %v2937_v34 = vsel %vm1797_vm0, %v18903_v43, 0.0 }
 0x50a   : > { %16446 = vpow2.f32 %v2850_v15  ;;  %v2759_v0 = vpop.xlane.xlu1 %2758  ;;  %2938 = vadd.xlane.f32.xlu1 %v2937_v34  ;;  %v2922_v14 = vsel %vm1797_vm0, %v18905_v11, 0.0 }
 0x50b   : > { %v2795_v36 = vsub.f32 %v18779_v22, %v2759_v0  ;;  %2923 = vadd.xlane.f32.xlu0 %v2922_v14  ;;  %v2756_v51 = vpop.xlane.xlu0 %2755 }
 0x50c   : > { %v18912_v5 = vpop.eup %16438  ;;  %v2794_v26 = vsub.f32 %v18781_v19, %v2756_v51 }
 0x50d   : > { %v18915_v59 = vpop.eup %16440  ;;  %v2856_v55 = vmul.f32 1.442695, %v2795_v36  ;;  %v2931_v33 = vsel %vm1797_vm0, %v18912_v5, 0.0 }
 0x50e   : > { %v2854_v13 = vmul.f32 1.442695, %v2794_v26  ;;  %v18919_v56 = vpop.xlane.xlu1 %2764  ;;  %2932 = vadd.xlane.f32.xlu1 %v2931_v33  ;;  %v2934_v38 = vsel %vm1797_vm0, %v18915_v59, 0.0 }
 0x50f   : > { %16448 = vpow2.f32 %v2856_v55  ;;  %2935 = vadd.xlane.f32.xlu0 %v2934_v38  ;;  %v18923_v22 = vpop.xlane.xlu0 %2761 }
 0x510   : > { %v18925_v60 = vpop.eup %16442  ;;  %16450 = vpow2.f32 %v2854_v13 }
 0x511   : > { %v18927_v19 = vpop.eup %16444  ;;  %v2943_v24 = vsel %vm1797_vm0, %v18925_v60, 0.0 }
 0x512   : > { %v2867_v45 = vpop.xlane.xlu1 %2866  ;;  %2944 = vadd.xlane.f32.xlu1 %v2943_v24  ;;  %v2928_v30 = vsel %vm1797_vm0, %v18927_v19, 0.0 }
 0x513   : > { %2929 = vadd.xlane.f32.xlu0 %v2928_v30  ;;  %v2864_v18 = vpop.xlane.xlu0 %2863  ;;  %16452 = vrcp.f32 %v2867_v45 }
 0x514   : > { %v18933_v15 = vpop.eup %16446  ;;  %16454 = vrcp.f32 %v2864_v18 }
 0x515   : > { %v2940_v34 = vsel %vm1797_vm0, %v18933_v15, 0.0 }
 0x516   : > { %v2873_v0 = vpop.xlane.xlu1 %2872 }
 0x517   : > { %2941 = vadd.xlane.f32.xlu0 %v2940_v34  ;;  %v2870_v14 = vpop.xlane.xlu0 %2869 }
 0x518   : > { %16456 = vrcp.f32 %v2870_v14 }
 0x519   : > { %v18937_v36 = vpop.eup %16448  ;;  %16458 = vrcp.f32 %v2873_v0 }
 0x51a   : > { %v18939_v51 = vpop.eup %16450  ;;  %v2949_v26 = vsel %vm1797_vm0, %v18937_v36, 0.0 }
 0x51b   : > { %2950 = vadd.xlane.f32.xlu1 %v2949_v26  ;;  %v2879_v55 = vpop.xlane.xlu0 %2878  ;;  %v2946_v33 = vsel %vm1797_vm0, %v18939_v51, 0.0 }
 0x51c   : > { %2947 = vadd.xlane.f32.xlu0 %v2946_v33  ;;  %16460 = vrcp.f32 %v2879_v55 }
 0x51d   : > { %v16453_v13 = vpop.eup %16452 }
 0x51e   : > { %v16455_v24 = vpop.eup %16454  ;;  %v2991_v18 = vmul.f32 %v16453_v13, %v18794_v53 }
 0x51f   : > { %v2876_v38 = vpop.xlane.xlu0 %2875  ;;  %v2990_v45 = vmul.f32 %v16455_v24, %v18799_v32 }
 0x520   : > { %16462 = vrcp.f32 %v2876_v38 }
 0x521   : > { %13674 = vmatprep.mubr.msk.f32.mxu0 %vm1797_vm0, %v2990_v45 }
 0x522   : > { %v16457_v30 = vpop.eup %16456  ;;  %13675 = vmatmul.mubr.msk.f32.vlgmr.msra.gmra.mrb[56].mxu0 %vm1797_vm0, %v2991_v18 }
 0x523   : > { %v16459_v34 = vpop.eup %16458  ;;  %v2885_v0 = vpop.xlane.xlu0 %2884  ;;  %v2992_v14 = vmul.f32 %v16457_v30, %v18808_v31  ;;  %14869 = vmatpush3.bf16.msra.mxu0 %v18559_v27  ;;  %v2797_v30 = vsub.f32 %v18788_v28, %v18919_v56 }
 0x524   : > { %14871 = vmatprep.subr.bf16.mxu0 %v18566_v39  ;;  %v2993_v26 = vmul.f32 %v16459_v34, %v18803_v52  ;;  %16464 = vrcp.f32 %v2885_v0 }
 0x525   : > { %13677 = vmatprep.mubr.msk.f32.mxu0 %vm1797_vm0, %v2992_v14  ;;  %v2860_v34 = vmul.f32 1.442695, %v2797_v30  ;;  %v22651_v30 = vld [vmem:[#allocation45_spill] sm:$0xff] }
 0x526   : > { %13678 = vmatmul.mubr.msk.f32.gmra.mrb[58].mxu0 %vm1797_vm0, %v2993_v26  ;;  %v16461_v53 = vpop.eup %16460 }
 0x527   : > { %v2882_v32 = vpop.xlane.xlu0 %2881  ;;  %14873 = vmatpush3.bf16.msra.mxu0 %v18566_v39  ;;  %v2995_v33 = vmul.f32 %v16461_v53, %v18815_v48 }
 0x528   : > { %16466 = vrcp.f32 %v2882_v32  ;;  %14883 = vmatprep.subr.bf16.mxu0 %v18585_v6 }
 0x52a   : > { %v16463_v55 = vpop.eup %16462  ;;  %v2891_v31 = vpop.xlane.xlu1 %2890 }
 0x52b   : > { %v2994_v27 = vmul.f32 %v16463_v55, %v18820_v29  ;;  %16468 = vrcp.f32 %v2891_v31 }
 0x52c   : > { %3919 = vrot.lane.b32.xlu1 %v18308_v35, %s17216_s0 }
 0x52d   : > { %13688 = vmatprep.mubr.msk.f32.mxu1 %vm1797_vm0, %v2994_v27 }
 0x52e   : > { %v2888_v52 = vpop.xlane.xlu1 %2887  ;;  %13689 = vmatmul.mubr.msk.f32.vlgmr.msra.gmra.mrb[72].mxu1 %vm1797_vm0, %v2995_v33  ;;  %v16465_v39 = vpop.eup %16464 }
 0x52f   : > { %16470 = vrcp.f32 %v2888_v52  ;;  %14877 = vmatpush3.bf16.msra.mxu1 %v18572_v49  ;;  %v2997_v29 = vmul.f32 %v16465_v39, %v18825_v12 }
 0x530   : > { %14879 = vmatprep.subr.bf16.mxu1 %v18579_v23 }
 0x532   : > { %v16467_v13 = vpop.eup %16466  ;;  %v2897_v38 = vpop.xlane.xlu1 %2896  ;;  %4034 = vrot.lane.b32.xlu0 %v18353_v4, %s17216_s0 }
 0x533   : > { %14881 = vmatpush3.bf16.msra.mxu1 %v18579_v23  ;;  %v2996_v48 = vmul.f32 %v16467_v13, %v18830_v41  ;;  %16472 = vrcp.f32 %v2897_v38  ;;  %v2796_v23 = vsub.f32 %v18790_v57, %v18923_v22 }
 0x534   : > { %14891 = vmatprep.subr.bf16.mxu1 %v18597_v58 }
 0x535   : > { %13691 = vmatprep.mubr.msk.f32.mxu1 %vm1797_vm0, %v2996_v48  ;;  %v16469_v24 = vpop.eup %16468  ;;  %v2858_v0 = vmul.f32 1.442695, %v2796_v23  ;;  %v22652_v23 = vld [vmem:[#allocation41_spill] sm:$0xff] }
 0x536   : > { %v2894_v49 = vpop.xlane.xlu1 %2893  ;;  %13692 = vmatmul.mubr.msk.f32.gmra.mrb[74].mxu1 %vm1797_vm0, %v2997_v29  ;;  %v2999_v12 = vmul.f32 %v16469_v24, %v18835_v2 }
 0x537   : > { %16474 = vrcp.f32 %v2894_v49 }
 0x539   : > { %v16471_v45 = vpop.eup %16470 }
 0x53a   : > { %v2903_v41 = vpop.xlane.xlu0 %2902  ;;  %v2998_v18 = vmul.f32 %v16471_v45, %v18840_v21  ;;  %v22650_v45 = vld [vmem:[#allocation42_spill] sm:$0xff] }
 0x53b   : > { %16476 = vrcp.f32 %v2903_v41  ;;  %v22653_v41 = vld [vmem:[#allocation54_spill] sm:$0xff] }
 0x53c   : > { %13702 = vmatprep.mubr.msk.f32.mxu0 %vm1797_vm0, %v2998_v18  ;;  %v22654_v18 = vld [vmem:[#allocation49_spill] sm:$0xff] }
 0x53d   : > { %13703 = vmatmul.mubr.msk.f32.vlgmr.msra.gmra.mrb[60].mxu0 %vm1797_vm0, %v2999_v12  ;;  %v16473_v56 = vpop.eup %16472  ;;  %v22655_v12 = vld [vmem:[#allocation47_spill] sm:$0xff] }
 0x53e   : > { %14885 = vmatpush3.bf16.msra.mxu0 %v18585_v6  ;;  %v2909_v14 = vpop.xlane.xlu1 %2908  ;;  %v3001_v6 = vmul.f32 %v16473_v56, %v18846_v50  ;;  %v22660_v56 = vld [vmem:[#allocation55_spill] sm:$0xff] }
 0x53f   : > { %14887 = vmatprep.subr.bf16.mxu0 %v18591_v10  ;;  %v2900_v28 = vpop.xlane.xlu0 %2899 }
 0x540   : > { %16478 = vrcp.f32 %v2900_v28  ;;  %v22659_v28 = vld [vmem:[#allocation63_spill] sm:$0xff] }
 0x541   : > { %v16475_v57 = vpop.eup %16474  ;;  %16480 = vpow2.f32 %v2860_v34  ;;  %v22656_v34 = vld [vmem:[#allocation46_spill] sm:$0xff] }
 0x542   : > { %16482 = vpow2.f32 %v2858_v0  ;;  %14889 = vmatpush3.bf16.msra.mxu0 %v18591_v10  ;;  %v2915_v2 = vpop.xlane.xlu1 %2914  ;;  %v3000_v21 = vmul.f32 %v16475_v57, %v18852_v61  ;;  %v22657_v0 = vld [vmem:[#allocation50_spill] sm:$0xff]  ;;  %v22661_v57 = vld [vmem:[#allocation57_spill] sm:$0xff] }
 0x543   : > { %16484 = vrcp.f32 %v2909_v14  ;;  %14899 = vmatprep.subr.bf16.mxu0 %v18609_v1  ;;  %v2906_v22 = vpop.xlane.xlu0 %2905  ;;  %v22658_v14 = vld [vmem:[#allocation59_spill] sm:$0xff] }
 0x544   : > { %16486 = vrcp.f32 %v2906_v22  ;;  %13705 = vmatprep.mubr.msk.f32.mxu0 %vm1797_vm0, %v3000_v21  ;;  %v22663_v21 = vld [vmem:[#allocation58_spill] sm:$0xff]  ;;  %v22664_v22 = vld [vmem:[#allocation52_spill] sm:$0xff] }
 0x545   : > { %13706 = vmatmul.mubr.msk.f32.gmra.mrb[62].mxu0 %vm1797_vm0, %v3001_v6  ;;  %16488 = vrcp.f32 %v2915_v2  ;;  %v16477_v32 = vpop.eup %16476  ;;  %v22662_v2 = vld [vmem:[#allocation51_spill] sm:$0xff]  ;;  %v22665_v6 = vld [vmem:[#allocation66_spill] sm:$0xff] }
 0x546   : > { %v2912_v26 = vpop.xlane.xlu1 %2911  ;;  %v3003_v27 = vmul.f32 %v16477_v32, %v18857_v8 }
 0x547   : > { %16490 = vrcp.f32 %v2912_v26  ;;  %v22666_v26 = vld [vmem:[#allocation56_spill] sm:$0xff] }
 0x54a   : > { %v16479_v53 = vpop.eup %16478  ;;  %v2921_v10 = vpop.xlane.xlu1 %2920 }
 0x54b   : > { %v18989_v55 = vpop.eup %16480  ;;  %v3002_v61 = vmul.f32 %v16479_v53, %v18864_v47  ;;  %16492 = vrcp.f32 %v2921_v10  ;;  %v22667_v53 = vld [vmem:[#allocation62_spill] sm:$0xff]  ;;  %v22668_v10 = vld [vmem:[#allocation61_spill] sm:$0xff] }
 0x54c   : > { %v18992_v31 = vpop.eup %16482  ;;  %v2955_v39 = vsel %vm1797_vm0, %v18989_v55, 0.0 }
 0x54d   : > { %v16485_v50 = vpop.eup %16484  ;;  %13716 = vmatprep.mubr.msk.f32.mxu1 %vm1797_vm0, %v3002_v61  ;;  %v2952_v8 = vsel %vm1797_vm0, %v18992_v31, 0.0 }
 0x54e   : > { %v16487_v33 = vpop.eup %16486  ;;  %13717 = vmatmul.mubr.msk.f32.vlgmr.msra.gmra.mrb[76].mxu1 %vm1797_vm0, %v3003_v27  ;;  %v2918_v52 = vpop.xlane.xlu1 %2917  ;;  %v3005_v38 = vmul.f32 %v16485_v50, %v18862_v44  ;;  %v15611_v44 = vunpack.i.l.bf16 %v18721_v46  ;;  %v22669_v50 = vld [vmem:[#allocation69_spill] sm:$0xff] }
 0x54f   : > { %14893 = vmatpush3.bf16.msra.mxu1 %v18597_v58  ;;  %16494 = vrcp.f32 %v2918_v52  ;;  %v3004_v47 = vmul.f32 %v16487_v33, %v18873_v16  ;;  %v16489_v13 = vpop.eup %16488  ;;  %v15612_v16 = vunpack.i.h.bf16 %v18721_v46  ;;  %v22670_v33 = vld [vmem:[#allocation60_spill] sm:$0xff] }
 0x550   : > { %14895 = vmatprep.subr.bf16.mxu1 %v18603_v25  ;;  %2956 = vadd.xlane.f32.xlu1 %v2955_v39  ;;  %v3007_v29 = vmul.f32 %v16489_v13, %v18871_v37  ;;  %v22647_v37 = vld [vmem:[#allocation53_spill] sm:$0xff]  ;;  %v22672_v13 = vld [vmem:[#allocation67_spill] sm:$0xff] }
 0x551   : > { %v16491_v48 = vpop.eup %16490  ;;  %13719 = vmatprep.mubr.msk.f32.mxu1 %vm1797_vm0, %v3004_v47  ;;  %2953 = vadd.xlane.f32.xlu0 %v2952_v8  ;;  %v19017_v24 = vpack.c.bf16 %v15612_v16, %v15611_v44  ;;  %v22671_v47 = vld [vmem:[#allocation65_spill] sm:$0xff]  ;;  %v22674_v16 = vld [vmem:[#allocation64_spill] sm:$0xff] }
 0x552   : > { %13720 = vmatmul.mubr.msk.f32.gmra.mrb[78].mxu1 %vm1797_vm0, %v3005_v38  ;;  %v3006_v58 = vmul.f32 %v16491_v48, %v18879_v63  ;;  %v22673_v48 = vld [vmem:[#allocation71_spill] sm:$0xff] }
 0x553   : > { %14897 = vmatpush3.bf16.msra.mxu1 %v18603_v25 }
 0x554   : > { %14907 = vmatprep.subr.bf16.mxu1 %v18621_v62  ;;  %13730 = vmatprep.mubr.msk.f32.mxu0 %vm1797_vm0, %v3006_v58 }
 0x555   : > { %13731 = vmatmul.mubr.msk.f32.vlgmr.msra.gmra.mrb[64].mxu0 %vm1797_vm0, %v3007_v29  ;;  %v16493_v49 = vpop.eup %16492 }
 0x556   : > { %14901 = vmatpush3.bf16.msra.mxu0 %v18609_v1  ;;  %v3009_v46 = vmul.f32 %v16493_v49, %v18883_v54  ;;  %v22645_v1 = vld [vmem:[#allocation40_spill] sm:$0xff] }
 0x557   : > { %14903 = vmatprep.subr.bf16.mxu0 %v18615_v40  ;;  %v22648_v54 = vld [vmem:[#allocation44_spill] sm:$0xff] }
 0x559   : > { %v16495_v63 = vpop.eup %16494 }
 0x55a   : > { %14905 = vmatpush3.bf16.msra.mxu0 %v18615_v40  ;;  %v3008_v25 = vmul.f32 %v16495_v63, %v18887_v20  ;;  %v22646_v40 = vld [vmem:[#allocation48_spill] sm:$0xff]  ;;  %v22649_v20 = vld [vmem:[#allocation39_spill] sm:$0xff] }
 0x55b   : > { %14916 = vmatprep.subr.msk.bf16.mxu0 %vm18203_vm1, %v19017_v24 }
 0x55c   : > { %13733 = vmatprep.mubr.msk.f32.mxu0 %vm1797_vm0, %v3008_v25  ;;  %v22675_v25 = vld [vmem:[#allocation72_spill] sm:$0xff] }
 0x55d   : > { %13734 = vmatmul.mubr.msk.f32.gmra.mrb[66].mxu0 %vm1797_vm0, %v3009_v46 }
 0x561   : > { %15654 = vrot.lane.b32.xlu1 %v18394_v42, %s17216_s0 }
 0x565   : > { %4149 = vrot.lane.b32.xlu1 %v18374_v7, %s17216_s0 }
 0x567   : > { %3921 = vrot.lane.b32.xlu0 %v18321_v9, %s17216_s0 }
 0x569   : > { %4036 = vrot.lane.b32.xlu1 %v22645_v1, %s17216_s0 }
 0x56b   : > { %15659 = vrot.lane.b32.xlu0 %v22646_v40, %s17216_s0 }
 0x56d   : > { %15664 = vrot.lane.b32.xlu1 %v22647_v37, %s17216_s0 }
 0x56f   : > { %4151 = vrot.lane.b32.xlu0 %v22648_v54, %s17216_s0 }
 0x571   : > { %4266 = vrot.lane.b32.xlu1 %v22649_v20, %s17216_s0 }
 0x573   : > { %4038 = vrot.lane.b32.xlu0 %v22650_v45, %s17216_s0 }
 0x575   : > { %4153 = vrot.lane.b32.xlu1 %v22651_v30, %s17216_s0 }
 0x577   : > { %15669 = vrot.lane.b32.xlu0 %v22652_v23, %s17216_s0 }
 0x579   : > { %15674 = vrot.lane.b32.xlu1 %v22653_v41, %s17216_s0 }
 0x57b   : > { %4268 = vrot.lane.b32.xlu0 %v22654_v18, %s17216_s0 }
 0x57d   : > { %4383 = vrot.lane.b32.xlu1 %v22655_v12, %s17216_s0 }
 0x57f   : > { %4155 = vrot.lane.b32.xlu0 %v22656_v34, %s17216_s0 }
 0x581   : > { %4270 = vrot.lane.b32.xlu1 %v22657_v0, %s17216_s0 }
 0x583   : > { %15679 = vrot.lane.b32.xlu0 %v22658_v14, %s17216_s0 }
 0x585   : > { %15684 = vrot.lane.b32.xlu1 %v22659_v28, %s17216_s0 }
 0x587   : > { %4385 = vrot.lane.b32.xlu0 %v22660_v56, %s17216_s0 }
 0x589   : > { %4502 = vrot.lane.b32.xlu1 %v22661_v57, %s17216_s0 }
 0x58b   : > { %4272 = vrot.lane.b32.xlu0 %v22662_v2, %s17216_s0 }
 0x58d   : > { %4389 = vrot.lane.b32.xlu1 %v22663_v21, %s17216_s0 }
 0x58f   : > { %4500 = vrot.lane.b32.xlu0 %v22664_v22, %s17216_s0 }
 0x591   : > { %4619 = vrot.lane.b32.xlu1 %v22665_v6, %s17216_s0 }
 0x593   : > { %4387 = vrot.lane.b32.xlu0 %v22666_v26, %s17216_s0  ;;  %v2927_v32 = vpop.xlane.xlu0 %2926 }
 0x594   : > { %16496 = vrcp.f32 %v2927_v32 }
 0x595   : > { %4506 = vrot.lane.b32.xlu1 %v22667_v53, %s17216_s0 }
 0x597   : > { %4617 = vrot.lane.b32.xlu0 %v22668_v10, %s17216_s0  ;;  %v2939_v61 = vpop.xlane.xlu1 %2938 }
 0x598   : > { %v2924_v27 = vpop.xlane.xlu0 %2923 }
 0x599   : > { %16498 = vrcp.f32 %v2924_v27  ;;  %4623 = vrot.lane.b32.xlu1 %v22669_v50, %s17216_s0 }
 0x59a   : > { %16500 = vrcp.f32 %v2939_v61  ;;  %v22676_v61 = vld [vmem:[#allocation86_spill] sm:$0xff] }
 0x59b   : > { %4504 = vrot.lane.b32.xlu0 %v22670_v33, %s17216_s0  ;;  %v2933_v52 = vpop.xlane.xlu1 %2932  ;;  %v15617_v27 = vunpack.i.h.bf16 %v22676_v61 }
 0x59c   : > { %v2936_v39 = vpop.xlane.xlu0 %2935 }
 0x59d   : > { %16502 = vrcp.f32 %v2936_v39  ;;  %15694 = vrot.lane.b32.xlu1 %v22671_v47, %s17216_s0  ;;  %v22677_v39 = vld [vmem:[#allocation89_spill] sm:$0xff]  ;;  %v22764_v47 = vld [vmem:[#allocation38_spill] sm:$0xff] }
 0x59e   : > { %16504 = vrcp.f32 %v2933_v52  ;;  %v16497_v58 = vpop.eup %16496  ;;  %v15616_v52 = vunpack.i.l.bf16 %v22676_v61 }
 0x59f   : > { %4621 = vrot.lane.b32.xlu0 %v22672_v13, %s17216_s0  ;;  %v2945_v38 = vpop.xlane.xlu1 %2944  ;;  %v3011_v63 = vmul.f32 %v16497_v58, %v18898_v17 }
 0x5a0   : > { %v2930_v8 = vpop.xlane.xlu0 %2929 }
 0x5a1   : > { %16506 = vrcp.f32 %v2930_v8  ;;  %15704 = vrot.lane.b32.xlu1 %v22673_v48, %s17216_s0  ;;  %v15622_v8 = vunpack.i.h.bf16 %v22677_v39 }
 0x5a2   : > { %16508 = vrcp.f32 %v2945_v38  ;;  %v15621_v38 = vunpack.i.l.bf16 %v22677_v39 }
 0x5a3   : > { %v16499_v29 = vpop.eup %16498  ;;  %15689 = vrot.lane.b32.xlu0 %v22674_v16, %s17216_s0 }
 0x5a4   : > { %v2942_v44 = vpop.xlane.xlu0 %2941  ;;  %v3010_v49 = vmul.f32 %v16499_v29, %v18905_v11  ;;  %v16501_v46 = vpop.eup %16500  ;;  %v22678_v11 = vld [vmem:[#allocation68_spill] sm:$0xff]  ;;  %v14926_v16 = vpack.c.bf16 %v15622_v8, %v15621_v38 }
 0x5a5   : > { %16510 = vrcp.f32 %v2942_v44  ;;  %15714 = vrot.lane.b32.xlu1 %v22675_v25, %s17216_s0  ;;  %v3015_v29 = vmul.f32 %v16501_v46, %v18903_v43  ;;  %v22679_v44 = vld [vmem:[#allocation82_spill] sm:$0xff] }
 0x5a6   : > { %13744 = vmatprep.mubr.msk.f32.mxu1 %vm1797_vm0, %v3010_v49  ;;  %v22680_v49 = vld [vmem:[#allocation75_spill] sm:$0xff] }
 0x5a7   : > { %v16503_v32 = vpop.eup %16502  ;;  %15699 = vrot.lane.b32.xlu0 %v22678_v11, %s17216_s0  ;;  %13745 = vmatmul.mubr.msk.f32.vlgmr.msra.gmra.mrb[80].mxu1 %vm1797_vm0, %v3011_v63  ;;  %v14920_v63 = vpack.c.bf16 %v15617_v27, %v15616_v52  ;;  %v22683_v52 = vld [vmem:[#allocation94_spill] sm:$0xff] }
 0x5a8   : > { %14909 = vmatpush3.bf16.msra.mxu1 %v18621_v62  ;;  %v2951_v17 = vpop.xlane.xlu1 %2950  ;;  %v3014_v58 = vmul.f32 %v16503_v32, %v18915_v59  ;;  %v16505_v39 = vpop.eup %16504  ;;  %v22681_v62 = vld [vmem:[#allocation70_spill] sm:$0xff]  ;;  %v22682_v32 = vld [vmem:[#allocation76_spill] sm:$0xff]  ;;  %v15632_v8 = vunpack.i.h.bf16 %v22683_v52 }
 0x5a9   : > { %16512 = vrcp.f32 %v2951_v17  ;;  %14911 = vmatprep.subr.bf16.mxu1 %v22679_v44  ;;  %15724 = vrot.lane.b32.xlu1 %v22680_v49, %s17216_s0  ;;  %v2948_v61 = vpop.xlane.xlu0 %2947  ;;  %v3013_v59 = vmul.f32 %v16505_v39, %v18912_v5 }
 0x5aa   : > { %16514 = vrcp.f32 %v2948_v61  ;;  %13758 = vmatprep.mubr.msk.f32.mxu0 %vm1797_vm0, %v3014_v58  ;;  %v22687_v61 = vld [vmem:[#allocation91_spill] sm:$0xff] }
 0x5ab   : > { %v16507_v11 = vpop.eup %16506  ;;  %15709 = vrot.lane.b32.xlu0 %v22681_v62, %s17216_s0  ;;  %13759 = vmatmul.mubr.msk.f32.vlgmr.msra.gmra.mrb[68].mxu0 %vm1797_vm0, %v3015_v29  ;;  %v22686_v29 = vld [vmem:[#allocation74_spill] sm:$0xff]  ;;  %v15627_v39 = vunpack.i.h.bf16 %v22687_v61 }
 0x5ac   : > { %14913 = vmatpush3.bf16.msra.mxu1 %v22679_v44  ;;  %14919 = vmatpush3.bf16.xpose.msk.msra.mxu0 %vm18203_vm1, %v19017_v24  ;;  %v3012_v43 = vmul.f32 %v16507_v11, %v18927_v19  ;;  %v16509_v46 = vpop.eup %16508  ;;  %v15631_v24 = vunpack.i.l.bf16 %v22683_v52  ;;  %v22684_v19 = vld [vmem:[#allocation73_spill] sm:$0xff]  ;;  %v22685_v11 = vld [vmem:[#allocation79_spill] sm:$0xff] }
 0x5ad   : > { %14922 = vmatprep.subr.msk.bf16.mxu0 %vm18203_vm1, %v14920_v63  ;;  %14928 = vmatprep.subr.msk.bf16.mxu1 %vm18203_vm1, %v14926_v16  ;;  %v3017_v5 = vmul.f32 %v16509_v46, %v18925_v60  ;;  %v22688_v60 = vld [vmem:[#allocation84_spill] sm:$0xff]  ;;  %v22689_v46 = vld [vmem:[#allocation81_spill] sm:$0xff] }
 0x5ae   : > { %15734 = vrot.lane.b32.xlu1 %v22682_v32, %s17216_s0  ;;  %13747 = vmatprep.mubr.msk.f32.mxu1 %vm1797_vm0, %v3012_v43  ;;  %v14938_v58 = vpack.c.bf16 %v15632_v8, %v15631_v24  ;;  %v15626_v43 = vunpack.i.l.bf16 %v22687_v61  ;;  %v22691_v24 = vld [vmem:[#allocation77_spill] sm:$0xff] }
 0x5af   : > { %v16511_v27 = vpop.eup %16510  ;;  %15719 = vrot.lane.b32.xlu0 %v22684_v19, %s17216_s0  ;;  %13748 = vmatmul.mubr.msk.f32.gmra.mrb[82].mxu1 %vm1797_vm0, %v3013_v59 }
 0x5b0   : > { %v3016_v38 = vmul.f32 %v16511_v27, %v18933_v15  ;;  %v22690_v27 = vld [vmem:[#allocation95_spill] sm:$0xff] }
 0x5b1   : > { %v15637_v52 = vunpack.i.h.bf16 %v22690_v27  ;;  %v15636_v8 = vunpack.i.l.bf16 %v22690_v27  ;;  %v22700_v27 = vld [vmem:[#allocation80_spill] sm:$0xff] }
 0x5b2   : > { %15744 = vrot.lane.b32.xlu1 %v22685_v11, %s17216_s0  ;;  %13761 = vmatprep.mubr.msk.f32.mxu0 %vm1797_vm0, %v3016_v38  ;;  %v22693_v38 = vld [vmem:[#allocation87_spill] sm:$0xff] }
 0x5b3   : > { %v16513_v17 = vpop.eup %16512  ;;  %15729 = vrot.lane.b32.xlu0 %v22686_v29, %s17216_s0  ;;  %13762 = vmatmul.mubr.msk.f32.gmra.mrb[70].mxu0 %vm1797_vm0, %v3017_v5  ;;  %v22694_v5 = vld [vmem:[#allocation78_spill] sm:$0xff] }
 0x5b4   : > { %v16515_v44 = vpop.eup %16514  ;;  %14925 = vmatpush3.bf16.xpose.msk.msra.mxu0 %vm18203_vm1, %v14920_v63  ;;  %13786 = vmatprep.mubr.msk.f32.mxu0 %vm1797_vm0, %v22688_v60  ;;  %v3019_v59 = vmul.f32 %v16513_v17, %v18937_v36  ;;  %v14932_v63 = vpack.c.bf16 %v15627_v39, %v15626_v43  ;;  %v22692_v36 = vld [vmem:[#allocation25_spill] sm:$0xff]  ;;  %v22695_v17 = vld [vmem:[#allocation96_spill] sm:$0xff]  ;;  %v22698_v43 = vld [vmem:[#allocation98_spill] sm:$0xff] }
 0x5b5   : > { %14940 = vmatprep.subr.msk.bf16.mxu0 %vm18203_vm1, %v14938_v58  ;;  %v3018_v15 = vmul.f32 %v16515_v44, %v18939_v51  ;;  %v14944_v51 = vpack.c.bf16 %v15637_v52, %v15636_v8  ;;  %v15642_v44 = vunpack.i.h.bf16 %v22695_v17  ;;  %v15641_v61 = vunpack.i.l.bf16 %v22695_v17  ;;  %v22696_v39 = vld [vmem:[#allocation85_spill] sm:$0xff]  ;;  %v22703_v17 = vld [vmem:[#allocation83_spill] sm:$0xff] }
 0x5b6   : > { %15759 = vrot.lane.b32.xlu1 %v22689_v46, %s17216_s0  ;;  %v15652_v60 = vunpack.i.h.bf16 %v22698_v43  ;;  %v22701_v8 = vld [vmem:[#allocation93_spill] sm:$0xff] }
 0x5b7   : > { %15739 = vrot.lane.b32.xlu0 %v22691_v24, %s17216_s0  ;;  %13772 = vmatprep.mubr.msk.f32.mxu1 %vm1797_vm0, %v3018_v15  ;;  %v15651_v15 = vunpack.i.l.bf16 %v22698_v43  ;;  %v14950_v52 = vpack.c.bf16 %v15642_v44, %v15641_v61  ;;  %v22704_v44 = vld [vmem:[#allocation32_spill] sm:$0xff]  ;;  %v4035_v61 = vpop.permute.xlu0 %4034  ;;  %v22707_v43 = vld [vmem:[#allocation23_spill] sm:$0xff] }
 0x5b8   : > { %13773 = vmatmul.mubr.msk.f32.vlgmr.msra.gmra.mrb[84].mxu1 %vm1797_vm0, %v3019_v59  ;;  %v22699_v59 = vld [vmem:[#allocation90_spill] sm:$0xff] }
 0x5b9   : > { %14931 = vmatpush3.bf16.xpose.msk.msra.mxu1 %vm18203_vm1, %v14926_v16  ;;  %v22697_v16 = vld [vmem:[#allocation28_spill] sm:$0xff] }
 0x5ba   : > { %15769 = vrot.lane.b32.xlu1 %v22692_v36, %s17217_s4  ;;  %14934 = vmatprep.subr.msk.bf16.mxu1 %vm18203_vm1, %v14932_v63 }
 0x5bb   : > { %13787 = vmatmul.mubr.msk.f32.vlgmr.msra.gmra.mrb[72].mxu0 %vm1797_vm0, %v22693_v38  ;;  %15749 = vrot.lane.b32.xlu0 %v22694_v5, %s17216_s0  ;;  %v14962_v38 = vpack.c.bf16 %v15652_v60, %v15651_v15  ;;  %v22709_v60 = vld [vmem:[#allocation37_spill] sm:$0xff] }
 0x5bc   : > { %13789 = vmatprep.mubr.msk.f32.mxu0 %vm1797_vm0, %v22696_v39  ;;  %14943 = vmatpush3.bf16.xpose.msk.msra.mxu0 %vm18203_vm1, %v14938_v58  ;;  %v22702_v58 = vld [vmem:[#allocation31_spill] sm:$0xff]  ;;  %v22706_v39 = vld [vmem:[#allocation22_spill] sm:$0xff]  ;;  %v22710_v15 = vld [vmem:[#allocation29_spill] sm:$0xff] }
 0x5bd   : > { %14946 = vmatprep.subr.msk.bf16.mxu0 %vm18203_vm1, %v14944_v51 }
 0x5be   : > { %15774 = vrot.lane.b32.xlu1 %v22697_v16, %s17217_s4 }
 0x5bf   : > { %13790 = vmatmul.mubr.msk.f32.gmra.mrb[74].mxu0 %vm1797_vm0, %v22699_v59  ;;  %15754 = vrot.lane.b32.xlu0 %v22700_v27, %s17216_s0  ;;  %v22711_v59 = vld [vmem:[#allocation30_spill] sm:$0xff] }
 0x5c0   : > { %13814 = vmatprep.mubr.msk.f32.mxu0 %vm1797_vm0, %v22701_v8  ;;  %v22712_v8 = vld [vmem:[#allocation26_spill] sm:$0xff] }
 0x5c1   : > { %14937 = vmatpush3.bf16.xpose.msk.msra.mxu1 %vm18203_vm1, %v14932_v63  ;;  %v22705_v63 = vld [vmem:[#allocation34_spill] sm:$0xff] }
 0x5c2   : > { %15779 = vrot.lane.b32.xlu1 %v22702_v58, %s17217_s4  ;;  %14952 = vmatprep.subr.msk.bf16.mxu1 %vm18203_vm1, %v14950_v52 }
 0x5c3   : > { %15764 = vrot.lane.b32.xlu0 %v22703_v17, %s17216_s0 }
 0x5c4   : > { %14949 = vmatpush3.bf16.xpose.msk.msra.mxu0 %vm18203_vm1, %v14944_v51  ;;  %v22708_v51 = vld [vmem:[#allocation35_spill] sm:$0xff] }
 0x5c5   : > { %14964 = vmatprep.subr.msk.bf16.mxu0 %vm18203_vm1, %v14962_v38 }
 0x5c6   : > { %15784 = vrot.lane.b32.xlu1 %v22704_v44, %s17217_s4 }
 0x5c7   : > { %15789 = vrot.lane.b32.xlu0 %v22705_v63, %s17217_s4 }
 0x5ca   : > { %5990 = vrot.lane.b32.xlu1 %v22706_v39, %s17217_s4 }
 0x5cb   : > { %13815 = vmatmul.mubr.msk.f32.vlgmr.msra.gmra.mrb[76].mxu0 %vm1797_vm0, %v4035_v61  ;;  %5992 = vrot.lane.b32.xlu0 %v22707_v43, %s17217_s4  ;;  %v22713_v61 = vld [vmem:[#allocation27_spill] sm:$0xff]  ;;  %v3920_v43 = vpop.permute.xlu1 %3919 }
 0x5cc   : > { %14967 = vmatpush3.bf16.xpose.msk.msra.mxu0 %vm18203_vm1, %v14962_v38 }
 0x5ce   : > { %15794 = vrot.lane.b32.xlu1 %v22708_v51, %s17217_s4 }
 0x5cf   : > { %15799 = vrot.lane.b32.xlu0 %v22709_v60, %s17217_s4 }
 0x5d2   : > { %6107 = vrot.lane.b32.xlu1 %v22710_v15, %s17217_s4 }
 0x5d3   : > { %6109 = vrot.lane.b32.xlu0 %v22711_v59, %s17217_s4 }
 0x5d6   : > { %5994 = vrot.lane.b32.xlu1 %v22712_v8, %s17217_s4 }
 0x5d7   : > { %5996 = vrot.lane.b32.xlu0 %v22713_v61, %s17217_s4 }
 0x5dd   : > { %v2957_v38 = vpop.xlane.xlu1 %2956 }
 0x5de   : > { %16516 = vrcp.f32 %v2957_v38  ;;  %v2954_v63 = vpop.xlane.xlu0 %2953 }
 0x5df   : > { %16518 = vrcp.f32 %v2954_v63 }
 0x5e1   : > { %v15655_v58 = vpop.permute.xlu1 %15654 }
 0x5e2   : > { %v15657_v36 = vunpack.i.h.bf16 %v15655_v58  ;;  %v15656_v60 = vunpack.i.l.bf16 %v15655_v58  ;;  %v3922_v46 = vpop.permute.xlu0 %3921 }
 0x5e4   : > { %v14968_v24 = vpack.c.bf16 %v15657_v36, %v15656_v60  ;;  %v22714_v36 = vld [vmem:[#allocation97_spill] sm:$0xff] }
 0x5e5   : > { %v4150_v29 = vpop.permute.xlu1 %4149  ;;  %v15647_v60 = vunpack.i.h.bf16 %v22714_v36  ;;  %v15646_v38 = vunpack.i.l.bf16 %v22714_v36 }
 0x5e6   : > { %v15660_v19 = vpop.permute.xlu0 %15659  ;;  %14970 = vmatprep.subr.msk.bf16.mxu0 %vm18203_vm1, %v14968_v24 }
 0x5e7   : > { %14973 = vmatpush3.bf16.xpose.msk.msra.mxu0 %vm18203_vm1, %v14968_v24  ;;  %v22715_v24 = vld [vmem:[#allocation88_spill] sm:$0xff] }
 0x5e8   : > { %v16517_v59 = vpop.eup %16516 }
 0x5e9   : > { %v16519_v61 = vpop.eup %16518  ;;  %v4037_v62 = vpop.permute.xlu1 %4036  ;;  %v3021_v58 = vmul.f32 %v16517_v59, %v18989_v55 }
 0x5ea   : > { %v4152_v15 = vpop.permute.xlu0 %4151  ;;  %13817 = vmatprep.mubr.msk.f32.mxu0 %vm1797_vm0, %v4037_v62  ;;  %v3020_v63 = vmul.f32 %v16519_v61, %v18992_v31  ;;  %v14956_v62 = vpack.c.bf16 %v15647_v60, %v15646_v38  ;;  %v22716_v31 = vld [vmem:[#allocation92_spill] sm:$0xff] }
 0x5ec   : > { %13775 = vmatprep.mubr.msk.f32.mxu1 %vm1797_vm0, %v3020_v63  ;;  %v15662_v63 = vunpack.i.h.bf16 %v15660_v19 }
 0x5ed   : > { %v15665_v13 = vpop.permute.xlu1 %15664  ;;  %13776 = vmatmul.mubr.msk.f32.gmra.mrb[86].mxu1 %vm1797_vm0, %v3021_v58 }
 0x5ee   : > { %13800 = vmatprep.mubr.msk.f32.mxu1 %vm1797_vm0, %v22715_v24  ;;  %v4039_v51 = vpop.permute.xlu0 %4038 }
 0x5ef   : > { %13818 = vmatmul.mubr.msk.f32.gmra.mrb[78].mxu0 %vm1797_vm0, %v4039_v51  ;;  %v15661_v51 = vunpack.i.l.bf16 %v15660_v19 }
 0x5f1   : > { %v4267_v33 = vpop.permute.xlu1 %4266  ;;  %13801 = vmatmul.mubr.msk.f32.vlgmr.msra.gmra.mrb[88].mxu1 %vm1797_vm0, %v22716_v31 }
 0x5f2   : > { %14955 = vmatpush3.bf16.xpose.msk.msra.mxu1 %vm18203_vm1, %v14950_v52  ;;  %13803 = vmatprep.mubr.msk.f32.mxu1 %vm1797_vm0, %v3920_v43  ;;  %v15670_v55 = vpop.permute.xlu0 %15669 }
 0x5f3   : > { %v15672_v59 = vunpack.i.h.bf16 %v15670_v55  ;;  %v15671_v61 = vunpack.i.l.bf16 %v15670_v55  ;;  %14958 = vmatprep.subr.msk.bf16.mxu1 %vm18203_vm1, %v14956_v62  ;;  %13842 = vmatprep.mubr.msk.f32.mxu0 %vm1797_vm0, %v4267_v33  ;;  %v14974_v33 = vpack.c.bf16 %v15662_v63, %v15661_v51 }
 0x5f5   : > { %v14986_v58 = vpack.c.bf16 %v15672_v59, %v15671_v61  ;;  %v4154_v36 = vpop.permute.xlu1 %4153  ;;  %13804 = vmatmul.mubr.msk.f32.gmra.mrb[90].mxu1 %vm1797_vm0, %v3922_v46  ;;  %v19246_v52 = vpop.f32.mrb[56].mxu0  ;;  %v15667_v59 = vunpack.i.h.bf16 %v15665_v13  ;;  %v15666_v61 = vunpack.i.l.bf16 %v15665_v13 }
 0x5f6   : > { %13828 = vmatprep.mubr.msk.f32.mxu1 %vm1797_vm0, %v4150_v29  ;;  %v4269_v60 = vpop.permute.xlu0 %4268  ;;  %22717 = vst [vmem:[#allocation40_spill] sm:$0xff] %v19246_v52  ;;  %v19251_v43 = vpop.f32.mrb[57].mxu0 }
 0x5f7   : > { %13843 = vmatmul.mubr.msk.f32.vlgmr.msra.gmra.mrb[80].mxu0 %vm1797_vm0, %v4269_v60  ;;  %14988 = vmatprep.subr.msk.bf16.mxu0 %vm18203_vm1, %v14986_v58  ;;  %22718 = vst [vmem:[#allocation53_spill] sm:$0xff] %v19251_v43 }
 0x5f8   : > { %14991 = vmatpush3.bf16.xpose.msk.msra.mxu0 %vm18203_vm1, %v14986_v58 }
 0x5f9   : > { %v15675_v19 = vpop.permute.xlu1 %15674  ;;  %v19257_v46 = vpop.f32.mrb[58].mxu0 }
 0x5fa   : > { %v15677_v38 = vunpack.i.h.bf16 %v15675_v19  ;;  %v15676_v24 = vunpack.i.l.bf16 %v15675_v19  ;;  %14961 = vmatpush3.bf16.xpose.msk.msra.mxu1 %vm18203_vm1, %v14956_v62  ;;  %v4156_v29 = vpop.permute.xlu0 %4155  ;;  %22719 = vst [vmem:[#allocation39_spill] sm:$0xff] %v19257_v46  ;;  %v19261_v55 = vpop.f32.mrb[59].mxu0  ;;  %v14980_v62 = vpack.c.bf16 %v15667_v59, %v15666_v61 }
 0x5fb   : > { %14976 = vmatprep.subr.msk.bf16.mxu1 %vm18203_vm1, %v14974_v33  ;;  %22720 = vst [vmem:[#allocation45_spill] sm:$0xff] %v19261_v55 }
 0x5fc   : > { %v14992_v31 = vpack.c.bf16 %v15677_v38, %v15676_v24 }
 0x5fd   : > { %v4384_v60 = vpop.permute.xlu1 %4383 }
 0x5fe   : > { %v15680_v58 = vpop.permute.xlu0 %15679  ;;  %14994 = vmatprep.subr.msk.bf16.mxu0 %vm18203_vm1, %v14992_v31 }
 0x5ff   : > { %v15682_v38 = vunpack.i.h.bf16 %v15680_v58  ;;  %v15681_v24 = vunpack.i.l.bf16 %v15680_v58 }
 0x600   : > { %14997 = vmatpush3.bf16.xpose.msk.msra.mxu0 %vm18203_vm1, %v14992_v31 }
 0x601   : > { %13829 = vmatmul.mubr.msk.f32.vlgmr.msra.gmra.mrb[92].mxu1 %vm1797_vm0, %v4152_v15  ;;  %v4271_v63 = vpop.permute.xlu1 %4270  ;;  %v19268_v51 = vpop.f32.mrb[72].mxu1 }
 0x602   : > { %22721 = vst [vmem:[#allocation50_spill] sm:$0xff] %v19268_v51  ;;  %13831 = vmatprep.mubr.msk.f32.mxu1 %vm1797_vm0, %v4154_v36  ;;  %14979 = vmatpush3.bf16.xpose.msk.msra.mxu1 %vm18203_vm1, %v14974_v33  ;;  %v19273_v13 = vpop.f32.mrb[73].mxu1  ;;  %v4386_v19 = vpop.permute.xlu0 %4385  ;;  %v14998_v36 = vpack.c.bf16 %v15682_v38, %v15681_v24 }
 0x603   : > { %22722 = vst [vmem:[#allocation86_spill] sm:$0xff] %v19273_v13  ;;  %13845 = vmatprep.mubr.msk.f32.mxu0 %vm1797_vm0, %v4271_v63  ;;  %14982 = vmatprep.subr.msk.bf16.mxu1 %vm18203_vm1, %v14980_v62 }
 0x605   : > { %13832 = vmatmul.mubr.msk.f32.gmra.mrb[94].mxu1 %vm1797_vm0, %v4156_v29  ;;  %v15685_v15 = vpop.permute.xlu1 %15684 }
 0x606   : > { %13856 = vmatprep.mubr.msk.f32.mxu1 %vm1797_vm0, %v4384_v60  ;;  %v4273_v31 = vpop.permute.xlu0 %4272  ;;  %v15687_v29 = vunpack.i.h.bf16 %v15685_v15  ;;  %v15686_v60 = vunpack.i.l.bf16 %v15685_v15 }
 0x607   : > { %13846 = vmatmul.mubr.msk.f32.gmra.mrb[82].mxu0 %vm1797_vm0, %v4273_v31 }
 0x608   : > { %v15004_v31 = vpack.c.bf16 %v15687_v29, %v15686_v60 }
 0x609   : > { %v4503_v33 = vpop.permute.xlu1 %4502  ;;  %v19281_v59 = vpop.f32.mrb[74].mxu1 }
 0x60a   : > { %22723 = vst [vmem:[#allocation89_spill] sm:$0xff] %v19281_v59  ;;  %14985 = vmatpush3.bf16.xpose.msk.msra.mxu1 %vm18203_vm1, %v14980_v62  ;;  %v19285_v61 = vpop.f32.mrb[75].mxu1  ;;  %v4501_v63 = vpop.permute.xlu0 %4500 }
 0x60b   : > { %22724 = vst [vmem:[#allocation82_spill] sm:$0xff] %v19285_v61  ;;  %15000 = vmatprep.subr.msk.bf16.mxu1 %vm18203_vm1, %v14998_v36  ;;  %13870 = vmatprep.mubr.msk.f32.mxu0 %vm1797_vm0, %v4501_v63 }
 0x60c   : > { %13871 = vmatmul.mubr.msk.f32.vlgmr.msra.gmra.mrb[84].mxu0 %vm1797_vm0, %v4503_v33 }
 0x60d   : > { %v4390_v58 = vpop.permute.xlu1 %4389 }
 0x60e   : > { %v4388_v38 = vpop.permute.xlu0 %4387 }
 0x610   : > { %v19291_v24 = vpop.f32.mrb[60].mxu0 }
 0x611   : > { %22725 = vst [vmem:[#allocation94_spill] sm:$0xff] %v19291_v24  ;;  %13857 = vmatmul.mubr.msk.f32.vlgmr.msra.gmra.mrb[96].mxu1 %vm1797_vm0, %v4386_v19  ;;  %v4620_v62 = vpop.permute.xlu1 %4619  ;;  %v19294_v59 = vpop.f32.mrb[61].mxu0 }
 0x612   : > { %22726 = vst [vmem:[#allocation91_spill] sm:$0xff] %v19294_v59  ;;  %13859 = vmatprep.mubr.msk.f32.mxu1 %vm1797_vm0, %v4388_v38  ;;  %15003 = vmatpush3.bf16.xpose.msk.msra.mxu1 %vm18203_vm1, %v14998_v36  ;;  %v4618_v63 = vpop.permute.xlu0 %4617 }
 0x613   : > { %15006 = vmatprep.subr.msk.bf16.mxu1 %vm18203_vm1, %v15004_v31 }
 0x615   : > { %13860 = vmatmul.mubr.msk.f32.gmra.mrb[98].mxu1 %vm1797_vm0, %v4390_v58  ;;  %v4507_v15 = vpop.permute.xlu1 %4506 }
 0x616   : > { %13884 = vmatprep.mubr.msk.f32.mxu1 %vm1797_vm0, %v4618_v63  ;;  %v4505_v33 = vpop.permute.xlu0 %4504 }
 0x617   : > { %13873 = vmatprep.mubr.msk.f32.mxu0 %vm1797_vm0, %v4505_v33 }
 0x618   : > { %v19304_v19 = vpop.f32.mrb[62].mxu0  ;;  %13874 = vmatmul.mubr.msk.f32.gmra.mrb[86].mxu0 %vm1797_vm0, %v4507_v15 }
 0x619   : > { %22727 = vst [vmem:[#allocation84_spill] sm:$0xff] %v19304_v19  ;;  %v4624_v29 = vpop.permute.xlu1 %4623  ;;  %v19307_v60 = vpop.f32.mrb[63].mxu0 }
 0x61a   : > { %22728 = vst [vmem:[#allocation95_spill] sm:$0xff] %v19307_v60  ;;  %15009 = vmatpush3.bf16.xpose.msk.msra.mxu1 %vm18203_vm1, %v15004_v31  ;;  %v4622_v36 = vpop.permute.xlu0 %4621 }
 0x61d   : > { %v15695_v38 = vpop.permute.xlu1 %15694 }
 0x61e   : > { %v15697_v24 = vunpack.i.h.bf16 %v15695_v38  ;;  %v15696_v58 = vunpack.i.l.bf16 %v15695_v38  ;;  %v15690_v59 = vpop.permute.xlu0 %15689 }
 0x61f   : > { %v15692_v61 = vunpack.i.h.bf16 %v15690_v59  ;;  %v15691_v63 = vunpack.i.l.bf16 %v15690_v59 }
 0x620   : > { %v15014_v13 = vpack.c.bf16 %v15697_v24, %v15696_v58 }
 0x621   : > { %v19311_v51 = vpop.f32.mrb[76].mxu1  ;;  %13885 = vmatmul.mubr.msk.f32.vlgmr.msra.gmra.mrb[100].mxu1 %vm1797_vm0, %v4620_v62  ;;  %v15705_v33 = vpop.permute.xlu1 %15704  ;;  %v15010_v19 = vpack.c.bf16 %v15692_v61, %v15691_v63 }
 0x622   : > { %22729 = vst [vmem:[#allocation87_spill] sm:$0xff] %v19311_v51  ;;  %v19314_v15 = vpop.f32.mrb[77].mxu1  ;;  %13887 = vmatprep.mubr.msk.f32.mxu1 %vm1797_vm0, %v4622_v36  ;;  %v15700_v60 = vpop.permute.xlu0 %15699  ;;  %v15707_v31 = vunpack.i.h.bf16 %v15705_v33  ;;  %v15706_v46 = vunpack.i.l.bf16 %v15705_v33 }
 0x623   : > { %22730 = vst [vmem:[#allocation96_spill] sm:$0xff] %v19314_v15  ;;  %v15702_v55 = vunpack.i.h.bf16 %v15700_v60  ;;  %v15701_v43 = vunpack.i.l.bf16 %v15700_v60  ;;  %15011 = vmatprep.subr.bf16.mxu0 %v15010_v19 }
 0x624   : > { %15013 = vmatpush3.bf16.msra.mxu0 %v15010_v19  ;;  %v19322_v36 = vpack.c.bf16 %v15707_v31, %v15706_v46 }
 0x625   : > { %v19317_v38 = vpop.f32.mrb[78].mxu1  ;;  %13888 = vmatmul.mubr.msk.f32.gmra.mrb[102].mxu1 %vm1797_vm0, %v4624_v29  ;;  %15015 = vmatprep.subr.bf16.mxu0 %v15014_v13  ;;  %v15018_v59 = vpack.c.bf16 %v15702_v55, %v15701_v43  ;;  %v19414_v8 = vpop.permute.xlu1 %15714 }
 0x626   : > { %22731 = vst [vmem:[#allocation85_spill] sm:$0xff] %v19317_v38  ;;  %v19320_v62 = vpop.f32.mrb[79].mxu1  ;;  %v15710_v61 = vpop.permute.xlu0 %15709 }
 0x627   : > { %22732 = vst [vmem:[#allocation98_spill] sm:$0xff] %v19320_v62  ;;  %v15712_v63 = vunpack.i.h.bf16 %v15710_v61  ;;  %v15711_v52 = vunpack.i.l.bf16 %v15710_v61  ;;  %15019 = vmatprep.subr.bf16.mxu1 %v15018_v59 }
 0x628   : > { %v19324_v24 = vpop.f32.mrb[64].mxu0  ;;  %15017 = vmatpush3.bf16.msra.mxu0 %v15014_v13  ;;  %15021 = vmatpush3.bf16.msra.mxu1 %v15018_v59 }
 0x629   : > { %22733 = vst [vmem:[#allocation90_spill] sm:$0xff] %v19324_v24  ;;  %v19326_v60 = vpop.f32.mrb[65].mxu0  ;;  %15027 = vmatprep.subr.bf16.mxu0 %v19322_v36  ;;  %v15022_v19 = vpack.c.bf16 %v15712_v63, %v15711_v52  ;;  %v19424_v26 = vpop.permute.xlu1 %15724 }
 0x62a   : > { %22734 = vst [vmem:[#allocation93_spill] sm:$0xff] %v19326_v60  ;;  %v15720_v29 = vpop.permute.xlu0 %15719 }
 0x62b   : > { %v15722_v58 = vunpack.i.h.bf16 %v15720_v29  ;;  %v15721_v43 = vunpack.i.l.bf16 %v15720_v29  ;;  %15023 = vmatprep.subr.bf16.mxu1 %v15022_v19 }
 0x62c   : > { %15025 = vmatpush3.bf16.msra.mxu1 %v15022_v19 }
 0x62d   : > { %v19329_v55 = vpack.c.bf16 %v15722_v58, %v15721_v43  ;;  %v19440_v16 = vpop.permute.xlu1 %15734 }
 0x62f   : > { %22735 = vst [vmem:[#allocation97_spill] sm:$0xff] %v19329_v55  ;;  %15035 = vmatprep.subr.bf16.mxu1 %v19329_v55  ;;  %v19452_v55 = vpop.permute.xlu0 %15729 }
 0x630   : > { %v19332_v46 = vpop.f32.mrb[66].mxu0  ;;  %22751 = vst [vmem:[#allocation112_spill] sm:$0xff] %v19452_v55 }
 0x631   : > { %22736 = vst [vmem:[#allocation88_spill] sm:$0xff] %v19332_v46  ;;  %v19334_v33 = vpop.f32.mrb[67].mxu0 }
 0x632   : > { %22737 = vst [vmem:[#allocation92_spill] sm:$0xff] %v19334_v33 }
 0x633   : > { %v19472_v18 = vpop.permute.xlu0 %15739 }
 0x634   : > { %22753 = vst [vmem:[#allocation114_spill] sm:$0xff] %v19472_v18 }
 0x637   : > { %v19484_v49 = vpop.permute.xlu0 %15749 }
 0x638   : > { %22755 = vst [vmem:[#allocation116_spill] sm:$0xff] %v19484_v49 }
 0x67a   : > { %v19336_v13 = vpop.f32.mrb[80].mxu1 }
 0x67b   : > { %22738 = vst [vmem:[#allocation99_spill] sm:$0xff] %v19336_v13  ;;  %v19338_v31 = vpop.f32.mrb[81].mxu1 }
 0x67c   : > { %22739 = vst [vmem:[#allocation100_spill] sm:$0xff] %v19338_v31 }
 0x67e   : > { %v19340_v59 = vpop.f32.mrb[68].mxu0 }
 0x67f   : > { %22740 = vst [vmem:[#allocation101_spill] sm:$0xff] %v19340_v59  ;;  %v19342_v52 = vpop.f32.mrb[69].mxu0 }
 0x680   : > { %22741 = vst [vmem:[#allocation102_spill] sm:$0xff] %v19342_v52 }
 0x682   : > { %v19344_v61 = vpop.f32.mrb[82].mxu1 }
 0x683   : > { %22742 = vst [vmem:[#allocation103_spill] sm:$0xff] %v19344_v61  ;;  %v19346_v63 = vpop.f32.mrb[83].mxu1 }
 0x684   : > { %22743 = vst [vmem:[#allocation104_spill] sm:$0xff] %v19346_v63 }
 0x686   : > { %v19348_v19 = vpop.f32.mrb[70].mxu0 }
 0x687   : > { %22744 = vst [vmem:[#allocation105_spill] sm:$0xff] %v19348_v19  ;;  %v19350_v29 = vpop.f32.mrb[71].mxu0 }
 0x688   : > { %22745 = vst [vmem:[#allocation106_spill] sm:$0xff] %v19350_v29 }
 0x68b   : > { %v19352_v58 = vpop.f32.mrb[84].mxu1 }
 0x68c   : > { %22746 = vst [vmem:[#allocation107_spill] sm:$0xff] %v19352_v58  ;;  %v19354_v43 = vpop.f32.mrb[85].mxu1 }
 0x68d   : > { %22747 = vst [vmem:[#allocation108_spill] sm:$0xff] %v19354_v43 }
 0x68e   : > { %v19356_v46 = vpop.f32.mrb[72].mxu0 }
 0x68f   : > { %v19358_v13 = vpop.f32.mrb[73].mxu0  ;;  %v4737_v59 = vsel %vm1797_vm0, %v19356_v46, -inf }
 0x690   : > { %4738 = vmax.xlane.f32.xlu1 %v4737_v59  ;;  %v4734_v52 = vsel %vm1797_vm0, %v19358_v13, -inf }
 0x691   : > { %4735 = vmax.xlane.f32.xlu0 %v4734_v52 }
 0x692   : > { %v19364_v61 = vpop.f32.mrb[74].mxu0 }
 0x693   : > { %v19366_v19 = vpop.f32.mrb[75].mxu0  ;;  %v4743_v58 = vsel %vm1797_vm0, %v19364_v61, -inf }
 0x694   : > { %v4740_v43 = vsel %vm1797_vm0, %v19366_v19, -inf }
 0x695   : > { %4744 = vmax.xlane.f32.xlu0 %v4743_v58 }
 0x699   : > { %4741 = vmax.xlane.f32.xlu0 %v4740_v43 }
 0x69e   : > { %v19372_v29 = vpop.f32.mrb[76].mxu0 }
 0x69f   : > { %v19374_v63 = vpop.f32.mrb[77].mxu0  ;;  %v4761_v59 = vsel %vm1797_vm0, %v19372_v29, -inf }
 0x6a0   : > { %4762 = vmax.xlane.f32.xlu1 %v4761_v59  ;;  %v4758_v52 = vsel %vm1797_vm0, %v19374_v63, -inf }
 0x6a4   : > { %4759 = vmax.xlane.f32.xlu1 %v4758_v52 }
 0x6c0   : > { %v19380_v31 = vpop.f32.mrb[86].mxu1 }
 0x6c1   : > { %22748 = vst [vmem:[#allocation109_spill] sm:$0xff] %v19380_v31  ;;  %v19382_v33 = vpop.f32.mrb[87].mxu1 }
 0x6c2   : > { %22749 = vst [vmem:[#allocation110_spill] sm:$0xff] %v19382_v33  ;;  %v19384_v58 = vpop.f32.mrb[78].mxu0 }
 0x6c3   : > { %v19386_v24 = vpop.f32.mrb[79].mxu0  ;;  %v4767_v43 = vsel %vm1797_vm0, %v19384_v58, -inf }
 0x6c4   : > { %v19390_v60 = vpop.f32.mrb[88].mxu1  ;;  %4768 = vmax.xlane.f32.xlu1 %v4767_v43  ;;  %v4764_v52 = vsel %vm1797_vm0, %v19386_v24, -inf }
 0x6c5   : > { %v19392_v38 = vpop.f32.mrb[89].mxu1  ;;  %v4749_v59 = vsel %vm1797_vm0, %v19390_v60, -inf }
 0x6c6   : > { %4750 = vmax.xlane.f32.xlu0 %v4749_v59  ;;  %v4746_v62 = vsel %vm1797_vm0, %v19392_v38, -inf }
 0x6c8   : > { %v19398_v31 = vpop.f32.mrb[90].mxu1  ;;  %4765 = vmax.xlane.f32.xlu1 %v4764_v52 }
 0x6c9   : > { %v19400_v33 = vpop.f32.mrb[91].mxu1  ;;  %v4755_v59 = vsel %vm1797_vm0, %v19398_v31, -inf }
 0x6ca   : > { %4747 = vmax.xlane.f32.xlu0 %v4746_v62  ;;  %v19404_v51 = vpop.f32.mrb[80].mxu0  ;;  %v4752_v62 = vsel %vm1797_vm0, %v19400_v33, -inf }
 0x6cb   : > { %v19406_v43 = vpop.f32.mrb[81].mxu0  ;;  %v4785_v15 = vsel %vm1797_vm0, %v19404_v51, -inf }
 0x6cc   : > { %4786 = vmax.xlane.f32.xlu1 %v4785_v15  ;;  %v4782_v52 = vsel %vm1797_vm0, %v19406_v43, -inf }
 0x6ce   : > { %4756 = vmax.xlane.f32.xlu0 %v4755_v59 }
 0x6d0   : > { %4783 = vmax.xlane.f32.xlu1 %v4782_v52 }
 0x6d2   : > { %4753 = vmax.xlane.f32.xlu0 %v4752_v62 }
 0x6d4   : > { %v19418_v10 = vpop.f32.mrb[92].mxu1 }
 0x6d5   : > { %v19420_v39 = vpop.f32.mrb[93].mxu1  ;;  %v4773_v15 = vsel %vm1797_vm0, %v19418_v10, -inf }
 0x6d6   : > { %4774 = vmax.xlane.f32.xlu0 %v4773_v15  ;;  %v4770_v62 = vsel %vm1797_vm0, %v19420_v39, -inf }
 0x6d8   : > { %v19426_v59 = vpop.f32.mrb[94].mxu1 }
 0x6d9   : > { %v19428_v44 = vpop.f32.mrb[95].mxu1  ;;  %v4779_v52 = vsel %vm1797_vm0, %v19426_v59, -inf }
 0x6da   : > { %4780 = vmax.xlane.f32.xlu1 %v4779_v52  ;;  %4771 = vmax.xlane.f32.xlu0 %v4770_v62  ;;  %v19434_v3 = vpop.f32.mrb[82].mxu0  ;;  %v4776_v2 = vsel %vm1797_vm0, %v19428_v44, -inf  ;;  %v19450_v62 = vpop.permute.xlu1 %15744 }
 0x6db   : > { %v19436_v22 = vpop.f32.mrb[83].mxu0  ;;  %v4791_v15 = vsel %vm1797_vm0, %v19434_v3, -inf  ;;  %22750 = vst [vmem:[#allocation111_spill] sm:$0xff] %v19450_v62 }
 0x6dc   : > { %v4788_v52 = vsel %vm1797_vm0, %v19436_v22, -inf }
 0x6de   : > { %4792 = vmax.xlane.f32.xlu1 %v4791_v15  ;;  %4777 = vmax.xlane.f32.xlu0 %v4776_v2  ;;  %v19464_v34 = vpop.permute.xlu1 %15759 }
 0x6df   : > { %v19444_v17 = vpop.f32.mrb[84].mxu0  ;;  %22752 = vst [vmem:[#allocation113_spill] sm:$0xff] %v19464_v34 }
 0x6e0   : > { %v19446_v56 = vpop.f32.mrb[85].mxu0  ;;  %v4809_v2 = vsel %vm1797_vm0, %v19444_v17, -inf }
 0x6e1   : > { %v4806_v34 = vsel %vm1797_vm0, %v19446_v56, -inf }
 0x6e2   : > { %4789 = vmax.xlane.f32.xlu1 %v4788_v52  ;;  %v19482_v23 = vpop.permute.xlu1 %15769 }
 0x6e3   : > { %22754 = vst [vmem:[#allocation115_spill] sm:$0xff] %v19482_v23 }
 0x6e4   : > { %v19454_v27 = vpop.f32.mrb[96].mxu1 }
 0x6e5   : > { %v19456_v14 = vpop.f32.mrb[97].mxu1  ;;  %v4797_v15 = vsel %vm1797_vm0, %v19454_v27, -inf }
 0x6e6   : > { %4798 = vmax.xlane.f32.xlu0 %v4797_v15  ;;  %4810 = vmax.xlane.f32.xlu1 %v4809_v2  ;;  %v4794_v55 = vsel %vm1797_vm0, %v19456_v14, -inf  ;;  %v19490_v18 = vpop.permute.xlu1 %15774 }
 0x6e7   : > { %22756 = vst [vmem:[#allocation117_spill] sm:$0xff] %v19490_v18 }
 0x6e8   : > { %v19462_v5 = vpop.f32.mrb[98].mxu1 }
 0x6e9   : > { %v19466_v52 = vpop.f32.mrb[99].mxu1  ;;  %v4803_v11 = vsel %vm1797_vm0, %v19462_v5, -inf }
 0x6ea   : > { %4795 = vmax.xlane.f32.xlu0 %v4794_v55  ;;  %4804 = vmax.xlane.f32.xlu1 %v4803_v11  ;;  %v4800_v55 = vsel %vm1797_vm0, %v19466_v52, -inf  ;;  %v19508_v54 = vpop.permute.xlu1 %15779 }
 0x6eb   : > { %v19474_v32 = vpop.f32.mrb[86].mxu0  ;;  %22758 = vst [vmem:[#allocation119_spill] sm:$0xff] %v19508_v54 }
 0x6ec   : > { %v19476_v15 = vpop.f32.mrb[87].mxu0  ;;  %v4815_v2 = vsel %vm1797_vm0, %v19474_v32, -inf }
 0x6ee   : > { %4807 = vmax.xlane.f32.xlu0 %v4806_v34  ;;  %4816 = vmax.xlane.f32.xlu1 %v4815_v2  ;;  %v4812_v34 = vsel %vm1797_vm0, %v19476_v15, -inf  ;;  %v19498_v2 = vpop.permute.xlu0 %15754  ;;  %v19512_v40 = vpop.permute.xlu1 %15784 }
 0x6ef   : > { %22757 = vst [vmem:[#allocation118_spill] sm:$0xff] %v19498_v2  ;;  %22760 = vst [vmem:[#allocation121_spill] sm:$0xff] %v19512_v40 }
 0x6f2   : > { %4801 = vmax.xlane.f32.xlu0 %v4800_v55  ;;  %v19510_v48 = vpop.permute.xlu0 %15764 }
 0x6f3   : > { %22759 = vst [vmem:[#allocation120_spill] sm:$0xff] %v19510_v48 }
 0x6f4   : > { %v19488_v11 = vpop.f32.mrb[100].mxu1 }
 0x6f5   : > { %v19492_v45 = vpop.f32.mrb[101].mxu1  ;;  %v4821_v25 = vsel %vm1797_vm0, %v19488_v11, -inf }
 0x6f6   : > { %4822 = vmax.xlane.f32.xlu1 %v4821_v25  ;;  %4813 = vmax.xlane.f32.xlu0 %v4812_v34  ;;  %v4818_v18 = vsel %vm1797_vm0, %v19492_v45, -inf  ;;  %v19514_v25 = vpop.permute.xlu0 %15789  ;;  %v19516_v34 = vpop.permute.xlu1 %5990 }
 0x6f7   : > { %22761 = vst [vmem:[#allocation122_spill] sm:$0xff] %v19514_v25  ;;  %22762 = vst [vmem:[#allocation123_spill] sm:$0xff] %v19516_v34 }
 0x6f8   : > { %v19500_v49 = vpop.f32.mrb[102].mxu1 }
 0x6f9   : > { %v19502_v23 = vpop.f32.mrb[103].mxu1  ;;  %v4827_v55 = vsel %vm1797_vm0, %v19500_v49, -inf }
 0x6fa   : > { %4828 = vmax.xlane.f32.xlu1 %v4827_v55  ;;  %4819 = vmax.xlane.f32.xlu0 %v4818_v18  ;;  %v19518_v2 = vpop.permute.xlu0 %5992  ;;  %v19522_v9 = vpop.permute.xlu1 %15794  ;;  %v22767_v18 = vld [vmem:[#allocation43_spill] sm:$0xff] }
 0x6fb   : > { %22763 = vst [vmem:[#allocation124_spill] sm:$0xff] %v19518_v2  ;;  %22765 = vst [vmem:[#allocation125_spill] sm:$0xff] %v19522_v9 }
 0x6fe   : > { %v19524_v50 = vpop.permute.xlu0 %15799  ;;  %v19528_v55 = vpop.permute.xlu1 %6107 }
 0x6ff   : > { %22766 = vst [vmem:[#allocation126_spill] sm:$0xff] %v19524_v50  ;;  %22768 = vst [vmem:[#allocation127_spill] sm:$0xff] %v19528_v55 }
 0x702   : > { %v19530_v54 = vpop.permute.xlu0 %6109  ;;  %v19532_v40 = vpop.permute.xlu1 %5994 }
 0x703   : > { %22769 = vst [vmem:[#allocation128_spill] sm:$0xff] %v19530_v54  ;;  %22770 = vst [vmem:[#allocation129_spill] sm:$0xff] %v19532_v40 }
 0x706   : > { %v19534_v25 = vpop.permute.xlu0 %5996 }
 0x707   : > { %22771 = vst [vmem:[#allocation130_spill] sm:$0xff] %v19534_v25 }
 0x70b   : > { %15804 = vrot.lane.b32.xlu1 %v22764_v47, %s17217_s4 }
 0x710   : > { %15809 = vrot.lane.b32.xlu0 %v22767_v18, %s17217_s4 }
 0x71d   : > { %v4739_v34 = vpop.xlane.xlu1 %4738 }
 0x71e   : > { %v4831_v2 = vsub.f32 %v19356_v46, %v4739_v34  ;;  %v4736_v48 = vpop.xlane.xlu0 %4735 }
 0x71f   : > { %v4830_v47 = vsub.f32 %v19358_v13, %v4736_v48 }
 0x720   : > { %v4864_v9 = vmul.f32 1.442695, %v4831_v2 }
 0x721   : > { %v4862_v53 = vmul.f32 1.442695, %v4830_v47 }
 0x722   : > { %16520 = vpow2.f32 %v4864_v9  ;;  %v4745_v50 = vpop.xlane.xlu0 %4744  ;;  %v4824_v9 = vsel %vm1797_vm0, %v19502_v23, -inf }
 0x723   : > { %v4833_v18 = vsub.f32 %v19364_v61, %v4745_v50  ;;  %16522 = vpow2.f32 %v4862_v53 }
 0x725   : > { %v4868_v55 = vmul.f32 1.442695, %v4833_v18 }
 0x726   : > { %v4742_v62 = vpop.xlane.xlu0 %4741 }
 0x727   : > { %16524 = vpow2.f32 %v4868_v55  ;;  %v4832_v54 = vsub.f32 %v19366_v19, %v4742_v62 }
 0x729   : > { %v4866_v40 = vmul.f32 1.442695, %v4832_v54 }
 0x72b   : > { %16526 = vpow2.f32 %v4866_v40 }
 0x72c   : > { %v19540_v25 = vpop.eup %16520 }
 0x72d   : > { %v4763_v46 = vpop.xlane.xlu1 %4762  ;;  %v4929_v48 = vsel %vm1797_vm0, %v19540_v25, 0.0  ;;  %v19547_v50 = vpop.eup %16522 }
 0x72e   : > { %v4839_v47 = vsub.f32 %v19372_v29, %v4763_v46  ;;  %v4926_v19 = vsel %vm1797_vm0, %v19547_v50, 0.0 }
 0x72f   : > { %4930 = vadd.xlane.f32.xlu1 %v4929_v48  ;;  %4825 = vmax.xlane.f32.xlu0 %v4824_v9 }
 0x730   : > { %v4880_v53 = vmul.f32 1.442695, %v4839_v47 }
 0x731   : > { %v19549_v13 = vpop.eup %16524  ;;  %v4760_v54 = vpop.xlane.xlu1 %4759 }
 0x732   : > { %16528 = vpow2.f32 %v4880_v53  ;;  %v4838_v40 = vsub.f32 %v19374_v63, %v4760_v54  ;;  %v4935_v61 = vsel %vm1797_vm0, %v19549_v13, 0.0 }
 0x733   : > { %4936 = vadd.xlane.f32.xlu1 %v4935_v61  ;;  %4927 = vadd.xlane.f32.xlu0 %v4926_v19 }
 0x734   : > { %v4878_v29 = vmul.f32 1.442695, %v4838_v40 }
 0x735   : > { %v19556_v62 = vpop.eup %16526 }
 0x736   : > { %16530 = vpow2.f32 %v4878_v29  ;;  %v4932_v2 = vsel %vm1797_vm0, %v19556_v62, 0.0 }
 0x737   : > { %4933 = vadd.xlane.f32.xlu0 %v4932_v2 }
 0x73c   : > { %v19560_v34 = vpop.eup %16528 }
 0x73d   : > { %v4953_v63 = vsel %vm1797_vm0, %v19560_v34, 0.0 }
 0x73e   : > { %4954 = vadd.xlane.f32.xlu1 %v4953_v63 }
 0x740   : > { %v19564_v18 = vpop.eup %16530 }
 0x741   : > { %v4950_v55 = vsel %vm1797_vm0, %v19564_v18, 0.0 }
 0x742   : > { %4951 = vadd.xlane.f32.xlu1 %v4950_v55 }
 0x751   : > { %v4769_v46 = vpop.xlane.xlu1 %4768 }
 0x752   : > { %v4841_v48 = vsub.f32 %v19384_v58, %v4769_v46 }
 0x753   : > { %v4751_v47 = vpop.xlane.xlu0 %4750 }
 0x754   : > { %v4884_v9 = vmul.f32 1.442695, %v4841_v48  ;;  %v4835_v53 = vsub.f32 %v19390_v60, %v4751_v47 }
 0x755   : > { %v4766_v54 = vpop.xlane.xlu1 %4765 }
 0x756   : > { %16532 = vpow2.f32 %v4884_v9  ;;  %v4872_v40 = vmul.f32 1.442695, %v4835_v53  ;;  %v4840_v61 = vsub.f32 %v19386_v24, %v4766_v54 }
 0x757   : > { %v4748_v19 = vpop.xlane.xlu0 %4747 }
 0x758   : > { %16534 = vpow2.f32 %v4872_v40  ;;  %v4882_v29 = vmul.f32 1.442695, %v4840_v61  ;;  %v4834_v2 = vsub.f32 %v19392_v38, %v4748_v19 }
 0x759   : > { %v4787_v63 = vpop.xlane.xlu1 %4786 }
 0x75a   : > { %16536 = vpow2.f32 %v4882_v29  ;;  %v4870_v55 = vmul.f32 1.442695, %v4834_v2  ;;  %v4847_v6 = vsub.f32 %v19404_v51, %v4787_v63 }
 0x75b   : > { %v4757_v58 = vpop.xlane.xlu0 %4756 }
 0x75c   : > { %16538 = vpow2.f32 %v4870_v55  ;;  %v4896_v46 = vmul.f32 1.442695, %v4847_v6  ;;  %v4837_v60 = vsub.f32 %v19398_v31, %v4757_v58 }
 0x75d   : > { %v4784_v48 = vpop.xlane.xlu1 %4783 }
 0x75e   : > { %16540 = vpow2.f32 %v4896_v46  ;;  %v4876_v47 = vmul.f32 1.442695, %v4837_v60  ;;  %v4846_v24 = vsub.f32 %v19406_v43, %v4784_v48 }
 0x75f   : > { %v4754_v9 = vpop.xlane.xlu0 %4753 }
 0x760   : > { %v19575_v53 = vpop.eup %16532  ;;  %16542 = vpow2.f32 %v4876_v47  ;;  %v4894_v38 = vmul.f32 1.442695, %v4846_v24  ;;  %v4836_v54 = vsub.f32 %v19400_v33, %v4754_v9 }
 0x761   : > { %v4959_v51 = vsel %vm1797_vm0, %v19575_v53, 0.0 }
 0x762   : > { %v19580_v40 = vpop.eup %16534  ;;  %16544 = vpow2.f32 %v4894_v38  ;;  %v4874_v6 = vmul.f32 1.442695, %v4836_v54  ;;  %4960 = vadd.xlane.f32.xlu1 %v4959_v51 }
 0x763   : > { %v4775_v31 = vpop.xlane.xlu0 %4774  ;;  %v4941_v61 = vsel %vm1797_vm0, %v19580_v40, 0.0 }
 0x764   : > { %v19584_v43 = vpop.eup %16536  ;;  %16546 = vpow2.f32 %v4874_v6  ;;  %v4843_v19 = vsub.f32 %v19418_v10, %v4775_v31  ;;  %4942 = vadd.xlane.f32.xlu0 %v4941_v61 }
 0x765   : > { %v4956_v33 = vsel %vm1797_vm0, %v19584_v43, 0.0 }
 0x766   : > { %v19589_v29 = vpop.eup %16538  ;;  %v4888_v2 = vmul.f32 1.442695, %v4843_v19  ;;  %4957 = vadd.xlane.f32.xlu1 %v4956_v33 }
 0x767   : > { %v4781_v63 = vpop.xlane.xlu1 %4780  ;;  %v4772_v55 = vpop.xlane.xlu0 %4771  ;;  %v4938_v58 = vsel %vm1797_vm0, %v19589_v29, 0.0 }
 0x768   : > { %v19593_v46 = vpop.eup %16540  ;;  %16548 = vpow2.f32 %v4888_v2  ;;  %v4845_v60 = vsub.f32 %v19426_v59, %v4781_v63  ;;  %v4842_v10 = vsub.f32 %v19420_v39, %v4772_v55  ;;  %4939 = vadd.xlane.f32.xlu0 %v4938_v58 }
 0x769   : > { %v4977_v48 = vsel %vm1797_vm0, %v19593_v46, 0.0 }
 0x76a   : > { %v19599_v47 = vpop.eup %16542  ;;  %v4892_v24 = vmul.f32 1.442695, %v4845_v60  ;;  %v4886_v9 = vmul.f32 1.442695, %v4842_v10  ;;  %4978 = vadd.xlane.f32.xlu1 %v4977_v48 }
 0x76b   : > { %v4793_v38 = vpop.xlane.xlu1 %4792  ;;  %v4778_v54 = vpop.xlane.xlu0 %4777  ;;  %v4947_v51 = vsel %vm1797_vm0, %v19599_v47, 0.0 }
 0x76c   : > { %v19603_v6 = vpop.eup %16544  ;;  %16550 = vpow2.f32 %v4892_v24  ;;  %v4849_v59 = vsub.f32 %v19434_v3, %v4793_v38  ;;  %v4844_v39 = vsub.f32 %v19428_v44, %v4778_v54  ;;  %4948 = vadd.xlane.f32.xlu0 %v4947_v51 }
 0x76d   : > { %16552 = vpow2.f32 %v4886_v9  ;;  %v4974_v31 = vsel %vm1797_vm0, %v19603_v6, 0.0 }
 0x76e   : > { %v19609_v61 = vpop.eup %16546  ;;  %v4900_v19 = vmul.f32 1.442695, %v4849_v59  ;;  %v4890_v33 = vmul.f32 1.442695, %v4844_v39  ;;  %4975 = vadd.xlane.f32.xlu1 %v4974_v31 }
 0x76f   : > { %v4790_v2 = vpop.xlane.xlu1 %4789  ;;  %v4944_v63 = vsel %vm1797_vm0, %v19609_v61, 0.0 }
 0x770   : > { %16554 = vpow2.f32 %v4900_v19  ;;  %v4848_v55 = vsub.f32 %v19436_v22, %v4790_v2  ;;  %4945 = vadd.xlane.f32.xlu0 %v4944_v63 }
 0x771   : > { %16556 = vpow2.f32 %v4890_v33 }
 0x772   : > { %v19614_v3 = vpop.eup %16548  ;;  %v4898_v44 = vmul.f32 1.442695, %v4848_v55 }
 0x773   : > { %v4799_v58 = vpop.xlane.xlu0 %4798  ;;  %v4811_v60 = vpop.xlane.xlu1 %4810  ;;  %v4965_v10 = vsel %vm1797_vm0, %v19614_v3, 0.0 }
 0x774   : > { %v4851_v48 = vsub.f32 %v19454_v27, %v4799_v58  ;;  %v4855_v24 = vsub.f32 %v19444_v17, %v4811_v60  ;;  %4966 = vadd.xlane.f32.xlu0 %v4965_v10  ;;  %16558 = vpow2.f32 %v4898_v44 }
 0x776   : > { %v19620_v9 = vpop.eup %16550  ;;  %v4904_v38 = vmul.f32 1.442695, %v4851_v48  ;;  %v4912_v22 = vmul.f32 1.442695, %v4855_v24 }
 0x777   : > { %v19622_v54 = vpop.eup %16552  ;;  %v4796_v51 = vpop.xlane.xlu0 %4795  ;;  %v4971_v39 = vsel %vm1797_vm0, %v19620_v9, 0.0 }
 0x778   : > { %v4805_v59 = vpop.xlane.xlu1 %4804  ;;  %16560 = vpow2.f32 %v4904_v38  ;;  %v4850_v31 = vsub.f32 %v19456_v14, %v4796_v51  ;;  %4972 = vadd.xlane.f32.xlu1 %v4971_v39  ;;  %v4962_v17 = vsel %vm1797_vm0, %v19622_v54, 0.0 }
 0x779   : > { %v4853_v27 = vsub.f32 %v19462_v5, %v4805_v59  ;;  %4963 = vadd.xlane.f32.xlu0 %v4962_v17  ;;  %16562 = vpow2.f32 %v4912_v22 }
 0x77a   : > { %v19630_v19 = vpop.eup %16554  ;;  %v4902_v33 = vmul.f32 1.442695, %v4850_v31 }
 0x77b   : > { %v4908_v2 = vmul.f32 1.442695, %v4853_v27  ;;  %v4808_v63 = vpop.xlane.xlu0 %4807  ;;  %v4983_v44 = vsel %vm1797_vm0, %v19630_v19, 0.0  ;;  %v19634_v58 = vpop.eup %16556 }
 0x77c   : > { %v4817_v55 = vpop.xlane.xlu1 %4816  ;;  %16564 = vpow2.f32 %v4902_v33  ;;  %v4854_v14 = vsub.f32 %v19446_v56, %v4808_v63  ;;  %4984 = vadd.xlane.f32.xlu1 %v4983_v44  ;;  %v4968_v24 = vsel %vm1797_vm0, %v19634_v58, 0.0 }
 0x77d   : > { %v4857_v5 = vsub.f32 %v19474_v32, %v4817_v55  ;;  %16566 = vpow2.f32 %v4908_v2 }
 0x77e   : > { %v4910_v60 = vmul.f32 1.442695, %v4854_v14  ;;  %v19640_v38 = vpop.eup %16558 }
 0x77f   : > { %v4916_v10 = vmul.f32 1.442695, %v4857_v5  ;;  %v4802_v48 = vpop.xlane.xlu0 %4801  ;;  %v4980_v39 = vsel %vm1797_vm0, %v19640_v38, 0.0 }
 0x780   : > { %16568 = vpow2.f32 %v4910_v60  ;;  %v4852_v22 = vsub.f32 %v19466_v52, %v4802_v48  ;;  %4969 = vadd.xlane.f32.xlu1 %v4968_v24 }
 0x781   : > { %16570 = vpow2.f32 %v4916_v10 }
 0x782   : > { %v19643_v51 = vpop.eup %16560  ;;  %v4906_v56 = vmul.f32 1.442695, %v4852_v22 }
 0x783   : > { %v4823_v59 = vpop.xlane.xlu1 %4822  ;;  %v4814_v32 = vpop.xlane.xlu0 %4813  ;;  %v4989_v31 = vsel %vm1797_vm0, %v19643_v51, 0.0 }
 0x784   : > { %v19649_v27 = vpop.eup %16562  ;;  %16572 = vpow2.f32 %v4906_v56  ;;  %v4859_v17 = vsub.f32 %v19488_v11, %v4823_v59  ;;  %v4856_v52 = vsub.f32 %v19476_v15, %v4814_v32  ;;  %4981 = vadd.xlane.f32.xlu1 %v4980_v39  ;;  %4990 = vadd.xlane.f32.xlu0 %v4989_v31 }
 0x785   : > { %v5001_v44 = vsel %vm1797_vm0, %v19649_v27, 0.0 }
 0x786   : > { %v19653_v33 = vpop.eup %16564  ;;  %v4920_v2 = vmul.f32 1.442695, %v4859_v17  ;;  %v4914_v63 = vmul.f32 1.442695, %v4856_v52 }
 0x787   : > { %v4820_v55 = vpop.xlane.xlu0 %4819  ;;  %v4986_v14 = vsel %vm1797_vm0, %v19653_v33, 0.0  ;;  %v19659_v5 = vpop.eup %16566 }
 0x788   : > { %16574 = vpow2.f32 %v4920_v2  ;;  %v4858_v11 = vsub.f32 %v19492_v45, %v4820_v55  ;;  %5002 = vadd.xlane.f32.xlu1 %v5001_v44  ;;  %4987 = vadd.xlane.f32.xlu0 %v4986_v14  ;;  %v4995_v10 = vsel %vm1797_vm0, %v19659_v5, 0.0  ;;  %v22772_v2 = vld [vmem:[#allocation33_spill] sm:$0xff] }
 0x789   : > { %16576 = vpow2.f32 %v4914_v63  ;;  %v4829_v63 = vpop.xlane.xlu1 %4828 }
 0x78a   : > { %v19662_v15 = vpop.eup %16568  ;;  %v4918_v60 = vmul.f32 1.442695, %v4858_v11  ;;  %v4861_v55 = vsub.f32 %v19500_v49, %v4829_v63 }
 0x78b   : > { %v4998_v48 = vsel %vm1797_vm0, %v19662_v15, 0.0  ;;  %v19668_v24 = vpop.eup %16570  ;;  %v19701_v44 = vpop.permute.xlu0 %15809 }
 0x78c   : > { %4996 = vadd.xlane.f32.xlu1 %v4995_v10  ;;  %4999 = vadd.xlane.f32.xlu0 %v4998_v48  ;;  %16578 = vpow2.f32 %v4918_v60  ;;  %v5007_v45 = vsel %vm1797_vm0, %v19668_v24, 0.0  ;;  %v4924_v11 = vmul.f32 1.442695, %v4861_v55  ;;  %v15717_v55 = vunpack.i.h.bf16 %v19414_v8 }
 0x78d   : > { %v19703_v14 = vpop.permute.xlu1 %15804 }
 0x78e   : > { %v19670_v22 = vpop.eup %16572  ;;  %16580 = vpow2.f32 %v4924_v11  ;;  %v15716_v11 = vunpack.i.l.bf16 %v19414_v8 }
 0x78f   : > { %v4992_v56 = vsel %vm1797_vm0, %v19670_v22, 0.0 }
 0x790   : > { %5008 = vadd.xlane.f32.xlu1 %v5007_v45  ;;  %4993 = vadd.xlane.f32.xlu0 %v4992_v56 }
 0x792   : > { %v19676_v59 = vpop.eup %16574 }
 0x793   : > { %v19678_v32 = vpop.eup %16576  ;;  %v5013_v39 = vsel %vm1797_vm0, %v19676_v59, 0.0 }
 0x794   : > { %5014 = vadd.xlane.f32.xlu1 %v5013_v39  ;;  %v5004_v31 = vsel %vm1797_vm0, %v19678_v32, 0.0 }
 0x795   : > { %5005 = vadd.xlane.f32.xlu0 %v5004_v31 }
 0x796   : > { %v19684_v17 = vpop.eup %16578 }
 0x797   : > { %v5010_v52 = vsel %vm1797_vm0, %v19684_v17, 0.0 }
 0x799   : > { %5011 = vadd.xlane.f32.xlu0 %v5010_v52 }
 0x7a5   : > { %6224 = vrot.lane.b32.xlu1 %v22772_v2, %s17217_s4 }
 0x7a9   : > { %6111 = vrot.lane.b32.xlu1 %v18308_v35, %s17217_s4 }
 0x7ad   : > { %15814 = vrot.lane.b32.xlu1 %v18394_v42, %s17217_s4 }
 0x7af   : > { %6226 = vrot.lane.b32.xlu0 %v18353_v4, %s17217_s4 }
 0x7b1   : > { %6341 = vrot.lane.b32.xlu1 %v18374_v7, %s17217_s4 }
 0x7b5   : > { %6228 = vrot.lane.b32.xlu1 %v22645_v1, %s17217_s4 }
 0x7b9   : > { %15824 = vrot.lane.b32.xlu1 %v22647_v37, %s17217_s4 }
 0x7bc   : > { %v4826_v60 = vpop.xlane.xlu0 %4825  ;;  %v4931_v10 = vpop.xlane.xlu1 %4930 }
 0x7bd   : > { %v4860_v48 = vsub.f32 %v19502_v23, %v4826_v60  ;;  %6458 = vrot.lane.b32.xlu1 %v22649_v20, %s17217_s4  ;;  %16582 = vrcp.f32 %v4931_v10  ;;  %v19716_v23 = vpop.eup %16580 }
 0x7be   : > { %v5019_v60 = vsel %vm1797_vm0, %v19716_v23, 0.0 }
 0x7bf   : > { %v4922_v45 = vmul.f32 1.442695, %v4860_v48 }
 0x7c0   : > { %v4928_v56 = vpop.xlane.xlu0 %4927  ;;  %v4937_v49 = vpop.xlane.xlu1 %4936 }
 0x7c1   : > { %6345 = vrot.lane.b32.xlu1 %v22651_v30, %s17217_s4  ;;  %16584 = vrcp.f32 %v4928_v56 }
 0x7c2   : > { %16586 = vpow2.f32 %v4922_v45 }
 0x7c4   : > { %v4934_v39 = vpop.xlane.xlu0 %4933 }
 0x7c5   : > { %16588 = vrcp.f32 %v4934_v39  ;;  %15834 = vrot.lane.b32.xlu1 %v22653_v41, %s17217_s4  ;;  %v15726_v41 = vunpack.i.l.bf16 %v19424_v26 }
 0x7c6   : > { %16590 = vrcp.f32 %v4937_v49 }
 0x7c7   : > { %v16583_v52 = vpop.eup %16582 }
 0x7c8   : > { %v5055_v56 = vmul.f32 %v16583_v52, %v19540_v25  ;;  %v15736_v52 = vunpack.i.l.bf16 %v19440_v16 }
 0x7c9   : > { %6575 = vrot.lane.b32.xlu1 %v22655_v12, %s17217_s4  ;;  %v15727_v12 = vunpack.i.h.bf16 %v19424_v26 }
 0x7cb   : > { %v4955_v31 = vpop.xlane.xlu1 %4954  ;;  %v16585_v63 = vpop.eup %16584  ;;  %v15042_v26 = vpack.c.bf16 %v15727_v12, %v15726_v41  ;;  %v22773_v41 = vld [vmem:[#allocation66_spill] sm:$0xff]  ;;  %v22774_v12 = vld [vmem:[#allocation111_spill] sm:$0xff] }
 0x7cc   : > { %v19724_v10 = vpop.eup %16586  ;;  %v5054_v48 = vmul.f32 %v16585_v63, %v19547_v50  ;;  %16592 = vrcp.f32 %v4955_v31 }
 0x7cd   : > { %6462 = vrot.lane.b32.xlu1 %v22657_v0, %s17217_s4  ;;  %v5016_v25 = vsel %vm1797_vm0, %v19724_v10, 0.0 }
 0x7ce   : > { %5020 = vadd.xlane.f32.xlu0 %v5019_v60  ;;  %13898 = vmatprep.mubr.msk.f32.mxu0 %vm1797_vm0, %v5054_v48  ;;  %v15030_v60 = vpack.c.bf16 %v15717_v55, %v15716_v11  ;;  %v15747_v55 = vunpack.i.h.bf16 %v22774_v12  ;;  %v15746_v11 = vunpack.i.l.bf16 %v22774_v12 }
 0x7cf   : > { %v16589_v45 = vpop.eup %16588  ;;  %v4952_v49 = vpop.xlane.xlu1 %4951  ;;  %13899 = vmatmul.mubr.msk.f32.vlgmr.msra.gmra.mrb[88].mxu0 %vm1797_vm0, %v5055_v56  ;;  %v22778_v56 = vld [vmem:[#allocation65_spill] sm:$0xff] }
 0x7d0   : > { %v16591_v39 = vpop.eup %16590  ;;  %16594 = vrcp.f32 %v4952_v49  ;;  %v5056_v8 = vmul.f32 %v16589_v45, %v19556_v62  ;;  %15029 = vmatpush3.bf16.msra.mxu0 %v19322_v36  ;;  %v15737_v36 = vunpack.i.h.bf16 %v19440_v16  ;;  %v22775_v16 = vld [vmem:[#allocation62_spill] sm:$0xff]  ;;  %v22777_v45 = vld [vmem:[#allocation36_spill] sm:$0xff] }
 0x7d1   : > { %15844 = vrot.lane.b32.xlu1 %v22659_v28, %s17217_s4  ;;  %15031 = vmatprep.subr.bf16.mxu0 %v15030_v60  ;;  %v5057_v50 = vmul.f32 %v16591_v39, %v19549_v13  ;;  %v22779_v49 = vld [vmem:[#allocation48_spill] sm:$0xff]  ;;  %v22780_v39 = vld [vmem:[#allocation71_spill] sm:$0xff] }
 0x7d2   : > { %5017 = vadd.xlane.f32.xlu0 %v5016_v25  ;;  %13901 = vmatprep.mubr.msk.f32.mxu0 %vm1797_vm0, %v5056_v8  ;;  %v15046_v48 = vpack.c.bf16 %v15737_v36, %v15736_v52  ;;  %v22782_v25 = vld [vmem:[#allocation72_spill] sm:$0xff] }
 0x7d3   : > { %13902 = vmatmul.mubr.msk.f32.gmra.mrb[90].mxu0 %vm1797_vm0, %v5057_v50 }
 0x7d4   : > { %15033 = vmatpush3.bf16.msra.mxu0 %v15030_v60  ;;  %v22781_v60 = vld [vmem:[#allocation44_spill] sm:$0xff] }
 0x7d5   : > { %6694 = vrot.lane.b32.xlu1 %v22661_v57, %s17217_s4  ;;  %15043 = vmatprep.subr.bf16.mxu0 %v15042_v26 }
 0x7d6   : > { %v16593_v62 = vpop.eup %16592 }
 0x7d7   : > { %v5063_v13 = vmul.f32 %v16593_v62, %v19560_v34  ;;  %v22776_v34 = vld [vmem:[#allocation69_spill] sm:$0xff]  ;;  %v22783_v62 = vld [vmem:[#allocation42_spill] sm:$0xff] }
 0x7d9   : > { %6581 = vrot.lane.b32.xlu1 %v22663_v21, %s17217_s4 }
 0x7da   : > { %v16595_v31 = vpop.eup %16594 }
 0x7db   : > { %v5062_v63 = vmul.f32 %v16595_v31, %v19564_v18  ;;  %v19757_v18 = vpack.c.bf16 %v15747_v55, %v15746_v11  ;;  %v22784_v31 = vld [vmem:[#allocation75_spill] sm:$0xff]  ;;  %v22787_v11 = vld [vmem:[#allocation49_spill] sm:$0xff] }
 0x7dd   : > { %6811 = vrot.lane.b32.xlu1 %v22773_v41, %s17217_s4  ;;  %13926 = vmatprep.mubr.msk.f32.mxu0 %vm1797_vm0, %v5062_v63  ;;  %v22785_v63 = vld [vmem:[#allocation41_spill] sm:$0xff] }
 0x7de   : > { %13927 = vmatmul.mubr.msk.f32.vlgmr.msra.gmra.mrb[92].mxu0 %vm1797_vm0, %v5063_v13  ;;  %v22786_v13 = vld [vmem:[#allocation76_spill] sm:$0xff] }
 0x7df   : > { %15045 = vmatpush3.bf16.msra.mxu0 %v15042_v26 }
 0x7e0   : > { %15047 = vmatprep.subr.bf16.mxu0 %v15046_v48 }
 0x7e1   : > { %6698 = vrot.lane.b32.xlu1 %v22775_v16, %s17217_s4 }
 0x7e3   : > { %15049 = vmatpush3.bf16.msra.mxu0 %v15046_v48 }
 0x7e4   : > { %15059 = vmatprep.subr.bf16.mxu0 %v19757_v18 }
 0x7e5   : > { %6815 = vrot.lane.b32.xlu1 %v22776_v34, %s17217_s4  ;;  %v22791_v34 = vld [vmem:[#allocation78_spill] sm:$0xff] }
 0x7e8   : > { %6113 = vrot.lane.b32.xlu0 %v22777_v45, %s17217_s4 }
 0x7e9   : > { %15854 = vrot.lane.b32.xlu1 %v22778_v56, %s17217_s4  ;;  %v22790_v56 = vld [vmem:[#allocation46_spill] sm:$0xff] }
 0x7ec   : > { %15819 = vrot.lane.b32.xlu0 %v22779_v49, %s17217_s4 }
 0x7ed   : > { %15864 = vrot.lane.b32.xlu1 %v22780_v39, %s17217_s4 }
 0x7ef   : > { %v4961_v8 = vpop.xlane.xlu1 %4960 }
 0x7f0   : > { %6343 = vrot.lane.b32.xlu0 %v22781_v60, %s17217_s4  ;;  %16596 = vrcp.f32 %v4961_v8  ;;  %v22788_v8 = vld [vmem:[#allocation79_spill] sm:$0xff] }
 0x7f1   : > { %15874 = vrot.lane.b32.xlu1 %v22782_v25, %s17217_s4  ;;  %v4943_v50 = vpop.xlane.xlu0 %4942 }
 0x7f3   : > { %v4958_v26 = vpop.xlane.xlu1 %4957 }
 0x7f4   : > { %6230 = vrot.lane.b32.xlu0 %v22783_v62, %s17217_s4  ;;  %16598 = vrcp.f32 %v4958_v26 }
 0x7f5   : > { %16600 = vrcp.f32 %v4943_v50  ;;  %15884 = vrot.lane.b32.xlu1 %v22784_v31, %s17217_s4  ;;  %v4940_v36 = vpop.xlane.xlu0 %4939 }
 0x7f6   : > { %16602 = vrcp.f32 %v4940_v36 }
 0x7f7   : > { %v4979_v52 = vpop.xlane.xlu1 %4978 }
 0x7f8   : > { %15829 = vrot.lane.b32.xlu0 %v22785_v63, %s17217_s4  ;;  %16604 = vrcp.f32 %v4979_v52 }
 0x7f9   : > { %15894 = vrot.lane.b32.xlu1 %v22786_v13, %s17217_s4  ;;  %v4949_v12 = vpop.xlane.xlu0 %4948  ;;  %v22789_v13 = vld [vmem:[#allocation112_spill] sm:$0xff] }
 0x7fa   : > { %v16597_v48 = vpop.eup %16596  ;;  %v15732_v31 = vunpack.i.h.bf16 %v22789_v13  ;;  %v15731_v52 = vunpack.i.l.bf16 %v22789_v13  ;;  %v22792_v13 = vld [vmem:[#allocation114_spill] sm:$0xff] }
 0x7fb   : > { %v4976_v55 = vpop.xlane.xlu1 %4975 }
 0x7fc   : > { %6460 = vrot.lane.b32.xlu0 %v22787_v11, %s17217_s4  ;;  %16606 = vrcp.f32 %v4976_v55  ;;  %v5065_v55 = vmul.f32 %v16597_v48, %v19575_v53  ;;  %v22793_v53 = vld [vmem:[#allocation59_spill] sm:$0xff]  ;;  %v15038_v48 = vpack.c.bf16 %v15732_v31, %v15731_v52 }
 0x7fd   : > { %15904 = vrot.lane.b32.xlu1 %v22788_v8, %s17217_s4  ;;  %v4946_v50 = vpop.xlane.xlu0 %4945  ;;  %v15741_v8 = vunpack.i.l.bf16 %v22792_v13  ;;  %v22797_v31 = vld [vmem:[#allocation55_spill] sm:$0xff] }
 0x7fe   : > { %v16599_v26 = vpop.eup %16598  ;;  %16608 = vrcp.f32 %v4946_v50 }
 0x7ff   : > { %v16601_v36 = vpop.eup %16600  ;;  %16610 = vrcp.f32 %v4949_v12  ;;  %v5064_v25 = vmul.f32 %v16599_v26, %v19584_v43  ;;  %v15742_v26 = vunpack.i.h.bf16 %v22792_v13 }
 0x800   : > { %v16603_v39 = vpop.eup %16602  ;;  %6347 = vrot.lane.b32.xlu0 %v22790_v56, %s17217_s4  ;;  %v5059_v43 = vmul.f32 %v16601_v36, %v19580_v40  ;;  %v22795_v40 = vld [vmem:[#allocation97_spill] sm:$0xff] }
 0x801   : > { %15909 = vrot.lane.b32.xlu1 %v22791_v34, %s17217_s4  ;;  %13929 = vmatprep.mubr.msk.f32.mxu0 %vm1797_vm0, %v5064_v25  ;;  %v4967_v50 = vpop.xlane.xlu0 %4966  ;;  %v5058_v12 = vmul.f32 %v16603_v39, %v19589_v29  ;;  %v22794_v34 = vld [vmem:[#allocation80_spill] sm:$0xff]  ;;  %v15050_v52 = vpack.c.bf16 %v15742_v26, %v15741_v8 }
 0x802   : > { %13930 = vmatmul.mubr.msk.f32.gmra.mrb[94].mxu0 %vm1797_vm0, %v5065_v55  ;;  %v16605_v25 = vpop.eup %16604  ;;  %16612 = vrcp.f32 %v4967_v50  ;;  %v22796_v55 = vld [vmem:[#allocation118_spill] sm:$0xff] }
 0x803   : > { %13912 = vmatprep.mubr.msk.f32.mxu1 %vm1797_vm0, %v5058_v12  ;;  %v15757_v12 = vunpack.i.h.bf16 %v22796_v55  ;;  %v15756_v13 = vunpack.i.l.bf16 %v22796_v55  ;;  %v5071_v41 = vmul.f32 %v16605_v25, %v19593_v46  ;;  %v22800_v46 = vld [vmem:[#allocation51_spill] sm:$0xff]  ;;  %v22803_v25 = vld [vmem:[#allocation116_spill] sm:$0xff] }
 0x804   : > { %15839 = vrot.lane.b32.xlu0 %v22793_v53, %s17217_s4  ;;  %13913 = vmatmul.mubr.msk.f32.vlgmr.msra.gmra.mrb[104].mxu1 %vm1797_vm0, %v5059_v43  ;;  %v22805_v55 = vld [vmem:[#allocation32_spill] sm:$0xff] }
 0x805   : > { %15914 = vrot.lane.b32.xlu1 %v22794_v34, %s17217_s4  ;;  %v4973_v29 = vpop.xlane.xlu1 %4972  ;;  %15037 = vmatpush3.bf16.msra.mxu1 %v22795_v40  ;;  %v22798_v40 = vld [vmem:[#allocation83_spill] sm:$0xff]  ;;  %v15062_v8 = vpack.c.bf16 %v15757_v12, %v15756_v13 }
 0x806   : > { %v16607_v39 = vpop.eup %16606  ;;  %15039 = vmatprep.subr.bf16.mxu1 %v15038_v48  ;;  %v4964_v36 = vpop.xlane.xlu0 %4963 }
 0x807   : > { %16614 = vrcp.f32 %v4964_v36  ;;  %v5070_v21 = vmul.f32 %v16607_v39, %v19603_v6  ;;  %v22799_v36 = vld [vmem:[#allocation115_spill] sm:$0xff] }
 0x808   : > { %v16609_v43 = vpop.eup %16608  ;;  %6577 = vrot.lane.b32.xlu0 %v22797_v31, %s17217_s4  ;;  %v15772_v6 = vunpack.i.h.bf16 %v22799_v36  ;;  %v15771_v39 = vunpack.i.l.bf16 %v22799_v36  ;;  %16616 = vrcp.f32 %v4973_v29 }
 0x809   : > { %v16611_v34 = vpop.eup %16610  ;;  %15924 = vrot.lane.b32.xlu1 %v22798_v40, %s17217_s4  ;;  %v4985_v50 = vpop.xlane.xlu1 %4984  ;;  %15041 = vmatpush3.bf16.msra.mxu1 %v15038_v48  ;;  %v5060_v16 = vmul.f32 %v16609_v43, %v19609_v61  ;;  %v22802_v48 = vld [vmem:[#allocation52_spill] sm:$0xff] }
 0x80a   : > { %13954 = vmatprep.mubr.msk.f32.mxu0 %vm1797_vm0, %v5070_v21  ;;  %15051 = vmatprep.subr.bf16.mxu1 %v15050_v52  ;;  %v5061_v26 = vmul.f32 %v16611_v34, %v19599_v47  ;;  %v22801_v21 = vld [vmem:[#allocation28_spill] sm:$0xff]  ;;  %v15752_v47 = vunpack.i.h.bf16 %v22803_v25  ;;  %v15751_v34 = vunpack.i.l.bf16 %v22803_v25 }
 0x80b   : > { %13955 = vmatmul.mubr.msk.f32.vlgmr.msra.gmra.mrb[96].mxu0 %vm1797_vm0, %v5071_v41  ;;  %13915 = vmatprep.mubr.msk.f32.mxu1 %vm1797_vm0, %v5060_v16  ;;  %v19828_v41 = vpack.c.bf16 %v15772_v6, %v15771_v39  ;;  %v22806_v6 = vld [vmem:[#allocation56_spill] sm:$0xff] }
 0x80c   : > { %6464 = vrot.lane.b32.xlu0 %v22800_v46, %s17217_s4  ;;  %15061 = vmatpush3.bf16.msra.mxu0 %v19757_v18  ;;  %v16613_v16 = vpop.eup %16612  ;;  %v15054_v25 = vpack.c.bf16 %v15752_v47, %v15751_v34 }
 0x80d   : > { %15063 = vmatprep.subr.bf16.mxu0 %v15062_v8  ;;  %15934 = vrot.lane.b32.xlu1 %v22801_v21, %s17218_s10  ;;  %v4970_v61 = vpop.xlane.xlu1 %4969  ;;  %v5067_v36 = vmul.f32 %v16613_v16, %v19614_v3  ;;  %v22809_v16 = vld [vmem:[#allocation61_spill] sm:$0xff] }
 0x80e   : > { %16618 = vrcp.f32 %v4970_v61  ;;  %13916 = vmatmul.mubr.msk.f32.gmra.mrb[106].mxu1 %vm1797_vm0, %v5061_v26  ;;  %v22808_v26 = vld [vmem:[#allocation22_spill] sm:$0xff] }
 0x80f   : > { %16620 = vrcp.f32 %v4985_v50  ;;  %v22807_v50 = vld [vmem:[#allocation113_spill] sm:$0xff] }
 0x810   : > { %6692 = vrot.lane.b32.xlu0 %v22802_v48, %s17217_s4  ;;  %15065 = vmatpush3.bf16.msra.mxu0 %v15062_v8  ;;  %v15762_v39 = vunpack.i.h.bf16 %v22807_v50  ;;  %v15761_v8 = vunpack.i.l.bf16 %v22807_v50 }
 0x811   : > { %v16615_v18 = vpop.eup %16614  ;;  %15076 = vmatprep.subr.msk.bf16.mxu0 %vm18203_vm1, %v19828_v41  ;;  %15944 = vrot.lane.b32.xlu1 %v22805_v55, %s17218_s10  ;;  %v4982_v12 = vpop.xlane.xlu1 %4981 }
 0x812   : > { %v4991_v13 = vpop.xlane.xlu0 %4990  ;;  %16622 = vrcp.f32 %v4982_v12  ;;  %v5066_v43 = vmul.f32 %v16615_v18, %v19622_v54  ;;  %v16617_v3 = vpop.eup %16616  ;;  %v22810_v18 = vld [vmem:[#allocation26_spill] sm:$0xff] }
 0x813   : > { %16624 = vrcp.f32 %v4991_v13  ;;  %v5069_v47 = vmul.f32 %v16617_v3, %v19620_v9  ;;  %v22811_v13 = vld [vmem:[#allocation60_spill] sm:$0xff] }
 0x814   : > { %6579 = vrot.lane.b32.xlu0 %v22806_v6, %s17217_s4  ;;  %13940 = vmatprep.mubr.msk.f32.mxu1 %vm1797_vm0, %v5066_v43  ;;  %v15066_v43 = vpack.c.bf16 %v15762_v39, %v15761_v8 }
 0x815   : > { %8150 = vrot.lane.b32.xlu1 %v22808_v26, %s17218_s10  ;;  %v5003_v21 = vpop.xlane.xlu1 %5002  ;;  %13941 = vmatmul.mubr.msk.f32.vlgmr.msra.gmra.mrb[108].mxu1 %vm1797_vm0, %v5067_v36  ;;  %v22812_v36 = vld [vmem:[#allocation35_spill] sm:$0xff] }
 0x816   : > { %v4988_v61 = vpop.xlane.xlu0 %4987  ;;  %15053 = vmatpush3.bf16.msra.mxu1 %v15050_v52 }
 0x817   : > { %16626 = vrcp.f32 %v4988_v61  ;;  %15055 = vmatprep.subr.bf16.mxu1 %v15054_v25 }
 0x818   : > { %v16619_v54 = vpop.eup %16618  ;;  %6809 = vrot.lane.b32.xlu0 %v22809_v16, %s17217_s4  ;;  %16628 = vrcp.f32 %v5003_v21  ;;  %v22813_v21 = vld [vmem:[#allocation67_spill] sm:$0xff] }
 0x819   : > { %8154 = vrot.lane.b32.xlu1 %v22810_v18, %s17218_s10  ;;  %v4997_v55 = vpop.xlane.xlu1 %4996  ;;  %v5068_v50 = vmul.f32 %v16619_v54, %v19634_v58  ;;  %v16621_v52 = vpop.eup %16620  ;;  %v22815_v18 = vld [vmem:[#allocation29_spill] sm:$0xff] }
 0x81a   : > { %v5000_v12 = vpop.xlane.xlu0 %4999  ;;  %15057 = vmatpush3.bf16.msra.mxu1 %v15054_v25  ;;  %v5073_v9 = vmul.f32 %v16621_v52, %v19630_v19  ;;  %v22814_v25 = vld [vmem:[#allocation120_spill] sm:$0xff] }
 0x81b   : > { %16630 = vrcp.f32 %v5000_v12  ;;  %15067 = vmatprep.subr.bf16.mxu1 %v15066_v43  ;;  %13943 = vmatprep.mubr.msk.f32.mxu1 %vm1797_vm0, %v5068_v50  ;;  %v15767_v3 = vunpack.i.h.bf16 %v22814_v25  ;;  %v15766_v54 = vunpack.i.l.bf16 %v22814_v25 }
 0x81c   : > { %v16623_v34 = vpop.eup %16622  ;;  %6696 = vrot.lane.b32.xlu0 %v22811_v13, %s17217_s4  ;;  %13944 = vmatmul.mubr.msk.f32.gmra.mrb[110].mxu1 %vm1797_vm0, %v5069_v47  ;;  %16632 = vrcp.f32 %v4997_v55  ;;  %v22816_v47 = vld [vmem:[#allocation117_spill] sm:$0xff] }
 0x81d   : > { %15954 = vrot.lane.b32.xlu1 %v22812_v36, %s17218_s10  ;;  %v5009_v39 = vpop.xlane.xlu1 %5008  ;;  %v5072_v8 = vmul.f32 %v16623_v34, %v19640_v38  ;;  %v16625_v26 = vpop.eup %16624  ;;  %v15777_v52 = vunpack.i.h.bf16 %v22816_v47  ;;  %v22817_v34 = vld [vmem:[#allocation64_spill] sm:$0xff] }
 0x81e   : > { %v4994_v58 = vpop.xlane.xlu0 %4993  ;;  %v5075_v55 = vmul.f32 %v16625_v26, %v19643_v51  ;;  %v15070_v51 = vpack.c.bf16 %v15767_v3, %v15766_v54  ;;  %v22821_v3 = vld [vmem:[#allocation70_spill] sm:$0xff] }
 0x81f   : > { %16634 = vrcp.f32 %v4994_v58  ;;  %13957 = vmatprep.mubr.msk.f32.mxu0 %vm1797_vm0, %v5072_v8  ;;  %v15776_v58 = vunpack.i.l.bf16 %v22816_v47  ;;  %v22818_v8 = vld [vmem:[#allocation119_spill] sm:$0xff] }
 0x820   : > { %6813 = vrot.lane.b32.xlu0 %v22813_v21, %s17217_s4  ;;  %13958 = vmatmul.mubr.msk.f32.gmra.mrb[98].mxu0 %vm1797_vm0, %v5073_v9  ;;  %16636 = vrcp.f32 %v5009_v39  ;;  %v15782_v39 = vunpack.i.h.bf16 %v22818_v8  ;;  %v15781_v9 = vunpack.i.l.bf16 %v22818_v8  ;;  %v22824_v8 = vld [vmem:[#allocation121_spill] sm:$0xff] }
 0x821   : > { %v16627_v61 = vpop.eup %16626  ;;  %8267 = vrot.lane.b32.xlu1 %v22815_v18, %s17218_s10  ;;  %v5015_v12 = vpop.xlane.xlu1 %5014  ;;  %v22819_v18 = vld [vmem:[#allocation68_spill] sm:$0xff] }
 0x822   : > { %v5006_v38 = vpop.xlane.xlu0 %5005  ;;  %v5074_v19 = vmul.f32 %v16627_v61, %v19653_v33  ;;  %v16629_v50 = vpop.eup %16628 }
 0x823   : > { %16638 = vrcp.f32 %v5006_v38  ;;  %v5079_v61 = vmul.f32 %v16629_v50, %v19649_v27 }
 0x824   : > { %15849 = vrot.lane.b32.xlu0 %v22817_v34, %s17217_s4  ;;  %13968 = vmatprep.mubr.msk.f32.mxu1 %vm1797_vm0, %v5074_v19  ;;  %16640 = vrcp.f32 %v5015_v12  ;;  %v15080_v19 = vpack.c.bf16 %v15777_v52, %v15776_v58  ;;  %v22822_v12 = vld [vmem:[#allocation122_spill] sm:$0xff]  ;;  %v22823_v52 = vld [vmem:[#allocation73_spill] sm:$0xff] }
 0x825   : > { %v16631_v36 = vpop.eup %16630  ;;  %13969 = vmatmul.mubr.msk.f32.vlgmr.msra.gmra.mrb[112].mxu1 %vm1797_vm0, %v5075_v55  ;;  %8271 = vrot.lane.b32.xlu1 %v18308_v35, %s17218_s10  ;;  %v15086_v55 = vpack.c.bf16 %v15782_v39, %v15781_v9  ;;  %v22820_v35 = vld [vmem:[#allocation38_spill] sm:$0xff]  ;;  %v15792_v50 = vunpack.i.h.bf16 %v22822_v12  ;;  %v15787_v39 = vunpack.i.h.bf16 %v22824_v8  ;;  %v15786_v9 = vunpack.i.l.bf16 %v22824_v8 }
 0x826   : > { %15069 = vmatpush3.bf16.msra.mxu1 %v15066_v43  ;;  %v5012_v33 = vpop.xlane.xlu0 %5011  ;;  %v5078_v26 = vmul.f32 %v16631_v36, %v19662_v15  ;;  %v16633_v25 = vpop.eup %16632 }
 0x827   : > { %15071 = vmatprep.subr.bf16.mxu1 %v15070_v51  ;;  %16642 = vrcp.f32 %v5012_v33  ;;  %v5077_v15 = vmul.f32 %v16633_v25, %v19659_v5  ;;  %v22826_v33 = vld [vmem:[#allocation74_spill] sm:$0xff] }
 0x828   : > { %15859 = vrot.lane.b32.xlu0 %v22819_v18, %s17217_s4  ;;  %13982 = vmatprep.mubr.msk.f32.mxu0 %vm1797_vm0, %v5078_v26  ;;  %v15092_v26 = vpack.c.bf16 %v15787_v39, %v15786_v9 }
 0x829   : > { %v16635_v38 = vpop.eup %16634  ;;  %13983 = vmatmul.mubr.msk.f32.vlgmr.msra.gmra.mrb[100].mxu0 %vm1797_vm0, %v5079_v61  ;;  %15964 = vrot.lane.b32.xlu1 %v22820_v35, %s17218_s10  ;;  %v22827_v61 = vld [vmem:[#allocation125_spill] sm:$0xff] }
 0x82a   : > { %15073 = vmatpush3.bf16.msra.mxu1 %v15070_v51  ;;  %15079 = vmatpush3.bf16.xpose.msk.msra.mxu0 %vm18203_vm1, %v19828_v41  ;;  %v5076_v27 = vmul.f32 %v16635_v38, %v19670_v22  ;;  %v16637_v43 = vpop.eup %16636  ;;  %v15791_v41 = vunpack.i.l.bf16 %v22822_v12  ;;  %v6225_v51 = vpop.permute.xlu1 %6224  ;;  %v15797_v25 = vunpack.i.h.bf16 %v22827_v61  ;;  %v15796_v38 = vunpack.i.l.bf16 %v22827_v61 }
 0x82b   : > { %15082 = vmatprep.subr.msk.bf16.mxu0 %vm18203_vm1, %v15080_v19  ;;  %15088 = vmatprep.subr.msk.bf16.mxu1 %vm18203_vm1, %v15086_v55  ;;  %v5081_v5 = vmul.f32 %v16637_v43, %v19668_v24  ;;  %v22830_v43 = vld [vmem:[#allocation124_spill] sm:$0xff]  ;;  %v6227_v9 = vpop.permute.xlu0 %6226 }
 0x82c   : > { %15869 = vrot.lane.b32.xlu0 %v22821_v3, %s17217_s4  ;;  %13971 = vmatprep.mubr.msk.f32.mxu1 %vm1797_vm0, %v5076_v27  ;;  %v15098_v58 = vpack.c.bf16 %v15792_v50, %v15791_v41  ;;  %v15812_v50 = vunpack.i.h.bf16 %v19701_v44  ;;  %v15811_v41 = vunpack.i.l.bf16 %v19701_v44 }
 0x82d   : > { %v16639_v54 = vpop.eup %16638  ;;  %13972 = vmatmul.mubr.msk.f32.gmra.mrb[114].mxu1 %vm1797_vm0, %v5077_v15  ;;  %8384 = vrot.lane.b32.xlu1 %v22772_v2, %s17218_s10  ;;  %v15104_v15 = vpack.c.bf16 %v15797_v25, %v15796_v38  ;;  %v22839_v25 = vld [vmem:[#allocation37_spill] sm:$0xff]  ;;  %v22840_v38 = vld [vmem:[#allocation30_spill] sm:$0xff] }
 0x82e   : > { %v5080_v22 = vmul.f32 %v16639_v54, %v19678_v32  ;;  %v16641_v47 = vpop.eup %16640  ;;  %v22825_v32 = vld [vmem:[#allocation123_spill] sm:$0xff]  ;;  %v22831_v54 = vld [vmem:[#allocation129_spill] sm:$0xff] }
 0x82f   : > { %v5083_v2 = vmul.f32 %v16641_v47, %v19676_v59  ;;  %v22828_v59 = vld [vmem:[#allocation77_spill] sm:$0xff] }
 0x830   : > { %15879 = vrot.lane.b32.xlu0 %v22823_v52, %s17217_s4  ;;  %13985 = vmatprep.mubr.msk.f32.mxu0 %vm1797_vm0, %v5080_v22  ;;  %v22834_v47 = vld [vmem:[#allocation25_spill] sm:$0xff] }
 0x831   : > { %v16643_v36 = vpop.eup %16642  ;;  %13986 = vmatmul.mubr.msk.f32.gmra.mrb[102].mxu0 %vm1797_vm0, %v5081_v5  ;;  %v22833_v5 = vld [vmem:[#allocation130_spill] sm:$0xff] }
 0x832   : > { %15085 = vmatpush3.bf16.xpose.msk.msra.mxu0 %vm18203_vm1, %v15080_v19  ;;  %14010 = vmatprep.mubr.msk.f32.mxu0 %vm1797_vm0, %v22825_v32  ;;  %v5082_v24 = vmul.f32 %v16643_v36, %v19684_v17  ;;  %v19932_v17 = vpop.permute.xlu1 %6111  ;;  %v22829_v19 = vld [vmem:[#allocation126_spill] sm:$0xff]  ;;  %v15122_v36 = vpack.c.bf16 %v15812_v50, %v15811_v41 }
 0x833   : > { %15100 = vmatprep.subr.msk.bf16.mxu0 %vm18203_vm1, %v15098_v58  ;;  %v15802_v35 = vunpack.i.h.bf16 %v22829_v19  ;;  %v15801_v27 = vunpack.i.l.bf16 %v22829_v19 }
 0x834   : > { %15889 = vrot.lane.b32.xlu0 %v22826_v33, %s17217_s4  ;;  %13996 = vmatprep.mubr.msk.f32.mxu1 %vm1797_vm0, %v5082_v24 }
 0x835   : > { %13997 = vmatmul.mubr.msk.f32.vlgmr.msra.gmra.mrb[116].mxu1 %vm1797_vm0, %v5083_v2  ;;  %v15110_v12 = vpack.c.bf16 %v15802_v35, %v15801_v27  ;;  %v22837_v2 = vld [vmem:[#allocation23_spill] sm:$0xff] }
 0x836   : > { %15091 = vmatpush3.bf16.xpose.msk.msra.mxu1 %vm18203_vm1, %v15086_v55  ;;  %v22832_v55 = vld [vmem:[#allocation81_spill] sm:$0xff]  ;;  %v15815_v22 = vpop.permute.xlu1 %15814 }
 0x837   : > { %15094 = vmatprep.subr.msk.bf16.mxu1 %vm18203_vm1, %v15092_v26  ;;  %v15817_v8 = vunpack.i.h.bf16 %v15815_v22  ;;  %v15816_v39 = vunpack.i.l.bf16 %v15815_v22 }
 0x838   : > { %15899 = vrot.lane.b32.xlu0 %v22828_v59, %s17217_s4 }
 0x839   : > { %14011 = vmatmul.mubr.msk.f32.vlgmr.msra.gmra.mrb[104].mxu0 %vm1797_vm0, %v22830_v43  ;;  %v15128_v32 = vpack.c.bf16 %v15817_v8, %v15816_v39  ;;  %v22841_v43 = vld [vmem:[#allocation43_spill] sm:$0xff]  ;;  %v15806_v39 = vunpack.i.l.bf16 %v19703_v14 }
 0x83a   : > { %14013 = vmatprep.mubr.msk.f32.mxu0 %vm1797_vm0, %v22831_v54  ;;  %15103 = vmatpush3.bf16.xpose.msk.msra.mxu0 %vm18203_vm1, %v15098_v58  ;;  %v6342_v44 = vpop.permute.xlu1 %6341  ;;  %v22835_v58 = vld [vmem:[#allocation31_spill] sm:$0xff] }
 0x83b   : > { %15106 = vmatprep.subr.msk.bf16.mxu0 %vm18203_vm1, %v15104_v15 }
 0x83c   : > { %15919 = vrot.lane.b32.xlu0 %v22832_v55, %s17217_s4 }
 0x83d   : > { %14014 = vmatmul.mubr.msk.f32.gmra.mrb[106].mxu0 %vm1797_vm0, %v22833_v5 }
 0x83e   : > { %15097 = vmatpush3.bf16.xpose.msk.msra.mxu1 %vm18203_vm1, %v15092_v26  ;;  %14038 = vmatprep.mubr.msk.f32.mxu0 %vm1797_vm0, %v6225_v51  ;;  %v22836_v51 = vld [vmem:[#allocation34_spill] sm:$0xff]  ;;  %v6229_v24 = vpop.permute.xlu1 %6228  ;;  %v22838_v26 = vld [vmem:[#allocation27_spill] sm:$0xff] }
 0x83f   : > { %15112 = vmatprep.subr.msk.bf16.mxu1 %vm18203_vm1, %v15110_v12 }
 0x840   : > { %15929 = vrot.lane.b32.xlu0 %v22834_v47, %s17218_s10 }
 0x842   : > { %15109 = vmatpush3.bf16.xpose.msk.msra.mxu0 %vm18203_vm1, %v15104_v15  ;;  %v15825_v61 = vpop.permute.xlu1 %15824 }
 0x843   : > { %15124 = vmatprep.subr.msk.bf16.mxu0 %vm18203_vm1, %v15122_v36 }
 0x844   : > { %15939 = vrot.lane.b32.xlu0 %v22835_v58, %s17218_s10 }
 0x846   : > { %v6459_v19 = vpop.permute.xlu1 %6458 }
 0x848   : > { %15949 = vrot.lane.b32.xlu0 %v22836_v51, %s17218_s10 }
 0x849   : > { %14039 = vmatmul.mubr.msk.f32.vlgmr.msra.gmra.mrb[108].mxu0 %vm1797_vm0, %v6227_v9  ;;  %v22842_v9 = vld [vmem:[#allocation127_spill] sm:$0xff] }
 0x84a   : > { %14041 = vmatprep.mubr.msk.f32.mxu0 %vm1797_vm0, %v6229_v24  ;;  %15127 = vmatpush3.bf16.xpose.msk.msra.mxu0 %vm18203_vm1, %v15122_v36  ;;  %v6346_v27 = vpop.permute.xlu1 %6345  ;;  %v22843_v24 = vld [vmem:[#allocation128_spill] sm:$0xff] }
 0x84b   : > { %15130 = vmatprep.subr.msk.bf16.mxu0 %vm18203_vm1, %v15128_v32 }
 0x84c   : > { %8152 = vrot.lane.b32.xlu0 %v22837_v2, %s17218_s10 }
 0x84e   : > { %v15835_v50 = vpop.permute.xlu1 %15834 }
 0x84f   : > { %v15836_v2 = vunpack.i.l.bf16 %v15835_v50 }
 0x850   : > { %8156 = vrot.lane.b32.xlu0 %v22838_v26, %s17218_s10 }
 0x852   : > { %15133 = vmatpush3.bf16.xpose.msk.msra.mxu0 %vm18203_vm1, %v15128_v32  ;;  %v6576_v47 = vpop.permute.xlu1 %6575 }
 0x854   : > { %15959 = vrot.lane.b32.xlu0 %v22839_v25, %s17218_s10 }
 0x856   : > { %v6463_v32 = vpop.permute.xlu1 %6462 }
 0x858   : > { %8269 = vrot.lane.b32.xlu0 %v22840_v38, %s17218_s10 }
 0x85b   : > { %v5021_v35 = vpop.xlane.xlu0 %5020 }
 0x85c   : > { %8273 = vrot.lane.b32.xlu0 %v22777_v45, %s17218_s10  ;;  %16644 = vrcp.f32 %v5021_v35  ;;  %v15807_v45 = vunpack.i.h.bf16 %v19703_v14 }
 0x85f   : > { %v5018_v15 = vpop.xlane.xlu0 %5017 }
 0x860   : > { %16646 = vrcp.f32 %v5018_v15  ;;  %15969 = vrot.lane.b32.xlu0 %v22841_v43, %s17218_s10  ;;  %v15845_v15 = vpop.permute.xlu1 %15844 }
 0x863   : > { %v6114_v54 = vpop.permute.xlu0 %6113 }
 0x866   : > { %v16645_v22 = vpop.eup %16644 }
 0x867   : > { %v15820_v41 = vpop.permute.xlu0 %15819  ;;  %v5085_v8 = vmul.f32 %v16645_v22, %v19716_v23  ;;  %v15837_v23 = vunpack.i.h.bf16 %v15835_v50  ;;  %v15827_v50 = vunpack.i.h.bf16 %v15825_v61 }
 0x868   : > { %v15822_v38 = vunpack.i.h.bf16 %v15820_v41 }
 0x869   : > { %v15152_v43 = vpack.c.bf16 %v15837_v23, %v15836_v2 }
 0x86a   : > { %v16647_v5 = vpop.eup %16646 }
 0x86b   : > { %v6344_v36 = vpop.permute.xlu0 %6343  ;;  %v5084_v58 = vmul.f32 %v16647_v5, %v19724_v10  ;;  %v15116_v10 = vpack.c.bf16 %v15807_v45, %v15806_v39 }
 0x86d   : > { %13999 = vmatprep.mubr.msk.f32.mxu1 %vm1797_vm0, %v5084_v58 }
 0x86e   : > { %14000 = vmatmul.mubr.msk.f32.gmra.mrb[118].mxu1 %vm1797_vm0, %v5085_v8 }
 0x86f   : > { %14024 = vmatprep.mubr.msk.f32.mxu1 %vm1797_vm0, %v22842_v9  ;;  %v6231_v51 = vpop.permute.xlu0 %6230 }
 0x870   : > { %14042 = vmatmul.mubr.msk.f32.gmra.mrb[110].mxu0 %vm1797_vm0, %v6231_v51  ;;  %v15847_v51 = vunpack.i.h.bf16 %v15845_v15 }
 0x871   : > { %14066 = vmatprep.mubr.msk.f32.mxu0 %vm1797_vm0, %v6459_v19  ;;  %v15821_v19 = vunpack.i.l.bf16 %v15820_v41  ;;  %v15826_v41 = vunpack.i.l.bf16 %v15825_v61 }
 0x872   : > { %14025 = vmatmul.mubr.msk.f32.vlgmr.msra.gmra.mrb[120].mxu1 %vm1797_vm0, %v22843_v24 }
 0x873   : > { %15115 = vmatpush3.bf16.xpose.msk.msra.mxu1 %vm18203_vm1, %v15110_v12  ;;  %14027 = vmatprep.mubr.msk.f32.mxu1 %vm1797_vm0, %v19932_v17  ;;  %v15830_v14 = vpop.permute.xlu0 %15829  ;;  %v15134_v17 = vpack.c.bf16 %v15822_v38, %v15821_v19  ;;  %v15140_v5 = vpack.c.bf16 %v15827_v50, %v15826_v41 }
 0x874   : > { %15118 = vmatprep.subr.msk.bf16.mxu1 %vm18203_vm1, %v15116_v10  ;;  %v15832_v26 = vunpack.i.h.bf16 %v15830_v14  ;;  %v15831_v25 = vunpack.i.l.bf16 %v15830_v14 }
 0x876   : > { %v15146_v35 = vpack.c.bf16 %v15832_v26, %v15831_v25  ;;  %14028 = vmatmul.mubr.msk.f32.gmra.mrb[122].mxu1 %vm1797_vm0, %v6114_v54  ;;  %v6695_v54 = vpop.permute.xlu1 %6694 }
 0x877   : > { %14052 = vmatprep.mubr.msk.f32.mxu1 %vm1797_vm0, %v6342_v44  ;;  %v6461_v12 = vpop.permute.xlu0 %6460 }
 0x878   : > { %14067 = vmatmul.mubr.msk.f32.vlgmr.msra.gmra.mrb[112].mxu0 %vm1797_vm0, %v6461_v12  ;;  %15148 = vmatprep.subr.msk.bf16.mxu0 %vm18203_vm1, %v15146_v35 }
 0x879   : > { %14069 = vmatprep.mubr.msk.f32.mxu0 %vm1797_vm0, %v6463_v32  ;;  %15151 = vmatpush3.bf16.xpose.msk.msra.mxu0 %vm18203_vm1, %v15146_v35  ;;  %v15846_v32 = vunpack.i.l.bf16 %v15845_v15 }
 0x87a   : > { %15154 = vmatprep.subr.msk.bf16.mxu0 %vm18203_vm1, %v15152_v43  ;;  %v6582_v58 = vpop.permute.xlu1 %6581 }
 0x87b   : > { %15121 = vmatpush3.bf16.xpose.msk.msra.mxu1 %vm18203_vm1, %v15116_v10  ;;  %v6348_v44 = vpop.permute.xlu0 %6347  ;;  %v15164_v24 = vpack.c.bf16 %v15847_v51, %v15846_v32 }
 0x87c   : > { %15136 = vmatprep.subr.msk.bf16.mxu1 %vm18203_vm1, %v15134_v17 }
 0x87f   : > { %v15840_v22 = vpop.permute.xlu0 %15839 }
 0x880   : > { %v15842_v45 = vunpack.i.h.bf16 %v15840_v22  ;;  %v15841_v39 = vunpack.i.l.bf16 %v15840_v22 }
 0x881   : > { %15157 = vmatpush3.bf16.xpose.msk.msra.mxu0 %vm18203_vm1, %v15152_v43 }
 0x882   : > { %14053 = vmatmul.mubr.msk.f32.vlgmr.msra.gmra.mrb[124].mxu1 %vm1797_vm0, %v6344_v36  ;;  %v6812_v36 = vpop.permute.xlu1 %6811  ;;  %v15158_v9 = vpack.c.bf16 %v15842_v45, %v15841_v39 }
 0x883   : > { %14055 = vmatprep.mubr.msk.f32.mxu1 %vm1797_vm0, %v6346_v27  ;;  %15139 = vmatpush3.bf16.xpose.msk.msra.mxu1 %vm18203_vm1, %v15134_v17  ;;  %v6578_v8 = vpop.permute.xlu0 %6577 }
 0x884   : > { %15142 = vmatprep.subr.msk.bf16.mxu1 %vm18203_vm1, %v15140_v5 }
 0x886   : > { %14056 = vmatmul.mubr.msk.f32.gmra.mrb[126].mxu1 %vm1797_vm0, %v6348_v44  ;;  %v6699_v10 = vpop.permute.xlu1 %6698 }
 0x887   : > { %14080 = vmatprep.mubr.msk.f32.mxu1 %vm1797_vm0, %v6576_v47  ;;  %v6465_v61 = vpop.permute.xlu0 %6464 }
 0x888   : > { %14070 = vmatmul.mubr.msk.f32.gmra.mrb[114].mxu0 %vm1797_vm0, %v6465_v61 }
 0x88a   : > { %v6816_v23 = vpop.permute.xlu1 %6815 }
 0x88b   : > { %15145 = vmatpush3.bf16.xpose.msk.msra.mxu1 %vm18203_vm1, %v15140_v5  ;;  %v6693_v27 = vpop.permute.xlu0 %6692 }
 0x88c   : > { %15160 = vmatprep.subr.msk.bf16.mxu1 %vm18203_vm1, %v15158_v9  ;;  %14094 = vmatprep.mubr.msk.f32.mxu0 %vm1797_vm0, %v6693_v27 }
 0x88d   : > { %14095 = vmatmul.mubr.msk.f32.vlgmr.msra.gmra.mrb[116].mxu0 %vm1797_vm0, %v6695_v54 }
 0x88e   : > { %v15855_v26 = vpop.permute.xlu1 %15854 }
 0x88f   : > { %v6580_v47 = vpop.permute.xlu0 %6579  ;;  %v15857_v38 = vunpack.i.h.bf16 %v15855_v26  ;;  %v15856_v19 = vunpack.i.l.bf16 %v15855_v26 }
 0x891   : > { %v15174_v54 = vpack.c.bf16 %v15857_v38, %v15856_v19 }
 0x892   : > { %14081 = vmatmul.mubr.msk.f32.vlgmr.msra.gmra.mrb[128].mxu1 %vm1797_vm0, %v6578_v8  ;;  %v15865_v43 = vpop.permute.xlu1 %15864 }
 0x893   : > { %14083 = vmatprep.mubr.msk.f32.mxu1 %vm1797_vm0, %v6580_v47  ;;  %15163 = vmatpush3.bf16.xpose.msk.msra.mxu1 %vm18203_vm1, %v15158_v9  ;;  %v6810_v14 = vpop.permute.xlu0 %6809  ;;  %v15867_v50 = vunpack.i.h.bf16 %v15865_v43  ;;  %v15866_v41 = vunpack.i.l.bf16 %v15865_v43 }
 0x894   : > { %15166 = vmatprep.subr.msk.bf16.mxu1 %vm18203_vm1, %v15164_v24 }
 0x895   : > { %v20061_v51 = vpack.c.bf16 %v15867_v50, %v15866_v41 }
 0x896   : > { %14084 = vmatmul.mubr.msk.f32.gmra.mrb[130].mxu1 %vm1797_vm0, %v6582_v58 }
 0x897   : > { %14108 = vmatprep.mubr.msk.f32.mxu1 %vm1797_vm0, %v6810_v14  ;;  %v6697_v2 = vpop.permute.xlu0 %6696 }
 0x898   : > { %14097 = vmatprep.mubr.msk.f32.mxu0 %vm1797_vm0, %v6697_v2 }
 0x899   : > { %14098 = vmatmul.mubr.msk.f32.gmra.mrb[118].mxu0 %vm1797_vm0, %v6699_v10 }
 0x89b   : > { %15169 = vmatpush3.bf16.xpose.msk.msra.mxu1 %vm18203_vm1, %v15164_v24  ;;  %v6814_v25 = vpop.permute.xlu0 %6813 }
 0x89f   : > { %v15850_v35 = vpop.permute.xlu0 %15849 }
 0x8a0   : > { %v15852_v15 = vunpack.i.h.bf16 %v15850_v35  ;;  %v15851_v12 = vunpack.i.l.bf16 %v15850_v35 }
 0x8a2   : > { %14109 = vmatmul.mubr.msk.f32.vlgmr.msra.gmra.mrb[132].mxu1 %vm1797_vm0, %v6812_v36  ;;  %v15170_v17 = vpack.c.bf16 %v15852_v15, %v15851_v12  ;;  %v20052_v22 = vpop.f32.mrb[88].mxu0 }
 0x8a3   : > { %14111 = vmatprep.mubr.msk.f32.mxu1 %vm1797_vm0, %v6814_v25  ;;  %v15860_v44 = vpop.permute.xlu0 %15859  ;;  %22844 = vst [vmem:[#allocation33_spill] sm:$0xff] %v20052_v22  ;;  %v20054_v8 = vpop.f32.mrb[89].mxu0 }
 0x8a4   : > { %v15862_v5 = vunpack.i.h.bf16 %v15860_v44  ;;  %v15861_v58 = vunpack.i.l.bf16 %v15860_v44  ;;  %15171 = vmatprep.subr.bf16.mxu0 %v15170_v17  ;;  %22845 = vst [vmem:[#allocation111_spill] sm:$0xff] %v20054_v8 }
 0x8a5   : > { %15173 = vmatpush3.bf16.msra.mxu0 %v15170_v17 }
 0x8a6   : > { %14112 = vmatmul.mubr.msk.f32.gmra.mrb[134].mxu1 %vm1797_vm0, %v6816_v23  ;;  %15175 = vmatprep.subr.bf16.mxu0 %v15174_v54  ;;  %v15178_v39 = vpack.c.bf16 %v15862_v5, %v15861_v58  ;;  %v20059_v36 = vpop.f32.mrb[90].mxu0 }
 0x8a7   : > { %v15870_v61 = vpop.permute.xlu0 %15869  ;;  %22846 = vst [vmem:[#allocation36_spill] sm:$0xff] %v20059_v36  ;;  %v20063_v32 = vpop.f32.mrb[91].mxu0 }
 0x8a8   : > { %v15872_v9 = vunpack.i.h.bf16 %v15870_v61  ;;  %v15871_v27 = vunpack.i.l.bf16 %v15870_v61  ;;  %15179 = vmatprep.subr.bf16.mxu1 %v15178_v39  ;;  %22847 = vst [vmem:[#allocation48_spill] sm:$0xff] %v20063_v32 }
 0x8a9   : > { %15177 = vmatpush3.bf16.msra.mxu0 %v15174_v54  ;;  %15181 = vmatpush3.bf16.msra.mxu1 %v15178_v39 }
 0x8aa   : > { %15187 = vmatprep.subr.bf16.mxu0 %v20061_v51  ;;  %v15182_v47 = vpack.c.bf16 %v15872_v9, %v15871_v27 }
 0x8ab   : > { %v15880_v24 = vpop.permute.xlu0 %15879 }
 0x8ac   : > { %v15882_v14 = vunpack.i.h.bf16 %v15880_v24  ;;  %v15881_v23 = vunpack.i.l.bf16 %v15880_v24  ;;  %15183 = vmatprep.subr.bf16.mxu1 %v15182_v47 }
 0x8ad   : > { %15185 = vmatpush3.bf16.msra.mxu1 %v15182_v47 }
 0x8ae   : > { %v20068_v2 = vpack.c.bf16 %v15882_v14, %v15881_v23 }
 0x8b0   : > { %22848 = vst [vmem:[#allocation44_spill] sm:$0xff] %v20068_v2  ;;  %15195 = vmatprep.subr.bf16.mxu1 %v20068_v2 }
 0x8b1   : > { %v20071_v26 = vpop.f32.mrb[92].mxu0 }
 0x8b2   : > { %22849 = vst [vmem:[#allocation42_spill] sm:$0xff] %v20071_v26  ;;  %v20073_v25 = vpop.f32.mrb[93].mxu0 }
 0x8b3   : > { %22850 = vst [vmem:[#allocation41_spill] sm:$0xff] %v20073_v25 }
 0x8d5   : > { %v20077_v19 = vpop.f32.mrb[94].mxu0 }
 0x8d6   : > { %22851 = vst [vmem:[#allocation112_spill] sm:$0xff] %v20077_v19  ;;  %v20079_v35 = vpop.f32.mrb[95].mxu0 }
 0x8d7   : > { %22852 = vst [vmem:[#allocation46_spill] sm:$0xff] %v20079_v35  ;;  %v20083_v12 = vpop.f32.mrb[104].mxu1 }
 0x8d8   : > { %22853 = vst [vmem:[#allocation114_spill] sm:$0xff] %v20083_v12  ;;  %v20085_v43 = vpop.f32.mrb[105].mxu1  ;;  %v20223_v12 = vpop.permute.xlu0 %15889 }
 0x8d9   : > { %22854 = vst [vmem:[#allocation97_spill] sm:$0xff] %v20085_v43  ;;  %22878 = vst [vmem:[#allocation31_spill] sm:$0xff] %v20223_v12 }
 0x8dc   : > { %v20241_v40 = vpop.permute.xlu0 %15899 }
 0x8dd   : > { %22880 = vst [vmem:[#allocation23_spill] sm:$0xff] %v20241_v40 }
 0x8de   : > { %v20089_v44 = vpop.f32.mrb[96].mxu0 }
 0x8df   : > { %22855 = vst [vmem:[#allocation118_spill] sm:$0xff] %v20089_v44  ;;  %v20091_v54 = vpop.f32.mrb[97].mxu0 }
 0x8e0   : > { %22856 = vst [vmem:[#allocation115_spill] sm:$0xff] %v20091_v54 }
 0x8e1   : > { %v20095_v41 = vpop.f32.mrb[106].mxu1 }
 0x8e2   : > { %22857 = vst [vmem:[#allocation28_spill] sm:$0xff] %v20095_v41  ;;  %v20097_v5 = vpop.f32.mrb[107].mxu1 }
 0x8e3   : > { %22858 = vst [vmem:[#allocation116_spill] sm:$0xff] %v20097_v5 }
 0x8e8   : > { %v20101_v39 = vpop.f32.mrb[108].mxu1 }
 0x8e9   : > { %22859 = vst [vmem:[#allocation32_spill] sm:$0xff] %v20101_v39  ;;  %v20103_v61 = vpop.f32.mrb[109].mxu1 }
 0x8ea   : > { %22860 = vst [vmem:[#allocation113_spill] sm:$0xff] %v20103_v61 }
 0x8ef   : > { %v20107_v27 = vpop.f32.mrb[110].mxu1 }
 0x8f0   : > { %22861 = vst [vmem:[#allocation22_spill] sm:$0xff] %v20107_v27  ;;  %v20109_v47 = vpop.f32.mrb[111].mxu1 }
 0x8f1   : > { %22862 = vst [vmem:[#allocation26_spill] sm:$0xff] %v20109_v47 }
 0x8f3   : > { %v20113_v14 = vpop.f32.mrb[98].mxu0 }
 0x8f4   : > { %22863 = vst [vmem:[#allocation35_spill] sm:$0xff] %v20113_v14  ;;  %v20115_v23 = vpop.f32.mrb[99].mxu0 }
 0x8f5   : > { %22864 = vst [vmem:[#allocation120_spill] sm:$0xff] %v20115_v23 }
 0x8f8   : > { %v20119_v15 = vpop.f32.mrb[112].mxu1 }
 0x8f9   : > { %22865 = vst [vmem:[#allocation29_spill] sm:$0xff] %v20119_v15  ;;  %v20121_v38 = vpop.f32.mrb[113].mxu1 }
 0x8fa   : > { %22866 = vst [vmem:[#allocation117_spill] sm:$0xff] %v20121_v38 }
 0x8fc   : > { %v20125_v58 = vpop.f32.mrb[100].mxu0 }
 0x8fd   : > { %22867 = vst [vmem:[#allocation119_spill] sm:$0xff] %v20125_v58  ;;  %v20127_v17 = vpop.f32.mrb[101].mxu0 }
 0x8fe   : > { %22868 = vst [vmem:[#allocation38_spill] sm:$0xff] %v20127_v17 }
 0x900   : > { %v20131_v10 = vpop.f32.mrb[114].mxu1 }
 0x901   : > { %22869 = vst [vmem:[#allocation122_spill] sm:$0xff] %v20131_v10  ;;  %v20133_v45 = vpop.f32.mrb[115].mxu1  ;;  %v20173_v10 = vpop.permute.xlu1 %15874 }
 0x902   : > { %22870 = vst [vmem:[#allocation121_spill] sm:$0xff] %v20133_v45 }
 0x904   : > { %v20137_v23 = vpop.f32.mrb[102].mxu0 }
 0x905   : > { %22871 = vst [vmem:[#allocation123_spill] sm:$0xff] %v20137_v23  ;;  %v20139_v14 = vpop.f32.mrb[103].mxu0  ;;  %v20179_v44 = vpop.permute.xlu1 %15884 }
 0x906   : > { %22872 = vst [vmem:[#allocation125_spill] sm:$0xff] %v20139_v14 }
 0x908   : > { %v20143_v38 = vpop.f32.mrb[116].mxu1 }
 0x909   : > { %22873 = vst [vmem:[#allocation126_spill] sm:$0xff] %v20143_v38  ;;  %v20145_v15 = vpop.f32.mrb[117].mxu1 }
 0x90a   : > { %22874 = vst [vmem:[#allocation124_spill] sm:$0xff] %v20145_v15 }
 0x90c   : > { %v20149_v17 = vpop.f32.mrb[104].mxu0 }
 0x90d   : > { %v20151_v58 = vpop.f32.mrb[105].mxu0  ;;  %v6929_v50 = vsel %vm1797_vm0, %v20149_v17, -inf }
 0x90e   : > { %6930 = vmax.xlane.f32.xlu1 %v6929_v50  ;;  %v6926_v45 = vsel %vm1797_vm0, %v20151_v58, -inf }
 0x90f   : > { %6927 = vmax.xlane.f32.xlu0 %v6926_v45 }
 0x910   : > { %v20157_v9 = vpop.f32.mrb[106].mxu0 }
 0x911   : > { %v20159_v14 = vpop.f32.mrb[107].mxu0  ;;  %v6935_v23 = vsel %vm1797_vm0, %v20157_v9, -inf }
 0x912   : > { %v6932_v24 = vsel %vm1797_vm0, %v20159_v14, -inf }
 0x913   : > { %6936 = vmax.xlane.f32.xlu0 %v6935_v23 }
 0x917   : > { %6933 = vmax.xlane.f32.xlu0 %v6932_v24  ;;  %v20197_v24 = vpop.permute.xlu1 %15894 }
 0x91b   : > { %v20213_v5 = vpop.permute.xlu1 %15904 }
 0x91c   : > { %v20165_v15 = vpop.f32.mrb[108].mxu0 }
 0x91d   : > { %v20167_v38 = vpop.f32.mrb[109].mxu0  ;;  %v6953_v50 = vsel %vm1797_vm0, %v20165_v15, -inf }
 0x91e   : > { %6954 = vmax.xlane.f32.xlu1 %v6953_v50  ;;  %v6950_v45 = vsel %vm1797_vm0, %v20167_v38, -inf }
 0x91f   : > { %v20219_v41 = vpop.permute.xlu1 %15909 }
 0x920   : > { %22877 = vst [vmem:[#allocation25_spill] sm:$0xff] %v20219_v41 }
 0x922   : > { %6951 = vmax.xlane.f32.xlu1 %v6950_v45 }
 0x923   : > { %v20237_v8 = vpop.permute.xlu1 %15914 }
 0x924   : > { %22879 = vst [vmem:[#allocation34_spill] sm:$0xff] %v20237_v8 }
 0x927   : > { %v20251_v59 = vpop.permute.xlu1 %15924 }
 0x928   : > { %22881 = vst [vmem:[#allocation27_spill] sm:$0xff] %v20251_v59 }
 0x92b   : > { %v20267_v16 = vpop.permute.xlu1 %15934 }
 0x92c   : > { %22883 = vst [vmem:[#allocation30_spill] sm:$0xff] %v20267_v16 }
 0x92f   : > { %v20281_v41 = vpop.permute.xlu1 %15944 }
 0x930   : > { %22885 = vst [vmem:[#allocation127_spill] sm:$0xff] %v20281_v41 }
 0x941   : > { %v20175_v54 = vpop.f32.mrb[118].mxu1 }
 0x942   : > { %22875 = vst [vmem:[#allocation129_spill] sm:$0xff] %v20175_v54  ;;  %v20177_v23 = vpop.f32.mrb[119].mxu1 }
 0x943   : > { %22876 = vst [vmem:[#allocation130_spill] sm:$0xff] %v20177_v23  ;;  %v20183_v47 = vpop.f32.mrb[110].mxu0 }
 0x944   : > { %v20185_v27 = vpop.f32.mrb[111].mxu0  ;;  %v6959_v50 = vsel %vm1797_vm0, %v20183_v47, -inf }
 0x945   : > { %v20189_v61 = vpop.f32.mrb[120].mxu1  ;;  %6960 = vmax.xlane.f32.xlu1 %v6959_v50  ;;  %v6956_v35 = vsel %vm1797_vm0, %v20185_v27, -inf }
 0x946   : > { %v20191_v45 = vpop.f32.mrb[121].mxu1  ;;  %v6941_v39 = vsel %vm1797_vm0, %v20189_v61, -inf }
 0x947   : > { %6942 = vmax.xlane.f32.xlu0 %v6941_v39  ;;  %v6938_v19 = vsel %vm1797_vm0, %v20191_v45, -inf }
 0x949   : > { %v20199_v23 = vpop.f32.mrb[122].mxu1  ;;  %6957 = vmax.xlane.f32.xlu1 %v6956_v35 }
 0x94a   : > { %v20201_v54 = vpop.f32.mrb[123].mxu1  ;;  %v6947_v26 = vsel %vm1797_vm0, %v20199_v23, -inf }
 0x94b   : > { %6939 = vmax.xlane.f32.xlu0 %v6938_v19  ;;  %v20205_v50 = vpop.f32.mrb[112].mxu0  ;;  %v6944_v19 = vsel %vm1797_vm0, %v20201_v54, -inf }
 0x94c   : > { %v20207_v25 = vpop.f32.mrb[113].mxu0  ;;  %v6977_v39 = vsel %vm1797_vm0, %v20205_v50, -inf }
 0x94d   : > { %6978 = vmax.xlane.f32.xlu1 %v6977_v39  ;;  %v6974_v35 = vsel %vm1797_vm0, %v20207_v25, -inf }
 0x94f   : > { %6948 = vmax.xlane.f32.xlu0 %v6947_v26 }
 0x951   : > { %6975 = vmax.xlane.f32.xlu1 %v6974_v35 }
 0x953   : > { %6945 = vmax.xlane.f32.xlu0 %v6944_v19 }
 0x955   : > { %v20221_v43 = vpop.f32.mrb[124].mxu1 }
 0x956   : > { %v20225_v39 = vpop.f32.mrb[125].mxu1  ;;  %v6965_v32 = vsel %vm1797_vm0, %v20221_v43, -inf }
 0x957   : > { %6966 = vmax.xlane.f32.xlu0 %v6965_v32  ;;  %v6962_v19 = vsel %vm1797_vm0, %v20225_v39, -inf }
 0x959   : > { %v20229_v26 = vpop.f32.mrb[126].mxu1 }
 0x95a   : > { %v20231_v36 = vpop.f32.mrb[127].mxu1  ;;  %v6971_v35 = vsel %vm1797_vm0, %v20229_v26, -inf }
 0x95b   : > { %6972 = vmax.xlane.f32.xlu1 %v6971_v35  ;;  %6963 = vmax.xlane.f32.xlu0 %v6962_v19  ;;  %v20239_v22 = vpop.f32.mrb[114].mxu0  ;;  %v6968_v33 = vsel %vm1797_vm0, %v20231_v36, -inf  ;;  %v20255_v19 = vpop.permute.xlu0 %15919 }
 0x95c   : > { %v20243_v55 = vpop.f32.mrb[115].mxu0  ;;  %v6983_v32 = vsel %vm1797_vm0, %v20239_v22, -inf  ;;  %22882 = vst [vmem:[#allocation37_spill] sm:$0xff] %v20255_v19 }
 0x95d   : > { %v6980_v34 = vsel %vm1797_vm0, %v20243_v55, -inf }
 0x95f   : > { %6984 = vmax.xlane.f32.xlu1 %v6983_v32  ;;  %6969 = vmax.xlane.f32.xlu0 %v6968_v33  ;;  %v20269_v59 = vpop.permute.xlu0 %15929 }
 0x960   : > { %v20249_v18 = vpop.f32.mrb[116].mxu0  ;;  %22884 = vst [vmem:[#allocation43_spill] sm:$0xff] %v20269_v59 }
 0x961   : > { %v20253_v35 = vpop.f32.mrb[117].mxu0  ;;  %v7001_v33 = vsel %vm1797_vm0, %v20249_v18, -inf }
 0x962   : > { %v6998_v48 = vsel %vm1797_vm0, %v20253_v35, -inf }
 0x963   : > { %6981 = vmax.xlane.f32.xlu1 %v6980_v34  ;;  %v20287_v16 = vpop.permute.xlu0 %15939 }
 0x964   : > { %22886 = vst [vmem:[#allocation128_spill] sm:$0xff] %v20287_v16 }
 0x965   : > { %v20259_v21 = vpop.f32.mrb[128].mxu1 }
 0x966   : > { %v20261_v52 = vpop.f32.mrb[129].mxu1  ;;  %v6989_v32 = vsel %vm1797_vm0, %v20259_v21, -inf }
 0x967   : > { %6990 = vmax.xlane.f32.xlu0 %v6989_v32  ;;  %7002 = vmax.xlane.f32.xlu1 %v7001_v33  ;;  %v6986_v34 = vsel %vm1797_vm0, %v20261_v52, -inf  ;;  %v20295_v59 = vpop.permute.xlu0 %15949 }
 0x968   : > { %22888 = vst [vmem:[#allocation132_spill] sm:$0xff] %v20295_v59 }
 0x969   : > { %v20271_v3 = vpop.f32.mrb[130].mxu1 }
 0x96a   : > { %v20273_v19 = vpop.f32.mrb[131].mxu1  ;;  %v6995_v13 = vsel %vm1797_vm0, %v20271_v3, -inf }
 0x96b   : > { %6987 = vmax.xlane.f32.xlu0 %v6986_v34  ;;  %6996 = vmax.xlane.f32.xlu1 %v6995_v13  ;;  %v6992_v34 = vsel %vm1797_vm0, %v20273_v19, -inf  ;;  %v20293_v13 = vpop.permute.xlu1 %8150 }
 0x96c   : > { %v20279_v29 = vpop.f32.mrb[118].mxu0  ;;  %22887 = vst [vmem:[#allocation131_spill] sm:$0xff] %v20293_v13  ;;  %v20309_v13 = vpop.permute.xlu0 %8152 }
 0x96d   : > { %v20283_v32 = vpop.f32.mrb[119].mxu0  ;;  %v7007_v33 = vsel %vm1797_vm0, %v20279_v29, -inf  ;;  %22890 = vst [vmem:[#allocation134_spill] sm:$0xff] %v20309_v13 }
 0x96e   : > { %v7004_v8 = vsel %vm1797_vm0, %v20283_v32, -inf }
 0x96f   : > { %6999 = vmax.xlane.f32.xlu0 %v6998_v48  ;;  %7008 = vmax.xlane.f32.xlu1 %v7007_v33  ;;  %v20305_v48 = vpop.permute.xlu1 %8154 }
 0x970   : > { %22889 = vst [vmem:[#allocation133_spill] sm:$0xff] %v20305_v48  ;;  %v20321_v48 = vpop.permute.xlu0 %8156 }
 0x971   : > { %22892 = vst [vmem:[#allocation136_spill] sm:$0xff] %v20321_v48 }
 0x973   : > { %6993 = vmax.xlane.f32.xlu0 %v6992_v34 }
 0x974   : > { %v20325_v13 = vpop.permute.xlu0 %15959 }
 0x975   : > { %v20297_v41 = vpop.f32.mrb[132].mxu1  ;;  %22894 = vst [vmem:[#allocation138_spill] sm:$0xff] %v20325_v13 }
 0x976   : > { %v20299_v31 = vpop.f32.mrb[133].mxu1  ;;  %v7013_v16 = vsel %vm1797_vm0, %v20297_v41, -inf }
 0x977   : > { %7014 = vmax.xlane.f32.xlu1 %v7013_v16  ;;  %7005 = vmax.xlane.f32.xlu0 %v7004_v8  ;;  %v7010_v2 = vsel %vm1797_vm0, %v20299_v31, -inf  ;;  %v20319_v8 = vpop.permute.xlu1 %15954 }
 0x978   : > { %22891 = vst [vmem:[#allocation135_spill] sm:$0xff] %v20319_v8  ;;  %v20329_v57 = vpop.permute.xlu0 %8269 }
 0x979   : > { %v20307_v33 = vpop.f32.mrb[134].mxu1  ;;  %22896 = vst [vmem:[#allocation140_spill] sm:$0xff] %v20329_v57 }
 0x97a   : > { %v20311_v34 = vpop.f32.mrb[135].mxu1  ;;  %v7019_v59 = vsel %vm1797_vm0, %v20307_v33, -inf }
 0x97b   : > { %7020 = vmax.xlane.f32.xlu1 %v7019_v59  ;;  %7011 = vmax.xlane.f32.xlu0 %v7010_v2  ;;  %v7016_v16 = vsel %vm1797_vm0, %v20311_v34, -inf  ;;  %v20323_v40 = vpop.permute.xlu1 %8267 }
 0x97c   : > { %22893 = vst [vmem:[#allocation137_spill] sm:$0xff] %v20323_v40  ;;  %v20333_v59 = vpop.permute.xlu0 %8273 }
 0x97d   : > { %22898 = vst [vmem:[#allocation142_spill] sm:$0xff] %v20333_v59 }
 0x97f   : > { %7017 = vmax.xlane.f32.xlu0 %v7016_v16  ;;  %v20327_v53 = vpop.permute.xlu1 %8271 }
 0x980   : > { %22895 = vst [vmem:[#allocation139_spill] sm:$0xff] %v20327_v53  ;;  %v20337_v46 = vpop.permute.xlu0 %15969 }
 0x981   : > { %22900 = vst [vmem:[#allocation144_spill] sm:$0xff] %v20337_v46 }
 0x983   : > { %v20331_v12 = vpop.permute.xlu1 %15964 }
 0x984   : > { %22897 = vst [vmem:[#allocation141_spill] sm:$0xff] %v20331_v12 }
 0x987   : > { %v20335_v2 = vpop.permute.xlu1 %8384 }
 0x988   : > { %22899 = vst [vmem:[#allocation143_spill] sm:$0xff] %v20335_v2 }
 0x99b   : > { %v6931_v8 = vpop.xlane.xlu1 %6930 }
 0x99c   : > { %v7023_v16 = vsub.f32 %v20149_v17, %v6931_v8  ;;  %v6928_v48 = vpop.xlane.xlu0 %6927 }
 0x99d   : > { %v7022_v40 = vsub.f32 %v20151_v58, %v6928_v48 }
 0x99e   : > { %v7056_v28 = vmul.f32 1.442695, %v7023_v16 }
 0x99f   : > { %v7054_v13 = vmul.f32 1.442695, %v7022_v40 }
 0x9a0   : > { %16648 = vpow2.f32 %v7056_v28  ;;  %v6937_v53 = vpop.xlane.xlu0 %6936 }
 0x9a1   : > { %16650 = vpow2.f32 %v7054_v13  ;;  %v7025_v57 = vsub.f32 %v20157_v9, %v6937_v53 }
 0x9a3   : > { %v7060_v12 = vmul.f32 1.442695, %v7025_v57 }
 0x9a4   : > { %v6934_v11 = vpop.xlane.xlu0 %6933 }
 0x9a5   : > { %16652 = vpow2.f32 %v7060_v12  ;;  %v7024_v59 = vsub.f32 %v20159_v14, %v6934_v11 }
 0x9a7   : > { %v7058_v2 = vmul.f32 1.442695, %v7024_v59 }
 0x9a9   : > { %16654 = vpow2.f32 %v7058_v2 }
 0x9aa   : > { %v20343_v46 = vpop.eup %16648 }
 0x9ab   : > { %v20345_v17 = vpop.eup %16650  ;;  %v6955_v8 = vpop.xlane.xlu1 %6954  ;;  %v7121_v40 = vsel %vm1797_vm0, %v20343_v46, 0.0 }
 0x9ac   : > { %v7031_v28 = vsub.f32 %v20165_v15, %v6955_v8  ;;  %7122 = vadd.xlane.f32.xlu1 %v7121_v40  ;;  %v7118_v57 = vsel %vm1797_vm0, %v20345_v17, 0.0 }
 0x9ad   : > { %7119 = vadd.xlane.f32.xlu0 %v7118_v57 }
 0x9ae   : > { %v7072_v53 = vmul.f32 1.442695, %v7031_v28 }
 0x9af   : > { %v20352_v12 = vpop.eup %16652  ;;  %v6952_v11 = vpop.xlane.xlu1 %6951 }
 0x9b0   : > { %16656 = vpow2.f32 %v7072_v53  ;;  %v7030_v58 = vsub.f32 %v20167_v38, %v6952_v11  ;;  %v7127_v9 = vsel %vm1797_vm0, %v20352_v12, 0.0 }
 0x9b1   : > { %7128 = vadd.xlane.f32.xlu1 %v7127_v9 }
 0x9b2   : > { %v7070_v14 = vmul.f32 1.442695, %v7030_v58 }
 0x9b3   : > { %v20357_v13 = vpop.eup %16654 }
 0x9b4   : > { %16658 = vpow2.f32 %v7070_v14  ;;  %v7124_v15 = vsel %vm1797_vm0, %v20357_v13, 0.0 }
 0x9b5   : > { %7125 = vadd.xlane.f32.xlu0 %v7124_v15 }
 0x9ba   : > { %v20361_v48 = vpop.eup %16656 }
 0x9bb   : > { %v7145_v59 = vsel %vm1797_vm0, %v20361_v48, 0.0 }
 0x9bc   : > { %7146 = vadd.xlane.f32.xlu1 %v7145_v59 }
 0x9be   : > { %v20365_v2 = vpop.eup %16658 }
 0x9bf   : > { %v7142_v38 = vsel %vm1797_vm0, %v20365_v2, 0.0 }
 0x9c0   : > { %7143 = vadd.xlane.f32.xlu1 %v7142_v38 }
 0x9d2   : > { %v6961_v16 = vpop.xlane.xlu1 %6960 }
 0x9d3   : > { %v7033_v8 = vsub.f32 %v20183_v47, %v6961_v16 }
 0x9d4   : > { %v6943_v40 = vpop.xlane.xlu0 %6942 }
 0x9d5   : > { %v7076_v28 = vmul.f32 1.442695, %v7033_v8  ;;  %v7027_v57 = vsub.f32 %v20189_v61, %v6943_v40 }
 0x9d6   : > { %v6958_v53 = vpop.xlane.xlu1 %6957 }
 0x9d7   : > { %16660 = vpow2.f32 %v7076_v28  ;;  %v7064_v11 = vmul.f32 1.442695, %v7027_v57  ;;  %v7032_v58 = vsub.f32 %v20185_v27, %v6958_v53 }
 0x9d8   : > { %v6940_v9 = vpop.xlane.xlu0 %6939 }
 0x9d9   : > { %16662 = vpow2.f32 %v7064_v11  ;;  %v7074_v14 = vmul.f32 1.442695, %v7032_v58  ;;  %v7026_v15 = vsub.f32 %v20191_v45, %v6940_v9 }
 0x9da   : > { %v6979_v59 = vpop.xlane.xlu1 %6978 }
 0x9db   : > { %16664 = vpow2.f32 %v7074_v14  ;;  %v7062_v38 = vmul.f32 1.442695, %v7026_v15  ;;  %v7039_v6 = vsub.f32 %v20205_v50, %v6979_v59 }
 0x9dc   : > { %v6949_v47 = vpop.xlane.xlu0 %6948 }
 0x9dd   : > { %16666 = vpow2.f32 %v7062_v38  ;;  %v7088_v16 = vmul.f32 1.442695, %v7039_v6  ;;  %v7029_v61 = vsub.f32 %v20199_v23, %v6949_v47 }
 0x9de   : > { %v6976_v8 = vpop.xlane.xlu1 %6975 }
 0x9df   : > { %16668 = vpow2.f32 %v7088_v16  ;;  %v7068_v40 = vmul.f32 1.442695, %v7029_v61  ;;  %v7038_v27 = vsub.f32 %v20207_v25, %v6976_v8 }
 0x9e0   : > { %v6946_v28 = vpop.xlane.xlu0 %6945 }
 0x9e1   : > { %v20376_v57 = vpop.eup %16660  ;;  %16670 = vpow2.f32 %v7068_v40  ;;  %v7086_v45 = vmul.f32 1.442695, %v7038_v27  ;;  %v7028_v53 = vsub.f32 %v20201_v54, %v6946_v28 }
 0x9e2   : > { %v7151_v50 = vsel %vm1797_vm0, %v20376_v57, 0.0 }
 0x9e3   : > { %v20381_v11 = vpop.eup %16662  ;;  %16672 = vpow2.f32 %v7086_v45  ;;  %v7066_v6 = vmul.f32 1.442695, %v7028_v53  ;;  %7152 = vadd.xlane.f32.xlu1 %v7151_v50 }
 0x9e4   : > { %v6967_v23 = vpop.xlane.xlu0 %6966  ;;  %v7133_v58 = vsel %vm1797_vm0, %v20381_v11, 0.0 }
 0x9e5   : > { %v20385_v25 = vpop.eup %16664  ;;  %16674 = vpow2.f32 %v7066_v6  ;;  %v7035_v9 = vsub.f32 %v20221_v43, %v6967_v23  ;;  %7134 = vadd.xlane.f32.xlu0 %v7133_v58 }
 0x9e6   : > { %v7148_v54 = vsel %vm1797_vm0, %v20385_v25, 0.0 }
 0x9e7   : > { %v20390_v14 = vpop.eup %16666  ;;  %v7080_v15 = vmul.f32 1.442695, %v7035_v9  ;;  %7149 = vadd.xlane.f32.xlu1 %v7148_v54 }
 0x9e8   : > { %v6973_v59 = vpop.xlane.xlu1 %6972  ;;  %v6964_v38 = vpop.xlane.xlu0 %6963  ;;  %v7130_v47 = vsel %vm1797_vm0, %v20390_v14, 0.0 }
 0x9e9   : > { %v20394_v16 = vpop.eup %16668  ;;  %16676 = vpow2.f32 %v7080_v15  ;;  %v7037_v61 = vsub.f32 %v20229_v26, %v6973_v59  ;;  %v7034_v43 = vsub.f32 %v20225_v39, %v6964_v38  ;;  %7131 = vadd.xlane.f32.xlu0 %v7130_v47 }
 0x9ea   : > { %v7169_v8 = vsel %vm1797_vm0, %v20394_v16, 0.0 }
 0x9eb   : > { %v20400_v40 = vpop.eup %16670  ;;  %v7084_v27 = vmul.f32 1.442695, %v7037_v61  ;;  %v7078_v28 = vmul.f32 1.442695, %v7034_v43  ;;  %7170 = vadd.xlane.f32.xlu1 %v7169_v8 }
 0x9ec   : > { %v6985_v45 = vpop.xlane.xlu1 %6984  ;;  %v6970_v53 = vpop.xlane.xlu0 %6969  ;;  %v7139_v50 = vsel %vm1797_vm0, %v20400_v40, 0.0 }
 0x9ed   : > { %v20404_v6 = vpop.eup %16672  ;;  %16678 = vpow2.f32 %v7084_v27  ;;  %v7041_v26 = vsub.f32 %v20239_v22, %v6985_v45  ;;  %v7036_v39 = vsub.f32 %v20231_v36, %v6970_v53  ;;  %7140 = vadd.xlane.f32.xlu0 %v7139_v50 }
 0x9ee   : > { %16680 = vpow2.f32 %v7078_v28  ;;  %v7166_v23 = vsel %vm1797_vm0, %v20404_v6, 0.0 }
 0x9ef   : > { %v20410_v58 = vpop.eup %16674  ;;  %v7092_v9 = vmul.f32 1.442695, %v7041_v26  ;;  %v7082_v54 = vmul.f32 1.442695, %v7036_v39  ;;  %7167 = vadd.xlane.f32.xlu1 %v7166_v23 }
 0x9f0   : > { %v6982_v15 = vpop.xlane.xlu1 %6981  ;;  %v7136_v59 = vsel %vm1797_vm0, %v20410_v58, 0.0 }
 0x9f1   : > { %16682 = vpow2.f32 %v7092_v9  ;;  %v7040_v38 = vsub.f32 %v20243_v55, %v6982_v15  ;;  %7137 = vadd.xlane.f32.xlu0 %v7136_v59 }
 0x9f2   : > { %16684 = vpow2.f32 %v7082_v54 }
 0x9f3   : > { %v20415_v22 = vpop.eup %16676  ;;  %v7090_v36 = vmul.f32 1.442695, %v7040_v38 }
 0x9f4   : > { %v6991_v47 = vpop.xlane.xlu0 %6990  ;;  %v7003_v61 = vpop.xlane.xlu1 %7002  ;;  %v7157_v43 = vsel %vm1797_vm0, %v20415_v22, 0.0 }
 0x9f5   : > { %v7043_v8 = vsub.f32 %v20259_v21, %v6991_v47  ;;  %v7047_v27 = vsub.f32 %v20249_v18, %v7003_v61  ;;  %7158 = vadd.xlane.f32.xlu0 %v7157_v43  ;;  %16686 = vpow2.f32 %v7090_v36 }
 0x9f7   : > { %v20421_v28 = vpop.eup %16678  ;;  %v7096_v45 = vmul.f32 1.442695, %v7043_v8  ;;  %v7104_v55 = vmul.f32 1.442695, %v7047_v27 }
 0x9f8   : > { %v20423_v53 = vpop.eup %16680  ;;  %v6988_v50 = vpop.xlane.xlu0 %6987  ;;  %v7163_v39 = vsel %vm1797_vm0, %v20421_v28, 0.0 }
 0x9f9   : > { %v6997_v26 = vpop.xlane.xlu1 %6996  ;;  %16688 = vpow2.f32 %v7096_v45  ;;  %v7042_v23 = vsub.f32 %v20261_v52, %v6988_v50  ;;  %7164 = vadd.xlane.f32.xlu1 %v7163_v39  ;;  %v7154_v18 = vsel %vm1797_vm0, %v20423_v53, 0.0 }
 0x9fa   : > { %v7045_v21 = vsub.f32 %v20271_v3, %v6997_v26  ;;  %7155 = vadd.xlane.f32.xlu0 %v7154_v18  ;;  %16690 = vpow2.f32 %v7104_v55 }
 0x9fb   : > { %v20431_v9 = vpop.eup %16682  ;;  %v7094_v54 = vmul.f32 1.442695, %v7042_v23 }
 0x9fc   : > { %v7100_v15 = vmul.f32 1.442695, %v7045_v21  ;;  %v7000_v59 = vpop.xlane.xlu0 %6999  ;;  %v7175_v36 = vsel %vm1797_vm0, %v20431_v9, 0.0  ;;  %v20435_v47 = vpop.eup %16684 }
 0x9fd   : > { %v7009_v38 = vpop.xlane.xlu1 %7008  ;;  %16692 = vpow2.f32 %v7094_v54  ;;  %v7046_v3 = vsub.f32 %v20253_v35, %v7000_v59  ;;  %7176 = vadd.xlane.f32.xlu1 %v7175_v36  ;;  %v7160_v27 = vsel %vm1797_vm0, %v20435_v47, 0.0 }
 0x9fe   : > { %v7049_v52 = vsub.f32 %v20279_v29, %v7009_v38  ;;  %16694 = vpow2.f32 %v7100_v15 }
 0x9ff   : > { %v7102_v61 = vmul.f32 1.442695, %v7046_v3  ;;  %v20441_v45 = vpop.eup %16686 }
 0xa00   : > { %v7108_v43 = vmul.f32 1.442695, %v7049_v52  ;;  %v6994_v8 = vpop.xlane.xlu0 %6993  ;;  %v7172_v39 = vsel %vm1797_vm0, %v20441_v45, 0.0 }
 0xa01   : > { %16696 = vpow2.f32 %v7102_v61  ;;  %v7044_v55 = vsub.f32 %v20273_v19, %v6994_v8  ;;  %7161 = vadd.xlane.f32.xlu1 %v7160_v27 }
 0xa02   : > { %16698 = vpow2.f32 %v7108_v43 }
 0xa03   : > { %v20444_v50 = vpop.eup %16688  ;;  %v7098_v35 = vmul.f32 1.442695, %v7044_v55 }
 0xa04   : > { %v7015_v26 = vpop.xlane.xlu1 %7014  ;;  %v7006_v29 = vpop.xlane.xlu0 %7005  ;;  %v7181_v23 = vsel %vm1797_vm0, %v20444_v50, 0.0 }
 0xa05   : > { %v20450_v21 = vpop.eup %16690  ;;  %v7051_v18 = vsub.f32 %v20297_v41, %v7015_v26  ;;  %v7048_v54 = vsub.f32 %v20283_v32, %v7006_v29  ;;  %7173 = vadd.xlane.f32.xlu1 %v7172_v39  ;;  %7182 = vadd.xlane.f32.xlu0 %v7181_v23  ;;  %16700 = vpow2.f32 %v7098_v35 }
 0xa06   : > { %v7193_v36 = vsel %vm1797_vm0, %v20450_v21, 0.0 }
 0xa07   : > { %v20454_v19 = vpop.eup %16692  ;;  %v7112_v15 = vmul.f32 1.442695, %v7051_v18  ;;  %v7106_v59 = vmul.f32 1.442695, %v7048_v54 }
 0xa08   : > { %v7012_v38 = vpop.xlane.xlu0 %7011  ;;  %v7178_v3 = vsel %vm1797_vm0, %v20454_v19, 0.0  ;;  %v20460_v52 = vpop.eup %16694 }
 0xa09   : > { %16702 = vpow2.f32 %v7112_v15  ;;  %v7050_v41 = vsub.f32 %v20299_v31, %v7012_v38  ;;  %7194 = vadd.xlane.f32.xlu1 %v7193_v36  ;;  %7179 = vadd.xlane.f32.xlu0 %v7178_v3  ;;  %v7187_v43 = vsel %vm1797_vm0, %v20460_v52, 0.0  ;;  %v7021_v15 = vpop.xlane.xlu1 %7020 }
 0xa0a   : > { %16704 = vpow2.f32 %v7106_v59  ;;  %v7053_v59 = vsub.f32 %v20307_v33, %v7021_v15  ;;  %v15876_v33 = vunpack.i.l.bf16 %v20173_v10  ;;  %v15886_v15 = vunpack.i.l.bf16 %v20179_v44 }
 0xa0b   : > { %v20463_v32 = vpop.eup %16696  ;;  %v7110_v61 = vmul.f32 1.442695, %v7050_v41 }
 0xa0c   : > { %v7190_v8 = vsel %vm1797_vm0, %v20463_v32, 0.0  ;;  %v20469_v27 = vpop.eup %16698  ;;  %v7018_v38 = vpop.xlane.xlu0 %7017  ;;  %v7116_v36 = vmul.f32 1.442695, %v7053_v59 }
 0xa0d   : > { %7188 = vadd.xlane.f32.xlu1 %v7187_v43  ;;  %7191 = vadd.xlane.f32.xlu0 %v7190_v8  ;;  %16706 = vpow2.f32 %v7110_v61  ;;  %v7199_v31 = vsel %vm1797_vm0, %v20469_v27, 0.0  ;;  %v7052_v61 = vsub.f32 %v20311_v34, %v7018_v38  ;;  %v15887_v34 = vunpack.i.h.bf16 %v20179_v44 }
 0xa0f   : > { %v20473_v55 = vpop.eup %16700  ;;  %v7114_v8 = vmul.f32 1.442695, %v7052_v61 }
 0xa10   : > { %v7184_v29 = vsel %vm1797_vm0, %v20473_v55, 0.0 }
 0xa11   : > { %7200 = vadd.xlane.f32.xlu0 %v7199_v31 }
 0xa13   : > { %v20475_v35 = vpop.eup %16702 }
 0xa14   : > { %v7205_v26 = vsel %vm1797_vm0, %v20475_v35, 0.0  ;;  %v20481_v39 = vpop.eup %16704 }
 0xa15   : > { %7206 = vadd.xlane.f32.xlu1 %v7205_v26  ;;  %7185 = vadd.xlane.f32.xlu0 %v7184_v29  ;;  %v7196_v23 = vsel %vm1797_vm0, %v20481_v39, 0.0 }
 0xa17   : > { %v20485_v18 = vpop.eup %16706 }
 0xa18   : > { %v7202_v54 = vsel %vm1797_vm0, %v20485_v18, 0.0 }
 0xa19   : > { %7197 = vadd.xlane.f32.xlu0 %v7196_v23 }
 0xa1d   : > { %7203 = vadd.xlane.f32.xlu0 %v7202_v54 }
 0xa26   : > { %8388 = vrot.lane.b32.xlu1 %v22645_v1, %s17218_s10 }
 0xa33   : > { %8386 = vrot.lane.b32.xlu0 %v18353_v4, %s17218_s10  ;;  %v15877_v4 = vunpack.i.h.bf16 %v20173_v10 }
 0xa39   : > { %v7123_v3 = vpop.xlane.xlu1 %7122 }
 0xa3a   : > { %16708 = vrcp.f32 %v7123_v3  ;;  %v7120_v41 = vpop.xlane.xlu0 %7119  ;;  %v15202_v3 = vpack.c.bf16 %v15887_v34, %v15886_v15  ;;  %v22906_v34 = vld [vmem:[#allocation51_spill] sm:$0xff] }
 0xa3b   : > { %16710 = vrcp.f32 %v7120_v41 }
 0xa3c   : > { %16712 = vpow2.f32 %v7116_v36  ;;  %v15190_v36 = vpack.c.bf16 %v15877_v4, %v15876_v33  ;;  %v15906_v4 = vunpack.i.l.bf16 %v20213_v5 }
 0xa3e   : > { %v7129_v43 = vpop.xlane.xlu1 %7128 }
 0xa3f   : > { %16714 = vrcp.f32 %v7129_v43 }
 0xa42   : > { %v7126_v31 = vpop.xlane.xlu0 %7125 }
 0xa43   : > { %16716 = vrcp.f32 %v7126_v31  ;;  %v15897_v31 = vunpack.i.h.bf16 %v20197_v24 }
 0xa44   : > { %v16709_v1 = vpop.eup %16708  ;;  %16718 = vpow2.f32 %v7114_v8 }
 0xa45   : > { %v16711_v26 = vpop.eup %16710  ;;  %v7247_v54 = vmul.f32 %v16709_v1, %v20343_v46  ;;  %v15896_v1 = vunpack.i.l.bf16 %v20197_v24 }
 0xa46   : > { %v20497_v29 = vpop.eup %16712  ;;  %v7246_v23 = vmul.f32 %v16711_v26, %v20345_v17 }
 0xa47   : > { %v7211_v38 = vsel %vm1797_vm0, %v20497_v29, 0.0  ;;  %v15206_v33 = vpack.c.bf16 %v15897_v31, %v15896_v1 }
 0xa48   : > { %14122 = vmatprep.mubr.msk.f32.mxu0 %vm1797_vm0, %v7246_v23 }
 0xa49   : > { %v7147_v59 = vpop.xlane.xlu1 %7146  ;;  %14123 = vmatmul.mubr.msk.f32.vlgmr.msra.gmra.mrb[120].mxu0 %vm1797_vm0, %v7247_v54  ;;  %v16715_v10 = vpop.eup %16714  ;;  %v22905_v54 = vld [vmem:[#allocation63_spill] sm:$0xff] }
 0xa4a   : > { %15189 = vmatpush3.bf16.msra.mxu0 %v20061_v51  ;;  %7212 = vadd.xlane.f32.xlu1 %v7211_v38  ;;  %16720 = vrcp.f32 %v7147_v59  ;;  %v7249_v61 = vmul.f32 %v16715_v10, %v20352_v12  ;;  %v15907_v12 = vunpack.i.h.bf16 %v20213_v5  ;;  %v22904_v5 = vld [vmem:[#allocation49_spill] sm:$0xff]  ;;  %v22907_v38 = vld [vmem:[#allocation31_spill] sm:$0xff] }
 0xa4b   : > { %15191 = vmatprep.subr.bf16.mxu0 %v15190_v36  ;;  %v15891_v10 = vunpack.i.l.bf16 %v22907_v38 }
 0xa4c   : > { %v20528_v24 = vpack.c.bf16 %v15907_v12, %v15906_v4  ;;  %v22913_v4 = vld [vmem:[#allocation34_spill] sm:$0xff] }
 0xa4d   : > { %v16717_v17 = vpop.eup %16716  ;;  %v7144_v46 = vpop.xlane.xlu1 %7143 }
 0xa4e   : > { %v20508_v41 = vpop.eup %16718  ;;  %16722 = vrcp.f32 %v7144_v46  ;;  %15193 = vmatpush3.bf16.msra.mxu0 %v15190_v36  ;;  %v7248_v44 = vmul.f32 %v16717_v17, %v20357_v13  ;;  %v15892_v36 = vunpack.i.h.bf16 %v22907_v38 }
 0xa4f   : > { %15203 = vmatprep.subr.bf16.mxu0 %v15202_v3  ;;  %v7208_v51 = vsel %vm1797_vm0, %v20508_v41, 0.0 }
 0xa50   : > { %14125 = vmatprep.mubr.msk.f32.mxu0 %vm1797_vm0, %v7248_v44 }
 0xa51   : > { %14126 = vmatmul.mubr.msk.f32.gmra.mrb[122].mxu0 %vm1797_vm0, %v7249_v61  ;;  %v22908_v61 = vld [vmem:[#allocation57_spill] sm:$0xff] }
 0xa52   : > { %7209 = vadd.xlane.f32.xlu0 %v7208_v51  ;;  %v22910_v51 = vld [vmem:[#allocation23_spill] sm:$0xff] }
 0xa54   : > { %v16721_v43 = vpop.eup %16720 }
 0xa55   : > { %v7255_v13 = vmul.f32 %v16721_v43, %v20361_v48  ;;  %v15902_v43 = vunpack.i.h.bf16 %v22910_v51 }
 0xa58   : > { %v16723_v8 = vpop.eup %16722 }
 0xa59   : > { %v7254_v26 = vmul.f32 %v16723_v8, %v20365_v2  ;;  %v15198_v8 = vpack.c.bf16 %v15892_v36, %v15891_v10 }
 0xa5b   : > { %15974 = vrot.lane.b32.xlu1 %v18394_v42, %s17218_s10  ;;  %14150 = vmatprep.mubr.msk.f32.mxu0 %vm1797_vm0, %v7254_v26  ;;  %v22912_v26 = vld [vmem:[#allocation62_spill] sm:$0xff] }
 0xa5c   : > { %14151 = vmatmul.mubr.msk.f32.vlgmr.msra.gmra.mrb[124].mxu0 %vm1797_vm0, %v7255_v13 }
 0xa5d   : > { %15205 = vmatpush3.bf16.msra.mxu0 %v15202_v3 }
 0xa5e   : > { %15207 = vmatprep.subr.bf16.mxu0 %v15206_v33 }
 0xa5f   : > { %8501 = vrot.lane.b32.xlu1 %v18374_v7, %s17218_s10 }
 0xa61   : > { %15209 = vmatpush3.bf16.msra.mxu0 %v15206_v33  ;;  %v15917_v33 = vunpack.i.h.bf16 %v22913_v4 }
 0xa62   : > { %15219 = vmatprep.subr.bf16.mxu0 %v20528_v24 }
 0xa63   : > { %8505 = vrot.lane.b32.xlu1 %v22651_v30, %s17218_s10  ;;  %v22901_v30 = vld [vmem:[#allocation54_spill] sm:$0xff] }
 0xa67   : > { %15984 = vrot.lane.b32.xlu1 %v22647_v37, %s17218_s10 }
 0xa68   : > { %8390 = vrot.lane.b32.xlu0 %v22783_v62, %s17218_s10  ;;  %v22903_v62 = vld [vmem:[#allocation56_spill] sm:$0xff] }
 0xa6b   : > { %8618 = vrot.lane.b32.xlu1 %v22649_v20, %s17218_s10 }
 0xa6c   : > { %15979 = vrot.lane.b32.xlu0 %v22779_v49, %s17218_s10  ;;  %v22902_v49 = vld [vmem:[#allocation47_spill] sm:$0xff] }
 0xa6f   : > { %8622 = vrot.lane.b32.xlu1 %v22657_v0, %s17218_s10 }
 0xa70   : > { %8503 = vrot.lane.b32.xlu0 %v22781_v60, %s17218_s10  ;;  %v7153_v7 = vpop.xlane.xlu1 %7152 }
 0xa71   : > { %16724 = vrcp.f32 %v7153_v7  ;;  %v15916_v7 = vunpack.i.l.bf16 %v22913_v4  ;;  %v22928_v4 = vld [vmem:[#allocation67_spill] sm:$0xff] }
 0xa72   : > { %v7135_v42 = vpop.xlane.xlu0 %7134 }
 0xa73   : > { %15994 = vrot.lane.b32.xlu1 %v22901_v30, %s17218_s10 }
 0xa74   : > { %8507 = vrot.lane.b32.xlu0 %v22790_v56, %s17218_s10  ;;  %v7150_v37 = vpop.xlane.xlu1 %7149 }
 0xa75   : > { %16726 = vrcp.f32 %v7150_v37 }
 0xa76   : > { %16728 = vrcp.f32 %v7135_v42  ;;  %v7132_v20 = vpop.xlane.xlu0 %7131  ;;  %v22914_v42 = vld [vmem:[#allocation55_spill] sm:$0xff] }
 0xa77   : > { %8735 = vrot.lane.b32.xlu1 %v22902_v49, %s17218_s10  ;;  %16730 = vrcp.f32 %v7132_v20 }
 0xa78   : > { %15989 = vrot.lane.b32.xlu0 %v22785_v63, %s17218_s10  ;;  %v7171_v0 = vpop.xlane.xlu1 %7170 }
 0xa79   : > { %16732 = vrcp.f32 %v7171_v0 }
 0xa7a   : > { %v7141_v60 = vpop.xlane.xlu0 %7140 }
 0xa7b   : > { %8739 = vrot.lane.b32.xlu1 %v22903_v62, %s17218_s10  ;;  %v16725_v48 = vpop.eup %16724  ;;  %v22915_v62 = vld [vmem:[#allocation66_spill] sm:$0xff] }
 0xa7c   : > { %8620 = vrot.lane.b32.xlu0 %v22904_v5, %s17218_s10  ;;  %v7168_v56 = vpop.xlane.xlu1 %7167  ;;  %v7257_v17 = vmul.f32 %v16725_v48, %v20376_v57  ;;  %v15901_v57 = vunpack.i.l.bf16 %v22910_v51  ;;  %v22916_v5 = vld [vmem:[#allocation43_spill] sm:$0xff] }
 0xa7d   : > { %16734 = vrcp.f32 %v7168_v56  ;;  %v15932_v56 = vunpack.i.h.bf16 %v22916_v5  ;;  %v15931_v48 = vunpack.i.l.bf16 %v22916_v5 }
 0xa7e   : > { %16736 = vrcp.f32 %v7141_v60  ;;  %v7138_v2 = vpop.xlane.xlu0 %7137  ;;  %v15210_v20 = vpack.c.bf16 %v15902_v43, %v15901_v57 }
 0xa7f   : > { %v16727_v23 = vpop.eup %16726  ;;  %16004 = vrot.lane.b32.xlu1 %v22905_v54, %s17218_s10  ;;  %16738 = vrcp.f32 %v7138_v2  ;;  %v20601_v54 = vpack.c.bf16 %v15932_v56, %v15931_v48  ;;  %v22932_v56 = vld [vmem:[#allocation77_spill] sm:$0xff] }
 0xa80   : > { %v16729_v63 = vpop.eup %16728  ;;  %8624 = vrot.lane.b32.xlu0 %v22906_v34, %s17218_s10  ;;  %v7256_v15 = vmul.f32 %v16727_v23, %v20385_v25  ;;  %v22909_v25 = vld [vmem:[#allocation59_spill] sm:$0xff]  ;;  %v22918_v23 = vld [vmem:[#allocation69_spill] sm:$0xff] }
 0xa81   : > { %v16731_v59 = vpop.eup %16730  ;;  %v7251_v44 = vmul.f32 %v16729_v63, %v20381_v11  ;;  %v22911_v11 = vld [vmem:[#allocation44_spill] sm:$0xff] }
 0xa82   : > { %14153 = vmatprep.mubr.msk.f32.mxu0 %vm1797_vm0, %v7256_v15  ;;  %v7159_v46 = vpop.xlane.xlu0 %7158  ;;  %v7250_v3 = vmul.f32 %v16731_v59, %v20390_v14  ;;  %v22919_v63 = vld [vmem:[#allocation52_spill] sm:$0xff] }
 0xa83   : > { %8854 = vrot.lane.b32.xlu1 %v22908_v61, %s17218_s10  ;;  %14154 = vmatmul.mubr.msk.f32.gmra.mrb[126].mxu0 %vm1797_vm0, %v7257_v17  ;;  %v16733_v14 = vpop.eup %16732  ;;  %16740 = vrcp.f32 %v7159_v46  ;;  %v22922_v17 = vld [vmem:[#allocation65_spill] sm:$0xff] }
 0xa84   : > { %15999 = vrot.lane.b32.xlu0 %v22909_v25, %s17218_s10  ;;  %14136 = vmatprep.mubr.msk.f32.mxu1 %vm1797_vm0, %v7250_v3  ;;  %v7263_v49 = vmul.f32 %v16733_v14, %v20394_v16  ;;  %v15222_v16 = vpack.c.bf16 %v15917_v33, %v15916_v7  ;;  %v22924_v61 = vld [vmem:[#allocation37_spill] sm:$0xff] }
 0xa85   : > { %14137 = vmatmul.mubr.msk.f32.vlgmr.msra.gmra.mrb[136].mxu1 %vm1797_vm0, %v7251_v44  ;;  %v22923_v44 = vld [vmem:[#allocation60_spill] sm:$0xff]  ;;  %v15922_v25 = vunpack.i.h.bf16 %v22924_v61  ;;  %v15921_v51 = vunpack.i.l.bf16 %v22924_v61  ;;  %v22926_v14 = vld [vmem:[#allocation61_spill] sm:$0xff] }
 0xa86   : > { %v7165_v31 = vpop.xlane.xlu1 %7164  ;;  %15197 = vmatpush3.bf16.msra.mxu1 %v22911_v11  ;;  %v22938_v61 = vld [vmem:[#allocation132_spill] sm:$0xff] }
 0xa87   : > { %v16735_v1 = vpop.eup %16734  ;;  %8858 = vrot.lane.b32.xlu1 %v22912_v26, %s17218_s10  ;;  %15199 = vmatprep.subr.bf16.mxu1 %v15198_v8  ;;  %v7156_v13 = vpop.xlane.xlu0 %7155 }
 0xa88   : > { %v16737_v12 = vpop.eup %16736  ;;  %16742 = vrcp.f32 %v7156_v13  ;;  %8737 = vrot.lane.b32.xlu0 %v22914_v42, %s17218_s10  ;;  %v7262_v30 = vmul.f32 %v16735_v1, %v20404_v6  ;;  %v22917_v6 = vld [vmem:[#allocation58_spill] sm:$0xff]  ;;  %v15226_v1 = vpack.c.bf16 %v15922_v25, %v15921_v51  ;;  %v22927_v13 = vld [vmem:[#allocation73_spill] sm:$0xff]  ;;  %v15952_v25 = vunpack.i.h.bf16 %v22938_v61 }
 0xa89   : > { %v16739_v37 = vpop.eup %16738  ;;  %v7253_v2 = vmul.f32 %v16737_v12, %v20400_v40  ;;  %16744 = vrcp.f32 %v7165_v31  ;;  %v15951_v51 = vunpack.i.l.bf16 %v22938_v61 }
 0xa8a   : > { %v7177_v0 = vpop.xlane.xlu1 %7176  ;;  %15201 = vmatpush3.bf16.msra.mxu1 %v15198_v8  ;;  %14178 = vmatprep.mubr.msk.f32.mxu0 %vm1797_vm0, %v7262_v30  ;;  %v7252_v60 = vmul.f32 %v16739_v37, %v20410_v58  ;;  %v22925_v8 = vld [vmem:[#allocation70_spill] sm:$0xff]  ;;  %v22929_v30 = vld [vmem:[#allocation75_spill] sm:$0xff] }
 0xa8b   : > { %8971 = vrot.lane.b32.xlu1 %v22915_v62, %s17218_s10  ;;  %15211 = vmatprep.subr.bf16.mxu1 %v15210_v20 }
 0xa8c   : > { %8741 = vrot.lane.b32.xlu0 %v22917_v6, %s17218_s10  ;;  %14179 = vmatmul.mubr.msk.f32.vlgmr.msra.gmra.mrb[128].mxu0 %vm1797_vm0, %v7263_v49  ;;  %v22930_v49 = vld [vmem:[#allocation64_spill] sm:$0xff] }
 0xa8d   : > { %15221 = vmatpush3.bf16.msra.mxu0 %v20528_v24  ;;  %14139 = vmatprep.mubr.msk.f32.mxu1 %vm1797_vm0, %v7252_v60  ;;  %v16741_v34 = vpop.eup %16740  ;;  %v22920_v24 = vld [vmem:[#allocation25_spill] sm:$0xff]  ;;  %v22933_v6 = vld [vmem:[#allocation68_spill] sm:$0xff] }
 0xa8e   : > { %15223 = vmatprep.subr.bf16.mxu0 %v15222_v16  ;;  %v7162_v58 = vpop.xlane.xlu1 %7161  ;;  %14140 = vmatmul.mubr.msk.f32.gmra.mrb[138].mxu1 %vm1797_vm0, %v7253_v2  ;;  %v15912_v15 = vunpack.i.h.bf16 %v22920_v24  ;;  %v15911_v59 = vunpack.i.l.bf16 %v22920_v24  ;;  %v7259_v3 = vmul.f32 %v16741_v34, %v20415_v22  ;;  %v22934_v2 = vld [vmem:[#allocation30_spill] sm:$0xff] }
 0xa8f   : > { %16746 = vrcp.f32 %v7162_v58  ;;  %8975 = vrot.lane.b32.xlu1 %v22918_v23, %s17218_s10  ;;  %v15937_v58 = vunpack.i.h.bf16 %v22934_v2  ;;  %v15936_v34 = vunpack.i.l.bf16 %v22934_v2 }
 0xa90   : > { %8852 = vrot.lane.b32.xlu0 %v22919_v63, %s17218_s10  ;;  %16748 = vrcp.f32 %v7177_v0  ;;  %v15214_v57 = vpack.c.bf16 %v15912_v15, %v15911_v59  ;;  %v22931_v0 = vld [vmem:[#allocation27_spill] sm:$0xff] }
 0xa91   : > { %15225 = vmatpush3.bf16.msra.mxu0 %v15222_v16  ;;  %v15927_v60 = vunpack.i.h.bf16 %v22931_v0  ;;  %v15926_v62 = vunpack.i.l.bf16 %v22931_v0 }
 0xa92   : > { %v16743_v40 = vpop.eup %16742  ;;  %15236 = vmatprep.subr.msk.bf16.mxu0 %vm18203_vm1, %v20601_v54  ;;  %v7174_v36 = vpop.xlane.xlu1 %7173 }
 0xa93   : > { %v7183_v10 = vpop.xlane.xlu0 %7182  ;;  %16750 = vrcp.f32 %v7174_v36  ;;  %16014 = vrot.lane.b32.xlu1 %v22922_v17, %s17218_s10  ;;  %v7258_v46 = vmul.f32 %v16743_v40, %v20423_v53  ;;  %v16745_v53 = vpop.eup %16744  ;;  %v15230_v23 = vpack.c.bf16 %v15927_v60, %v15926_v62  ;;  %v22935_v40 = vld [vmem:[#allocation128_spill] sm:$0xff]  ;;  %v15240_v17 = vpack.c.bf16 %v15937_v58, %v15936_v34  ;;  %v22949_v62 = vld [vmem:[#allocation143_spill] sm:$0xff] }
 0xa94   : > { %8856 = vrot.lane.b32.xlu0 %v22923_v44, %s17218_s10  ;;  %16752 = vrcp.f32 %v7183_v10  ;;  %v7261_v33 = vmul.f32 %v16745_v53, %v20421_v28  ;;  %v15942_v24 = vunpack.i.h.bf16 %v22935_v40  ;;  %v15941_v15 = vunpack.i.l.bf16 %v22935_v40  ;;  %v22936_v10 = vld [vmem:[#allocation71_spill] sm:$0xff]  ;;  %v22939_v53 = vld [vmem:[#allocation74_spill] sm:$0xff]  ;;  %v22948_v60 = vld [vmem:[#allocation136_spill] sm:$0xff] }
 0xa95   : > { %14164 = vmatprep.mubr.msk.f32.mxu1 %vm1797_vm0, %v7258_v46 }
 0xa96   : > { %14165 = vmatmul.mubr.msk.f32.vlgmr.msra.gmra.mrb[140].mxu1 %vm1797_vm0, %v7259_v3  ;;  %v7195_v22 = vpop.xlane.xlu1 %7194  ;;  %v15246_v46 = vpack.c.bf16 %v15942_v24, %v15941_v15 }
 0xa97   : > { %v7180_v43 = vpop.xlane.xlu0 %7179  ;;  %15213 = vmatpush3.bf16.msra.mxu1 %v15210_v20  ;;  %16024 = vrot.lane.b32.xlu1 %v22925_v8, %s17218_s10 }
 0xa98   : > { %16754 = vrcp.f32 %v7180_v43  ;;  %15215 = vmatprep.subr.bf16.mxu1 %v15214_v57  ;;  %8969 = vrot.lane.b32.xlu0 %v22926_v14, %s17218_s10 }
 0xa99   : > { %v16747_v31 = vpop.eup %16746  ;;  %16756 = vrcp.f32 %v7195_v22  ;;  %v15258_v22 = vpack.c.bf16 %v15952_v25, %v15951_v51  ;;  %v22952_v51 = vld [vmem:[#allocation140_spill] sm:$0xff] }
 0xa9a   : > { %v7260_v26 = vmul.f32 %v16747_v31, %v20435_v47  ;;  %v16749_v12 = vpop.eup %16748  ;;  %v7189_v20 = vpop.xlane.xlu1 %7188 }
 0xa9b   : > { %v7192_v11 = vpop.xlane.xlu0 %7191  ;;  %15217 = vmatpush3.bf16.msra.mxu1 %v15214_v57  ;;  %16039 = vrot.lane.b32.xlu1 %v22927_v13, %s17218_s10  ;;  %v7265_v37 = vmul.f32 %v16749_v12, %v20431_v9  ;;  %v22942_v13 = vld [vmem:[#allocation135_spill] sm:$0xff] }
 0xa9c   : > { %16758 = vrcp.f32 %v7192_v11  ;;  %15227 = vmatprep.subr.bf16.mxu1 %v15226_v1  ;;  %8973 = vrot.lane.b32.xlu0 %v22928_v4, %s17218_s10  ;;  %v22940_v11 = vld [vmem:[#allocation127_spill] sm:$0xff]  ;;  %v15957_v12 = vunpack.i.h.bf16 %v22942_v13 }
 0xa9d   : > { %v16751_v7 = vpop.eup %16750  ;;  %14167 = vmatprep.mubr.msk.f32.mxu1 %vm1797_vm0, %v7260_v26  ;;  %16760 = vrcp.f32 %v7189_v20  ;;  %v22941_v26 = vld [vmem:[#allocation76_spill] sm:$0xff]  ;;  %v22943_v4 = vld [vmem:[#allocation131_spill] sm:$0xff] }
 0xa9e   : > { %14168 = vmatmul.mubr.msk.f32.gmra.mrb[142].mxu1 %vm1797_vm0, %v7261_v33  ;;  %v7264_v47 = vmul.f32 %v16751_v7, %v20441_v45  ;;  %v16753_v28 = vpop.eup %16752 }
 0xa9f   : > { %v7201_v42 = vpop.xlane.xlu0 %7200  ;;  %16049 = vrot.lane.b32.xlu1 %v22929_v30, %s17218_s10  ;;  %v7267_v48 = vmul.f32 %v16753_v28, %v20444_v50  ;;  %v22944_v30 = vld [vmem:[#allocation134_spill] sm:$0xff] }
 0xaa0   : > { %16009 = vrot.lane.b32.xlu0 %v22930_v49, %s17218_s10  ;;  %14181 = vmatprep.mubr.msk.f32.mxu0 %vm1797_vm0, %v7264_v47  ;;  %v22947_v49 = vld [vmem:[#allocation144_spill] sm:$0xff] }
 0xaa1   : > { %14182 = vmatmul.mubr.msk.f32.gmra.mrb[130].mxu0 %vm1797_vm0, %v7265_v37  ;;  %v22945_v37 = vld [vmem:[#allocation133_spill] sm:$0xff]  ;;  %v15972_v28 = vunpack.i.h.bf16 %v22947_v49  ;;  %v15971_v0 = vunpack.i.l.bf16 %v22947_v49 }
 0xaa2   : > { %v16755_v5 = vpop.eup %16754 }
 0xaa3   : > { %v7186_v45 = vpop.xlane.xlu0 %7185  ;;  %16059 = vrot.lane.b32.xlu1 %v22932_v56, %s17218_s10  ;;  %v7266_v9 = vmul.f32 %v16755_v5, %v20454_v19  ;;  %v16757_v16 = vpop.eup %16756 }
 0xaa4   : > { %16762 = vrcp.f32 %v7186_v45  ;;  %16019 = vrot.lane.b32.xlu0 %v22933_v6, %s17218_s10  ;;  %v7207_v19 = vpop.xlane.xlu1 %7206  ;;  %v7271_v36 = vmul.f32 %v16757_v16, %v20450_v21  ;;  %v15282_v45 = vpack.c.bf16 %v15972_v28, %v15971_v0 }
 0xaa5   : > { %14192 = vmatprep.mubr.msk.f32.mxu1 %vm1797_vm0, %v7266_v9  ;;  %16764 = vrcp.f32 %v7201_v42 }
 0xaa6   : > { %v16759_v63 = vpop.eup %16758  ;;  %14193 = vmatmul.mubr.msk.f32.vlgmr.msra.gmra.mrb[144].mxu1 %vm1797_vm0, %v7267_v48 }
 0xaa7   : > { %v7198_v50 = vpop.xlane.xlu0 %7197  ;;  %15229 = vmatpush3.bf16.msra.mxu1 %v15226_v1  ;;  %v7270_v59 = vmul.f32 %v16759_v63, %v20463_v32  ;;  %v16761_v21 = vpop.eup %16760  ;;  %v22937_v32 = vld [vmem:[#allocation72_spill] sm:$0xff]  ;;  %v15947_v1 = vunpack.i.h.bf16 %v22940_v11 }
 0xaa8   : > { %16766 = vrcp.f32 %v7198_v50  ;;  %15231 = vmatprep.subr.bf16.mxu1 %v15230_v23  ;;  %16029 = vrot.lane.b32.xlu0 %v22936_v10, %s17218_s10  ;;  %v8389_v9 = vpop.permute.xlu1 %8388 }
 0xaa9   : > { %14206 = vmatprep.mubr.msk.f32.mxu0 %vm1797_vm0, %v7270_v59  ;;  %16768 = vrcp.f32 %v7207_v19 }
 0xaaa   : > { %14207 = vmatmul.mubr.msk.f32.vlgmr.msra.gmra.mrb[132].mxu0 %vm1797_vm0, %v7271_v36 }
 0xaab   : > { %v7204_v3 = vpop.xlane.xlu0 %7203  ;;  %15233 = vmatpush3.bf16.msra.mxu1 %v15230_v23  ;;  %15239 = vmatpush3.bf16.xpose.msk.msra.mxu0 %vm18203_vm1, %v20601_v54  ;;  %v7269_v54 = vmul.f32 %v16761_v21, %v20460_v52 }
 0xaac   : > { %16770 = vrcp.f32 %v7204_v3  ;;  %15242 = vmatprep.subr.msk.bf16.mxu0 %vm18203_vm1, %v15240_v17  ;;  %15248 = vmatprep.subr.msk.bf16.mxu1 %vm18203_vm1, %v15246_v46 }
 0xaad   : > { %16034 = vrot.lane.b32.xlu0 %v22937_v32, %s17218_s10 }
 0xaae   : > { %v16763_v44 = vpop.eup %16762 }
 0xaaf   : > { %v7268_v43 = vmul.f32 %v16763_v44, %v20473_v55  ;;  %v16765_v57 = vpop.eup %16764  ;;  %v8387_v56 = vpop.permute.xlu0 %8386  ;;  %v22951_v44 = vld [vmem:[#allocation137_spill] sm:$0xff] }
 0xab0   : > { %v7273_v31 = vmul.f32 %v16765_v57, %v20469_v27  ;;  %v15956_v27 = vunpack.i.l.bf16 %v22942_v13 }
 0xab1   : > { %16044 = vrot.lane.b32.xlu0 %v22939_v53, %s17218_s10  ;;  %14195 = vmatprep.mubr.msk.f32.mxu1 %vm1797_vm0, %v7268_v43 }
 0xab2   : > { %v16767_v8 = vpop.eup %16766  ;;  %14196 = vmatmul.mubr.msk.f32.gmra.mrb[146].mxu1 %vm1797_vm0, %v7269_v54  ;;  %v15264_v47 = vpack.c.bf16 %v15957_v12, %v15956_v27 }
 0xab3   : > { %v7272_v14 = vmul.f32 %v16767_v8, %v20481_v39  ;;  %15245 = vmatpush3.bf16.xpose.msk.msra.mxu0 %vm18203_vm1, %v15240_v17  ;;  %v16769_v55 = vpop.eup %16768  ;;  %v15946_v39 = vunpack.i.l.bf16 %v22940_v11 }
 0xab4   : > { %15260 = vmatprep.subr.msk.bf16.mxu0 %vm18203_vm1, %v15258_v22  ;;  %v7275_v7 = vmul.f32 %v16769_v55, %v20475_v35  ;;  %v22946_v35 = vld [vmem:[#allocation138_spill] sm:$0xff] }
 0xab5   : > { %14209 = vmatprep.mubr.msk.f32.mxu0 %vm1797_vm0, %v7272_v14  ;;  %16054 = vrot.lane.b32.xlu0 %v22941_v26, %s17218_s10  ;;  %v15252_v42 = vpack.c.bf16 %v15947_v1, %v15946_v39  ;;  %v15961_v20 = vunpack.i.l.bf16 %v22946_v35  ;;  %v22954_v55 = vld [vmem:[#allocation142_spill] sm:$0xff] }
 0xab6   : > { %v16771_v52 = vpop.eup %16770  ;;  %14210 = vmatmul.mubr.msk.f32.gmra.mrb[134].mxu0 %vm1797_vm0, %v7273_v31 }
 0xab7   : > { %14234 = vmatprep.mubr.msk.f32.mxu0 %vm1797_vm0, %v22943_v4  ;;  %v7274_v33 = vmul.f32 %v16771_v52, %v20485_v18  ;;  %v15962_v18 = vunpack.i.h.bf16 %v22946_v35 }
 0xab9   : > { %14220 = vmatprep.mubr.msk.f32.mxu1 %vm1797_vm0, %v7274_v33  ;;  %v15270_v5 = vpack.c.bf16 %v15962_v18, %v15961_v20 }
 0xaba   : > { %14221 = vmatmul.mubr.msk.f32.vlgmr.msra.gmra.mrb[148].mxu1 %vm1797_vm0, %v7275_v7  ;;  %14235 = vmatmul.mubr.msk.f32.vlgmr.msra.gmra.mrb[136].mxu0 %vm1797_vm0, %v22944_v30 }
 0xabb   : > { %15251 = vmatpush3.bf16.xpose.msk.msra.mxu1 %vm18203_vm1, %v15246_v46  ;;  %15263 = vmatpush3.bf16.xpose.msk.msra.mxu0 %vm18203_vm1, %v15258_v22  ;;  %v22950_v46 = vld [vmem:[#allocation141_spill] sm:$0xff] }
 0xabc   : > { %14237 = vmatprep.mubr.msk.f32.mxu0 %vm1797_vm0, %v22945_v37  ;;  %15254 = vmatprep.subr.msk.bf16.mxu1 %vm18203_vm1, %v15252_v42  ;;  %v15967_v3 = vunpack.i.h.bf16 %v22950_v46  ;;  %v15966_v21 = vunpack.i.l.bf16 %v22950_v46 }
 0xabd   : > { %15266 = vmatprep.subr.msk.bf16.mxu0 %vm18203_vm1, %v15264_v47 }
 0xabe   : > { %14238 = vmatmul.mubr.msk.f32.gmra.mrb[138].mxu0 %vm1797_vm0, %v22948_v60  ;;  %v15276_v25 = vpack.c.bf16 %v15967_v3, %v15966_v21 }
 0xabf   : > { %14262 = vmatprep.mubr.msk.f32.mxu0 %vm1797_vm0, %v22949_v62 }
 0xac3   : > { %15257 = vmatpush3.bf16.xpose.msk.msra.mxu1 %vm18203_vm1, %v15252_v42  ;;  %15269 = vmatpush3.bf16.xpose.msk.msra.mxu0 %vm18203_vm1, %v15264_v47 }
 0xac4   : > { %15272 = vmatprep.subr.msk.bf16.mxu1 %vm18203_vm1, %v15270_v5  ;;  %15284 = vmatprep.subr.msk.bf16.mxu0 %vm18203_vm1, %v15282_v45 }
 0xaca   : > { %14263 = vmatmul.mubr.msk.f32.vlgmr.msra.gmra.mrb[140].mxu0 %vm1797_vm0, %v8387_v56 }
 0xacb   : > { %14265 = vmatprep.mubr.msk.f32.mxu0 %vm1797_vm0, %v8389_v9  ;;  %15287 = vmatpush3.bf16.xpose.msk.msra.mxu0 %vm18203_vm1, %v15282_v45 }
 0xad7   : > { %v7213_v48 = vpop.xlane.xlu1 %7212 }
 0xad8   : > { %16772 = vrcp.f32 %v7213_v48 }
 0xadb   : > { %v15975_v6 = vpop.permute.xlu1 %15974 }
 0xadc   : > { %v15977_v16 = vunpack.i.h.bf16 %v15975_v6  ;;  %v15976_v2 = vunpack.i.l.bf16 %v15975_v6 }
 0xade   : > { %v15288_v58 = vpack.c.bf16 %v15977_v16, %v15976_v2 }
 0xadf   : > { %v8502_v23 = vpop.permute.xlu1 %8501  ;;  %v7210_v63 = vpop.xlane.xlu0 %7209 }
 0xae0   : > { %16774 = vrcp.f32 %v7210_v63  ;;  %15290 = vmatprep.subr.msk.bf16.mxu0 %vm18203_vm1, %v15288_v58 }
 0xae1   : > { %15293 = vmatpush3.bf16.xpose.msk.msra.mxu0 %vm18203_vm1, %v15288_v58 }
 0xae2   : > { %v16773_v50 = vpop.eup %16772 }
 0xae3   : > { %v8506_v34 = vpop.permute.xlu1 %8505  ;;  %v8391_v40 = vpop.permute.xlu0 %8390  ;;  %v7277_v17 = vmul.f32 %v16773_v50, %v20497_v29 }
 0xae4   : > { %14266 = vmatmul.mubr.msk.f32.gmra.mrb[142].mxu0 %vm1797_vm0, %v8391_v40 }
 0xae7   : > { %v15985_v24 = vpop.permute.xlu1 %15984  ;;  %v15980_v15 = vpop.permute.xlu0 %15979 }
 0xae8   : > { %v15982_v22 = vunpack.i.h.bf16 %v15980_v15  ;;  %v15981_v14 = vunpack.i.l.bf16 %v15980_v15  ;;  %v15987_v12 = vunpack.i.h.bf16 %v15985_v24  ;;  %v15986_v27 = vunpack.i.l.bf16 %v15985_v24 }
 0xaea   : > { %v16775_v19 = vpop.eup %16774  ;;  %v15294_v26 = vpack.c.bf16 %v15982_v22, %v15981_v14  ;;  %v15300_v7 = vpack.c.bf16 %v15987_v12, %v15986_v27 }
 0xaeb   : > { %v8619_v59 = vpop.permute.xlu1 %8618  ;;  %v8504_v36 = vpop.permute.xlu0 %8503  ;;  %v7276_v10 = vmul.f32 %v16775_v19, %v20508_v41  ;;  %v22953_v41 = vld [vmem:[#allocation139_spill] sm:$0xff] }
 0xaec   : > { %14290 = vmatprep.mubr.msk.f32.mxu0 %vm1797_vm0, %v8619_v59 }
 0xaed   : > { %14223 = vmatprep.mubr.msk.f32.mxu1 %vm1797_vm0, %v7276_v10 }
 0xaee   : > { %14224 = vmatmul.mubr.msk.f32.gmra.mrb[150].mxu1 %vm1797_vm0, %v7277_v17 }
 0xaef   : > { %v8623_v32 = vpop.permute.xlu1 %8622  ;;  %14248 = vmatprep.mubr.msk.f32.mxu1 %vm1797_vm0, %v22951_v44  ;;  %v8508_v61 = vpop.permute.xlu0 %8507 }
 0xaf2   : > { %14249 = vmatmul.mubr.msk.f32.vlgmr.msra.gmra.mrb[152].mxu1 %vm1797_vm0, %v22952_v51 }
 0xaf3   : > { %15275 = vmatpush3.bf16.xpose.msk.msra.mxu1 %vm18203_vm1, %v15270_v5  ;;  %v15995_v29 = vpop.permute.xlu1 %15994  ;;  %14251 = vmatprep.mubr.msk.f32.mxu1 %vm1797_vm0, %v22953_v41  ;;  %v15990_v43 = vpop.permute.xlu0 %15989 }
 0xaf4   : > { %v15997_v57 = vunpack.i.h.bf16 %v15995_v29  ;;  %v15996_v54 = vunpack.i.l.bf16 %v15995_v29  ;;  %15278 = vmatprep.subr.msk.bf16.mxu1 %vm18203_vm1, %v15276_v25  ;;  %v15992_v8 = vunpack.i.h.bf16 %v15990_v43  ;;  %v15991_v53 = vunpack.i.l.bf16 %v15990_v43 }
 0xaf6   : > { %v15306_v31 = vpack.c.bf16 %v15992_v8, %v15991_v53  ;;  %14252 = vmatmul.mubr.msk.f32.gmra.mrb[154].mxu1 %vm1797_vm0, %v22954_v55  ;;  %v15312_v1 = vpack.c.bf16 %v15997_v57, %v15996_v54 }
 0xaf7   : > { %v8736_v52 = vpop.permute.xlu1 %8735  ;;  %14276 = vmatprep.mubr.msk.f32.mxu1 %vm1797_vm0, %v8502_v23  ;;  %v8621_v11 = vpop.permute.xlu0 %8620 }
 0xaf8   : > { %14291 = vmatmul.mubr.msk.f32.vlgmr.msra.gmra.mrb[144].mxu0 %vm1797_vm0, %v8621_v11  ;;  %15308 = vmatprep.subr.msk.bf16.mxu0 %vm18203_vm1, %v15306_v31 }
 0xaf9   : > { %14293 = vmatprep.mubr.msk.f32.mxu0 %vm1797_vm0, %v8623_v32  ;;  %15311 = vmatpush3.bf16.xpose.msk.msra.mxu0 %vm18203_vm1, %v15306_v31 }
 0xafa   : > { %15314 = vmatprep.subr.msk.bf16.mxu0 %vm18203_vm1, %v15312_v1 }
 0xafb   : > { %15281 = vmatpush3.bf16.xpose.msk.msra.mxu1 %vm18203_vm1, %v15276_v25  ;;  %v8740_v39 = vpop.permute.xlu1 %8739  ;;  %v8625_v13 = vpop.permute.xlu0 %8624 }
 0xafc   : > { %15296 = vmatprep.subr.msk.bf16.mxu1 %vm18203_vm1, %v15294_v26  ;;  %14294 = vmatmul.mubr.msk.f32.gmra.mrb[146].mxu0 %vm1797_vm0, %v8625_v13 }
 0xaff   : > { %v16005_v4 = vpop.permute.xlu1 %16004  ;;  %v16000_v33 = vpop.permute.xlu0 %15999 }
 0xb00   : > { %v16002_v30 = vunpack.i.h.bf16 %v16000_v33  ;;  %v16001_v37 = vunpack.i.l.bf16 %v16000_v33  ;;  %v16007_v0 = vunpack.i.h.bf16 %v16005_v4  ;;  %v16006_v60 = vunpack.i.l.bf16 %v16005_v4 }
 0xb01   : > { %15317 = vmatpush3.bf16.xpose.msk.msra.mxu0 %vm18203_vm1, %v15312_v1 }
 0xb02   : > { %14277 = vmatmul.mubr.msk.f32.vlgmr.msra.gmra.mrb[156].mxu1 %vm1797_vm0, %v8504_v36  ;;  %v15318_v20 = vpack.c.bf16 %v16002_v30, %v16001_v37  ;;  %v15324_v45 = vpack.c.bf16 %v16007_v0, %v16006_v60 }
 0xb03   : > { %14279 = vmatprep.mubr.msk.f32.mxu1 %vm1797_vm0, %v8506_v34  ;;  %15299 = vmatpush3.bf16.xpose.msk.msra.mxu1 %vm18203_vm1, %v15294_v26  ;;  %v8855_v42 = vpop.permute.xlu1 %8854  ;;  %v8738_v47 = vpop.permute.xlu0 %8737 }
 0xb04   : > { %15302 = vmatprep.subr.msk.bf16.mxu1 %vm18203_vm1, %v15300_v7 }
 0xb06   : > { %14280 = vmatmul.mubr.msk.f32.gmra.mrb[158].mxu1 %vm1797_vm0, %v8508_v61 }
 0xb07   : > { %14304 = vmatprep.mubr.msk.f32.mxu1 %vm1797_vm0, %v8736_v52  ;;  %v8859_v35 = vpop.permute.xlu1 %8858  ;;  %v8742_v18 = vpop.permute.xlu0 %8741 }
 0xb0b   : > { %15305 = vmatpush3.bf16.xpose.msk.msra.mxu1 %vm18203_vm1, %v15300_v7  ;;  %v8972_v49 = vpop.permute.xlu1 %8971  ;;  %v8853_v28 = vpop.permute.xlu0 %8852 }
 0xb0c   : > { %15320 = vmatprep.subr.msk.bf16.mxu1 %vm18203_vm1, %v15318_v20  ;;  %14318 = vmatprep.mubr.msk.f32.mxu0 %vm1797_vm0, %v8853_v28 }
 0xb0d   : > { %14319 = vmatmul.mubr.msk.f32.vlgmr.msra.gmra.mrb[148].mxu0 %vm1797_vm0, %v8855_v42 }
 0xb0f   : > { %v8976_v62 = vpop.permute.xlu1 %8975  ;;  %v8857_v5 = vpop.permute.xlu0 %8856 }
 0xb10   : > { %14321 = vmatprep.mubr.msk.f32.mxu0 %vm1797_vm0, %v8857_v5 }
 0xb11   : > { %14322 = vmatmul.mubr.msk.f32.gmra.mrb[150].mxu0 %vm1797_vm0, %v8859_v35 }
 0xb12   : > { %14305 = vmatmul.mubr.msk.f32.vlgmr.msra.gmra.mrb[160].mxu1 %vm1797_vm0, %v8738_v47 }
 0xb13   : > { %14307 = vmatprep.mubr.msk.f32.mxu1 %vm1797_vm0, %v8740_v39  ;;  %15323 = vmatpush3.bf16.xpose.msk.msra.mxu1 %vm18203_vm1, %v15318_v20  ;;  %v8970_v56 = vpop.permute.xlu0 %8969  ;;  %v16015_v9 = vpop.permute.xlu1 %16014 }
 0xb14   : > { %15326 = vmatprep.subr.msk.bf16.mxu1 %vm18203_vm1, %v15324_v45  ;;  %v16017_v2 = vunpack.i.h.bf16 %v16015_v9  ;;  %v16016_v58 = vunpack.i.l.bf16 %v16015_v9 }
 0xb16   : > { %14308 = vmatmul.mubr.msk.f32.gmra.mrb[162].mxu1 %vm1797_vm0, %v8742_v18  ;;  %v15334_v38 = vpack.c.bf16 %v16017_v2, %v16016_v58 }
 0xb17   : > { %14332 = vmatprep.mubr.msk.f32.mxu1 %vm1797_vm0, %v8970_v56  ;;  %v8974_v48 = vpop.permute.xlu0 %8973  ;;  %v16025_v6 = vpop.permute.xlu1 %16024 }
 0xb18   : > { %v16027_v50 = vunpack.i.h.bf16 %v16025_v6  ;;  %v16026_v19 = vunpack.i.l.bf16 %v16025_v6 }
 0xb1a   : > { %v15342_v21 = vpack.c.bf16 %v16027_v50, %v16026_v19 }
 0xb1b   : > { %15329 = vmatpush3.bf16.xpose.msk.msra.mxu1 %vm18203_vm1, %v15324_v45  ;;  %v16010_v16 = vpop.permute.xlu0 %16009  ;;  %v16040_v17 = vpop.permute.xlu1 %16039 }
 0xb1c   : > { %v16012_v23 = vunpack.i.h.bf16 %v16010_v16  ;;  %v16011_v63 = vunpack.i.l.bf16 %v16010_v16  ;;  %v20795_v34 = vpop.f32.mrb[120].mxu0  ;;  %v16042_v32 = vunpack.i.h.bf16 %v16040_v17  ;;  %v16041_v44 = vunpack.i.l.bf16 %v16040_v17 }
 0xb1d   : > { %v20797_v40 = vpop.f32.mrb[121].mxu0 }
 0xb1e   : > { %v15330_v15 = vpack.c.bf16 %v16012_v23, %v16011_v63  ;;  %v20813_v57 = vpack.c.bf16 %v16042_v32, %v16041_v44 }
 0xb1f   : > { %v16020_v59 = vpop.permute.xlu0 %16019 }
 0xb20   : > { %v16022_v36 = vunpack.i.h.bf16 %v16020_v59  ;;  %v16021_v10 = vunpack.i.l.bf16 %v16020_v59  ;;  %15331 = vmatprep.subr.bf16.mxu0 %v15330_v15  ;;  %22955 = vst [vmem:[#allocation54_spill] sm:$0xff] %v20813_v57 }
 0xb21   : > { %15333 = vmatpush3.bf16.msra.mxu0 %v15330_v15 }
 0xb22   : > { %14333 = vmatmul.mubr.msk.f32.vlgmr.msra.gmra.mrb[164].mxu1 %vm1797_vm0, %v8972_v49  ;;  %15335 = vmatprep.subr.bf16.mxu0 %v15334_v38  ;;  %v15338_v46 = vpack.c.bf16 %v16022_v36, %v16021_v10 }
 0xb23   : > { %14335 = vmatprep.mubr.msk.f32.mxu1 %vm1797_vm0, %v8974_v48  ;;  %v16030_v3 = vpop.permute.xlu0 %16029 }
 0xb24   : > { %v16032_v61 = vunpack.i.h.bf16 %v16030_v3  ;;  %v16031_v25 = vunpack.i.l.bf16 %v16030_v3  ;;  %v20803_v51 = vpop.f32.mrb[122].mxu0  ;;  %15339 = vmatprep.subr.bf16.mxu1 %v15338_v46 }
 0xb25   : > { %v20805_v29 = vpop.f32.mrb[123].mxu0  ;;  %15337 = vmatpush3.bf16.msra.mxu0 %v15334_v38  ;;  %15341 = vmatpush3.bf16.msra.mxu1 %v15338_v46 }
 0xb26   : > { %14336 = vmatmul.mubr.msk.f32.gmra.mrb[166].mxu1 %vm1797_vm0, %v8976_v62  ;;  %15343 = vmatprep.subr.bf16.mxu1 %v15342_v21  ;;  %v20810_v43 = vpack.c.bf16 %v16032_v61, %v16031_v25 }
 0xb28   : > { %15347 = vmatprep.subr.bf16.mxu0 %v20810_v43 }
 0xb29   : > { %15345 = vmatpush3.bf16.msra.mxu1 %v15342_v21 }
 0xb2a   : > { %15355 = vmatprep.subr.bf16.mxu1 %v20813_v57 }
 0xb2f   : > { %v20816_v54 = vpop.f32.mrb[124].mxu0 }
 0xb30   : > { %v20818_v8 = vpop.f32.mrb[125].mxu0 }
 0xb56   : > { %v20822_v22 = vpop.f32.mrb[126].mxu0 }
 0xb57   : > { %v20824_v14 = vpop.f32.mrb[127].mxu0 }
 0xb58   : > { %v20828_v55 = vpop.f32.mrb[136].mxu1 }
 0xb59   : > { %v20830_v52 = vpop.f32.mrb[137].mxu1 }
 0xb5f   : > { %v20834_v1 = vpop.f32.mrb[128].mxu0 }
 0xb60   : > { %22956 = vst [vmem:[#allocation47_spill] sm:$0xff] %v20834_v1  ;;  %v20836_v26 = vpop.f32.mrb[129].mxu0 }
 0xb61   : > { %22957 = vst [vmem:[#allocation56_spill] sm:$0xff] %v20836_v26  ;;  %v20840_v13 = vpop.f32.mrb[138].mxu1 }
 0xb62   : > { %v20842_v12 = vpop.f32.mrb[139].mxu1 }
 0xb69   : > { %v20846_v4 = vpop.f32.mrb[140].mxu1 }
 0xb6a   : > { %v20848_v33 = vpop.f32.mrb[141].mxu1 }
 0xb71   : > { %v20852_v42 = vpop.f32.mrb[142].mxu1 }
 0xb72   : > { %v20854_v47 = vpop.f32.mrb[143].mxu1 }
 0xb73   : > { %22958 = vst [vmem:[#allocation49_spill] sm:$0xff] %v20854_v47 }
 0xb74   : > { %v20858_v37 = vpop.f32.mrb[130].mxu0 }
 0xb75   : > { %22959 = vst [vmem:[#allocation63_spill] sm:$0xff] %v20858_v37  ;;  %v20860_v35 = vpop.f32.mrb[131].mxu0 }
 0xb76   : > { %22960 = vst [vmem:[#allocation51_spill] sm:$0xff] %v20860_v35 }
 0xb79   : > { %v20864_v20 = vpop.f32.mrb[144].mxu1 }
 0xb7a   : > { %22961 = vst [vmem:[#allocation31_spill] sm:$0xff] %v20864_v20  ;;  %v20866_v49 = vpop.f32.mrb[145].mxu1 }
 0xb7b   : > { %22962 = vst [vmem:[#allocation57_spill] sm:$0xff] %v20866_v49 }
 0xb7d   : > { %v20870_v0 = vpop.f32.mrb[132].mxu0 }
 0xb7e   : > { %22963 = vst [vmem:[#allocation59_spill] sm:$0xff] %v20870_v0  ;;  %v20872_v60 = vpop.f32.mrb[133].mxu0  ;;  %v21030_v0 = vpop.permute.xlu1 %16049 }
 0xb7f   : > { %22964 = vst [vmem:[#allocation23_spill] sm:$0xff] %v20872_v60  ;;  %v21028_v60 = vpop.permute.xlu0 %16034 }
 0xb85   : > { %v20876_v5 = vpop.f32.mrb[146].mxu1 }
 0xb86   : > { %22965 = vst [vmem:[#allocation44_spill] sm:$0xff] %v20876_v5  ;;  %v20878_v45 = vpop.f32.mrb[147].mxu1 }
 0xb87   : > { %22966 = vst [vmem:[#allocation62_spill] sm:$0xff] %v20878_v45  ;;  %v21036_v45 = vpop.permute.xlu1 %16059 }
 0xb88   : > { %22975 = vst [vmem:[#allocation25_spill] sm:$0xff] %v21036_v45 }
 0xb89   : > { %v20882_v9 = vpop.f32.mrb[134].mxu0 }
 0xb8a   : > { %22967 = vst [vmem:[#allocation34_spill] sm:$0xff] %v20882_v9  ;;  %v20884_v48 = vpop.f32.mrb[135].mxu0 }
 0xb8b   : > { %22968 = vst [vmem:[#allocation55_spill] sm:$0xff] %v20884_v48 }
 0xb8d   : > { %v20888_v16 = vpop.f32.mrb[148].mxu1  ;;  %v20890_v2 = vpop.f32.mrb[136].mxu0 }
 0xb8e   : > { %22969 = vst [vmem:[#allocation66_spill] sm:$0xff] %v20888_v16  ;;  %v20892_v58 = vpop.f32.mrb[149].mxu1  ;;  %v20896_v63 = vpop.f32.mrb[137].mxu0  ;;  %v9089_v15 = vsel %vm1797_vm0, %v20890_v2, -inf }
 0xb8f   : > { %22970 = vst [vmem:[#allocation43_spill] sm:$0xff] %v20892_v58  ;;  %9090 = vmax.xlane.f32.xlu1 %v9089_v15  ;;  %v9086_v50 = vsel %vm1797_vm0, %v20896_v63, -inf }
 0xb90   : > { %9087 = vmax.xlane.f32.xlu0 %v9086_v50 }
 0xb91   : > { %v20902_v19 = vpop.f32.mrb[138].mxu0 }
 0xb92   : > { %v20904_v59 = vpop.f32.mrb[139].mxu0  ;;  %v9095_v36 = vsel %vm1797_vm0, %v20902_v19, -inf }
 0xb93   : > { %v9092_v10 = vsel %vm1797_vm0, %v20904_v59, -inf }
 0xb94   : > { %9096 = vmax.xlane.f32.xlu0 %v9095_v36 }
 0xb98   : > { %9093 = vmax.xlane.f32.xlu0 %v9092_v10 }
 0xb9d   : > { %v20910_v38 = vpop.f32.mrb[140].mxu0 }
 0xb9e   : > { %v20912_v17 = vpop.f32.mrb[141].mxu0  ;;  %v9113_v23 = vsel %vm1797_vm0, %v20910_v38, -inf }
 0xb9f   : > { %v9110_v6 = vsel %vm1797_vm0, %v20912_v17, -inf }
 0xbb7   : > { %v20914_v46 = vpop.f32.mrb[142].mxu0 }
 0xbb8   : > { %v20916_v3 = vpop.f32.mrb[143].mxu0 }
 0xbc1   : > { %v20918_v21 = vpop.f32.mrb[150].mxu1 }
 0xbc2   : > { %22971 = vst [vmem:[#allocation58_spill] sm:$0xff] %v20918_v21  ;;  %v20920_v32 = vpop.f32.mrb[151].mxu1 }
 0xbc3   : > { %22972 = vst [vmem:[#allocation69_spill] sm:$0xff] %v20920_v32 }
 0xbc5   : > { %v20924_v61 = vpop.f32.mrb[152].mxu1 }
 0xbc6   : > { %v20926_v25 = vpop.f32.mrb[153].mxu1  ;;  %v9101_v15 = vsel %vm1797_vm0, %v20924_v61, -inf }
 0xbc7   : > { %9102 = vmax.xlane.f32.xlu1 %v9101_v15  ;;  %v9098_v50 = vsel %vm1797_vm0, %v20926_v25, -inf }
 0xbc8   : > { %9099 = vmax.xlane.f32.xlu0 %v9098_v50 }
 0xbc9   : > { %v20932_v36 = vpop.f32.mrb[154].mxu1 }
 0xbca   : > { %v20934_v10 = vpop.f32.mrb[155].mxu1  ;;  %v9107_v15 = vsel %vm1797_vm0, %v20932_v36, -inf }
 0xbcb   : > { %9114 = vmax.xlane.f32.xlu1 %v9113_v23  ;;  %v20938_v44 = vpop.f32.mrb[144].mxu0  ;;  %v9104_v56 = vsel %vm1797_vm0, %v20934_v10, -inf  ;;  %v9119_v23 = vsel %vm1797_vm0, %v20914_v46, -inf }
 0xbcc   : > { %9111 = vmax.xlane.f32.xlu0 %v9110_v6  ;;  %v20942_v62 = vpop.f32.mrb[145].mxu0  ;;  %v9116_v6 = vsel %vm1797_vm0, %v20916_v3, -inf }
 0xbcf   : > { %9108 = vmax.xlane.f32.xlu1 %v9107_v15  ;;  %v20946_v50 = vpop.f32.mrb[146].mxu0 }
 0xbd0   : > { %9105 = vmax.xlane.f32.xlu0 %v9104_v56  ;;  %v20950_v28 = vpop.f32.mrb[147].mxu0  ;;  %v9143_v27 = vsel %vm1797_vm0, %v20946_v50, -inf }
 0xbd3   : > { %9120 = vmax.xlane.f32.xlu1 %v9119_v23  ;;  %v9137_v23 = vsel %vm1797_vm0, %v20938_v44, -inf }
 0xbd4   : > { %9117 = vmax.xlane.f32.xlu0 %v9116_v6  ;;  %v9134_v6 = vsel %vm1797_vm0, %v20942_v62, -inf }
 0xbd5   : > { %v20956_v18 = vpop.f32.mrb[156].mxu1 }
 0xbd6   : > { %v20958_v39 = vpop.f32.mrb[157].mxu1  ;;  %v9125_v15 = vsel %vm1797_vm0, %v20956_v18, -inf }
 0xbd7   : > { %9126 = vmax.xlane.f32.xlu1 %v9125_v15  ;;  %v9122_v56 = vsel %vm1797_vm0, %v20958_v39, -inf }
 0xbd8   : > { %9123 = vmax.xlane.f32.xlu0 %v9122_v56 }
 0xbd9   : > { %v20964_v30 = vpop.f32.mrb[158].mxu1 }
 0xbda   : > { %v20966_v7 = vpop.f32.mrb[159].mxu1  ;;  %v9131_v31 = vsel %vm1797_vm0, %v20964_v30, -inf }
 0xbdb   : > { %9138 = vmax.xlane.f32.xlu1 %v9137_v23  ;;  %v9128_v15 = vsel %vm1797_vm0, %v20966_v7, -inf  ;;  %v9140_v23 = vsel %vm1797_vm0, %v20950_v28, -inf }
 0xbdc   : > { %9135 = vmax.xlane.f32.xlu0 %v9134_v6 }
 0xbdf   : > { %9132 = vmax.xlane.f32.xlu1 %v9131_v31 }
 0xbe0   : > { %9129 = vmax.xlane.f32.xlu0 %v9128_v15  ;;  %v20976_v56 = vpop.f32.mrb[148].mxu0 }
 0xbe1   : > { %v20978_v53 = vpop.f32.mrb[149].mxu0 }
 0xbe2   : > { %v9158_v21 = vsel %vm1797_vm0, %v20978_v53, -inf }
 0xbe3   : > { %9144 = vmax.xlane.f32.xlu1 %v9143_v27 }
 0xbe4   : > { %9141 = vmax.xlane.f32.xlu0 %v9140_v23  ;;  %v20984_v6 = vpop.f32.mrb[150].mxu0  ;;  %v9161_v23 = vsel %vm1797_vm0, %v20976_v56, -inf }
 0xbe5   : > { %v20986_v11 = vpop.f32.mrb[160].mxu1  ;;  %v20988_v31 = vpop.f32.mrb[151].mxu0 }
 0xbe6   : > { %v20990_v41 = vpop.f32.mrb[161].mxu1  ;;  %v9149_v15 = vsel %vm1797_vm0, %v20986_v11, -inf  ;;  %v9164_v16 = vsel %vm1797_vm0, %v20988_v31, -inf }
 0xbe7   : > { %9150 = vmax.xlane.f32.xlu1 %v9149_v15  ;;  %v9146_v24 = vsel %vm1797_vm0, %v20990_v41, -inf }
 0xbe8   : > { %9147 = vmax.xlane.f32.xlu0 %v9146_v24  ;;  %v9167_v24 = vsel %vm1797_vm0, %v20984_v6, -inf }
 0xbe9   : > { %v20996_v27 = vpop.f32.mrb[162].mxu1 }
 0xbea   : > { %v20998_v32 = vpop.f32.mrb[163].mxu1  ;;  %v9155_v58 = vsel %vm1797_vm0, %v20996_v27, -inf }
 0xbeb   : > { %9162 = vmax.xlane.f32.xlu1 %v9161_v23  ;;  %v9152_v15 = vsel %vm1797_vm0, %v20998_v32, -inf }
 0xbec   : > { %9159 = vmax.xlane.f32.xlu0 %v9158_v21 }
 0xbef   : > { %9156 = vmax.xlane.f32.xlu1 %v9155_v58 }
 0xbf0   : > { %9153 = vmax.xlane.f32.xlu0 %v9152_v15 }
 0xbf3   : > { %9168 = vmax.xlane.f32.xlu1 %v9167_v24 }
 0xbf4   : > { %9165 = vmax.xlane.f32.xlu0 %v9164_v16 }
 0xbf5   : > { %v21012_v23 = vpop.f32.mrb[164].mxu1 }
 0xbf6   : > { %v21014_v48 = vpop.f32.mrb[165].mxu1  ;;  %v9173_v21 = vsel %vm1797_vm0, %v21012_v23, -inf }
 0xbf7   : > { %9174 = vmax.xlane.f32.xlu1 %v9173_v21  ;;  %v9170_v58 = vsel %vm1797_vm0, %v21014_v48, -inf  ;;  %v22973_v21 = vld [vmem:[#allocation78_spill] sm:$0xff] }
 0xbf8   : > { %9171 = vmax.xlane.f32.xlu0 %v9170_v58  ;;  %v21034_v58 = vpop.permute.xlu0 %16044 }
 0xbf9   : > { %v21020_v15 = vpop.f32.mrb[166].mxu1  ;;  %22974 = vst [vmem:[#allocation52_spill] sm:$0xff] %v21034_v58 }
 0xbfa   : > { %v21022_v9 = vpop.f32.mrb[167].mxu1  ;;  %v9179_v24 = vsel %vm1797_vm0, %v21020_v15, -inf }
 0xbfb   : > { %9180 = vmax.xlane.f32.xlu1 %v9179_v24  ;;  %v9176_v16 = vsel %vm1797_vm0, %v21022_v9, -inf }
 0xbfc   : > { %9177 = vmax.xlane.f32.xlu0 %v9176_v16  ;;  %v21038_v5 = vpop.permute.xlu0 %16054 }
 0xbfd   : > { %22976 = vst [vmem:[#allocation24_spill] sm:$0xff] %v21038_v5 }
 0xc12   : > { %16064 = vrot.lane.b32.xlu0 %v22973_v21, %s17218_s10 }
 0xc1c   : > { %v9091_v49 = vpop.xlane.xlu1 %9090 }
 0xc1d   : > { %v9183_v24 = vsub.f32 %v20890_v2, %v9091_v49  ;;  %v9088_v20 = vpop.xlane.xlu0 %9087 }
 0xc1e   : > { %v9182_v35 = vsub.f32 %v20896_v63, %v9088_v20 }
 0xc1f   : > { %v9216_v16 = vmul.f32 1.442695, %v9183_v24 }
 0xc20   : > { %v9214_v37 = vmul.f32 1.442695, %v9182_v35 }
 0xc21   : > { %16776 = vpow2.f32 %v9216_v16  ;;  %v9097_v57 = vpop.xlane.xlu0 %9096 }
 0xc22   : > { %v9185_v26 = vsub.f32 %v20902_v19, %v9097_v57  ;;  %16778 = vpow2.f32 %v9214_v37 }
 0xc24   : > { %v9220_v21 = vmul.f32 1.442695, %v9185_v26 }
 0xc25   : > { %v9094_v1 = vpop.xlane.xlu0 %9093 }
 0xc26   : > { %16780 = vpow2.f32 %v9220_v21  ;;  %v9184_v45 = vsub.f32 %v20904_v59, %v9094_v1 }
 0xc28   : > { %v9218_v58 = vmul.f32 1.442695, %v9184_v45 }
 0xc2a   : > { %16782 = vpow2.f32 %v9218_v58 }
 0xc2b   : > { %v21044_v5 = vpop.eup %16776 }
 0xc2c   : > { %v9281_v49 = vsel %vm1797_vm0, %v21044_v5, 0.0  ;;  %v21048_v20 = vpop.eup %16778 }
 0xc2d   : > { %9282 = vadd.xlane.f32.xlu1 %v9281_v49  ;;  %v9278_v57 = vsel %vm1797_vm0, %v21048_v20, 0.0 }
 0xc30   : > { %v21050_v35 = vpop.eup %16780 }
 0xc31   : > { %v9287_v26 = vsel %vm1797_vm0, %v21050_v35, 0.0  ;;  %9279 = vadd.xlane.f32.xlu0 %v9278_v57 }
 0xc32   : > { %9288 = vadd.xlane.f32.xlu1 %v9287_v26 }
 0xc34   : > { %v21056_v1 = vpop.eup %16782 }
 0xc35   : > { %v9284_v37 = vsel %vm1797_vm0, %v21056_v1, 0.0 }
 0xc36   : > { %9285 = vadd.xlane.f32.xlu0 %v9284_v37 }
 0xc54   : > { %v9103_v45 = vpop.xlane.xlu1 %9102 }
 0xc55   : > { %v9187_v2 = vsub.f32 %v20924_v61, %v9103_v45  ;;  %v9100_v63 = vpop.xlane.xlu0 %9099 }
 0xc56   : > { %v9186_v19 = vsub.f32 %v20926_v25, %v9100_v63 }
 0xc57   : > { %v9224_v59 = vmul.f32 1.442695, %v9187_v2 }
 0xc58   : > { %v9222_v58 = vmul.f32 1.442695, %v9186_v19  ;;  %v9115_v24 = vpop.xlane.xlu1 %9114 }
 0xc59   : > { %16784 = vpow2.f32 %v9224_v59  ;;  %v9191_v16 = vsub.f32 %v20910_v38, %v9115_v24  ;;  %v9112_v21 = vpop.xlane.xlu0 %9111 }
 0xc5a   : > { %16786 = vpow2.f32 %v9222_v58  ;;  %v9190_v49 = vsub.f32 %v20912_v17, %v9112_v21 }
 0xc5b   : > { %v9232_v57 = vmul.f32 1.442695, %v9191_v16 }
 0xc5c   : > { %v9230_v26 = vmul.f32 1.442695, %v9190_v49  ;;  %v9109_v47 = vpop.xlane.xlu1 %9108 }
 0xc5d   : > { %16788 = vpow2.f32 %v9232_v57  ;;  %v9189_v37 = vsub.f32 %v20932_v36, %v9109_v47  ;;  %v9106_v61 = vpop.xlane.xlu0 %9105 }
 0xc5e   : > { %16790 = vpow2.f32 %v9230_v26  ;;  %v9188_v25 = vsub.f32 %v20934_v10, %v9106_v61 }
 0xc5f   : > { %v9228_v45 = vmul.f32 1.442695, %v9189_v37 }
 0xc60   : > { %v9226_v2 = vmul.f32 1.442695, %v9188_v25  ;;  %v9121_v63 = vpop.xlane.xlu1 %9120 }
 0xc61   : > { %16792 = vpow2.f32 %v9228_v45  ;;  %v9193_v38 = vsub.f32 %v20914_v46, %v9121_v63  ;;  %v9118_v19 = vpop.xlane.xlu0 %9117 }
 0xc62   : > { %16794 = vpow2.f32 %v9226_v2  ;;  %v9192_v17 = vsub.f32 %v20916_v3, %v9118_v19 }
 0xc63   : > { %v21068_v59 = vpop.eup %16784  ;;  %v9236_v58 = vmul.f32 1.442695, %v9193_v38 }
 0xc64   : > { %v21070_v24 = vpop.eup %16786  ;;  %v9234_v47 = vmul.f32 1.442695, %v9192_v17  ;;  %v9127_v36 = vpop.xlane.xlu1 %9126  ;;  %v9293_v10 = vsel %vm1797_vm0, %v21068_v59, 0.0 }
 0xc65   : > { %16796 = vpow2.f32 %v9236_v58  ;;  %v9195_v16 = vsub.f32 %v20956_v18, %v9127_v36  ;;  %v9124_v21 = vpop.xlane.xlu0 %9123  ;;  %9294 = vadd.xlane.f32.xlu1 %v9293_v10  ;;  %v9290_v46 = vsel %vm1797_vm0, %v21070_v24, 0.0 }
 0xc66   : > { %v9194_v3 = vsub.f32 %v20958_v39, %v9124_v21  ;;  %9291 = vadd.xlane.f32.xlu0 %v9290_v46  ;;  %16798 = vpow2.f32 %v9234_v47 }
 0xc67   : > { %v21078_v49 = vpop.eup %16788  ;;  %v9240_v57 = vmul.f32 1.442695, %v9195_v16 }
 0xc68   : > { %v21080_v26 = vpop.eup %16790  ;;  %v9238_v37 = vmul.f32 1.442695, %v9194_v3  ;;  %v9139_v61 = vpop.xlane.xlu1 %9138  ;;  %v9305_v25 = vsel %vm1797_vm0, %v21078_v49, 0.0 }
 0xc69   : > { %v9199_v18 = vsub.f32 %v20938_v44, %v9139_v61  ;;  %v9136_v45 = vpop.xlane.xlu0 %9135  ;;  %9306 = vadd.xlane.f32.xlu1 %v9305_v25  ;;  %v9302_v2 = vsel %vm1797_vm0, %v21080_v26, 0.0 }
 0xc6a   : > { %16800 = vpow2.f32 %v9238_v37  ;;  %v9198_v39 = vsub.f32 %v20942_v62, %v9136_v45  ;;  %9303 = vadd.xlane.f32.xlu0 %v9302_v2 }
 0xc6b   : > { %v21088_v63 = vpop.eup %16792  ;;  %16802 = vpow2.f32 %v9240_v57  ;;  %v9248_v38 = vmul.f32 1.442695, %v9199_v18 }
 0xc6c   : > { %v21090_v19 = vpop.eup %16794  ;;  %v9246_v17 = vmul.f32 1.442695, %v9198_v39  ;;  %v9133_v58 = vpop.xlane.xlu1 %9132  ;;  %v9299_v44 = vsel %vm1797_vm0, %v21088_v63, 0.0 }
 0xc6d   : > { %v9197_v47 = vsub.f32 %v20964_v30, %v9133_v58  ;;  %v9130_v36 = vpop.xlane.xlu0 %9129  ;;  %9300 = vadd.xlane.f32.xlu1 %v9299_v44  ;;  %v9296_v10 = vsel %vm1797_vm0, %v21090_v19, 0.0 }
 0xc6e   : > { %16804 = vpow2.f32 %v9246_v17  ;;  %9297 = vadd.xlane.f32.xlu0 %v9296_v10  ;;  %v9196_v37 = vsub.f32 %v20966_v7, %v9130_v36 }
 0xc6f   : > { %v21097_v62 = vpop.eup %16796  ;;  %16806 = vpow2.f32 %v9248_v38  ;;  %v9244_v16 = vmul.f32 1.442695, %v9197_v47 }
 0xc70   : > { %v9145_v21 = vpop.xlane.xlu1 %9144  ;;  %v9311_v46 = vsel %vm1797_vm0, %v21097_v62, 0.0  ;;  %v21101_v3 = vpop.eup %16798  ;;  %v9242_v17 = vmul.f32 1.442695, %v9196_v37 }
 0xc71   : > { %v9201_v57 = vsub.f32 %v20946_v50, %v9145_v21  ;;  %v9142_v30 = vpop.xlane.xlu0 %9141  ;;  %9312 = vadd.xlane.f32.xlu1 %v9311_v46  ;;  %16808 = vpow2.f32 %v9244_v16  ;;  %v9308_v45 = vsel %vm1797_vm0, %v21101_v3, 0.0 }
 0xc72   : > { %v9200_v7 = vsub.f32 %v20950_v28, %v9142_v30 }
 0xc73   : > { %v9252_v61 = vmul.f32 1.442695, %v9201_v57 }
 0xc74   : > { %v21105_v25 = vpop.eup %16800  ;;  %v9151_v18 = vpop.xlane.xlu1 %9150  ;;  %v9250_v28 = vmul.f32 1.442695, %v9200_v7 }
 0xc75   : > { %v21109_v2 = vpop.eup %16802  ;;  %v9203_v39 = vsub.f32 %v20986_v11, %v9151_v18  ;;  %v9148_v38 = vpop.xlane.xlu0 %9147  ;;  %9309 = vadd.xlane.f32.xlu1 %v9308_v45  ;;  %v9314_v50 = vsel %vm1797_vm0, %v21105_v25, 0.0  ;;  %16810 = vpow2.f32 %v9252_v61 }
 0xc76   : > { %9315 = vadd.xlane.f32.xlu0 %v9314_v50  ;;  %v9317_v36 = vsel %vm1797_vm0, %v21109_v2, 0.0  ;;  %v9202_v46 = vsub.f32 %v20990_v41, %v9148_v38 }
 0xc77   : > { %v9256_v58 = vmul.f32 1.442695, %v9203_v39 }
 0xc78   : > { %v21115_v44 = vpop.eup %16804  ;;  %v9163_v47 = vpop.xlane.xlu1 %9162  ;;  %v9254_v45 = vmul.f32 1.442695, %v9202_v46 }
 0xc79   : > { %v21119_v10 = vpop.eup %16806  ;;  %16812 = vpow2.f32 %v9256_v58  ;;  %v9207_v11 = vsub.f32 %v20976_v56, %v9163_v47  ;;  %v9160_v16 = vpop.xlane.xlu0 %9159  ;;  %9318 = vadd.xlane.f32.xlu1 %v9317_v36  ;;  %v9326_v21 = vsel %vm1797_vm0, %v21115_v44, 0.0 }
 0xc7a   : > { %9327 = vadd.xlane.f32.xlu0 %v9326_v21  ;;  %16814 = vpow2.f32 %v9242_v17  ;;  %v9329_v37 = vsel %vm1797_vm0, %v21119_v10, 0.0  ;;  %v9206_v39 = vsub.f32 %v20978_v53, %v9160_v16 }
 0xc7b   : > { %v9264_v57 = vmul.f32 1.442695, %v9207_v11  ;;  %v21127_v61 = vpop.eup %16808 }
 0xc7c   : > { %v9157_v30 = vpop.xlane.xlu1 %9156  ;;  %v9323_v41 = vsel %vm1797_vm0, %v21127_v61, 0.0 }
 0xc7d   : > { %16816 = vpow2.f32 %v9264_v57  ;;  %v9205_v56 = vsub.f32 %v20996_v27, %v9157_v30  ;;  %v9154_v18 = vpop.xlane.xlu0 %9153  ;;  %9330 = vadd.xlane.f32.xlu1 %v9329_v37  ;;  %v9262_v27 = vmul.f32 1.442695, %v9206_v39 }
 0xc7e   : > { %16818 = vpow2.f32 %v9250_v28  ;;  %v9204_v36 = vsub.f32 %v20998_v32, %v9154_v18 }
 0xc7f   : > { %v9260_v50 = vmul.f32 1.442695, %v9205_v56  ;;  %v21133_v38 = vpop.eup %16810 }
 0xc80   : > { %v9169_v17 = vpop.xlane.xlu1 %9168  ;;  %v9335_v16 = vsel %vm1797_vm0, %v21133_v38, 0.0  ;;  %v9258_v32 = vmul.f32 1.442695, %v9204_v36 }
 0xc81   : > { %16820 = vpow2.f32 %v9260_v50  ;;  %v9209_v7 = vsub.f32 %v20984_v6, %v9169_v17  ;;  %v9166_v58 = vpop.xlane.xlu0 %9165  ;;  %9324 = vadd.xlane.f32.xlu1 %v9323_v41 }
 0xc82   : > { %16822 = vpow2.f32 %v9254_v45  ;;  %v9208_v30 = vsub.f32 %v20988_v31, %v9166_v58 }
 0xc83   : > { %v21136_v47 = vpop.eup %16812  ;;  %v9268_v11 = vmul.f32 1.442695, %v9209_v7 }
 0xc84   : > { %v9175_v53 = vpop.xlane.xlu1 %9174  ;;  %v9341_v21 = vsel %vm1797_vm0, %v21136_v47, 0.0  ;;  %v21143_v28 = vpop.eup %16814  ;;  %v9266_v17 = vmul.f32 1.442695, %v9208_v30 }
 0xc85   : > { %16824 = vpow2.f32 %v9268_v11  ;;  %v9211_v6 = vsub.f32 %v21012_v23, %v9175_v53  ;;  %9336 = vadd.xlane.f32.xlu1 %v9335_v16  ;;  %9342 = vadd.xlane.f32.xlu0 %v9341_v21  ;;  %v9172_v46 = vpop.xlane.xlu0 %9171  ;;  %v9320_v18 = vsel %vm1797_vm0, %v21143_v28, 0.0 }
 0xc86   : > { %16826 = vpow2.f32 %v9262_v27  ;;  %v9210_v31 = vsub.f32 %v21014_v48, %v9172_v46 }
 0xc87   : > { %v21146_v57 = vpop.eup %16816  ;;  %v9272_v37 = vmul.f32 1.442695, %v9211_v6 }
 0xc88   : > { %v9181_v56 = vpop.xlane.xlu1 %9180  ;;  %v9353_v45 = vsel %vm1797_vm0, %v21146_v57, 0.0  ;;  %v21153_v39 = vpop.eup %16818  ;;  %v9270_v11 = vmul.f32 1.442695, %v9210_v31 }
 0xc89   : > { %16828 = vpow2.f32 %v9272_v37  ;;  %v9213_v23 = vsub.f32 %v21020_v15, %v9181_v56  ;;  %9321 = vadd.xlane.f32.xlu1 %v9320_v18  ;;  %9354 = vadd.xlane.f32.xlu0 %v9353_v45  ;;  %v9178_v7 = vpop.xlane.xlu0 %9177  ;;  %v9332_v58 = vsel %vm1797_vm0, %v21153_v39, 0.0 }
 0xc8a   : > { %16830 = vpow2.f32 %v9258_v32  ;;  %v9212_v53 = vsub.f32 %v21022_v9, %v9178_v7 }
 0xc8b   : > { %v21156_v50 = vpop.eup %16820  ;;  %v9276_v41 = vmul.f32 1.442695, %v9213_v23 }
 0xc8c   : > { %v9347_v27 = vsel %vm1797_vm0, %v21156_v50, 0.0  ;;  %v21163_v36 = vpop.eup %16822  ;;  %v9274_v46 = vmul.f32 1.442695, %v9212_v53  ;;  %v22980_v53 = vld [vmem:[#allocation83_spill] sm:$0xff] }
 0xc8d   : > { %16832 = vpow2.f32 %v9276_v41  ;;  %9333 = vadd.xlane.f32.xlu1 %v9332_v58  ;;  %9348 = vadd.xlane.f32.xlu0 %v9347_v27  ;;  %v9338_v48 = vsel %vm1797_vm0, %v21163_v36, 0.0  ;;  %v22977_v58 = vld [vmem:[#allocation80_spill] sm:$0xff]  ;;  %v22978_v27 = vld [vmem:[#allocation81_spill] sm:$0xff] }
 0xc8e   : > { %16834 = vpow2.f32 %v9266_v17 }
 0xc8f   : > { %v21165_v15 = vpop.eup %16824  ;;  %16836 = vpow2.f32 %v9270_v11  ;;  %v22979_v11 = vld [vmem:[#allocation79_spill] sm:$0xff] }
 0xc90   : > { %v9359_v16 = vsel %vm1797_vm0, %v21165_v15, 0.0  ;;  %v21172_v21 = vpop.eup %16826  ;;  %16838 = vpow2.f32 %v9274_v46  ;;  %v22981_v46 = vpack.i.bf16 %v20795_v34, %v20797_v40  ;;  %v22989_v40 = vpack.i.bf16 %v20828_v55, %v20830_v52 }
 0xc91   : > { %9339 = vadd.xlane.f32.xlu1 %v9338_v48  ;;  %9360 = vadd.xlane.f32.xlu0 %v9359_v16  ;;  %v9350_v32 = vsel %vm1797_vm0, %v21172_v21, 0.0  ;;  %v21208_v48 = vpop.permute.xlu0 %16064  ;;  %v16037_v52 = vunpack.i.h.bf16 %v21028_v60 }
 0xc93   : > { %v21174_v6 = vpop.eup %16828 }
 0xc94   : > { %v9365_v9 = vsel %vm1797_vm0, %v21174_v6, 0.0  ;;  %v21180_v30 = vpop.eup %16830 }
 0xc95   : > { %9351 = vadd.xlane.f32.xlu1 %v9350_v32  ;;  %9366 = vadd.xlane.f32.xlu0 %v9365_v9  ;;  %v9344_v56 = vsel %vm1797_vm0, %v21180_v30, 0.0  ;;  %v22982_v32 = vld [vmem:[#allocation33_spill] sm:$0xff]  ;;  %v22983_v9 = vld [vmem:[#allocation111_spill] sm:$0xff] }
 0xc97   : > { %v21182_v37 = vpop.eup %16832 }
 0xc98   : > { %v9371_v18 = vsel %vm1797_vm0, %v21182_v37, 0.0  ;;  %v21188_v45 = vpop.eup %16834 }
 0xc99   : > { %9345 = vadd.xlane.f32.xlu1 %v9344_v56  ;;  %9372 = vadd.xlane.f32.xlu0 %v9371_v18  ;;  %v9356_v23 = vsel %vm1797_vm0, %v21188_v45, 0.0  ;;  %v21192_v17 = vpop.eup %16836  ;;  %v22984_v56 = vpack.i.bf16 %v22982_v32, %v22983_v9  ;;  %v22985_v18 = vld [vmem:[#allocation36_spill] sm:$0xff] }
 0xc9a   : > { %v9362_v31 = vsel %vm1797_vm0, %v21192_v17, 0.0  ;;  %v21196_v41 = vpop.eup %16838  ;;  %v22994_v32 = vld [vmem:[#allocation116_spill] sm:$0xff] }
 0xc9b   : > { %v9368_v7 = vsel %vm1797_vm0, %v21196_v41, 0.0 }
 0xc9d   : > { %9357 = vadd.xlane.f32.xlu1 %v9356_v23  ;;  %v22986_v23 = vld [vmem:[#allocation48_spill] sm:$0xff] }
 0xca1   : > { %9363 = vadd.xlane.f32.xlu1 %v9362_v31  ;;  %v22987_v31 = vpack.i.bf16 %v22985_v18, %v22986_v23  ;;  %v22997_v18 = vpack.i.bf16 %v20816_v54, %v20818_v8  ;;  %v16051_v54 = vunpack.i.l.bf16 %v21030_v0  ;;  %v23001_v8 = vld [vmem:[#allocation112_spill] sm:$0xff] }
 0xca5   : > { %9369 = vadd.xlane.f32.xlu1 %v9368_v7 }
 0xcaf   : > { %16074 = vrot.lane.b32.xlu0 %v22977_v58, %s17218_s10  ;;  %v22988_v58 = vpack.i.bf16 %v20803_v51, %v20805_v29  ;;  %v22996_v51 = vpack.i.bf16 %v20840_v13, %v20842_v12 }
 0xcb3   : > { %16079 = vrot.lane.b32.xlu0 %v22978_v27, %s17218_s10 }
 0xcb6   : > { %16069 = vrot.lane.b32.xlu1 %v22979_v11, %s17218_s10  ;;  %v22990_v11 = vld [vmem:[#allocation114_spill] sm:$0xff] }
 0xcb7   : > { %16084 = vrot.lane.b32.xlu0 %v22980_v53, %s17218_s10  ;;  %v22991_v53 = vld [vmem:[#allocation97_spill] sm:$0xff] }
 0xcba   : > { %v9283_v16 = vpop.xlane.xlu1 %9282  ;;  %16094 = vrot.lane.b32.xlu1 %v22981_v46, %s17217_s4  ;;  %v22993_v46 = vld [vmem:[#allocation28_spill] sm:$0xff] }
 0xcbb   : > { %16089 = vrot.lane.b32.xlu0 %v22984_v56, %s17218_s10  ;;  %16840 = vrcp.f32 %v9283_v16  ;;  %v22992_v16 = vpack.i.bf16 %v22990_v11, %v22991_v53  ;;  %v22995_v9 = vpack.i.bf16 %v22993_v46, %v22994_v32  ;;  %v16036_v56 = vunpack.i.l.bf16 %v21028_v60  ;;  %v23007_v46 = vld [vmem:[#allocation113_spill] sm:$0xff] }
 0xcbc   : > { %v23012_v32 = vld [vmem:[#allocation49_spill] sm:$0xff] }
 0xcbd   : > { %v15350_v60 = vpack.c.bf16 %v16037_v52, %v16036_v56 }
 0xcbe   : > { %16099 = vrot.lane.b32.xlu1 %v22987_v31, %s17218_s10  ;;  %v9280_v7 = vpop.xlane.xlu0 %9279 }
 0xcbf   : > { %16842 = vrcp.f32 %v9280_v7  ;;  %16104 = vrot.lane.b32.xlu0 %v22988_v58, %s17217_s4  ;;  %v9289_v34 = vpop.xlane.xlu1 %9288  ;;  %v22998_v7 = vld [vmem:[#allocation42_spill] sm:$0xff]  ;;  %v22999_v58 = vld [vmem:[#allocation41_spill] sm:$0xff] }
 0xcc0   : > { %16844 = vrcp.f32 %v9289_v34  ;;  %v23000_v13 = vpack.i.bf16 %v22998_v7, %v22999_v58  ;;  %v23017_v7 = vld [vmem:[#allocation52_spill] sm:$0xff] }
 0xcc1   : > { %v16047_v58 = vunpack.i.h.bf16 %v23017_v7 }
 0xcc2   : > { %16114 = vrot.lane.b32.xlu1 %v22989_v40, %s17217_s4  ;;  %v16052_v40 = vunpack.i.h.bf16 %v21030_v0 }
 0xcc3   : > { %v9286_v27 = vpop.xlane.xlu0 %9285  ;;  %16109 = vrot.lane.b32.xlu0 %v22992_v16, %s17218_s10  ;;  %v23006_v16 = vld [vmem:[#allocation32_spill] sm:$0xff] }
 0xcc4   : > { %16846 = vrcp.f32 %v9286_v27  ;;  %v23004_v27 = vpack.i.bf16 %v20822_v22, %v20824_v14  ;;  %v15362_v0 = vpack.c.bf16 %v16052_v40, %v16051_v54  ;;  %v23008_v22 = vpack.i.bf16 %v23006_v16, %v23007_v46  ;;  %v23009_v14 = vld [vmem:[#allocation22_spill] sm:$0xff]  ;;  %v23018_v54 = vld [vmem:[#allocation25_spill] sm:$0xff] }
 0xcc5   : > { %v16841_v29 = vpop.eup %16840 }
 0xcc6   : > { %16119 = vrot.lane.b32.xlu1 %v22995_v9, %s17218_s10  ;;  %v9407_v31 = vmul.f32 %v16841_v29, %v21044_v5  ;;  %v23002_v5 = vld [vmem:[#allocation46_spill] sm:$0xff]  ;;  %v23013_v9 = vpack.i.bf16 %v20852_v42, %v23012_v32 }
 0xcc7   : > { %16124 = vrot.lane.b32.xlu0 %v22996_v51, %s17217_s4 }
 0xcc9   : > { %v16843_v55 = vpop.eup %16842 }
 0xcca   : > { %16134 = vrot.lane.b32.xlu1 %v22997_v18, %s17217_s4  ;;  %v9406_v23 = vmul.f32 %v16843_v55, %v21048_v20  ;;  %v16845_v12 = vpop.eup %16844  ;;  %v23003_v20 = vpack.i.bf16 %v23001_v8, %v23002_v5  ;;  %v16062_v8 = vunpack.i.h.bf16 %v23018_v54  ;;  %v16061_v5 = vunpack.i.l.bf16 %v23018_v54 }
 0xccb   : > { %16129 = vrot.lane.b32.xlu0 %v23000_v13, %s17218_s10  ;;  %v9409_v53 = vmul.f32 %v16845_v12, %v21050_v35  ;;  %v23010_v35 = vld [vmem:[#allocation26_spill] sm:$0xff]  ;;  %v16046_v13 = vunpack.i.l.bf16 %v23017_v7 }
 0xccc   : > { %14346 = vmatprep.mubr.msk.f32.mxu0 %vm1797_vm0, %v9406_v23 }
 0xccd   : > { %14347 = vmatmul.mubr.msk.f32.vlgmr.msra.gmra.mrb[152].mxu0 %vm1797_vm0, %v9407_v31  ;;  %v15358_v16 = vpack.c.bf16 %v16047_v58, %v16046_v13 }
 0xcce   : > { %v16847_v34 = vpop.eup %16846  ;;  %15349 = vmatpush3.bf16.msra.mxu0 %v20810_v43  ;;  %16139 = vrot.lane.b32.xlu1 %v23003_v20, %s17218_s10  ;;  %v23005_v43 = vpack.i.bf16 %v20846_v4, %v20848_v33  ;;  %v23014_v4 = vld [vmem:[#allocation47_spill] sm:$0xff]  ;;  %v23015_v33 = vld [vmem:[#allocation56_spill] sm:$0xff] }
 0xccf   : > { %15351 = vmatprep.subr.bf16.mxu0 %v15350_v60  ;;  %16144 = vrot.lane.b32.xlu0 %v23004_v27, %s17217_s4  ;;  %v9408_v11 = vmul.f32 %v16847_v34, %v21056_v1  ;;  %v23011_v1 = vpack.i.bf16 %v23009_v14, %v23010_v35  ;;  %v23016_v51 = vpack.i.bf16 %v23014_v4, %v23015_v33  ;;  %v23019_v27 = vld [vmem:[#allocation24_spill] sm:$0xff] }
 0xcd1   : > { %14349 = vmatprep.mubr.msk.f32.mxu0 %vm1797_vm0, %v9408_v11  ;;  %v16057_v11 = vunpack.i.h.bf16 %v23019_v27 }
 0xcd2   : > { %14350 = vmatmul.mubr.msk.f32.gmra.mrb[154].mxu0 %vm1797_vm0, %v9409_v53  ;;  %16154 = vrot.lane.b32.xlu1 %v23005_v43, %s17217_s4  ;;  %v16056_v53 = vunpack.i.l.bf16 %v23019_v27 }
 0xcd3   : > { %15353 = vmatpush3.bf16.msra.mxu0 %v15350_v60  ;;  %16149 = vrot.lane.b32.xlu0 %v23008_v22, %s17218_s10 }
 0xcd4   : > { %15363 = vmatprep.subr.bf16.mxu0 %v15362_v0  ;;  %v15366_v32 = vpack.c.bf16 %v16057_v11, %v16056_v53 }
 0xcd6   : > { %16159 = vrot.lane.b32.xlu1 %v23011_v1, %s17218_s10 }
 0xcd7   : > { %16164 = vrot.lane.b32.xlu0 %v23013_v9, %s17217_s4  ;;  %v15370_v9 = vpack.c.bf16 %v16062_v8, %v16061_v5 }
 0xcda   : > { %16179 = vrot.lane.b32.xlu1 %v23016_v51, %s17217_s4 }
 0xcf2   : > { %v9295_v29 = vpop.xlane.xlu1 %9294 }
 0xcf3   : > { %16848 = vrcp.f32 %v9295_v29  ;;  %v9292_v55 = vpop.xlane.xlu0 %9291 }
 0xcf4   : > { %16850 = vrcp.f32 %v9292_v55 }
 0xcf6   : > { %v9307_v52 = vpop.xlane.xlu1 %9306 }
 0xcf7   : > { %16852 = vrcp.f32 %v9307_v52  ;;  %v9304_v56 = vpop.xlane.xlu0 %9303 }
 0xcf8   : > { %16854 = vrcp.f32 %v9304_v56 }
 0xcfa   : > { %v9301_v18 = vpop.xlane.xlu1 %9300 }
 0xcfb   : > { %16856 = vrcp.f32 %v9301_v18  ;;  %v9298_v23 = vpop.xlane.xlu0 %9297  ;;  %v16067_v18 = vunpack.i.h.bf16 %v21208_v48 }
 0xcfc   : > { %16858 = vrcp.f32 %v9298_v23 }
 0xcfd   : > { %v16849_v31 = vpop.eup %16848 }
 0xcfe   : > { %v16851_v42 = vpop.eup %16850  ;;  %v9313_v12 = vpop.xlane.xlu1 %9312  ;;  %v9411_v34 = vmul.f32 %v16849_v31, %v21068_v59 }
 0xcff   : > { %v9410_v60 = vmul.f32 %v16851_v42, %v21070_v24  ;;  %16860 = vrcp.f32 %v9313_v12  ;;  %v23020_v24 = vld [vmem:[#allocation54_spill] sm:$0xff] }
 0xd01   : > { %v16853_v40 = vpop.eup %16852  ;;  %14360 = vmatprep.mubr.msk.f32.mxu1 %vm1797_vm0, %v9410_v60 }
 0xd02   : > { %v16855_v20 = vpop.eup %16854  ;;  %v9310_v43 = vpop.xlane.xlu1 %9309  ;;  %14361 = vmatmul.mubr.msk.f32.vlgmr.msra.gmra.mrb[168].mxu1 %vm1797_vm0, %v9411_v34  ;;  %v9415_v22 = vmul.f32 %v16853_v40, %v21078_v49 }
 0xd03   : > { %16862 = vrcp.f32 %v9310_v43  ;;  %15357 = vmatpush3.bf16.msra.mxu1 %v23020_v24  ;;  %v9316_v59 = vpop.xlane.xlu0 %9315  ;;  %v9414_v46 = vmul.f32 %v16855_v20, %v21080_v26 }
 0xd04   : > { %15359 = vmatprep.subr.bf16.mxu1 %v15358_v16  ;;  %16864 = vrcp.f32 %v9316_v59 }
 0xd05   : > { %v16857_v14 = vpop.eup %16856  ;;  %14374 = vmatprep.mubr.msk.f32.mxu0 %vm1797_vm0, %v9414_v46 }
 0xd06   : > { %v16859_v35 = vpop.eup %16858  ;;  %v9319_v1 = vpop.xlane.xlu1 %9318  ;;  %14375 = vmatmul.mubr.msk.f32.vlgmr.msra.gmra.mrb[156].mxu0 %vm1797_vm0, %v9415_v22  ;;  %v9413_v49 = vmul.f32 %v16857_v14, %v21088_v63  ;;  %v16066_v63 = vunpack.i.l.bf16 %v21208_v48 }
 0xd07   : > { %16866 = vrcp.f32 %v9319_v1  ;;  %15361 = vmatpush3.bf16.msra.mxu1 %v15358_v16  ;;  %15365 = vmatpush3.bf16.msra.mxu0 %v15362_v0  ;;  %v9328_v4 = vpop.xlane.xlu0 %9327  ;;  %v9412_v33 = vmul.f32 %v16859_v35, %v21090_v19 }
 0xd08   : > { %15367 = vmatprep.subr.bf16.mxu0 %v15366_v32  ;;  %15371 = vmatprep.subr.bf16.mxu1 %v15370_v9  ;;  %16868 = vrcp.f32 %v9328_v4 }
 0xd09   : > { %14363 = vmatprep.mubr.msk.f32.mxu1 %vm1797_vm0, %v9412_v33  ;;  %v16861_v51 = vpop.eup %16860 }
 0xd0a   : > { %v9331_v26 = vpop.xlane.xlu1 %9330  ;;  %14364 = vmatmul.mubr.msk.f32.gmra.mrb[170].mxu1 %vm1797_vm0, %v9413_v49  ;;  %v9417_v19 = vmul.f32 %v16861_v51, %v21097_v62 }
 0xd0b   : > { %16870 = vrcp.f32 %v9331_v26  ;;  %15369 = vmatpush3.bf16.msra.mxu0 %v15366_v32 }
 0xd0d   : > { %v16863_v29 = vpop.eup %16862 }
 0xd0e   : > { %v16865_v55 = vpop.eup %16864  ;;  %v9325_v52 = vpop.xlane.xlu1 %9324  ;;  %v9416_v0 = vmul.f32 %v16863_v29, %v21101_v3 }
 0xd0f   : > { %v9418_v56 = vmul.f32 %v16865_v55, %v21105_v25  ;;  %v15374_v25 = vpack.c.bf16 %v16067_v18, %v16066_v63  ;;  %16872 = vrcp.f32 %v9325_v52 }
 0xd10   : > { %14377 = vmatprep.mubr.msk.f32.mxu0 %vm1797_vm0, %v9416_v0 }
 0xd11   : > { %v16867_v23 = vpop.eup %16866  ;;  %14378 = vmatmul.mubr.msk.f32.gmra.mrb[158].mxu0 %vm1797_vm0, %v9417_v19  ;;  %14388 = vmatprep.mubr.msk.f32.mxu1 %vm1797_vm0, %v9418_v56 }
 0xd12   : > { %v16869_v31 = vpop.eup %16868  ;;  %v9419_v42 = vmul.f32 %v16867_v23, %v21109_v2  ;;  %v9337_v7 = vpop.xlane.xlu1 %9336 }
 0xd13   : > { %v9343_v3 = vpop.xlane.xlu0 %9342  ;;  %v9422_v62 = vmul.f32 %v16869_v31, %v21115_v44 }
 0xd14   : > { %14389 = vmatmul.mubr.msk.f32.vlgmr.msra.gmra.mrb[172].mxu1 %vm1797_vm0, %v9419_v42 }
 0xd15   : > { %v16871_v58 = vpop.eup %16870  ;;  %15373 = vmatpush3.bf16.msra.mxu1 %v15370_v9  ;;  %14402 = vmatprep.mubr.msk.f32.mxu0 %vm1797_vm0, %v9422_v62 }
 0xd16   : > { %v9423_v48 = vmul.f32 %v16871_v58, %v21119_v10  ;;  %15375 = vmatprep.subr.bf16.mxu1 %v15374_v25  ;;  %v9322_v13 = vpop.xlane.xlu1 %9321 }
 0xd17   : > { %v9355_v12 = vpop.xlane.xlu0 %9354  ;;  %16874 = vrcp.f32 %v9322_v13 }
 0xd18   : > { %14403 = vmatmul.mubr.msk.f32.vlgmr.msra.gmra.mrb[160].mxu0 %vm1797_vm0, %v9423_v48  ;;  %16876 = vrcp.f32 %v9337_v7 }
 0xd19   : > { %15377 = vmatpush3.bf16.msra.mxu1 %v15374_v25  ;;  %v16873_v40 = vpop.eup %16872 }
 0xd1a   : > { %v9334_v2 = vpop.xlane.xlu1 %9333  ;;  %v9421_v20 = vmul.f32 %v16873_v40, %v21127_v61 }
 0xd1b   : > { %v9349_v44 = vpop.xlane.xlu0 %9348  ;;  %16878 = vrcp.f32 %v9334_v2 }
 0xd1c   : > { %16880 = vrcp.f32 %v9343_v3 }
 0xd1e   : > { %v9340_v60 = vpop.xlane.xlu1 %9339 }
 0xd1f   : > { %v21324_v34 = vpop.xlane.xlu0 %9360  ;;  %16882 = vrcp.f32 %v9340_v60 }
 0xd21   : > { %v16875_v54 = vpop.eup %16874 }
 0xd22   : > { %v9352_v10 = vpop.xlane.xlu1 %9351  ;;  %v9420_v5 = vmul.f32 %v16875_v54, %v21143_v28  ;;  %v16877_v27 = vpop.eup %16876 }
 0xd23   : > { %v9367_v8 = vpop.xlane.xlu0 %9366  ;;  %16884 = vrcp.f32 %v9352_v10  ;;  %v9425_v24 = vmul.f32 %v16877_v27, %v21133_v38 }
 0xd24   : > { %14391 = vmatprep.mubr.msk.f32.mxu1 %vm1797_vm0, %v9420_v5  ;;  %16886 = vrcp.f32 %v9349_v44 }
 0xd25   : > { %v16879_v11 = vpop.eup %16878  ;;  %14392 = vmatmul.mubr.msk.f32.gmra.mrb[174].mxu1 %vm1797_vm0, %v9421_v20 }
 0xd26   : > { %v9346_v53 = vpop.xlane.xlu1 %9345  ;;  %v9424_v16 = vmul.f32 %v16879_v11, %v21153_v39  ;;  %v16881_v59 = vpop.eup %16880 }
 0xd27   : > { %v9373_v43 = vpop.xlane.xlu0 %9372  ;;  %16888 = vrcp.f32 %v9346_v53  ;;  %v9427_v14 = vmul.f32 %v16881_v59, %v21136_v47 }
 0xd28   : > { %14405 = vmatprep.mubr.msk.f32.mxu0 %vm1797_vm0, %v9424_v16  ;;  %16890 = vrcp.f32 %v9367_v8 }
 0xd29   : > { %v16883_v28 = vpop.eup %16882  ;;  %14406 = vmatmul.mubr.msk.f32.gmra.mrb[162].mxu0 %vm1797_vm0, %v9425_v24  ;;  %v23022_v24 = vld [vmem:[#allocation87_spill] sm:$0xff] }
 0xd2a   : > { %v9358_v61 = vpop.xlane.xlu1 %9357  ;;  %v9426_v22 = vmul.f32 %v16883_v28, %v21163_v36 }
 0xd2b   : > { %v16075_v46 = vpop.permute.xlu0 %16074 }
 0xd2c   : > { %14416 = vmatprep.mubr.msk.f32.mxu1 %vm1797_vm0, %v9426_v22  ;;  %v16077_v19 = vunpack.i.h.bf16 %v16075_v46  ;;  %v16076_v56 = vunpack.i.l.bf16 %v16075_v46 }
 0xd2d   : > { %v16885_v35 = vpop.eup %16884  ;;  %14417 = vmatmul.mubr.msk.f32.vlgmr.msra.gmra.mrb[176].mxu1 %vm1797_vm0, %v9427_v14 }
 0xd2e   : > { %v9364_v39 = vpop.xlane.xlu1 %9363  ;;  %v9430_v1 = vmul.f32 %v16885_v35, %v21172_v21  ;;  %v16887_v4 = vpop.eup %16886  ;;  %v15382_v62 = vpack.c.bf16 %v16077_v19, %v16076_v56  ;;  %v23023_v35 = vld [vmem:[#allocation98_spill] sm:$0xff]  ;;  %v10801_v19 = vld [vmem:[%s17562_s24 + $0x48] sm:$0xff] }
 0xd2f   : > { %v16080_v38 = vpop.permute.xlu0 %16079  ;;  %16892 = vrcp.f32 %v9364_v39  ;;  %v9429_v55 = vmul.f32 %v16887_v4, %v21156_v50 }
 0xd30   : > { %v16082_v32 = vunpack.i.h.bf16 %v16080_v38  ;;  %v16081_v9 = vunpack.i.l.bf16 %v16080_v38  ;;  %14430 = vmatprep.mubr.msk.f32.mxu0 %vm1797_vm0, %v9430_v1  ;;  %16894 = vrcp.f32 %v9373_v43  ;;  %v23021_v43 = vld [vmem:[#allocation96_spill] sm:$0xff]  ;;  %v23024_v38 = vld [vmem:[#allocation85_spill] sm:$0xff] }
 0xd31   : > { %v16889_v33 = vpop.eup %16888 }
 0xd32   : > { %v15386_v36 = vpack.c.bf16 %v16082_v32, %v16081_v9  ;;  %v9370_v47 = vpop.xlane.xlu1 %9369  ;;  %v9428_v26 = vmul.f32 %v16889_v33, %v21180_v30  ;;  %v16891_v63 = vpop.eup %16890  ;;  %v10792_v32 = vld [vmem:[%s17562_s24] sm:$0xff]  ;;  %v10793_v9 = vld [vmem:[%s17562_s24 + $0x8] sm:$0xff]  ;;  %v10794_v33 = vld [vmem:[%s17562_s24 + $0x10] sm:$0xff] }
 0xd33   : > { %v16085_v49 = vpop.permute.xlu0 %16084  ;;  %16896 = vrcp.f32 %v9370_v47  ;;  %v9435_v3 = vmul.f32 %v16891_v63, %v21174_v6  ;;  %v15394_v4 = vpack.c.bf16 %v10793_v9, %v10792_v32  ;;  %v23034_v9 = vld [vmem:[#allocation29_spill] sm:$0xff] }
 0xd34   : > { %v16087_v51 = vunpack.i.h.bf16 %v16085_v49  ;;  %v16086_v29 = vunpack.i.l.bf16 %v16085_v49  ;;  %15387 = vmatprep.subr.bf16.mxu1 %v15386_v36  ;;  %16898 = vrcp.f32 %v9355_v12  ;;  %14419 = vmatprep.mubr.msk.f32.mxu1 %vm1797_vm0, %v9428_v26  ;;  %v10796_v49 = vld [vmem:[%s17562_s24 + $0x20] sm:$0xff]  ;;  %v10797_v26 = vld [vmem:[%s17562_s24 + $0x28] sm:$0xff] }
 0xd35   : > { %15389 = vmatpush3.bf16.msra.mxu1 %v15386_v36  ;;  %16900 = vrcp.f32 %v9358_v61  ;;  %v10795_v36 = vld [vmem:[%s17562_s24 + $0x18] sm:$0xff] }
 0xd36   : > { %14420 = vmatmul.mubr.msk.f32.gmra.mrb[178].mxu1 %vm1797_vm0, %v9429_v55  ;;  %v15390_v21 = vpack.c.bf16 %v16087_v51, %v16086_v29  ;;  %v16070_v52 = vpop.permute.xlu1 %16069  ;;  %16902 = vrcp.f32 %v21324_v34  ;;  %v15398_v47 = vpack.c.bf16 %v10795_v36, %v10794_v33  ;;  %v15402_v51 = vpack.c.bf16 %v10797_v26, %v10796_v49  ;;  %v10798_v29 = vld [vmem:[%s17562_s24 + $0x30] sm:$0xff]  ;;  %v10799_v55 = vld [vmem:[%s17562_s24 + $0x38] sm:$0xff] }
 0xd37   : > { %v21344_v0 = vpop.permute.xlu0 %16089  ;;  %v16072_v30 = vunpack.i.h.bf16 %v16070_v52  ;;  %v16071_v18 = vunpack.i.l.bf16 %v16070_v52  ;;  %v10800_v52 = vld [vmem:[%s17562_s24 + $0x40] sm:$0xff]  ;;  %v23038_v49 = vld [vmem:[#allocation57_spill] sm:$0xff] }
 0xd38   : > { %15391 = vmatprep.subr.bf16.mxu1 %v15390_v21  ;;  %v15410_v56 = vpack.c.bf16 %v10801_v19, %v10800_v52 }
 0xd39   : > { %15393 = vmatpush3.bf16.msra.mxu1 %v15390_v21  ;;  %v16893_v50 = vpop.eup %16892  ;;  %v15378_v23 = vpack.c.bf16 %v16072_v30, %v16071_v18  ;;  %v15406_v21 = vpack.c.bf16 %v10799_v55, %v10798_v29  ;;  %v10802_v30 = vld [vmem:[%s17562_s24 + $0x50] sm:$0xff]  ;;  %v10803_v18 = vld [vmem:[%s17562_s24 + $0x58] sm:$0xff] }
 0xd3a   : > { %v21347_v31 = vpop.permute.xlu1 %16094  ;;  %v9434_v7 = vmul.f32 %v16893_v50, %v21192_v17  ;;  %v16895_v25 = vpop.eup %16894  ;;  %v15414_v63 = vpack.c.bf16 %v10803_v18, %v10802_v30  ;;  %v10804_v50 = vld [vmem:[%s17562_s24 + $0x60] sm:$0xff]  ;;  %v23041_v18 = vld [vmem:[#allocation121_spill] sm:$0xff] }
 0xd3b   : > { %v21349_v42 = vpop.permute.xlu0 %16104  ;;  %15379 = vmatprep.subr.bf16.mxu0 %v15378_v23  ;;  %v9437_v6 = vmul.f32 %v16895_v25, %v21182_v37  ;;  %v23040_v30 = vld [vmem:[#allocation122_spill] sm:$0xff] }
 0xd3c   : > { %15381 = vmatpush3.bf16.msra.mxu0 %v15378_v23  ;;  %14444 = vmatprep.mubr.msk.f32.mxu1 %vm1797_vm0, %v9434_v7  ;;  %v10805_v23 = vld [vmem:[%s17562_s24 + $0x68] sm:$0xff] }
 0xd3d   : > { %v16897_v58 = vpop.eup %16896  ;;  %15383 = vmatprep.subr.bf16.mxu0 %v15382_v62  ;;  %14445 = vmatmul.mubr.msk.f32.vlgmr.msra.gmra.mrb[180].mxu1 %vm1797_vm0, %v9435_v3  ;;  %v15418_v7 = vpack.c.bf16 %v10805_v23, %v10804_v50  ;;  %v10806_v3 = vld [vmem:[%s17562_s24 + $0x70] sm:$0xff]  ;;  %v23044_v23 = vld [vmem:[#allocation62_spill] sm:$0xff] }
 0xd3e   : > { %v16899_v48 = vpop.eup %16898  ;;  %v21355_v13 = vpop.permute.xlu1 %16099  ;;  %v9436_v2 = vmul.f32 %v16897_v58, %v21196_v41  ;;  %v23043_v50 = vld [vmem:[#allocation44_spill] sm:$0xff] }
 0xd3f   : > { %v21357_v12 = vpop.permute.xlu0 %16109  ;;  %v16901_v17 = vpop.eup %16900  ;;  %v9431_v44 = vmul.f32 %v16899_v48, %v21146_v57 }
 0xd40   : > { %15385 = vmatpush3.bf16.msra.mxu0 %v15382_v62  ;;  %14447 = vmatprep.mubr.msk.f32.mxu1 %vm1797_vm0, %v9436_v2  ;;  %v16903_v60 = vpop.eup %16902  ;;  %v9432_v54 = vmul.f32 %v16901_v17, %v21188_v45  ;;  %v10807_v62 = vld [vmem:[%s17562_s24 + $0x78] sm:$0xff] }
 0xd41   : > { %14448 = vmatmul.mubr.msk.f32.gmra.mrb[182].mxu1 %vm1797_vm0, %v9437_v6  ;;  %v9433_v37 = vmul.f32 %v16903_v60, %v21165_v15  ;;  %15395 = vmatprep.subr.bf16.mxu0 %v15394_v4  ;;  %v15422_v25 = vpack.c.bf16 %v10807_v62, %v10806_v3  ;;  %v23025_v60 = vld [vmem:[#allocation118_spill] sm:$0xff]  ;;  %v23046_v3 = vld [vmem:[#allocation119_spill] sm:$0xff] }
 0xd42   : > { %v21364_v34 = vpop.permute.xlu1 %16114  ;;  %v23047_v62 = vld [vmem:[#allocation38_spill] sm:$0xff] }
 0xd43   : > { %v21366_v40 = vpop.permute.xlu0 %16124  ;;  %14431 = vmatmul.mubr.msk.f32.vlgmr.msra.gmra.mrb[164].mxu0 %vm1797_vm0, %v9431_v44 }
 0xd44   : > { %14433 = vmatprep.mubr.msk.f32.mxu0 %vm1797_vm0, %v9432_v54  ;;  %15397 = vmatpush3.bf16.msra.mxu0 %v15394_v4  ;;  %v23026_v54 = vld [vmem:[#allocation115_spill] sm:$0xff]  ;;  %v23035_v4 = vld [vmem:[#allocation117_spill] sm:$0xff] }
 0xd45   : > { %15399 = vmatprep.subr.bf16.mxu0 %v15398_v47  ;;  %v23036_v33 = vpack.i.bf16 %v23034_v9, %v23035_v4 }
 0xd46   : > { %v21372_v41 = vpop.permute.xlu1 %16119 }
 0xd47   : > { %v21374_v10 = vpop.permute.xlu0 %16129  ;;  %14434 = vmatmul.mubr.msk.f32.gmra.mrb[166].mxu0 %vm1797_vm0, %v9433_v37  ;;  %v23027_v37 = vpack.i.bf16 %v23025_v60, %v23026_v54  ;;  %v23049_v60 = vld [vmem:[#allocation59_spill] sm:$0xff] }
 0xd48   : > { %15401 = vmatpush3.bf16.msra.mxu0 %v15398_v47  ;;  %v23037_v47 = vld [vmem:[#allocation31_spill] sm:$0xff] }
 0xd49   : > { %15403 = vmatprep.subr.bf16.mxu0 %v15402_v51  ;;  %v23039_v26 = vpack.i.bf16 %v23037_v47, %v23038_v49  ;;  %v23050_v54 = vld [vmem:[#allocation23_spill] sm:$0xff]  ;;  %v16091_v47 = vunpack.i.l.bf16 %v21344_v0  ;;  %v16097_v49 = vunpack.i.h.bf16 %v21347_v31 }
 0xd4a   : > { %v21377_v57 = vpop.permute.xlu1 %16134 }
 0xd4b   : > { %v21379_v8 = vpop.permute.xlu0 %16144 }
 0xd4c   : > { %15405 = vmatpush3.bf16.msra.mxu0 %v15402_v51 }
 0xd4d   : > { %15407 = vmatprep.subr.bf16.mxu0 %v15406_v21 }
 0xd4e   : > { %v21381_v5 = vpop.permute.xlu1 %16139 }
 0xd4f   : > { %v16150_v20 = vpop.permute.xlu0 %16149 }
 0xd50   : > { %v16152_v45 = vunpack.i.h.bf16 %v16150_v20  ;;  %v16151_v27 = vunpack.i.l.bf16 %v16150_v20  ;;  %15409 = vmatpush3.bf16.msra.mxu0 %v15406_v21  ;;  %v23028_v20 = vld [vmem:[#allocation35_spill] sm:$0xff] }
 0xd51   : > { %15411 = vmatprep.subr.bf16.mxu0 %v15410_v56 }
 0xd52   : > { %v16155_v11 = vpop.permute.xlu1 %16154  ;;  %v10706_v16 = vsel %vm1797_vm0, %v23021_v43, %v16151_v27  ;;  %v10707_v59 = vsel %vm1797_vm0, %v23022_v24, %v16152_v45  ;;  %v23029_v45 = vld [vmem:[#allocation120_spill] sm:$0xff] }
 0xd53   : > { %v16157_v53 = vunpack.i.h.bf16 %v16155_v11  ;;  %v16156_v15 = vunpack.i.l.bf16 %v16155_v11  ;;  %v23030_v27 = vpack.i.bf16 %v23028_v20, %v23029_v45  ;;  %v21477_v4 = vpop.permute.xlu0 %16164 }
 0xd54   : > { %15413 = vmatpush3.bf16.msra.mxu0 %v15410_v56 }
 0xd55   : > { %v21388_v28 = vsel %vm10726_vm2, %v10706_v16, %v16156_v15  ;;  %v21391_v61 = vsel %vm10726_vm2, %v10707_v59, %v16157_v53  ;;  %15415 = vmatprep.subr.bf16.mxu0 %v15414_v63  ;;  %v23031_v59 = vld [vmem:[#allocation63_spill] sm:$0xff] }
 0xd56   : > { %v16160_v46 = vpop.permute.xlu1 %16159 }
 0xd57   : > { %v16162_v22 = vunpack.i.h.bf16 %v16160_v46  ;;  %v16161_v14 = vunpack.i.l.bf16 %v16160_v46  ;;  %v23032_v46 = vld [vmem:[#allocation51_spill] sm:$0xff] }
 0xd58   : > { %15417 = vmatpush3.bf16.msra.mxu0 %v15414_v63  ;;  %v23042_v63 = vpack.i.bf16 %v23040_v30, %v23041_v18  ;;  %v23061_v30 = vld [vmem:[#allocation40_spill] sm:$0xff] }
 0xd59   : > { %v21395_v39 = vsel %vm1797_vm0, %v23023_v35, %v16161_v14  ;;  %v21399_v1 = vsel %vm1797_vm0, %v23024_v38, %v16162_v22  ;;  %15419 = vmatprep.subr.bf16.mxu0 %v15418_v7  ;;  %v23033_v22 = vpack.i.bf16 %v23031_v59, %v23032_v46 }
 0xd5c   : > { %15421 = vmatpush3.bf16.msra.mxu0 %v15418_v7  ;;  %v23045_v7 = vpack.i.bf16 %v23043_v50, %v23044_v23 }
 0xd5d   : > { %15423 = vmatprep.subr.bf16.mxu0 %v15422_v25 }
 0xd60   : > { %15425 = vmatpush3.bf16.msra.mxu0 %v15422_v25  ;;  %v23048_v25 = vpack.i.bf16 %v23046_v3, %v23047_v62 }
 0xda0   : > { %v14348_v58 = vpop.f32.mrb[152].mxu0 }
 0xda1   : > { %v9528_v48 = vpop.f32.mrb[153].mxu0 }
 0xda2   : > { %v16168_v2 = vpack.i.bf16 %v14348_v58, %v9528_v48 }
 0xda4   : > { %16169 = vrot.lane.b32.xlu0 %v16168_v2, %s17216_s0 }
 0xda5   : > { %v14351_v17 = vpop.f32.mrb[154].mxu0 }
 0xda6   : > { %v9538_v6 = vpop.f32.mrb[155].mxu0 }
 0xda7   : > { %v16183_v44 = vpack.i.bf16 %v14351_v17, %v9538_v6 }
 0xda8   : > { %16174 = vrot.lane.b32.xlu0 %v23027_v37, %s17218_s10  ;;  %v23051_v37 = vpack.i.bf16 %v23049_v60, %v23050_v54  ;;  %v16107_v60 = vunpack.i.h.bf16 %v21349_v42  ;;  %v16106_v54 = vunpack.i.l.bf16 %v21349_v42 }
 0xda9   : > { %16184 = vrot.lane.b32.xlu1 %v16183_v44, %s17216_s0 }
 0xdad   : > { %16189 = vrot.lane.b32.xlu1 %v23030_v27, %s17218_s10 }
 0xdd5   : > { %v14362_v11 = vpop.f32.mrb[168].mxu1 }
 0xdd6   : > { %v9637_v53 = vpop.f32.mrb[169].mxu1 }
 0xdd7   : > { %v16193_v15 = vpack.i.bf16 %v14362_v11, %v9637_v53  ;;  %v23052_v11 = vld [vmem:[#allocation123_spill] sm:$0xff]  ;;  %v23053_v53 = vld [vmem:[#allocation125_spill] sm:$0xff] }
 0xdd9   : > { %16194 = vrot.lane.b32.xlu0 %v16193_v15, %s17216_s0  ;;  %v14376_v43 = vpop.f32.mrb[156].mxu0  ;;  %v23054_v15 = vpack.i.bf16 %v23052_v11, %v23053_v53 }
 0xdda   : > { %v9746_v16 = vpop.f32.mrb[157].mxu0 }
 0xddb   : > { %v16203_v24 = vpack.i.bf16 %v14376_v43, %v9746_v16  ;;  %v23055_v43 = vld [vmem:[#allocation34_spill] sm:$0xff]  ;;  %v23056_v16 = vld [vmem:[#allocation55_spill] sm:$0xff] }
 0xddd   : > { %16199 = vrot.lane.b32.xlu0 %v23033_v22, %s17217_s4  ;;  %v14365_v14 = vpop.f32.mrb[170].mxu1 }
 0xdde   : > { %v9647_v35 = vpop.f32.mrb[171].mxu1 }
 0xddf   : > { %v16213_v38 = vpack.i.bf16 %v14365_v14, %v9647_v35  ;;  %v23058_v14 = vld [vmem:[#allocation66_spill] sm:$0xff]  ;;  %v23059_v35 = vld [vmem:[#allocation43_spill] sm:$0xff] }
 0xde1   : > { %16204 = vrot.lane.b32.xlu0 %v16203_v24, %s17216_s0  ;;  %16214 = vrot.lane.b32.xlu1 %v16213_v38, %s17216_s0  ;;  %v23057_v24 = vpack.i.bf16 %v23055_v43, %v23056_v16  ;;  %v23060_v38 = vpack.i.bf16 %v23058_v14, %v23059_v35  ;;  %v23065_v16 = vld [vmem:[#allocation126_spill] sm:$0xff] }
 0xde2   : > { %v23071_v35 = vld [vmem:[#allocation58_spill] sm:$0xff] }
 0xde4   : > { %v14379_v32 = vpop.f32.mrb[158].mxu0 }
 0xde5   : > { %16209 = vrot.lane.b32.xlu0 %v23036_v33, %s17218_s10  ;;  %v9756_v36 = vpop.f32.mrb[159].mxu0  ;;  %16219 = vrot.lane.b32.xlu1 %v23039_v26, %s17217_s4  ;;  %v16096_v26 = vunpack.i.l.bf16 %v21347_v31 }
 0xde6   : > { %v16223_v51 = vpack.i.bf16 %v14379_v32, %v9756_v36  ;;  %v16092_v36 = vunpack.i.h.bf16 %v21344_v0 }
 0xde7   : > { %v14390_v29 = vpop.f32.mrb[172].mxu1 }
 0xde8   : > { %v9855_v55 = vpop.f32.mrb[173].mxu1  ;;  %v10695_v18 = vsel %vm1797_vm0, %v23061_v30, %v16092_v36  ;;  %v16112_v36 = vunpack.i.h.bf16 %v21357_v12 }
 0xde9   : > { %v16233_v21 = vpack.i.bf16 %v14390_v29, %v9855_v55  ;;  %16224 = vrot.lane.b32.xlu1 %v16223_v51, %s17216_s0  ;;  %v16102_v55 = vunpack.i.h.bf16 %v21355_v13 }
 0xdeb   : > { %16234 = vrot.lane.b32.xlu0 %v16233_v21, %s17216_s0  ;;  %v14404_v52 = vpop.f32.mrb[160].mxu0  ;;  %v16101_v21 = vunpack.i.l.bf16 %v21355_v13  ;;  %v10728_v13 = vsel %vm10726_vm2, %v10695_v18, %v16097_v49  ;;  %v16117_v49 = vunpack.i.h.bf16 %v21364_v34  ;;  %v16122_v18 = vunpack.i.h.bf16 %v21372_v41 }
 0xdec   : > { %v9964_v19 = vpop.f32.mrb[161].mxu0 }
 0xded   : > { %v16243_v56 = vpack.i.bf16 %v14404_v52, %v9964_v19  ;;  %16229 = vrot.lane.b32.xlu1 %v23042_v63, %s17218_s10  ;;  %v21487_v63 = vpop.permute.xlu1 %16179 }
 0xdef   : > { %16239 = vrot.lane.b32.xlu0 %v23045_v7, %s17217_s4  ;;  %v23062_v7 = vld [vmem:[#allocation53_spill] sm:$0xff] }
 0xdf0   : > { %v10694_v31 = vsel %vm1797_vm0, %v23062_v7, %v16091_v47  ;;  %v16111_v47 = vunpack.i.l.bf16 %v21357_v12  ;;  %v16121_v12 = vunpack.i.l.bf16 %v21372_v41  ;;  %v16131_v7 = vunpack.i.l.bf16 %v21374_v10 }
 0xdf1   : > { %v10727_v62 = vsel %vm10726_vm2, %v10694_v31, %v16096_v26  ;;  %v16116_v26 = vunpack.i.l.bf16 %v21364_v34  ;;  %v23076_v31 = vld [vmem:[#allocation82_spill] sm:$0xff]  ;;  %v16127_v41 = vunpack.i.h.bf16 %v21366_v40 }
 0xdf3   : > { %16244 = vrot.lane.b32.xlu0 %v16243_v56, %s17216_s0 }
 0xdf7   : > { %16249 = vrot.lane.b32.xlu0 %v23048_v25, %s17218_s10 }
 0xdf8   : > { %v14393_v58 = vpop.f32.mrb[174].mxu1 }
 0xdf9   : > { %v9865_v48 = vpop.f32.mrb[175].mxu1 }
 0xdfa   : > { %v16253_v2 = vpack.i.bf16 %v14393_v58, %v9865_v48 }
 0xdfc   : > { %16254 = vrot.lane.b32.xlu1 %v16253_v2, %s17216_s0  ;;  %v14407_v17 = vpop.f32.mrb[162].mxu0  ;;  %v23063_v2 = vld [vmem:[#allocation45_spill] sm:$0xff] }
 0xdfd   : > { %v9974_v6 = vpop.f32.mrb[163].mxu0 }
 0xdfe   : > { %v16263_v44 = vpack.i.bf16 %v14407_v17, %v9974_v6  ;;  %v10696_v17 = vsel %vm1797_vm0, %v23063_v2, %v16101_v21  ;;  %v23064_v6 = vld [vmem:[#allocation39_spill] sm:$0xff] }
 0xdff   : > { %v10729_v53 = vsel %vm10726_vm2, %v10696_v17, %v16106_v54  ;;  %v16132_v17 = vunpack.i.h.bf16 %v21374_v10  ;;  %v16137_v54 = vunpack.i.h.bf16 %v21377_v57 }
 0xe00   : > { %16259 = vrot.lane.b32.xlu1 %v23051_v37, %s17217_s4  ;;  %v14418_v20 = vpop.f32.mrb[176].mxu1 }
 0xe01   : > { %v10073_v45 = vpop.f32.mrb[177].mxu1 }
 0xe02   : > { %v16273_v27 = vpack.i.bf16 %v14418_v20, %v10073_v45 }
 0xe04   : > { %16264 = vrot.lane.b32.xlu1 %v16263_v44, %s17216_s0  ;;  %16274 = vrot.lane.b32.xlu0 %v16273_v27, %s17216_s0  ;;  %v10697_v44 = vsel %vm1797_vm0, %v23064_v6, %v16102_v55  ;;  %v23074_v55 = vld [vmem:[#allocation86_spill] sm:$0xff] }
 0xe05   : > { %v10698_v21 = vsel %vm1797_vm0, %v23074_v55, %v16111_v47 }
 0xe08   : > { %16269 = vrot.lane.b32.xlu1 %v23054_v15, %s17218_s10  ;;  %16279 = vrot.lane.b32.xlu0 %v23057_v24, %s17217_s4  ;;  %v10730_v15 = vsel %vm10726_vm2, %v10697_v44, %v16107_v60  ;;  %v23066_v24 = vld [vmem:[#allocation124_spill] sm:$0xff] }
 0xe09   : > { %v14421_v59 = vpop.f32.mrb[178].mxu1 }
 0xe0a   : > { %v10083_v46 = vpop.f32.mrb[179].mxu1 }
 0xe0b   : > { %v16293_v22 = vpack.i.bf16 %v14421_v59, %v10083_v46  ;;  %v23067_v59 = vpack.i.bf16 %v23065_v16, %v23066_v24  ;;  %v23068_v46 = vld [vmem:[#allocation129_spill] sm:$0xff] }
 0xe0d   : > { %16294 = vrot.lane.b32.xlu1 %v16293_v22, %s17216_s0  ;;  %v23069_v22 = vld [vmem:[#allocation130_spill] sm:$0xff] }
 0xe0e   : > { %v23070_v14 = vpack.i.bf16 %v23068_v46, %v23069_v22  ;;  %v23080_v46 = vld [vmem:[#allocation95_spill] sm:$0xff] }
 0xe10   : > { %v14446_v32 = vpop.f32.mrb[180].mxu1 }
 0xe11   : > { %16299 = vrot.lane.b32.xlu1 %v23060_v38, %s17217_s4  ;;  %v10291_v9 = vpop.f32.mrb[181].mxu1  ;;  %v23072_v38 = vld [vmem:[#allocation69_spill] sm:$0xff] }
 0xe12   : > { %v16313_v33 = vpack.i.bf16 %v14446_v32, %v10291_v9  ;;  %v23073_v32 = vpack.i.bf16 %v23071_v35, %v23072_v38  ;;  %v16147_v38 = vunpack.i.h.bf16 %v21379_v8 }
 0xe14   : > { %v14449_v51 = vpop.f32.mrb[182].mxu1 }
 0xe15   : > { %v10301_v29 = vpop.f32.mrb[183].mxu1 }
 0xe16   : > { %v16323_v52 = vpack.i.bf16 %v14449_v51, %v10301_v29  ;;  %v16170_v19 = vpop.permute.xlu0 %16169  ;;  %v14432_v56 = vpop.f32.mrb[164].mxu0 }
 0xe17   : > { %v16172_v0 = vunpack.i.h.bf16 %v16170_v19  ;;  %v16171_v50 = vunpack.i.l.bf16 %v16170_v19  ;;  %v10182_v23 = vpop.f32.mrb[165].mxu0  ;;  %v23075_v19 = vld [vmem:[#allocation50_spill] sm:$0xff] }
 0xe18   : > { %v16283_v3 = vpack.i.bf16 %v14432_v56, %v10182_v23  ;;  %v10699_v56 = vsel %vm1797_vm0, %v23075_v19, %v16112_v36 }
 0xe19   : > { %v10760_v25 = vsel %vm10759_vm3, %v10727_v62, %v16171_v50  ;;  %v10761_v58 = vsel %vm10759_vm3, %v10728_v13, %v16172_v0  ;;  %v10732_v30 = vsel %vm10726_vm2, %v10699_v56, %v16117_v49  ;;  %v23077_v62 = vld [vmem:[#allocation89_spill] sm:$0xff] }
 0xe1a   : > { %v14435_v48 = vpop.f32.mrb[166].mxu0  ;;  %14482 = vmatprep.mubr.f32.mxu0 %v10760_v25  ;;  %16284 = vrot.lane.b32.xlu0 %v16283_v3, %s17216_s0  ;;  %v21521_v9 = vpop.permute.xlu0 %16174  ;;  %v10700_v3 = vsel %vm1797_vm0, %v23076_v31, %v16121_v12  ;;  %v10701_v13 = vsel %vm1797_vm0, %v23077_v62, %v16122_v18  ;;  %v16126_v25 = vunpack.i.l.bf16 %v21366_v40  ;;  %v16142_v40 = vunpack.i.h.bf16 %v21381_v5 }
 0xe1b   : > { %v16185_v37 = vpop.permute.xlu1 %16184  ;;  %v10192_v20 = vpop.f32.mrb[167].mxu0  ;;  %14483 = vmatmul.mubr.f32.vlgmr.msra.gmra.mrb[168].mxu0 %v10761_v58  ;;  %v16136_v58 = vunpack.i.l.bf16 %v21377_v57  ;;  %v16176_v12 = vunpack.i.l.bf16 %v21521_v9  ;;  %v16177_v31 = vunpack.i.h.bf16 %v21521_v9 }
 0xe1c   : > { %v16187_v45 = vunpack.i.h.bf16 %v16185_v37  ;;  %v16186_v27 = vunpack.i.l.bf16 %v16185_v37  ;;  %v16303_v11 = vpack.i.bf16 %v14435_v48, %v10192_v20  ;;  %v10733_v37 = vsel %vm10726_vm2, %v10700_v3, %v16126_v25 }
 0xe1d   : > { %v10734_v20 = vsel %vm10726_vm2, %v10701_v13, %v16127_v41  ;;  %v23082_v41 = vld [vmem:[#allocation93_spill] sm:$0xff]  ;;  %v16181_v25 = vunpack.i.l.bf16 %v21487_v63 }
 0xe1e   : > { %v10762_v43 = vsel %vm10759_vm3, %v10729_v53, %v16186_v27  ;;  %16289 = vrot.lane.b32.xlu0 %v23067_v59, %s17218_s10  ;;  %16304 = vrot.lane.b32.xlu1 %v16303_v11, %s17216_s0  ;;  %v10763_v42 = vsel %vm10759_vm3, %v10730_v15, %v16187_v45  ;;  %v23078_v45 = vld [vmem:[#allocation91_spill] sm:$0xff]  ;;  %v16141_v11 = vunpack.i.l.bf16 %v21381_v5  ;;  %v23079_v59 = vld [vmem:[#allocation94_spill] sm:$0xff] }
 0xe1f   : > { %14485 = vmatprep.mubr.f32.mxu0 %v10762_v43  ;;  %v21537_v50 = vpop.permute.xlu1 %16189  ;;  %v10702_v27 = vsel %vm1797_vm0, %v23078_v45, %v16131_v7  ;;  %v16166_v7 = vunpack.i.l.bf16 %v21477_v4 }
 0xe20   : > { %14486 = vmatmul.mubr.f32.gmra.mrb[170].mxu0 %v10763_v42  ;;  %v10735_v57 = vsel %vm10726_vm2, %v10702_v27, %v16136_v58  ;;  %v10703_v42 = vsel %vm1797_vm0, %v23079_v59, %v16132_v17  ;;  %v10704_v22 = vsel %vm1797_vm0, %v23080_v46, %v16141_v11  ;;  %v16192_v17 = vunpack.i.h.bf16 %v21537_v50  ;;  %v23084_v11 = vld [vmem:[#allocation92_spill] sm:$0xff] }
 0xe21   : > { %v10736_v5 = vsel %vm10726_vm2, %v10703_v42, %v16137_v54  ;;  %v10741_v58 = vsel %vm10726_vm2, %v21395_v39, %v16166_v7  ;;  %v23083_v39 = vld [vmem:[#allocation90_spill] sm:$0xff]  ;;  %v23085_v59 = vld [vmem:[#allocation88_spill] sm:$0xff] }
 0xe22   : > { %16309 = vrot.lane.b32.xlu1 %v23070_v14, %s17218_s10  ;;  %16314 = vrot.lane.b32.xlu0 %v16313_v33, %s17216_s0  ;;  %v23081_v14 = vld [vmem:[#allocation84_spill] sm:$0xff]  ;;  %v10713_v42 = vsel %vm1797_vm0, %v23085_v59, %v16192_v17 }
 0xe23   : > { %v10705_v35 = vsel %vm1797_vm0, %v23081_v14, %v16142_v40 }
 0xe26   : > { %16319 = vrot.lane.b32.xlu0 %v23073_v32, %s17217_s4  ;;  %16324 = vrot.lane.b32.xlu1 %v16323_v52, %s17216_s0  ;;  %v10731_v52 = vsel %vm10726_vm2, %v10698_v21, %v16116_v26  ;;  %v16146_v32 = vunpack.i.l.bf16 %v21379_v8 }
 0xe4b   : > { %v16195_v51 = vpop.permute.xlu0 %16194 }
 0xe4c   : > { %v16197_v29 = vunpack.i.h.bf16 %v16195_v51  ;;  %v16196_v33 = vunpack.i.l.bf16 %v16195_v51 }
 0xe4e   : > { %v10764_v0 = vsel %vm10759_vm3, %v10731_v52, %v16196_v33  ;;  %v10765_v34 = vsel %vm10759_vm3, %v10732_v30, %v16197_v29  ;;  %v10737_v29 = vsel %vm10726_vm2, %v10704_v22, %v16146_v32  ;;  %v10738_v33 = vsel %vm10726_vm2, %v10705_v35, %v16147_v38  ;;  %v23086_v22 = vld [vmem:[#allocation100_spill] sm:$0xff] }
 0xe4f   : > { %v21539_v23 = vpop.permute.xlu0 %16199  ;;  %14488 = vmatprep.mubr.f32.mxu0 %v10764_v0 }
 0xe50   : > { %14489 = vmatmul.mubr.f32.gmra.mrb[172].mxu0 %v10765_v34  ;;  %v16167_v34 = vunpack.i.h.bf16 %v21477_v4  ;;  %v16201_v27 = vunpack.i.l.bf16 %v21539_v23 }
 0xe53   : > { %v16215_v48 = vpop.permute.xlu1 %16214  ;;  %v16205_v2 = vpop.permute.xlu0 %16204 }
 0xe54   : > { %v16217_v6 = vunpack.i.h.bf16 %v16215_v48  ;;  %v16216_v44 = vunpack.i.l.bf16 %v16215_v48  ;;  %v16206_v60 = vunpack.i.l.bf16 %v16205_v2  ;;  %v16207_v15 = vunpack.i.h.bf16 %v16205_v2 }
 0xe55   : > { %v10742_v48 = vsel %vm10726_vm2, %v21399_v1, %v16167_v34  ;;  %v16191_v2 = vunpack.i.l.bf16 %v21537_v50  ;;  %v16182_v1 = vunpack.i.h.bf16 %v21487_v63  ;;  %v16202_v50 = vunpack.i.h.bf16 %v21539_v23 }
 0xe56   : > { %v10766_v53 = vsel %vm10759_vm3, %v10733_v37, %v16216_v44  ;;  %v10767_v10 = vsel %vm10759_vm3, %v10734_v20, %v16217_v6  ;;  %v10768_v16 = vsel %vm10759_vm3, %v10735_v57, %v16206_v60  ;;  %v10769_v47 = vsel %vm10759_vm3, %v10736_v5, %v16207_v15 }
 0xe57   : > { %v21559_v43 = vpop.permute.xlu1 %16219  ;;  %14491 = vmatprep.mubr.f32.mxu0 %v10766_v53  ;;  %v21563_v24 = vpop.permute.xlu0 %16209  ;;  %v10711_v37 = vsel %vm1797_vm0, %v23083_v39, %v16177_v31  ;;  %v10712_v53 = vsel %vm1797_vm0, %v23084_v11, %v16191_v2 }
 0xe58   : > { %14492 = vmatmul.mubr.f32.gmra.mrb[174].mxu0 %v10767_v10  ;;  %v16211_v20 = vunpack.i.l.bf16 %v21563_v24  ;;  %v10744_v40 = vsel %vm10726_vm2, %v10711_v37, %v16182_v1  ;;  %v16221_v10 = vunpack.i.l.bf16 %v21559_v43  ;;  %v16212_v15 = vunpack.i.h.bf16 %v21563_v24  ;;  %v23091_v37 = vld [vmem:[#allocation101_spill] sm:$0xff] }
 0xe59   : > { %14494 = vmatprep.mubr.f32.mxu0 %v10768_v16  ;;  %v16222_v35 = vunpack.i.h.bf16 %v21559_v43  ;;  %v10745_v38 = vsel %vm10726_vm2, %v10712_v53, %v16201_v27  ;;  %v10746_v24 = vsel %vm10726_vm2, %v10713_v42, %v16202_v50  ;;  %v23093_v53 = vld [vmem:[#allocation105_spill] sm:$0xff] }
 0xe5a   : > { %v10714_v14 = vsel %vm1797_vm0, %v23086_v22, %v16211_v20 }
 0xe5b   : > { %v16225_v36 = vpop.permute.xlu1 %16224 }
 0xe5c   : > { %v16227_v49 = vunpack.i.h.bf16 %v16225_v36  ;;  %v16226_v26 = vunpack.i.l.bf16 %v16225_v36  ;;  %14495 = vmatmul.mubr.f32.gmra.mrb[176].mxu0 %v10769_v47 }
 0xe5d   : > { %v16235_v51 = vpop.permute.xlu0 %16234 }
 0xe5e   : > { %v16236_v55 = vunpack.i.l.bf16 %v16235_v51  ;;  %v10770_v21 = vsel %vm10759_vm3, %v10737_v29, %v16226_v26  ;;  %v10771_v19 = vsel %vm10759_vm3, %v10738_v33, %v16227_v49  ;;  %v16237_v56 = vunpack.i.h.bf16 %v16235_v51  ;;  %v23087_v33 = vld [vmem:[#allocation99_spill] sm:$0xff] }
 0xe5f   : > { %14497 = vmatprep.mubr.f32.mxu0 %v10770_v21  ;;  %v21585_v18 = vpop.permute.xlu1 %16229  ;;  %v10747_v29 = vsel %vm10726_vm2, %v10714_v14, %v16221_v10  ;;  %v10715_v43 = vsel %vm1797_vm0, %v23087_v33, %v16212_v15  ;;  %v23094_v14 = vld [vmem:[#allocation108_spill] sm:$0xff] }
 0xe60   : > { %14498 = vmatmul.mubr.f32.gmra.mrb[178].mxu0 %v10771_v19  ;;  %v10772_v8 = vsel %vm10759_vm3, %v21388_v28, %v16236_v55  ;;  %v10773_v52 = vsel %vm10759_vm3, %v21391_v61, %v16237_v56  ;;  %v10710_v61 = vsel %vm1797_vm0, %v23082_v41, %v16176_v12  ;;  %v16232_v32 = vunpack.i.h.bf16 %v21585_v18 }
 0xe61   : > { %14500 = vmatprep.mubr.f32.mxu0 %v10772_v8  ;;  %v21583_v30 = vpop.permute.xlu0 %16239  ;;  %v10743_v54 = vsel %vm10726_vm2, %v10710_v61, %v16181_v25  ;;  %v16231_v36 = vunpack.i.l.bf16 %v21585_v18  ;;  %v10748_v56 = vsel %vm10726_vm2, %v10715_v43, %v16222_v35  ;;  %v23088_v8 = vld [vmem:[#allocation104_spill] sm:$0xff]  ;;  %v23089_v18 = vld [vmem:[#allocation103_spill] sm:$0xff] }
 0xe62   : > { %v16242_v21 = vunpack.i.h.bf16 %v21583_v30  ;;  %v16241_v19 = vunpack.i.l.bf16 %v21583_v30  ;;  %v10717_v12 = vsel %vm1797_vm0, %v23089_v18, %v16232_v32 }
 0xe64   : > { %14501 = vmatmul.mubr.f32.gmra.mrb[180].mxu0 %v10773_v52  ;;  %v10716_v52 = vsel %vm1797_vm0, %v23088_v8, %v16231_v36 }
 0xe65   : > { %v16245_v0 = vpop.permute.xlu0 %16244 }
 0xe66   : > { %v16246_v28 = vunpack.i.l.bf16 %v16245_v0  ;;  %v16247_v6 = vunpack.i.h.bf16 %v16245_v0 }
 0xe68   : > { %v10776_v45 = vsel %vm10759_vm3, %v10743_v54, %v16246_v28  ;;  %v10777_v16 = vsel %vm10759_vm3, %v10744_v40, %v16247_v6  ;;  %v10750_v28 = vsel %vm10726_vm2, %v10717_v12, %v16242_v21  ;;  %v23090_v54 = vld [vmem:[#allocation102_spill] sm:$0xff] }
 0xe69   : > { %v21602_v44 = vpop.permute.xlu0 %16249  ;;  %v23092_v40 = vld [vmem:[#allocation106_spill] sm:$0xff] }
 0xe6a   : > { %v16252_v41 = vunpack.i.h.bf16 %v21602_v44  ;;  %v16251_v61 = vunpack.i.l.bf16 %v21602_v44 }
 0xe6c   : > { %v10718_v39 = vsel %vm1797_vm0, %v23090_v54, %v16251_v61  ;;  %v10719_v1 = vsel %vm1797_vm0, %v23091_v37, %v16252_v41  ;;  %v21688_v41 = vld [vmem:[%s23099_s19] ss:$0 sm:$0xff]  ;;  %v11043_v54 = vld [vmem:[#allocation11 + $0x18] sm:$0xff] }
 0xe6e   : > { %v16255_v3 = vpop.permute.xlu1 %16254 }
 0xe6f   : > { %v16257_v62 = vunpack.i.h.bf16 %v16255_v3  ;;  %v16256_v13 = vunpack.i.l.bf16 %v16255_v3  ;;  %v10749_v3 = vsel %vm10726_vm2, %v10716_v52, %v16241_v19 }
 0xe71   : > { %v10774_v4 = vsel %vm10759_vm3, %v10741_v58, %v16256_v13  ;;  %v10775_v9 = vsel %vm10759_vm3, %v10742_v48, %v16257_v62 }
 0xe72   : > { %v21604_v60 = vpop.permute.xlu1 %16259  ;;  %14503 = vmatprep.mubr.f32.mxu0 %v10774_v4 }
 0xe73   : > { %14504 = vmatmul.mubr.f32.gmra.mrb[182].mxu0 %v10775_v9  ;;  %v16262_v25 = vunpack.i.h.bf16 %v21604_v60  ;;  %v16261_v58 = vunpack.i.l.bf16 %v21604_v60 }
 0xe74   : > { %14506 = vmatprep.mubr.f32.mxu0 %v10776_v45 }
 0xe75   : > { %v10751_v44 = vsel %vm10726_vm2, %v10718_v39, %v16261_v58  ;;  %v10752_v50 = vsel %vm10726_vm2, %v10719_v1, %v16262_v25  ;;  %v11041_v25 = vld [vmem:[#allocation11 + $0x8] sm:$0xff] }
 0xe76   : > { %v16265_v63 = vpop.permute.xlu1 %16264  ;;  %v16275_v57 = vpop.permute.xlu0 %16274 }
 0xe77   : > { %v16267_v5 = vunpack.i.h.bf16 %v16265_v63  ;;  %v16266_v46 = vunpack.i.l.bf16 %v16265_v63  ;;  %v16276_v23 = vunpack.i.l.bf16 %v16275_v57  ;;  %14507 = vmatmul.mubr.f32.gmra.mrb[184].mxu0 %v10777_v16  ;;  %v16277_v26 = vunpack.i.h.bf16 %v16275_v57 }
 0xe79   : > { %v10778_v47 = vsel %vm10759_vm3, %v10745_v38, %v16266_v46  ;;  %v10779_v49 = vsel %vm10759_vm3, %v10746_v24, %v16267_v5  ;;  %v10780_v55 = vsel %vm10759_vm3, %v10747_v29, %v16276_v23  ;;  %v10781_v34 = vsel %vm10759_vm3, %v10748_v56, %v16277_v26  ;;  %v23095_v38 = vld [vmem:[#allocation107_spill] sm:$0xff] }
 0xe7a   : > { %v16270_v51 = vpop.permute.xlu1 %16269  ;;  %14509 = vmatprep.mubr.f32.mxu0 %v10778_v47  ;;  %v16280_v13 = vpop.permute.xlu0 %16279 }
 0xe7b   : > { %14510 = vmatmul.mubr.f32.gmra.mrb[186].mxu0 %v10779_v49  ;;  %v16272_v48 = vunpack.i.h.bf16 %v16270_v51  ;;  %v16271_v2 = vunpack.i.l.bf16 %v16270_v51  ;;  %v16282_v20 = vunpack.i.h.bf16 %v16280_v13  ;;  %v16281_v45 = vunpack.i.l.bf16 %v16280_v13 }
 0xe7c   : > { %14512 = vmatprep.mubr.f32.mxu0 %v10780_v55 }
 0xe7d   : > { %v10720_v11 = vsel %vm1797_vm0, %v23092_v40, %v16271_v2  ;;  %v10721_v10 = vsel %vm1797_vm0, %v23093_v53, %v16272_v48  ;;  %v11040_v2 = vld [vmem:[#allocation11] sm:$0xff] }
 0xe7e   : > { %v10753_v5 = vsel %vm10726_vm2, %v10720_v11, %v16281_v45  ;;  %v10754_v46 = vsel %vm10726_vm2, %v10721_v10, %v16282_v20  ;;  %v11042_v45 = vld [vmem:[#allocation11 + $0x10] sm:$0xff]  ;;  %v11044_v11 = vld [vmem:[#allocation11 + $0x20] sm:$0xff] }
 0xe7f   : > { %v16295_v0 = vpop.permute.xlu1 %16294  ;;  %14513 = vmatmul.mubr.f32.gmra.mrb[188].mxu0 %v10781_v34  ;;  %v23096_v34 = vld [vmem:[#allocation110_spill] sm:$0xff] }
 0xe80   : > { %v16297_v7 = vunpack.i.h.bf16 %v16295_v0  ;;  %v16296_v31 = vunpack.i.l.bf16 %v16295_v0 }
 0xe82   : > { %v10782_v30 = vsel %vm10759_vm3, %v10749_v3, %v16296_v31  ;;  %v10783_v62 = vsel %vm10759_vm3, %v10750_v28, %v16297_v7  ;;  %v23097_v31 = vld [vmem:[#allocation109_spill] sm:$0xff] }
 0xe83   : > { %14515 = vmatprep.mubr.f32.mxu0 %v10782_v30  ;;  %v16300_v4 = vpop.permute.xlu1 %16299 }
 0xe84   : > { %14516 = vmatmul.mubr.f32.gmra.mrb[190].mxu0 %v10783_v62  ;;  %v16302_v32 = vunpack.i.h.bf16 %v16300_v4  ;;  %v16301_v36 = vunpack.i.l.bf16 %v16300_v4 }
 0xe8c   : > { %v16285_v9 = vpop.permute.xlu0 %16284 }
 0xe8d   : > { %v16287_v17 = vunpack.i.h.bf16 %v16285_v9  ;;  %v16286_v6 = vunpack.i.l.bf16 %v16285_v9 }
 0xe8f   : > { %v10784_v60 = vsel %vm10759_vm3, %v10751_v44, %v16286_v6  ;;  %v10785_v27 = vsel %vm10759_vm3, %v10752_v50, %v16287_v17 }
 0xe90   : > { %v16290_v15 = vpop.permute.xlu0 %16289  ;;  %v16305_v63 = vpop.permute.xlu1 %16304  ;;  %14518 = vmatprep.mubr.f32.mxu0 %v10784_v60  ;;  %v11045_v60 = vld [vmem:[#allocation11 + $0x28] sm:$0xff] }
 0xe91   : > { %v16292_v57 = vunpack.i.h.bf16 %v16290_v15  ;;  %v16291_v16 = vunpack.i.l.bf16 %v16290_v15  ;;  %v16307_v59 = vunpack.i.h.bf16 %v16305_v63  ;;  %v16306_v42 = vunpack.i.l.bf16 %v16305_v63  ;;  %14519 = vmatmul.mubr.f32.gmra.mrb[192].mxu0 %v10785_v27 }
 0xe93   : > { %v10786_v23 = vsel %vm10759_vm3, %v10753_v5, %v16306_v42  ;;  %v10787_v22 = vsel %vm10759_vm3, %v10754_v46, %v16307_v59  ;;  %v10722_v35 = vsel %vm1797_vm0, %v23094_v14, %v16291_v16  ;;  %v10723_v24 = vsel %vm1797_vm0, %v23095_v38, %v16292_v57  ;;  %v11047_v57 = vld [vmem:[#allocation11 + $0x38] sm:$0xff]  ;;  %v11046_v42 = vld [vmem:[#allocation11 + $0x30] sm:$0xff]  ;;  %v11049_v14 = vld [vmem:[#allocation11 + $0x48] sm:$0xff] }
 0xe94   : > { %v16310_v47 = vpop.permute.xlu1 %16309  ;;  %14521 = vmatprep.mubr.f32.mxu0 %v10786_v23  ;;  %v16315_v49 = vpop.permute.xlu0 %16314  ;;  %v10755_v43 = vsel %vm10726_vm2, %v10722_v35, %v16301_v36  ;;  %v10756_v55 = vsel %vm10726_vm2, %v10723_v24, %v16302_v32  ;;  %v11048_v24 = vld [vmem:[#allocation11 + $0x40] sm:$0xff] }
 0xe95   : > { %v16317_v26 = vunpack.i.h.bf16 %v16315_v49  ;;  %v16316_v51 = vunpack.i.l.bf16 %v16315_v49  ;;  %14522 = vmatmul.mubr.f32.gmra.mrb[194].mxu0 %v10787_v22  ;;  %v16312_v29 = vunpack.i.h.bf16 %v16310_v47  ;;  %v16311_v33 = vunpack.i.l.bf16 %v16310_v47 }
 0xe97   : > { %v10788_v21 = vsel %vm10759_vm3, %v10755_v43, %v16316_v51  ;;  %v10789_v19 = vsel %vm10759_vm3, %v10756_v55, %v16317_v26  ;;  %v10724_v7 = vsel %vm1797_vm0, %v23096_v34, %v16311_v33  ;;  %v10725_v3 = vsel %vm1797_vm0, %v23097_v31, %v16312_v29  ;;  %v11051_v26 = vld [vmem:[#allocation11 + $0x58] sm:$0xff]  ;;  %v11050_v33 = vld [vmem:[#allocation11 + $0x50] sm:$0xff] }
 0xe98   : > { %v16320_v56 = vpop.permute.xlu0 %16319  ;;  %14524 = vmatprep.mubr.f32.mxu0 %v10788_v21  ;;  %v16325_v8 = vpop.permute.xlu1 %16324  ;;  %v11055_v31 = vld [vmem:[#allocation11 + $0x78] sm:$0xff] }
 0xe99   : > { %v16322_v52 = vunpack.i.h.bf16 %v16320_v56  ;;  %v16321_v18 = vunpack.i.l.bf16 %v16320_v56  ;;  %v16327_v12 = vunpack.i.h.bf16 %v16325_v8  ;;  %v16326_v0 = vunpack.i.l.bf16 %v16325_v8  ;;  %14525 = vmatmul.mubr.f32.gmra.mrb[196].mxu0 %v10789_v19  ;;  %v11053_v56 = vld [vmem:[#allocation11 + $0x68] sm:$0xff] }
 0xe9b   : > { %v10757_v28 = vsel %vm10726_vm2, %v10724_v7, %v16321_v18  ;;  %v10758_v30 = vsel %vm10726_vm2, %v10725_v3, %v16322_v52  ;;  %v11052_v18 = vld [vmem:[#allocation11 + $0x60] sm:$0xff] }
 0xe9c   : > { %v10790_v62 = vsel %vm10759_vm3, %v10757_v28, %v16326_v0  ;;  %v10791_v13 = vsel %vm10759_vm3, %v10758_v30, %v16327_v12  ;;  %v11054_v30 = vld [vmem:[#allocation11 + $0x70] sm:$0xff] }
 0xe9d   : > { %14527 = vmatprep.mubr.f32.mxu0 %v10790_v62 }
 0xe9e   : > { %14528 = vmatmul.mubr.f32.gmra.mrb[198].mxu0 %v10791_v13 }
 0xeee   : > { %v14484_v61 = vpop.f32.mrb[168].mxu0 }
 0xeef   : > { %v10887_v58 = vadd.f32 %v14484_v61, %v21688_v41  ;;  %v10881_v48 = vpop.f32.mrb[169].mxu0 }
 0xef0   : > { %v10882_v4 = vadd.f32 %v21688_v41, %v10881_v48 }
 0xef1   : > { %v21692_v9 = vadd.f32 %v11041_v25, %v10887_v58  ;;  %v11057_v58 = vld [vmem:[#allocation11 + $0x88] sm:$0xff] }
 0xef2   : > { %v21694_v17 = vadd.f32 %v11040_v2, %v10882_v4  ;;  %v11056_v4 = vld [vmem:[#allocation11 + $0x80] sm:$0xff] }
 0xef3   : > { %v14487_v6 = vpop.f32.mrb[170].mxu0  ;;  %11108 = vadd.xlane.f32.xlu1 %v21692_v9 }
 0xef4   : > { %v10897_v39 = vadd.f32 %v14487_v6, %v21688_v41  ;;  %v10891_v37 = vpop.f32.mrb[171].mxu0  ;;  %11106 = vadd.xlane.f32.xlu0 %v21694_v17 }
 0xef5   : > { %v10892_v20 = vadd.f32 %v21688_v41, %v10891_v37 }
 0xef6   : > { %v21699_v1 = vadd.f32 %v11043_v54, %v10897_v39 }
 0xef7   : > { %v21703_v44 = vadd.f32 %v11042_v45, %v10892_v20  ;;  %v11059_v20 = vld [vmem:[#allocation11 + $0x98] sm:$0xff] }
 0xef8   : > { %11112 = vadd.xlane.f32.xlu0 %v21699_v1 }
 0xefc   : > { %11110 = vadd.xlane.f32.xlu0 %v21703_v44 }
 0xf23   : > { %v14490_v50 = vpop.f32.mrb[172].mxu0 }
 0xf24   : > { %v10907_v27 = vadd.f32 %v14490_v50, %v21688_v41  ;;  %v10901_v40 = vpop.f32.mrb[173].mxu0 }
 0xf25   : > { %v10902_v53 = vadd.f32 %v21688_v41, %v10901_v40 }
 0xf26   : > { %v21708_v10 = vadd.f32 %v11045_v60, %v10907_v27  ;;  %v11058_v60 = vld [vmem:[#allocation11 + $0x90] sm:$0xff] }
 0xf27   : > { %v21710_v15 = vadd.f32 %v11044_v11, %v10902_v53 }
 0xf28   : > { %11116 = vadd.xlane.f32.xlu1 %v21708_v10 }
 0xf29   : > { %11114 = vadd.xlane.f32.xlu0 %v21710_v15 }
 0xf2b   : > { %v14493_v63 = vpop.f32.mrb[174].mxu0 }
 0xf2c   : > { %v10917_v16 = vadd.f32 %v14493_v63, %v21688_v41  ;;  %v10911_v59 = vpop.f32.mrb[175].mxu0  ;;  %v11061_v63 = vld [vmem:[#allocation11 + $0xa8] sm:$0xff] }
 0xf2d   : > { %v10912_v5 = vadd.f32 %v21688_v41, %v10911_v59  ;;  %v11060_v59 = vld [vmem:[#allocation11 + $0xa0] sm:$0xff] }
 0xf2e   : > { %v21716_v46 = vadd.f32 %v11047_v57, %v10917_v16 }
 0xf2f   : > { %v21718_v23 = vadd.f32 %v11046_v42, %v10912_v5  ;;  %v14496_v22 = vpop.f32.mrb[176].mxu0 }
 0xf30   : > { %v10927_v35 = vadd.f32 %v14496_v22, %v21688_v41  ;;  %v10921_v38 = vpop.f32.mrb[177].mxu0  ;;  %11120 = vadd.xlane.f32.xlu1 %v21716_v46 }
 0xf31   : > { %v10922_v32 = vadd.f32 %v21688_v41, %v10921_v38  ;;  %11118 = vadd.xlane.f32.xlu0 %v21718_v23 }
 0xf32   : > { %v21724_v36 = vadd.f32 %v11049_v14, %v10927_v35  ;;  %v11063_v35 = vld [vmem:[#allocation11 + $0xb8] sm:$0xff] }
 0xf33   : > { %v21726_v47 = vadd.f32 %v11048_v24, %v10922_v32  ;;  %v14499_v49 = vpop.f32.mrb[178].mxu0  ;;  %v11062_v32 = vld [vmem:[#allocation11 + $0xb0] sm:$0xff] }
 0xf34   : > { %v10937_v51 = vadd.f32 %v14499_v49, %v21688_v41  ;;  %v10931_v29 = vpop.f32.mrb[179].mxu0  ;;  %11124 = vadd.xlane.f32.xlu1 %v21724_v36 }
 0xf35   : > { %v10932_v43 = vadd.f32 %v21688_v41, %v10931_v29  ;;  %11122 = vadd.xlane.f32.xlu0 %v21726_v47 }
 0xf36   : > { %v21732_v55 = vadd.f32 %v11051_v26, %v10937_v51 }
 0xf37   : > { %v21734_v21 = vadd.f32 %v11050_v33, %v10932_v43  ;;  %v14502_v19 = vpop.f32.mrb[180].mxu0  ;;  %v11065_v33 = vld [vmem:[#allocation11 + $0xc8] sm:$0xff] }
 0xf38   : > { %v10947_v8 = vadd.f32 %v14502_v19, %v21688_v41  ;;  %v10941_v52 = vpop.f32.mrb[181].mxu0  ;;  %11128 = vadd.xlane.f32.xlu1 %v21732_v55 }
 0xf39   : > { %v10942_v12 = vadd.f32 %v21688_v41, %v10941_v52  ;;  %11126 = vadd.xlane.f32.xlu0 %v21734_v21 }
 0xf3a   : > { %v21740_v0 = vadd.f32 %v11053_v56, %v10947_v8  ;;  %v11064_v56 = vld [vmem:[#allocation11 + $0xc0] sm:$0xff] }
 0xf3b   : > { %v21742_v34 = vadd.f32 %v11052_v18, %v10942_v12 }
 0xf3c   : > { %11132 = vadd.xlane.f32.xlu1 %v21740_v0 }
 0xf3d   : > { %11130 = vadd.xlane.f32.xlu0 %v21742_v34 }
 0xf46   : > { %v14505_v7 = vpop.f32.mrb[182].mxu0 }
 0xf47   : > { %v10957_v3 = vadd.f32 %v14505_v7, %v21688_v41  ;;  %v10951_v28 = vpop.f32.mrb[183].mxu0  ;;  %v11067_v7 = vld [vmem:[#allocation11 + $0xd8] sm:$0xff] }
 0xf48   : > { %v10952_v62 = vadd.f32 %v21688_v41, %v10951_v28  ;;  %v11066_v28 = vld [vmem:[#allocation11 + $0xd0] sm:$0xff] }
 0xf49   : > { %v21748_v13 = vadd.f32 %v11055_v31, %v10957_v3 }
 0xf4a   : > { %v21750_v61 = vadd.f32 %v11054_v30, %v10952_v62  ;;  %v14508_v25 = vpop.f32.mrb[184].mxu0 }
 0xf4b   : > { %v10967_v48 = vadd.f32 %v14508_v25, %v21688_v41  ;;  %v10961_v2 = vpop.f32.mrb[185].mxu0  ;;  %11136 = vadd.xlane.f32.xlu1 %v21748_v13 }
 0xf4c   : > { %v10962_v6 = vadd.f32 %v21688_v41, %v10961_v2  ;;  %11134 = vadd.xlane.f32.xlu0 %v21750_v61 }
 0xf4d   : > { %v21756_v54 = vadd.f32 %v11057_v58, %v10967_v48  ;;  %v11069_v48 = vld [vmem:[#allocation11 + $0xe8] sm:$0xff] }
 0xf4e   : > { %v21758_v39 = vadd.f32 %v11056_v4, %v10962_v6  ;;  %v14511_v37 = vpop.f32.mrb[186].mxu0  ;;  %v11068_v6 = vld [vmem:[#allocation11 + $0xe0] sm:$0xff] }
 0xf4f   : > { %23100 = vst [vmem:[#allocation65_spill] sm:$0xff] %v21756_v54  ;;  %v10977_v45 = vadd.f32 %v14511_v37, %v21688_v41  ;;  %v10971_v50 = vpop.f32.mrb[187].mxu0  ;;  %11140 = vadd.xlane.f32.xlu1 %v21756_v54 }
 0xf50   : > { %23101 = vst [vmem:[#allocation60_spill] sm:$0xff] %v21758_v39  ;;  %v10972_v27 = vadd.f32 %v21688_v41, %v10971_v50  ;;  %11138 = vadd.xlane.f32.xlu0 %v21758_v39 }
 0xf51   : > { %v21764_v40 = vadd.f32 %v11059_v20, %v10977_v45 }
 0xf52   : > { %v21766_v11 = vadd.f32 %v11058_v60, %v10972_v27  ;;  %v14514_v53 = vpop.f32.mrb[188].mxu0  ;;  %v11071_v60 = vld [vmem:[#allocation11 + $0xf8] sm:$0xff] }
 0xf53   : > { %23102 = vst [vmem:[#allocation37_spill] sm:$0xff] %v21764_v40  ;;  %v10987_v57 = vadd.f32 %v14514_v53, %v21688_v41  ;;  %v10981_v16 = vpop.f32.mrb[189].mxu0  ;;  %11144 = vadd.xlane.f32.xlu1 %v21764_v40 }
 0xf54   : > { %23103 = vst [vmem:[#allocation70_spill] sm:$0xff] %v21766_v11  ;;  %v10982_v42 = vadd.f32 %v21688_v41, %v10981_v16  ;;  %11142 = vadd.xlane.f32.xlu0 %v21766_v11 }
 0xf55   : > { %v21772_v5 = vadd.f32 %v11061_v63, %v10987_v57  ;;  %v11070_v63 = vld [vmem:[#allocation11 + $0xf0] sm:$0xff] }
 0xf56   : > { %v21774_v22 = vadd.f32 %v11060_v59, %v10982_v42 }
 0xf57   : > { %23104 = vst [vmem:[#allocation61_spill] sm:$0xff] %v21772_v5  ;;  %v14517_v14 = vpop.f32.mrb[190].mxu0  ;;  %11148 = vadd.xlane.f32.xlu1 %v21772_v5 }
 0xf58   : > { %23105 = vst [vmem:[#allocation73_spill] sm:$0xff] %v21774_v22  ;;  %v10997_v38 = vadd.f32 %v14517_v14, %v21688_v41  ;;  %v10991_v24 = vpop.f32.mrb[191].mxu0  ;;  %11146 = vadd.xlane.f32.xlu0 %v21774_v22 }
 0xf59   : > { %v10992_v49 = vadd.f32 %v21688_v41, %v10991_v24 }
 0xf5a   : > { %v21780_v26 = vadd.f32 %v11063_v35, %v10997_v38 }
 0xf5b   : > { %v21782_v51 = vadd.f32 %v11062_v32, %v10992_v49 }
 0xf5c   : > { %23106 = vst [vmem:[#allocation67_spill] sm:$0xff] %v21780_v26  ;;  %11152 = vadd.xlane.f32.xlu1 %v21780_v26 }
 0xf5d   : > { %23107 = vst [vmem:[#allocation75_spill] sm:$0xff] %v21782_v51  ;;  %11150 = vadd.xlane.f32.xlu0 %v21782_v51 }
 0xf64   : > { %v14520_v29 = vpop.f32.mrb[192].mxu0 }
 0xf65   : > { %v11007_v43 = vadd.f32 %v14520_v29, %v21688_v41  ;;  %v11001_v19 = vpop.f32.mrb[193].mxu0 }
 0xf66   : > { %v11002_v8 = vadd.f32 %v21688_v41, %v11001_v19 }
 0xf67   : > { %v21788_v52 = vadd.f32 %v11065_v33, %v11007_v43 }
 0xf68   : > { %v21790_v18 = vadd.f32 %v11064_v56, %v11002_v8  ;;  %v14523_v12 = vpop.f32.mrb[194].mxu0 }
 0xf69   : > { %23108 = vst [vmem:[#allocation64_spill] sm:$0xff] %v21788_v52  ;;  %v11017_v31 = vadd.f32 %v14523_v12, %v21688_v41  ;;  %v11011_v3 = vpop.f32.mrb[195].mxu0  ;;  %11156 = vadd.xlane.f32.xlu1 %v21788_v52  ;;  %v11534_v12 = vld [vmem:[%s17564_s9] sm:$0xff] }
 0xf6a   : > { %23109 = vst [vmem:[#allocation27_spill] sm:$0xff] %v21790_v18  ;;  %v11012_v30 = vadd.f32 %v21688_v41, %v11011_v3  ;;  %11154 = vadd.xlane.f32.xlu0 %v21790_v18 }
 0xf6b   : > { %v21796_v62 = vadd.f32 %v11067_v7, %v11017_v31  ;;  %v11535_v7 = vld [vmem:[%s17564_s9 + $0x8] sm:$0xff]  ;;  %v11536_v31 = vld [vmem:[%s17564_s9 + $0x10] sm:$0xff] }
 0xf6c   : > { %v21798_v25 = vadd.f32 %v11066_v28, %v11012_v30  ;;  %v14526_v58 = vpop.f32.mrb[196].mxu0  ;;  %v15426_v28 = vpack.c.bf16 %v11535_v7, %v11534_v12  ;;  %v11537_v30 = vld [vmem:[%s17564_s9 + $0x18] sm:$0xff] }
 0xf6d   : > { %23110 = vst [vmem:[#allocation77_spill] sm:$0xff] %v21796_v62  ;;  %v11027_v2 = vadd.f32 %v14526_v58, %v21688_v41  ;;  %v11021_v4 = vpop.f32.mrb[197].mxu0  ;;  %11160 = vadd.xlane.f32.xlu1 %v21796_v62  ;;  %v15430_v58 = vpack.c.bf16 %v11537_v30, %v11536_v31 }
 0xf6e   : > { %23111 = vst [vmem:[#allocation68_spill] sm:$0xff] %v21798_v25  ;;  %v11022_v37 = vadd.f32 %v21688_v41, %v11021_v4  ;;  %11158 = vadd.xlane.f32.xlu0 %v21798_v25  ;;  %15427 = vmatprep.subr.bf16.mxu1 %v15426_v28 }
 0xf6f   : > { %v21804_v20 = vadd.f32 %v11069_v48, %v11027_v2  ;;  %v11538_v48 = vld [vmem:[%s17564_s9 + $0x20] sm:$0xff]  ;;  %v11539_v2 = vld [vmem:[%s17564_s9 + $0x28] sm:$0xff]  ;;  %15429 = vmatpush3.bf16.msra.mxu1 %v15426_v28 }
 0xf70   : > { %v21806_v45 = vadd.f32 %v11068_v6, %v11022_v37  ;;  %15431 = vmatprep.subr.bf16.mxu1 %v15430_v58  ;;  %v15434_v6 = vpack.c.bf16 %v11539_v2, %v11538_v48  ;;  %v11540_v37 = vld [vmem:[%s17564_s9 + $0x30] sm:$0xff] }
 0xf71   : > { %23112 = vst [vmem:[#allocation30_spill] sm:$0xff] %v21804_v20  ;;  %11164 = vadd.xlane.f32.xlu1 %v21804_v20  ;;  %v14529_v50 = vpop.f32.mrb[198].mxu0 }
 0xf72   : > { %23113 = vst [vmem:[#allocation128_spill] sm:$0xff] %v21806_v45  ;;  %v11037_v27 = vadd.f32 %v14529_v50, %v21688_v41  ;;  %11162 = vadd.xlane.f32.xlu0 %v21806_v45  ;;  %v11031_v53 = vpop.f32.mrb[199].mxu0  ;;  %v11541_v50 = vld [vmem:[%s17564_s9 + $0x38] sm:$0xff] }
 0xf73   : > { %v11032_v57 = vadd.f32 %v21688_v41, %v11031_v53  ;;  %15433 = vmatpush3.bf16.msra.mxu1 %v15430_v58  ;;  %v11543_v53 = vld [vmem:[%s17564_s9 + $0x48] sm:$0xff] }
 0xf74   : > { %v21812_v16 = vadd.f32 %v11071_v60, %v11037_v27  ;;  %15435 = vmatprep.subr.bf16.mxu1 %v15434_v6  ;;  %v15438_v60 = vpack.c.bf16 %v11541_v50, %v11540_v37  ;;  %v11542_v27 = vld [vmem:[%s17564_s9 + $0x40] sm:$0xff] }
 0xf75   : > { %v21814_v59 = vadd.f32 %v11070_v63, %v11032_v57  ;;  %v15442_v63 = vpack.c.bf16 %v11543_v53, %v11542_v27  ;;  %v11544_v57 = vld [vmem:[%s17564_s9 + $0x50] sm:$0xff] }
 0xf76   : > { %23114 = vst [vmem:[#allocation71_spill] sm:$0xff] %v21812_v16  ;;  %11168 = vadd.xlane.f32.xlu1 %v21812_v16 }
 0xf77   : > { %23115 = vst [vmem:[#allocation72_spill] sm:$0xff] %v21814_v59  ;;  %11166 = vadd.xlane.f32.xlu0 %v21814_v59  ;;  %15437 = vmatpush3.bf16.msra.mxu1 %v15434_v6 }
 0xf78   : > { %15439 = vmatprep.subr.bf16.mxu1 %v15438_v60 }
 0xf7b   : > { %15441 = vmatpush3.bf16.msra.mxu1 %v15438_v60 }
 0xf7c   : > { %15443 = vmatprep.subr.bf16.mxu1 %v15442_v63 }
 0xf7f   : > { %15445 = vmatpush3.bf16.msra.mxu1 %v15442_v63 }
 0xf80   : > { %v11109_v42 = vpop.xlane.xlu1 %11108 }
 0xf81   : > { %v11171_v14 = vmul.f32 0.0078125, %v11109_v42  ;;  %v11107_v35 = vpop.xlane.xlu0 %11106  ;;  %v11545_v42 = vld [vmem:[%s17564_s9 + $0x58] sm:$0xff] }
 0xf82   : > { %v11170_v38 = vmul.f32 0.0078125, %v11107_v35  ;;  %v11546_v35 = vld [vmem:[%s17564_s9 + $0x60] sm:$0xff] }
 0xf83   : > { %v21819_v24 = vsub.f32 %v21692_v9, %v11171_v14  ;;  %v15446_v14 = vpack.c.bf16 %v11545_v42, %v11544_v57 }
 0xf84   : > { %v21822_v41 = vsub.f32 %v21694_v17, %v11170_v38  ;;  %v11547_v38 = vld [vmem:[%s17564_s9 + $0x68] sm:$0xff] }
 0xf85   : > { %v11113_v32 = vpop.xlane.xlu0 %11112  ;;  %v11235_v49 = vmul.f32 %v21819_v24, %v21819_v24  ;;  %15447 = vmatprep.subr.bf16.mxu1 %v15446_v14 }
 0xf86   : > { %v11173_v29 = vmul.f32 0.0078125, %v11113_v32  ;;  %v11234_v33 = vmul.f32 %v21822_v41, %v21822_v41  ;;  %15449 = vmatpush3.bf16.msra.mxu1 %v15446_v14  ;;  %v15450_v32 = vpack.c.bf16 %v11547_v38, %v11546_v35 }
 0xf87   : > { %11268 = vadd.xlane.f32.xlu1 %v11235_v49  ;;  %v11548_v49 = vld [vmem:[%s17564_s9 + $0x70] sm:$0xff] }
 0xf88   : > { %v21829_v43 = vsub.f32 %v21699_v1, %v11173_v29  ;;  %11266 = vadd.xlane.f32.xlu0 %v11234_v33  ;;  %v11549_v29 = vld [vmem:[%s17564_s9 + $0x78] sm:$0xff]  ;;  %15451 = vmatprep.subr.bf16.mxu1 %v15450_v32 }
 0xf89   : > { %v11111_v19 = vpop.xlane.xlu0 %11110  ;;  %v15454_v33 = vpack.c.bf16 %v11549_v29, %v11548_v49 }
 0xf8a   : > { %v11172_v56 = vmul.f32 0.0078125, %v11111_v19  ;;  %v11237_v8 = vmul.f32 %v21829_v43, %v21829_v43  ;;  %15453 = vmatpush3.bf16.msra.mxu1 %v15450_v32 }
 0xf8b   : > { %15455 = vmatprep.subr.bf16.mxu1 %v15454_v33 }
 0xf8c   : > { %v21837_v3 = vsub.f32 %v21703_v44, %v11172_v56  ;;  %11272 = vadd.xlane.f32.xlu1 %v11237_v8 }
 0xf8e   : > { %v11236_v4 = vmul.f32 %v21837_v3, %v21837_v3  ;;  %15457 = vmatpush3.bf16.msra.mxu1 %v15454_v33 }
 0xf90   : > { %11270 = vadd.xlane.f32.xlu0 %v11236_v4 }
 0xfb5   : > { %v11117_v19 = vpop.xlane.xlu1 %11116 }
 0xfb6   : > { %v11175_v56 = vmul.f32 0.0078125, %v11117_v19  ;;  %v11115_v8 = vpop.xlane.xlu0 %11114 }
 0xfb7   : > { %v11174_v12 = vmul.f32 0.0078125, %v11115_v8 }
 0xfb8   : > { %v21855_v7 = vsub.f32 %v21708_v10, %v11175_v56 }
 0xfb9   : > { %v21858_v31 = vsub.f32 %v21710_v15, %v11174_v12 }
 0xfba   : > { %v11239_v28 = vmul.f32 %v21855_v7, %v21855_v7 }
 0xfbb   : > { %v11238_v30 = vmul.f32 %v21858_v31, %v21858_v31 }
 0xfbc   : > { %11276 = vadd.xlane.f32.xlu1 %v11239_v28 }
 0xfbd   : > { %v11121_v58 = vpop.xlane.xlu1 %11120  ;;  %11274 = vadd.xlane.f32.xlu0 %v11238_v30 }
 0xfbe   : > { %v11177_v48 = vmul.f32 0.0078125, %v11121_v58  ;;  %v11119_v2 = vpop.xlane.xlu0 %11118 }
 0xfbf   : > { %v11176_v4 = vmul.f32 0.0078125, %v11119_v2 }
 0xfc0   : > { %v21865_v6 = vsub.f32 %v21716_v46, %v11177_v48 }
 0xfc1   : > { %v21868_v37 = vsub.f32 %v21718_v23, %v11176_v4  ;;  %v11125_v50 = vpop.xlane.xlu1 %11124 }
 0xfc2   : > { %v11179_v60 = vmul.f32 0.0078125, %v11125_v50  ;;  %v11123_v27 = vpop.xlane.xlu0 %11122  ;;  %v11241_v53 = vmul.f32 %v21865_v6, %v21865_v6 }
 0xfc3   : > { %v11178_v63 = vmul.f32 0.0078125, %v11123_v27  ;;  %v11240_v57 = vmul.f32 %v21868_v37, %v21868_v37 }
 0xfc4   : > { %v21875_v42 = vsub.f32 %v21724_v36, %v11179_v60  ;;  %11280 = vadd.xlane.f32.xlu1 %v11241_v53 }
 0xfc5   : > { %v21878_v14 = vsub.f32 %v21726_v47, %v11178_v63  ;;  %v11129_v35 = vpop.xlane.xlu1 %11128  ;;  %11278 = vadd.xlane.f32.xlu0 %v11240_v57 }
 0xfc6   : > { %v11181_v38 = vmul.f32 0.0078125, %v11129_v35  ;;  %v11127_v32 = vpop.xlane.xlu0 %11126  ;;  %v11243_v49 = vmul.f32 %v21875_v42, %v21875_v42 }
 0xfc7   : > { %v11180_v29 = vmul.f32 0.0078125, %v11127_v32  ;;  %v11242_v33 = vmul.f32 %v21878_v14, %v21878_v14 }
 0xfc8   : > { %v21885_v19 = vsub.f32 %v21732_v55, %v11181_v38  ;;  %11284 = vadd.xlane.f32.xlu1 %v11243_v49 }
 0xfc9   : > { %v21888_v56 = vsub.f32 %v21734_v21, %v11180_v29  ;;  %v11133_v8 = vpop.xlane.xlu1 %11132  ;;  %11282 = vadd.xlane.f32.xlu0 %v11242_v33 }
 0xfca   : > { %v11183_v12 = vmul.f32 0.0078125, %v11133_v8  ;;  %v11131_v28 = vpop.xlane.xlu0 %11130  ;;  %v11245_v30 = vmul.f32 %v21885_v19, %v21885_v19 }
 0xfcb   : > { %v11182_v58 = vmul.f32 0.0078125, %v11131_v28  ;;  %v11244_v48 = vmul.f32 %v21888_v56, %v21888_v56 }
 0xfcc   : > { %v21895_v2 = vsub.f32 %v21740_v0, %v11183_v12  ;;  %11288 = vadd.xlane.f32.xlu1 %v11245_v30 }
 0xfcd   : > { %v21898_v4 = vsub.f32 %v21742_v34, %v11182_v58  ;;  %11286 = vadd.xlane.f32.xlu0 %v11244_v48 }
 0xfce   : > { %v11247_v50 = vmul.f32 %v21895_v2, %v21895_v2 }
 0xfcf   : > { %v11246_v60 = vmul.f32 %v21898_v4, %v21898_v4 }
 0xfd0   : > { %11292 = vadd.xlane.f32.xlu1 %v11247_v50 }
 0xfd1   : > { %11290 = vadd.xlane.f32.xlu0 %v11246_v60 }
 0xfd8   : > { %v11137_v27 = vpop.xlane.xlu1 %11136 }
 0xfd9   : > { %v11185_v53 = vmul.f32 0.0078125, %v11137_v27  ;;  %v11135_v63 = vpop.xlane.xlu0 %11134 }
 0xfda   : > { %v11184_v57 = vmul.f32 0.0078125, %v11135_v63 }
 0xfdb   : > { %v21905_v35 = vsub.f32 %v21748_v13, %v11185_v53 }
 0xfdc   : > { %v21908_v38 = vsub.f32 %v21750_v61, %v11184_v57  ;;  %v11141_v32 = vpop.xlane.xlu1 %11140 }
 0xfdd   : > { %v11187_v49 = vmul.f32 0.0078125, %v11141_v32  ;;  %v11139_v29 = vpop.xlane.xlu0 %11138  ;;  %v11249_v33 = vmul.f32 %v21905_v35, %v21905_v35 }
 0xfde   : > { %v11186_v8 = vmul.f32 0.0078125, %v11139_v29  ;;  %v11248_v12 = vmul.f32 %v21908_v38, %v21908_v38 }
 0xfdf   : > { %v21915_v28 = vsub.f32 %v21756_v54, %v11187_v49  ;;  %11296 = vadd.xlane.f32.xlu1 %v11249_v33 }
 0xfe0   : > { %v21918_v30 = vsub.f32 %v21758_v39, %v11186_v8  ;;  %v11145_v58 = vpop.xlane.xlu1 %11144  ;;  %11294 = vadd.xlane.f32.xlu0 %v11248_v12 }
 0xfe1   : > { %v11189_v48 = vmul.f32 0.0078125, %v11145_v58  ;;  %v11143_v50 = vpop.xlane.xlu0 %11142  ;;  %v11251_v60 = vmul.f32 %v21915_v28, %v21915_v28 }
 0xfe2   : > { %v11188_v27 = vmul.f32 0.0078125, %v11143_v50  ;;  %v11250_v53 = vmul.f32 %v21918_v30, %v21918_v30 }
 0xfe3   : > { %v21925_v63 = vsub.f32 %v21764_v40, %v11189_v48  ;;  %11300 = vadd.xlane.f32.xlu1 %v11251_v60 }
 0xfe4   : > { %v21928_v57 = vsub.f32 %v21766_v11, %v11188_v27  ;;  %v11149_v32 = vpop.xlane.xlu1 %11148  ;;  %11298 = vadd.xlane.f32.xlu0 %v11250_v53 }
 0xfe5   : > { %v11191_v49 = vmul.f32 0.0078125, %v11149_v32  ;;  %v11147_v29 = vpop.xlane.xlu0 %11146  ;;  %v11253_v33 = vmul.f32 %v21925_v63, %v21925_v63 }
 0xfe6   : > { %v11190_v8 = vmul.f32 0.0078125, %v11147_v29  ;;  %v11252_v12 = vmul.f32 %v21928_v57, %v21928_v57 }
 0xfe7   : > { %v21935_v58 = vsub.f32 %v21772_v5, %v11191_v49  ;;  %11304 = vadd.xlane.f32.xlu1 %v11253_v33 }
 0xfe8   : > { %v21938_v48 = vsub.f32 %v21774_v22, %v11190_v8  ;;  %11302 = vadd.xlane.f32.xlu0 %v11252_v12 }
 0xfe9   : > { %v11153_v50 = vpop.xlane.xlu1 %11152  ;;  %v11255_v53 = vmul.f32 %v21935_v58, %v21935_v58 }
 0xfea   : > { %v11193_v60 = vmul.f32 0.0078125, %v11153_v50  ;;  %v11151_v27 = vpop.xlane.xlu0 %11150  ;;  %v11254_v29 = vmul.f32 %v21938_v48, %v21938_v48 }
 0xfeb   : > { %v11192_v32 = vmul.f32 0.0078125, %v11151_v27  ;;  %11308 = vadd.xlane.f32.xlu1 %v11255_v53 }
 0xfec   : > { %v21945_v11 = vsub.f32 %v21780_v26, %v11193_v60  ;;  %11306 = vadd.xlane.f32.xlu0 %v11254_v29 }
 0xfed   : > { %v21948_v49 = vsub.f32 %v21782_v51, %v11192_v32 }
 0xfee   : > { %v11257_v33 = vmul.f32 %v21945_v11, %v21945_v11 }
 0xfef   : > { %v11256_v8 = vmul.f32 %v21948_v49, %v21948_v49 }
 0xff0   : > { %11312 = vadd.xlane.f32.xlu1 %v11257_v33 }
 0xff1   : > { %11310 = vadd.xlane.f32.xlu0 %v11256_v8 }
 0xff6   : > { %v11157_v12 = vpop.xlane.xlu1 %11156 }
 0xff7   : > { %v11195_v50 = vmul.f32 0.0078125, %v11157_v12  ;;  %v11155_v27 = vpop.xlane.xlu0 %11154 }
 0xff8   : > { %v11194_v22 = vmul.f32 0.0078125, %v11155_v27 }
 0xff9   : > { %v21955_v60 = vsub.f32 %v21788_v52, %v11195_v50 }
 0xffa   : > { %v21958_v53 = vsub.f32 %v21790_v18, %v11194_v22  ;;  %v11161_v32 = vpop.xlane.xlu1 %11160 }
 0xffb   : > { %v11197_v29 = vmul.f32 0.0078125, %v11161_v32  ;;  %v11159_v51 = vpop.xlane.xlu0 %11158  ;;  %v11259_v26 = vmul.f32 %v21955_v60, %v21955_v60 }
 0xffc   : > { %v11196_v5 = vmul.f32 0.0078125, %v11159_v51  ;;  %v11258_v33 = vmul.f32 %v21958_v53, %v21958_v53 }
 0xffd   : > { %v21965_v8 = vsub.f32 %v21796_v62, %v11197_v29  ;;  %11316 = vadd.xlane.f32.xlu1 %v11259_v26 }
 0xffe   : > { %v21968_v12 = vsub.f32 %v21798_v25, %v11196_v5  ;;  %v11165_v50 = vpop.xlane.xlu1 %11164  ;;  %11314 = vadd.xlane.f32.xlu0 %v11258_v33 }
 0xfff   : > { %v11199_v22 = vmul.f32 0.0078125, %v11165_v50  ;;  %v11163_v27 = vpop.xlane.xlu0 %11162  ;;  %v11261_v32 = vmul.f32 %v21965_v8, %v21965_v8 }
0x1000   : > { %v11198_v18 = vmul.f32 0.0078125, %v11163_v27  ;;  %v11260_v51 = vmul.f32 %v21968_v12, %v21968_v12 }
0x1001   : > { %v21975_v52 = vsub.f32 %v21804_v20, %v11199_v22  ;;  %11320 = vadd.xlane.f32.xlu1 %v11261_v32 }
0x1002   : > { %v21978_v26 = vsub.f32 %v21806_v45, %v11198_v18  ;;  %11318 = vadd.xlane.f32.xlu0 %v11260_v51 }
0x1003   : > { %v11169_v5 = vpop.xlane.xlu1 %11168  ;;  %v11263_v29 = vmul.f32 %v21975_v52, %v21975_v52 }
0x1004   : > { %v11201_v33 = vmul.f32 0.0078125, %v11169_v5  ;;  %v11167_v50 = vpop.xlane.xlu0 %11166  ;;  %v11262_v27 = vmul.f32 %v21978_v26, %v21978_v26 }
0x1005   : > { %v11200_v25 = vmul.f32 0.0078125, %v11167_v50  ;;  %11324 = vadd.xlane.f32.xlu1 %v11263_v29 }
0x1006   : > { %v21985_v62 = vsub.f32 %v21812_v16, %v11201_v33  ;;  %11322 = vadd.xlane.f32.xlu0 %v11262_v27 }
0x1007   : > { %v21988_v22 = vsub.f32 %v21814_v59, %v11200_v25 }
0x1008   : > { %v11265_v18 = vmul.f32 %v21985_v62, %v21985_v62 }
0x1009   : > { %v11264_v32 = vmul.f32 %v21988_v22, %v21988_v22 }
0x100a   : > { %11328 = vadd.xlane.f32.xlu1 %v11265_v18 }
0x100b   : > { %11326 = vadd.xlane.f32.xlu0 %v11264_v32  ;;  %v21999_v32 = vld [vmem:[%s708_s13] ss:$0 sm:$0xff] }
0x1014   : > { %v11269_v51 = vpop.xlane.xlu1 %11268 }
0x1015   : > { %v11331_v5 = vmul.f32 0.0078125, %v11269_v51  ;;  %v11267_v50 = vpop.xlane.xlu0 %11266 }
0x1016   : > { %v11330_v29 = vmul.f32 0.0078125, %v11267_v50 }
0x1017   : > { %v11363_v45 = vadd.f32 1e-05, %v11331_v5 }
0x1018   : > { %v11362_v33 = vadd.f32 1e-05, %v11330_v29 }
0x1019   : > { %16904 = vrsqrt.f32 %v11363_v45  ;;  %v11273_v27 = vpop.xlane.xlu1 %11272 }
0x101a   : > { %16906 = vrsqrt.f32 %v11362_v33  ;;  %v11333_v25 = vmul.f32 0.0078125, %v11273_v27 }
0x101c   : > { %v11365_v59 = vadd.f32 1e-05, %v11333_v25 }
0x101d   : > { %v11271_v16 = vpop.xlane.xlu0 %11270 }
0x101e   : > { %16908 = vrsqrt.f32 %v11365_v59  ;;  %v11332_v20 = vmul.f32 0.0078125, %v11271_v16 }
0x1020   : > { %v11364_v40 = vadd.f32 1e-05, %v11332_v20 }
0x1022   : > { %16910 = vrsqrt.f32 %v11364_v40  ;;  %v22008_v40 = vld [vmem:[%s711_s12] ss:$0 sm:$0xff] }
0x1023   : > { %v16905_v18 = vpop.eup %16904 }
0x1024   : > { %v16907_v51 = vpop.eup %16906  ;;  %v11427_v45 = vmul.f32 %v16905_v18, %v21819_v24  ;;  %v11814_v18 = vld [vmem:[%s17608_s22] sm:$0xff] }
0x1025   : > { %v11426_v5 = vmul.f32 %v16907_v51, %v21822_v41  ;;  %v11815_v51 = vld [vmem:[%s17608_s22 + $0x8] sm:$0xff] }
0x1026   : > { %v11465_v20 = vmul.f32 %v21999_v32, %v11427_v45  ;;  %v11816_v45 = vld [vmem:[%s17608_s22 + $0x10] sm:$0xff] }
0x1027   : > { %v11464_v16 = vmul.f32 %v21999_v32, %v11426_v5  ;;  %v15458_v5 = vpack.c.bf16 %v11815_v51, %v11814_v18  ;;  %v11823_v18 = vld [vmem:[%s17608_s22 + $0x48] sm:$0xff]  ;;  %v11824_v51 = vld [vmem:[%s17608_s22 + $0x50] sm:$0xff] }
0x1028   : > { %v16909_v59 = vpop.eup %16908  ;;  %v11503_v24 = vadd.f32 %v22008_v40, %v11465_v20 }
0x1029   : > { %v11502_v50 = vadd.f32 %v22008_v40, %v11464_v16  ;;  %v11429_v41 = vmul.f32 %v16909_v59, %v21829_v43  ;;  %v11817_v16 = vld [vmem:[%s17608_s22 + $0x18] sm:$0xff]  ;;  %v11818_v59 = vld [vmem:[%s17608_s22 + $0x20] sm:$0xff]  ;;  %15459 = vmatprep.subr.bf16.mxu0 %v15458_v5 }
0x102a   : > { %v15462_v43 = vpack.c.bf16 %v11817_v16, %v11816_v45  ;;  %15461 = vmatpush3.bf16.msra.mxu0 %v15458_v5  ;;  %v11825_v45 = vld [vmem:[%s17608_s22 + $0x58] sm:$0xff]  ;;  %v11826_v16 = vld [vmem:[%s17608_s22 + $0x60] sm:$0xff] }
0x102b   : > { %14562 = vmatprep.mubr.f32.mxu1 %v11502_v50  ;;  %v11467_v27 = vmul.f32 %v21999_v32, %v11429_v41  ;;  %v11819_v50 = vld [vmem:[%s17608_s22 + $0x28] sm:$0xff]  ;;  %v11820_v41 = vld [vmem:[%s17608_s22 + $0x30] sm:$0xff]  ;;  %v15478_v5 = vpack.c.bf16 %v11825_v45, %v11824_v51 }
0x102c   : > { %v16911_v29 = vpop.eup %16910  ;;  %14563 = vmatmul.mubr.f32.vlgmr.msra.gmra.mrb[184].mxu1 %v11503_v24  ;;  %15463 = vmatprep.subr.bf16.mxu0 %v15462_v43  ;;  %v15466_v24 = vpack.c.bf16 %v11819_v50, %v11818_v59 }
0x102d   : > { %v11428_v33 = vmul.f32 %v16911_v29, %v21837_v3  ;;  %v11505_v3 = vadd.f32 %v22008_v40, %v11467_v27  ;;  %v11821_v29 = vld [vmem:[%s17608_s22 + $0x38] sm:$0xff] }
0x102e   : > { %15465 = vmatpush3.bf16.msra.mxu0 %v15462_v43 }
0x102f   : > { %v11466_v25 = vmul.f32 %v21999_v32, %v11428_v33  ;;  %15467 = vmatprep.subr.bf16.mxu0 %v15466_v24  ;;  %v15470_v33 = vpack.c.bf16 %v11821_v29, %v11820_v41 }
0x1031   : > { %v11504_v20 = vadd.f32 %v22008_v40, %v11466_v25  ;;  %v11822_v25 = vld [vmem:[%s17608_s22 + $0x40] sm:$0xff] }
0x1032   : > { %15469 = vmatpush3.bf16.msra.mxu0 %v15466_v24  ;;  %v15474_v27 = vpack.c.bf16 %v11823_v18, %v11822_v25 }
0x1033   : > { %14565 = vmatprep.mubr.f32.mxu1 %v11504_v20  ;;  %15471 = vmatprep.subr.bf16.mxu0 %v15470_v33  ;;  %v11827_v20 = vld [vmem:[%s17608_s22 + $0x68] sm:$0xff] }
0x1034   : > { %14566 = vmatmul.mubr.f32.gmra.mrb[186].mxu1 %v11505_v3  ;;  %v15482_v59 = vpack.c.bf16 %v11827_v20, %v11826_v16 }
0x1036   : > { %15473 = vmatpush3.bf16.msra.mxu0 %v15470_v33 }
0x1037   : > { %15475 = vmatprep.subr.bf16.mxu0 %v15474_v27 }
0x103a   : > { %15477 = vmatpush3.bf16.msra.mxu0 %v15474_v27 }
0x103b   : > { %15479 = vmatprep.subr.bf16.mxu0 %v15478_v5 }
0x103e   : > { %15481 = vmatpush3.bf16.msra.mxu0 %v15478_v5 }
0x103f   : > { %15483 = vmatprep.subr.bf16.mxu0 %v15482_v59 }
0x1042   : > { %15485 = vmatpush3.bf16.msra.mxu0 %v15482_v59 }
0x1049   : > { %v11277_v43 = vpop.xlane.xlu1 %11276 }
0x104a   : > { %v11335_v50 = vmul.f32 0.0078125, %v11277_v43  ;;  %v11275_v3 = vpop.xlane.xlu0 %11274 }
0x104b   : > { %v11334_v41 = vmul.f32 0.0078125, %v11275_v3 }
0x104c   : > { %v11367_v24 = vadd.f32 1e-05, %v11335_v50 }
0x104d   : > { %v11366_v29 = vadd.f32 1e-05, %v11334_v41 }
0x104e   : > { %16912 = vrsqrt.f32 %v11367_v24 }
0x104f   : > { %16914 = vrsqrt.f32 %v11366_v29 }
0x1051   : > { %v11281_v25 = vpop.xlane.xlu1 %11280 }
0x1052   : > { %v11337_v33 = vmul.f32 0.0078125, %v11281_v25  ;;  %v11279_v18 = vpop.xlane.xlu0 %11278 }
0x1053   : > { %v11336_v51 = vmul.f32 0.0078125, %v11279_v18 }
0x1054   : > { %v11369_v45 = vadd.f32 1e-05, %v11337_v33 }
0x1055   : > { %v11368_v39 = vadd.f32 1e-05, %v11336_v51  ;;  %v11285_v27 = vpop.xlane.xlu1 %11284 }
0x1056   : > { %16916 = vrsqrt.f32 %v11369_v45  ;;  %v11339_v16 = vmul.f32 0.0078125, %v11285_v27  ;;  %v11283_v5 = vpop.xlane.xlu0 %11282 }
0x1057   : > { %16918 = vrsqrt.f32 %v11368_v39  ;;  %v11338_v20 = vmul.f32 0.0078125, %v11283_v5 }
0x1058   : > { %v16913_v43 = vpop.eup %16912  ;;  %v11371_v54 = vadd.f32 1e-05, %v11339_v16 }
0x1059   : > { %v16915_v3 = vpop.eup %16914  ;;  %v11370_v59 = vadd.f32 1e-05, %v11338_v20  ;;  %v11289_v50 = vpop.xlane.xlu1 %11288  ;;  %v11431_v41 = vmul.f32 %v16913_v43, %v21855_v7 }
0x105a   : > { %16920 = vrsqrt.f32 %v11371_v54  ;;  %v11341_v24 = vmul.f32 0.0078125, %v11289_v50  ;;  %v11287_v29 = vpop.xlane.xlu0 %11286  ;;  %v11430_v25 = vmul.f32 %v16915_v3, %v21858_v31 }
0x105b   : > { %16922 = vrsqrt.f32 %v11370_v59  ;;  %v11340_v33 = vmul.f32 0.0078125, %v11287_v29  ;;  %v11469_v18 = vmul.f32 %v21999_v32, %v11431_v41 }
0x105c   : > { %v11373_v51 = vadd.f32 1e-05, %v11341_v24  ;;  %v11468_v39 = vmul.f32 %v21999_v32, %v11430_v25 }
0x105d   : > { %v11372_v45 = vadd.f32 1e-05, %v11340_v33  ;;  %v11293_v27 = vpop.xlane.xlu1 %11292  ;;  %v11507_v7 = vadd.f32 %v22008_v40, %v11469_v18 }
0x105e   : > { %16924 = vrsqrt.f32 %v11373_v51  ;;  %v11343_v16 = vmul.f32 0.0078125, %v11293_v27  ;;  %v11291_v5 = vpop.xlane.xlu0 %11290  ;;  %v11506_v20 = vadd.f32 %v22008_v40, %v11468_v39 }
0x105f   : > { %16926 = vrsqrt.f32 %v11372_v45  ;;  %v11342_v54 = vmul.f32 0.0078125, %v11291_v5 }
0x1060   : > { %v16917_v43 = vpop.eup %16916  ;;  %v11375_v31 = vadd.f32 1e-05, %v11343_v16  ;;  %14568 = vmatprep.mubr.f32.mxu1 %v11506_v20 }
0x1061   : > { %v16919_v3 = vpop.eup %16918  ;;  %v11374_v59 = vadd.f32 1e-05, %v11342_v54  ;;  %14569 = vmatmul.mubr.f32.gmra.mrb[188].mxu1 %v11507_v7  ;;  %v11433_v50 = vmul.f32 %v16917_v43, %v21865_v6 }
0x1062   : > { %16928 = vrsqrt.f32 %v11375_v31  ;;  %v11432_v41 = vmul.f32 %v16919_v3, %v21868_v37 }
0x1063   : > { %16930 = vrsqrt.f32 %v11374_v59  ;;  %v11471_v24 = vmul.f32 %v21999_v32, %v11433_v50 }
0x1064   : > { %v16921_v29 = vpop.eup %16920  ;;  %v11470_v25 = vmul.f32 %v21999_v32, %v11432_v41 }
0x1065   : > { %v16923_v33 = vpop.eup %16922  ;;  %v11435_v18 = vmul.f32 %v16921_v29, %v21875_v42  ;;  %v11509_v45 = vadd.f32 %v22008_v40, %v11471_v24 }
0x1066   : > { %v11508_v51 = vadd.f32 %v22008_v40, %v11470_v25  ;;  %v11434_v39 = vmul.f32 %v16923_v33, %v21878_v14 }
0x1067   : > { %v11473_v6 = vmul.f32 %v21999_v32, %v11435_v18 }
0x1068   : > { %v16925_v27 = vpop.eup %16924  ;;  %14571 = vmatprep.mubr.f32.mxu1 %v11508_v51  ;;  %v11472_v37 = vmul.f32 %v21999_v32, %v11434_v39 }
0x1069   : > { %v16927_v16 = vpop.eup %16926  ;;  %14572 = vmatmul.mubr.f32.gmra.mrb[190].mxu1 %v11509_v45  ;;  %v11437_v5 = vmul.f32 %v16925_v27, %v21885_v19  ;;  %v11511_v54 = vadd.f32 %v22008_v40, %v11473_v6 }
0x106a   : > { %v11510_v20 = vadd.f32 %v22008_v40, %v11472_v37  ;;  %v11436_v42 = vmul.f32 %v16927_v16, %v21888_v56 }
0x106b   : > { %v11475_v14 = vmul.f32 %v21999_v32, %v11437_v5 }
0x106c   : > { %v16929_v7 = vpop.eup %16928  ;;  %v11297_v43 = vpop.xlane.xlu1 %11296  ;;  %14574 = vmatprep.mubr.f32.mxu1 %v11510_v20  ;;  %v11474_v31 = vmul.f32 %v21999_v32, %v11436_v42 }
0x106d   : > { %v16931_v3 = vpop.eup %16930  ;;  %v11345_v59 = vmul.f32 0.0078125, %v11297_v43  ;;  %14575 = vmatmul.mubr.f32.gmra.mrb[192].mxu1 %v11511_v54  ;;  %v11295_v50 = vpop.xlane.xlu0 %11294  ;;  %v11439_v41 = vmul.f32 %v16929_v7, %v21895_v2  ;;  %v11513_v25 = vadd.f32 %v22008_v40, %v11475_v14 }
0x106e   : > { %v11344_v19 = vmul.f32 0.0078125, %v11295_v50  ;;  %v11512_v24 = vadd.f32 %v22008_v40, %v11474_v31  ;;  %v11438_v56 = vmul.f32 %v16931_v3, %v21898_v4 }
0x106f   : > { %v11377_v29 = vadd.f32 1e-05, %v11345_v59  ;;  %v11477_v33 = vmul.f32 %v21999_v32, %v11439_v41 }
0x1070   : > { %v11376_v18 = vadd.f32 1e-05, %v11344_v19  ;;  %v11301_v51 = vpop.xlane.xlu1 %11300  ;;  %14577 = vmatprep.mubr.f32.mxu1 %v11512_v24  ;;  %v11476_v39 = vmul.f32 %v21999_v32, %v11438_v56 }
0x1071   : > { %16932 = vrsqrt.f32 %v11377_v29  ;;  %v11347_v45 = vmul.f32 0.0078125, %v11301_v51  ;;  %14578 = vmatmul.mubr.f32.gmra.mrb[194].mxu1 %v11513_v25  ;;  %v11299_v6 = vpop.xlane.xlu0 %11298  ;;  %v11515_v4 = vadd.f32 %v22008_v40, %v11477_v33 }
0x1072   : > { %16934 = vrsqrt.f32 %v11376_v18  ;;  %v11346_v2 = vmul.f32 0.0078125, %v11299_v6  ;;  %v11514_v27 = vadd.f32 %v22008_v40, %v11476_v39 }
0x1073   : > { %v11379_v37 = vadd.f32 1e-05, %v11347_v45 }
0x1074   : > { %v11378_v16 = vadd.f32 1e-05, %v11346_v2  ;;  %v11305_v5 = vpop.xlane.xlu1 %11304  ;;  %14580 = vmatprep.mubr.f32.mxu1 %v11514_v27 }
0x1075   : > { %16936 = vrsqrt.f32 %v11379_v37  ;;  %v11349_v20 = vmul.f32 0.0078125, %v11305_v5  ;;  %14581 = vmatmul.mubr.f32.gmra.mrb[196].mxu1 %v11515_v4  ;;  %v11303_v42 = vpop.xlane.xlu0 %11302  ;;  %v11828_v5 = vld [vmem:[%s17608_s22 + $0x70] sm:$0xff] }
0x1076   : > { %16938 = vrsqrt.f32 %v11378_v16  ;;  %v11348_v54 = vmul.f32 0.0078125, %v11303_v42 }
0x1077   : > { %v11381_v14 = vadd.f32 1e-05, %v11349_v20  ;;  %v11829_v20 = vld [vmem:[%s17608_s22 + $0x78] sm:$0xff] }
0x1078   : > { %v11380_v7 = vadd.f32 1e-05, %v11348_v54  ;;  %v11309_v43 = vpop.xlane.xlu1 %11308  ;;  %v15486_v54 = vpack.c.bf16 %v11829_v20, %v11828_v5 }
0x1079   : > { %16940 = vrsqrt.f32 %v11381_v14  ;;  %v11351_v31 = vmul.f32 0.0078125, %v11309_v43  ;;  %v11307_v3 = vpop.xlane.xlu0 %11306 }
0x107a   : > { %16942 = vrsqrt.f32 %v11380_v7  ;;  %v11350_v59 = vmul.f32 0.0078125, %v11307_v3  ;;  %15487 = vmatprep.subr.bf16.mxu0 %v15486_v54 }
0x107b   : > { %v16933_v50 = vpop.eup %16932  ;;  %v11383_v41 = vadd.f32 1e-05, %v11351_v31  ;;  %15489 = vmatpush3.bf16.msra.mxu0 %v15486_v54 }
0x107c   : > { %v16935_v19 = vpop.eup %16934  ;;  %v11382_v24 = vadd.f32 1e-05, %v11350_v59  ;;  %v11441_v29 = vmul.f32 %v16933_v50, %v21905_v35 }
0x107d   : > { %v11313_v56 = vpop.xlane.xlu1 %11312  ;;  %16944 = vrsqrt.f32 %v11383_v41  ;;  %v11440_v18 = vmul.f32 %v16935_v19, %v21908_v38 }
0x107e   : > { %v11353_v25 = vmul.f32 0.0078125, %v11313_v56  ;;  %v11311_v33 = vpop.xlane.xlu0 %11310  ;;  %16946 = vrsqrt.f32 %v11382_v24  ;;  %v11479_v39 = vmul.f32 %v21999_v32, %v11441_v29 }
0x107f   : > { %v11352_v51 = vmul.f32 0.0078125, %v11311_v33  ;;  %v16937_v45 = vpop.eup %16936  ;;  %v11478_v2 = vmul.f32 %v21999_v32, %v11440_v18 }
0x1080   : > { %v11385_v6 = vadd.f32 1e-05, %v11353_v25  ;;  %v16939_v27 = vpop.eup %16938  ;;  %v11443_v4 = vmul.f32 %v16937_v45, %v21915_v28  ;;  %v11517_v38 = vadd.f32 %v22008_v40, %v11479_v39 }
0x1081   : > { %v11384_v37 = vadd.f32 1e-05, %v11352_v51  ;;  %v11516_v35 = vadd.f32 %v22008_v40, %v11478_v2  ;;  %v11442_v16 = vmul.f32 %v16939_v27, %v21918_v30 }
0x1082   : > { %16948 = vrsqrt.f32 %v11385_v6  ;;  %v11481_v42 = vmul.f32 %v21999_v32, %v11443_v4 }
0x1083   : > { %16950 = vrsqrt.f32 %v11384_v37  ;;  %v16941_v14 = vpop.eup %16940  ;;  %14583 = vmatprep.mubr.f32.mxu1 %v11516_v35  ;;  %v11480_v7 = vmul.f32 %v21999_v32, %v11442_v16 }
0x1084   : > { %v16943_v43 = vpop.eup %16942  ;;  %14584 = vmatmul.mubr.f32.gmra.mrb[198].mxu1 %v11517_v38  ;;  %v11445_v28 = vmul.f32 %v16941_v14, %v21925_v63  ;;  %v11519_v3 = vadd.f32 %v22008_v40, %v11481_v42 }
0x1085   : > { %v11518_v31 = vadd.f32 %v22008_v40, %v11480_v7  ;;  %v11444_v30 = vmul.f32 %v16943_v43, %v21928_v57 }
0x1086   : > { %v11483_v59 = vmul.f32 %v21999_v32, %v11445_v28 }
0x1087   : > { %v16945_v50 = vpop.eup %16944  ;;  %14586 = vmatprep.mubr.f32.mxu1 %v11518_v31  ;;  %v11482_v41 = vmul.f32 %v21999_v32, %v11444_v30 }
0x1088   : > { %v16947_v19 = vpop.eup %16946  ;;  %14587 = vmatmul.mubr.f32.gmra.mrb[200].mxu1 %v11519_v3  ;;  %v11447_v24 = vmul.f32 %v16945_v50, %v21935_v58  ;;  %v11521_v57 = vadd.f32 %v22008_v40, %v11483_v59 }
0x1089   : > { %v11520_v63 = vadd.f32 %v22008_v40, %v11482_v41  ;;  %v11446_v56 = vmul.f32 %v16947_v19, %v21938_v48 }
0x108a   : > { %v11317_v29 = vpop.xlane.xlu1 %11316  ;;  %v11485_v25 = vmul.f32 %v21999_v32, %v11447_v24 }
0x108b   : > { %v11355_v18 = vmul.f32 0.0078125, %v11317_v29  ;;  %14589 = vmatprep.mubr.f32.mxu1 %v11520_v63  ;;  %v11315_v51 = vpop.xlane.xlu0 %11314  ;;  %v11484_v39 = vmul.f32 %v21999_v32, %v11446_v56 }
0x108c   : > { %v16949_v33 = vpop.eup %16948  ;;  %v11354_v6 = vmul.f32 0.0078125, %v11315_v51  ;;  %14590 = vmatmul.mubr.f32.gmra.mrb[202].mxu1 %v11521_v57  ;;  %v11523_v35 = vadd.f32 %v22008_v40, %v11485_v25 }
0x108d   : > { %v16951_v45 = vpop.eup %16950  ;;  %v11449_v58 = vmul.f32 %v16949_v33, %v21945_v11  ;;  %v11387_v2 = vadd.f32 1e-05, %v11355_v18  ;;  %v11522_v27 = vadd.f32 %v22008_v40, %v11484_v39 }
0x108e   : > { %v11448_v48 = vmul.f32 %v16951_v45, %v21948_v49  ;;  %v11386_v37 = vadd.f32 1e-05, %v11354_v6  ;;  %v11321_v4 = vpop.xlane.xlu1 %11320 }
0x108f   : > { %v11487_v16 = vmul.f32 %v21999_v32, %v11449_v58  ;;  %16952 = vrsqrt.f32 %v11387_v2  ;;  %v11357_v5 = vmul.f32 0.0078125, %v11321_v4  ;;  %14592 = vmatprep.mubr.f32.mxu1 %v11522_v27  ;;  %v11319_v20 = vpop.xlane.xlu0 %11318 }
0x1090   : > { %v11486_v38 = vmul.f32 %v21999_v32, %v11448_v48  ;;  %16954 = vrsqrt.f32 %v11386_v37  ;;  %v11356_v42 = vmul.f32 0.0078125, %v11319_v20  ;;  %14593 = vmatmul.mubr.f32.gmra.mrb[204].mxu1 %v11523_v35 }
0x1091   : > { %v11389_v11 = vadd.f32 1e-05, %v11357_v5  ;;  %v11525_v7 = vadd.f32 %v22008_v40, %v11487_v16 }
0x1092   : > { %v11524_v54 = vadd.f32 %v22008_v40, %v11486_v38  ;;  %v11388_v14 = vadd.f32 1e-05, %v11356_v42  ;;  %v11325_v49 = vpop.xlane.xlu1 %11324 }
0x1093   : > { %16956 = vrsqrt.f32 %v11389_v11  ;;  %v11359_v43 = vmul.f32 0.0078125, %v11325_v49  ;;  %v11323_v28 = vpop.xlane.xlu0 %11322 }
0x1094   : > { %14595 = vmatprep.mubr.f32.mxu1 %v11524_v54  ;;  %16958 = vrsqrt.f32 %v11388_v14  ;;  %v11358_v31 = vmul.f32 0.0078125, %v11323_v28 }
0x1095   : > { %14596 = vmatmul.mubr.f32.gmra.mrb[206].mxu1 %v11525_v7  ;;  %v11391_v30 = vadd.f32 1e-05, %v11359_v43 }
0x1096   : > { %v11390_v3 = vadd.f32 1e-05, %v11358_v31 }
0x1097   : > { %16960 = vrsqrt.f32 %v11391_v30  ;;  %v11329_v59 = vpop.xlane.xlu1 %11328 }
0x1098   : > { %16962 = vrsqrt.f32 %v11390_v3  ;;  %v11361_v50 = vmul.f32 0.0078125, %v11329_v59  ;;  %v11327_v41 = vpop.xlane.xlu0 %11326 }
0x1099   : > { %v16953_v19 = vpop.eup %16952  ;;  %v11360_v24 = vmul.f32 0.0078125, %v11327_v41 }
0x109a   : > { %v16955_v63 = vpop.eup %16954  ;;  %v11393_v56 = vadd.f32 1e-05, %v11361_v50  ;;  %v11451_v29 = vmul.f32 %v16953_v19, %v21955_v60 }
0x109b   : > { %v11392_v57 = vadd.f32 1e-05, %v11360_v24  ;;  %v11450_v25 = vmul.f32 %v16955_v63, %v21958_v53 }
0x109c   : > { %16964 = vrsqrt.f32 %v11393_v56  ;;  %v11489_v33 = vmul.f32 %v21999_v32, %v11451_v29 }
0x109d   : > { %v16957_v18 = vpop.eup %16956  ;;  %16966 = vrsqrt.f32 %v11392_v57  ;;  %v11488_v51 = vmul.f32 %v21999_v32, %v11450_v25 }
0x109e   : > { %v16959_v39 = vpop.eup %16958  ;;  %v11453_v45 = vmul.f32 %v16957_v18, %v21965_v8  ;;  %v11527_v2 = vadd.f32 %v22008_v40, %v11489_v33 }
0x109f   : > { %v11526_v6 = vadd.f32 %v22008_v40, %v11488_v51  ;;  %v11452_v58 = vmul.f32 %v16959_v39, %v21968_v12 }
0x10a0   : > { %v11491_v60 = vmul.f32 %v21999_v32, %v11453_v45 }
0x10a1   : > { %v16961_v27 = vpop.eup %16960  ;;  %14598 = vmatprep.mubr.f32.mxu1 %v11526_v6  ;;  %v11490_v53 = vmul.f32 %v21999_v32, %v11452_v58 }
0x10a2   : > { %v16963_v48 = vpop.eup %16962  ;;  %14599 = vmatmul.mubr.f32.gmra.mrb[208].mxu1 %v11527_v2  ;;  %v11455_v37 = vmul.f32 %v16961_v27, %v21975_v52  ;;  %v11529_v35 = vadd.f32 %v22008_v40, %v11491_v60 }
0x10a3   : > { %v11528_v4 = vadd.f32 %v22008_v40, %v11490_v53  ;;  %v11454_v8 = vmul.f32 %v16963_v48, %v21978_v26 }
0x10a4   : > { %v11493_v12 = vmul.f32 %v21999_v32, %v11455_v37 }
0x10a5   : > { %14601 = vmatprep.mubr.f32.mxu1 %v11528_v4  ;;  %v11492_v16 = vmul.f32 %v21999_v32, %v11454_v8 }
0x10a6   : > { %v16965_v5 = vpop.eup %16964  ;;  %14602 = vmatmul.mubr.f32.gmra.mrb[210].mxu1 %v11529_v35  ;;  %v11531_v52 = vadd.f32 %v22008_v40, %v11493_v12 }
0x10a7   : > { %v16967_v20 = vpop.eup %16966  ;;  %v11530_v38 = vadd.f32 %v22008_v40, %v11492_v16  ;;  %v11457_v42 = vmul.f32 %v16965_v5, %v21985_v62  ;;  %v22125_v62 = vld [vmem:[%s714_s11] ss:$0 sm:$0xff] }
0x10a8   : > { %v11456_v11 = vmul.f32 %v16967_v20, %v21988_v22 }
0x10a9   : > { %14604 = vmatprep.mubr.f32.mxu1 %v11530_v38  ;;  %v11495_v26 = vmul.f32 %v21999_v32, %v11457_v42 }
0x10aa   : > { %14605 = vmatmul.mubr.f32.gmra.mrb[212].mxu1 %v11531_v52  ;;  %v11494_v54 = vmul.f32 %v21999_v32, %v11456_v11 }
0x10ab   : > { %v11533_v49 = vadd.f32 %v22008_v40, %v11495_v26 }
0x10ac   : > { %v11532_v14 = vadd.f32 %v22008_v40, %v11494_v54 }
0x10ae   : > { %14607 = vmatprep.mubr.f32.mxu1 %v11532_v14 }
0x10af   : > { %14608 = vmatmul.mubr.f32.gmra.mrb[214].mxu1 %v11533_v49 }
0x10ff   : > { %v14564_v7 = vpop.f32.mrb[184].mxu1 }
0x1100   : > { %v11629_v22 = vadd.f32 %v14564_v7, %v22125_v62  ;;  %v11623_v43 = vpop.f32.mrb[185].mxu1 }
0x1101   : > { %v11624_v28 = vadd.f32 %v22125_v62, %v11623_v43 }
0x1102   : > { %v11783_v32 = vmax.f32 %v11629_v22, 0.0 }
0x1103   : > { %v11782_v31 = vmax.f32 %v11624_v28, 0.0 }
0x1105   : > { %14642 = vmatprep.mubr.f32.mxu0 %v11782_v31 }
0x1106   : > { %14643 = vmatmul.mubr.f32.vlgmr.msra.gmra.mrb[200].mxu0 %v11783_v32 }
0x1107   : > { %v14567_v30 = vpop.f32.mrb[186].mxu1 }
0x1108   : > { %v11639_v40 = vadd.f32 %v14567_v30, %v22125_v62  ;;  %v11633_v3 = vpop.f32.mrb[187].mxu1 }
0x1109   : > { %v11634_v59 = vadd.f32 %v22125_v62, %v11633_v3 }
0x110a   : > { %v11785_v41 = vmax.f32 %v11639_v40, 0.0 }
0x110b   : > { %v11784_v50 = vmax.f32 %v11634_v59, 0.0 }
0x110d   : > { %14645 = vmatprep.mubr.f32.mxu0 %v11784_v50 }
0x110e   : > { %14646 = vmatmul.mubr.f32.gmra.mrb[202].mxu0 %v11785_v41 }
0x1134   : > { %v14570_v19 = vpop.f32.mrb[188].mxu1 }
0x1135   : > { %v11649_v24 = vadd.f32 %v14570_v19, %v22125_v62  ;;  %v11643_v63 = vpop.f32.mrb[189].mxu1 }
0x1136   : > { %v11644_v56 = vadd.f32 %v22125_v62, %v11643_v63 }
0x1137   : > { %v11787_v57 = vmax.f32 %v11649_v24, 0.0 }
0x1138   : > { %v11786_v29 = vmax.f32 %v11644_v56, 0.0 }
0x113a   : > { %14648 = vmatprep.mubr.f32.mxu0 %v11786_v29 }
0x113b   : > { %14649 = vmatmul.mubr.f32.gmra.mrb[204].mxu0 %v11787_v57 }
0x113c   : > { %v14573_v25 = vpop.f32.mrb[190].mxu1 }
0x113d   : > { %v11659_v33 = vadd.f32 %v14573_v25, %v22125_v62  ;;  %v11653_v18 = vpop.f32.mrb[191].mxu1 }
0x113e   : > { %v11654_v51 = vadd.f32 %v22125_v62, %v11653_v18 }
0x113f   : > { %v11789_v6 = vmax.f32 %v11659_v33, 0.0 }
0x1140   : > { %v11788_v39 = vmax.f32 %v11654_v51, 0.0  ;;  %v14576_v45 = vpop.f32.mrb[192].mxu1 }
0x1141   : > { %v11669_v58 = vadd.f32 %v14576_v45, %v22125_v62  ;;  %v11663_v2 = vpop.f32.mrb[193].mxu1 }
0x1142   : > { %v11664_v60 = vadd.f32 %v22125_v62, %v11663_v2  ;;  %14651 = vmatprep.mubr.f32.mxu0 %v11788_v39 }
0x1143   : > { %14652 = vmatmul.mubr.f32.gmra.mrb[206].mxu0 %v11789_v6  ;;  %v11791_v48 = vmax.f32 %v11669_v58, 0.0 }
0x1144   : > { %v11790_v27 = vmax.f32 %v11664_v60, 0.0  ;;  %v14579_v53 = vpop.f32.mrb[194].mxu1 }
0x1145   : > { %v11679_v37 = vadd.f32 %v14579_v53, %v22125_v62  ;;  %v11673_v4 = vpop.f32.mrb[195].mxu1 }
0x1146   : > { %v11674_v8 = vadd.f32 %v22125_v62, %v11673_v4  ;;  %14654 = vmatprep.mubr.f32.mxu0 %v11790_v27 }
0x1147   : > { %14655 = vmatmul.mubr.f32.gmra.mrb[208].mxu0 %v11791_v48  ;;  %v11793_v16 = vmax.f32 %v11679_v37, 0.0 }
0x1148   : > { %v11792_v35 = vmax.f32 %v11674_v8, 0.0  ;;  %v14582_v12 = vpop.f32.mrb[196].mxu1 }
0x1149   : > { %v11689_v5 = vadd.f32 %v14582_v12, %v22125_v62  ;;  %v11683_v20 = vpop.f32.mrb[197].mxu1 }
0x114a   : > { %v11684_v38 = vadd.f32 %v22125_v62, %v11683_v20  ;;  %14657 = vmatprep.mubr.f32.mxu0 %v11792_v35 }
0x114b   : > { %14658 = vmatmul.mubr.f32.gmra.mrb[210].mxu0 %v11793_v16  ;;  %v11795_v52 = vmax.f32 %v11689_v5, 0.0 }
0x114c   : > { %v11794_v42 = vmax.f32 %v11684_v38, 0.0 }
0x114e   : > { %14660 = vmatprep.mubr.f32.mxu0 %v11794_v42 }
0x114f   : > { %14661 = vmatmul.mubr.f32.gmra.mrb[212].mxu0 %v11795_v52 }
0x1157   : > { %v14585_v11 = vpop.f32.mrb[198].mxu1 }
0x1158   : > { %v11699_v26 = vadd.f32 %v14585_v11, %v22125_v62  ;;  %v11693_v54 = vpop.f32.mrb[199].mxu1 }
0x1159   : > { %v11694_v14 = vadd.f32 %v22125_v62, %v11693_v54 }
0x115a   : > { %v11797_v22 = vmax.f32 %v11699_v26, 0.0 }
0x115b   : > { %v11796_v49 = vmax.f32 %v11694_v14, 0.0  ;;  %v14588_v7 = vpop.f32.mrb[200].mxu1 }
0x115c   : > { %v11709_v43 = vadd.f32 %v14588_v7, %v22125_v62  ;;  %v11703_v28 = vpop.f32.mrb[201].mxu1 }
0x115d   : > { %v11704_v31 = vadd.f32 %v22125_v62, %v11703_v28  ;;  %14663 = vmatprep.mubr.f32.mxu0 %v11796_v49 }
0x115e   : > { %14664 = vmatmul.mubr.f32.gmra.mrb[214].mxu0 %v11797_v22  ;;  %v11799_v40 = vmax.f32 %v11709_v43, 0.0  ;;  %v22164_v43 = vld [vmem:[%s717_s25] ss:$0 sm:$0xff]  ;;  %s17116_s25 = scalar_lea.vmem %s12137_s3, 4096 }
0x115f   : > { %v11798_v32 = vmax.f32 %v11704_v31, 0.0  ;;  %v14591_v30 = vpop.f32.mrb[202].mxu1  ;;  %p17117_p13 = scmp.ne.s32.totalorder %s12137_s3, %s17116_s25  ;;  %p17124_p3 = scmp.lt.s32.totalorder %s17116_s25, %s17116_s25 }
0x1160   : > { %v11719_v3 = vadd.f32 %v14591_v30, %v22125_v62  ;;  %v11713_v59 = vpop.f32.mrb[203].mxu1 }
0x1161   : > { %v11714_v50 = vadd.f32 %v22125_v62, %v11713_v59  ;;  %14666 = vmatprep.mubr.f32.mxu0 %v11798_v32  ;;  %p17118_p2 = pnand %p17117_p13, %p15546_p10  ;;  %p17125_p12 = por %p17124_p3, %p17123_p6 }
0x1162   : > { %14667 = vmatmul.mubr.f32.gmra.mrb[216].mxu0 %v11799_v40  ;;  %v11801_v24 = vmax.f32 %v11719_v3, 0.0 }
0x1163   : > { %v11800_v41 = vmax.f32 %v11714_v50, 0.0  ;;  %v14594_v19 = vpop.f32.mrb[204].mxu1  ;;  %p17119_p0 = pneg %p17118_p2 }
0x1164   : > { %v11729_v63 = vadd.f32 %v14594_v19, %v22125_v62  ;;  %v11723_v56 = vpop.f32.mrb[205].mxu1 }
0x1165   : > { %v11724_v29 = vadd.f32 %v22125_v62, %v11723_v56  ;;  %14669 = vmatprep.mubr.f32.mxu0 %v11800_v41  ;;  %p17126_p9 = pnand %p17125_p12, %p17119_p0 }
0x1166   : > { %14670 = vmatmul.mubr.f32.gmra.mrb[218].mxu0 %v11801_v24  ;;  %v11803_v33 = vmax.f32 %v11729_v63, 0.0 }
0x1167   : > { %v11802_v57 = vmax.f32 %v11724_v29, 0.0 }
0x1168   : > { %v14597_v25 = vpop.f32.mrb[206].mxu1 }
0x1169   : > { %v11739_v18 = vadd.f32 %v14597_v25, %v22125_v62  ;;  %v11733_v51 = vpop.f32.mrb[207].mxu1  ;;  %14672 = vmatprep.mubr.f32.mxu0 %v11802_v57 }
0x116a   : > { %v11734_v39 = vadd.f32 %v22125_v62, %v11733_v51  ;;  %14673 = vmatmul.mubr.f32.gmra.mrb[220].mxu0 %v11803_v33 }
0x116b   : > { %v11805_v6 = vmax.f32 %v11739_v18, 0.0 }
0x116c   : > { %v11804_v45 = vmax.f32 %v11734_v39, 0.0 }
0x116e   : > { %14675 = vmatprep.mubr.f32.mxu0 %v11804_v45 }
0x116f   : > { %14676 = vmatmul.mubr.f32.gmra.mrb[222].mxu0 %v11805_v6 }
0x1175   : > { %v14600_v58 = vpop.f32.mrb[208].mxu1 }
0x1176   : > { %v11749_v2 = vadd.f32 %v14600_v58, %v22125_v62  ;;  %v11743_v60 = vpop.f32.mrb[209].mxu1 }
0x1177   : > { %v11744_v27 = vadd.f32 %v22125_v62, %v11743_v60 }
0x1178   : > { %v11807_v37 = vmax.f32 %v11749_v2, 0.0 }
0x1179   : > { %v11806_v53 = vmax.f32 %v11744_v27, 0.0  ;;  %v14603_v48 = vpop.f32.mrb[210].mxu1 }
0x117a   : > { %v11759_v4 = vadd.f32 %v14603_v48, %v22125_v62  ;;  %v11753_v8 = vpop.f32.mrb[211].mxu1 }
0x117b   : > { %v11754_v35 = vadd.f32 %v22125_v62, %v11753_v8  ;;  %14678 = vmatprep.mubr.f32.mxu0 %v11806_v53 }
0x117c   : > { %14679 = vmatmul.mubr.f32.gmra.mrb[224].mxu0 %v11807_v37  ;;  %v11809_v5 = vmax.f32 %v11759_v4, 0.0 }
0x117d   : > { %v11808_v12 = vmax.f32 %v11754_v35, 0.0  ;;  %v14606_v16 = vpop.f32.mrb[212].mxu1 }
0x117e   : > { %v11769_v20 = vadd.f32 %v14606_v16, %v22125_v62  ;;  %v11763_v38 = vpop.f32.mrb[213].mxu1 }
0x117f   : > { %v11764_v42 = vadd.f32 %v22125_v62, %v11763_v38  ;;  %14681 = vmatprep.mubr.f32.mxu0 %v11808_v12 }
0x1180   : > { %14682 = vmatmul.mubr.f32.gmra.mrb[226].mxu0 %v11809_v5  ;;  %v11811_v11 = vmax.f32 %v11769_v20, 0.0 }
0x1181   : > { %v11810_v52 = vmax.f32 %v11764_v42, 0.0 }
0x1182   : > { %v14609_v26 = vpop.f32.mrb[214].mxu1 }
0x1183   : > { %v11779_v54 = vadd.f32 %v14609_v26, %v22125_v62  ;;  %v11773_v14 = vpop.f32.mrb[215].mxu1  ;;  %14684 = vmatprep.mubr.f32.mxu0 %v11810_v52 }
0x1184   : > { %v11774_v49 = vadd.f32 %v22125_v62, %v11773_v14  ;;  %14685 = vmatmul.mubr.f32.gmra.mrb[228].mxu0 %v11811_v11  ;;  %v23121_v11 = vld [vmem:[#allocation60_spill] sm:$0xff] }
0x1185   : > { %v11813_v22 = vmax.f32 %v11779_v54, 0.0 }
0x1186   : > { %v11812_v7 = vmax.f32 %v11774_v49, 0.0 }
0x1188   : > { %14687 = vmatprep.mubr.f32.mxu0 %v11812_v7 }
0x1189   : > { %14688 = vmatmul.mubr.f32.gmra.mrb[230].mxu0 %v11813_v22  ;;  %v23123_v22 = vld [vmem:[#allocation70_spill] sm:$0xff] }
0x11d9   : > { %v14644_v28 = vpop.f32.mrb[200].mxu0 }
0x11da   : > { %v11909_v31 = vadd.f32 %v14644_v28, %v22164_v43  ;;  %v11903_v32 = vpop.f32.mrb[201].mxu0 }
0x11db   : > { %v11904_v30 = vadd.f32 %v22164_v43, %v11903_v32 }
0x11dc   : > { %v12063_v40 = vadd.f32 %v11909_v31, %v21692_v9 }
0x11dd   : > { %v12062_v62 = vadd.f32 %v11904_v30, %v21694_v17 }
0x11de   : > { %12095 = vst [vmem:[#allocation11 + $0x8] sm:$0xff] %v12063_v40 }
0x11df   : > { %12094 = vst [vmem:[#allocation11] sm:$0xff] %v12062_v62  ;;  %v23124_v62 = vld [vmem:[#allocation61_spill] sm:$0xff] }
0x11e1   : > { %v14647_v3 = vpop.f32.mrb[202].mxu0 }
0x11e2   : > { %v11919_v59 = vadd.f32 %v14647_v3, %v22164_v43  ;;  %v11913_v50 = vpop.f32.mrb[203].mxu0 }
0x11e3   : > { %v11914_v41 = vadd.f32 %v22164_v43, %v11913_v50 }
0x11e4   : > { %v12065_v19 = vadd.f32 %v11919_v59, %v21699_v1  ;;  %v23125_v59 = vld [vmem:[#allocation73_spill] sm:$0xff] }
0x11e5   : > { %v12064_v24 = vadd.f32 %v11914_v41, %v21703_v44 }
0x11e6   : > { %12097 = vst [vmem:[#allocation11 + $0x18] sm:$0xff] %v12065_v19 }
0x11e7   : > { %12096 = vst [vmem:[#allocation11 + $0x10] sm:$0xff] %v12064_v24 }
0x120e   : > { %v14650_v63 = vpop.f32.mrb[204].mxu0 }
0x120f   : > { %v11929_v56 = vadd.f32 %v14650_v63, %v22164_v43  ;;  %v11923_v9 = vpop.f32.mrb[205].mxu0 }
0x1210   : > { %v11924_v17 = vadd.f32 %v22164_v43, %v11923_v9 }
0x1211   : > { %v12067_v29 = vadd.f32 %v11929_v56, %v21708_v10  ;;  %v23126_v56 = vld [vmem:[#allocation67_spill] sm:$0xff] }
0x1212   : > { %v12066_v57 = vadd.f32 %v11924_v17, %v21710_v15  ;;  %v23127_v17 = vld [vmem:[#allocation75_spill] sm:$0xff] }
0x1213   : > { %12099 = vst [vmem:[#allocation11 + $0x28] sm:$0xff] %v12067_v29 }
0x1214   : > { %12098 = vst [vmem:[#allocation11 + $0x20] sm:$0xff] %v12066_v57 }
0x1216   : > { %v14653_v25 = vpop.f32.mrb[206].mxu0 }
0x1217   : > { %v11939_v33 = vadd.f32 %v14653_v25, %v22164_v43  ;;  %v11933_v1 = vpop.f32.mrb[207].mxu0 }
0x1218   : > { %v11934_v44 = vadd.f32 %v22164_v43, %v11933_v1 }
0x1219   : > { %v12069_v18 = vadd.f32 %v11939_v33, %v21716_v46 }
0x121a   : > { %v12068_v51 = vadd.f32 %v11934_v44, %v21718_v23  ;;  %v14656_v39 = vpop.f32.mrb[208].mxu0  ;;  %v23128_v44 = vld [vmem:[#allocation64_spill] sm:$0xff] }
0x121b   : > { %12101 = vst [vmem:[#allocation11 + $0x38] sm:$0xff] %v12069_v18  ;;  %v11949_v45 = vadd.f32 %v14656_v39, %v22164_v43  ;;  %v11943_v6 = vpop.f32.mrb[209].mxu0 }
0x121c   : > { %12100 = vst [vmem:[#allocation11 + $0x30] sm:$0xff] %v12068_v51  ;;  %v11944_v10 = vadd.f32 %v22164_v43, %v11943_v6  ;;  %v23129_v51 = vld [vmem:[#allocation27_spill] sm:$0xff] }
0x121d   : > { %v12071_v15 = vadd.f32 %v11949_v45, %v21724_v36 }
0x121e   : > { %v12070_v58 = vadd.f32 %v11944_v10, %v21726_v47  ;;  %v14659_v2 = vpop.f32.mrb[210].mxu0 }
0x121f   : > { %12103 = vst [vmem:[#allocation11 + $0x48] sm:$0xff] %v12071_v15  ;;  %v11959_v60 = vadd.f32 %v14659_v2, %v22164_v43  ;;  %v11953_v27 = vpop.f32.mrb[211].mxu0 }
0x1220   : > { %12102 = vst [vmem:[#allocation11 + $0x40] sm:$0xff] %v12070_v58  ;;  %v11954_v46 = vadd.f32 %v22164_v43, %v11953_v27  ;;  %v23130_v58 = vld [vmem:[#allocation77_spill] sm:$0xff] }
0x1221   : > { %v12073_v23 = vadd.f32 %v11959_v60, %v21732_v55  ;;  %v23131_v60 = vld [vmem:[#allocation68_spill] sm:$0xff] }
0x1222   : > { %v12072_v53 = vadd.f32 %v11954_v46, %v21734_v21  ;;  %v14662_v48 = vpop.f32.mrb[212].mxu0 }
0x1223   : > { %12105 = vst [vmem:[#allocation11 + $0x58] sm:$0xff] %v12073_v23  ;;  %v11969_v37 = vadd.f32 %v14662_v48, %v22164_v43  ;;  %v11963_v4 = vpop.f32.mrb[213].mxu0 }
0x1224   : > { %12104 = vst [vmem:[#allocation11 + $0x50] sm:$0xff] %v12072_v53  ;;  %v11964_v36 = vadd.f32 %v22164_v43, %v11963_v4 }
0x1225   : > { %v12075_v47 = vadd.f32 %v11969_v37, %v21740_v0  ;;  %v23132_v37 = vld [vmem:[#allocation30_spill] sm:$0xff] }
0x1226   : > { %v12074_v8 = vadd.f32 %v11964_v36, %v21742_v34  ;;  %v23120_v34 = vld [vmem:[#allocation65_spill] sm:$0xff]  ;;  %v23133_v36 = vld [vmem:[#allocation128_spill] sm:$0xff] }
0x1227   : > { %12107 = vst [vmem:[#allocation11 + $0x68] sm:$0xff] %v12075_v47 }
0x1228   : > { %12106 = vst [vmem:[#allocation11 + $0x60] sm:$0xff] %v12074_v8 }
0x1231   : > { %v14665_v35 = vpop.f32.mrb[214].mxu0 }
0x1232   : > { %v11979_v12 = vadd.f32 %v14665_v35, %v22164_v43  ;;  %v11973_v55 = vpop.f32.mrb[215].mxu0 }
0x1233   : > { %v11974_v21 = vadd.f32 %v22164_v43, %v11973_v55 }
0x1234   : > { %v12077_v16 = vadd.f32 %v11979_v12, %v21748_v13 }
0x1235   : > { %v12076_v5 = vadd.f32 %v11974_v21, %v21750_v61  ;;  %v14668_v20 = vpop.f32.mrb[216].mxu0  ;;  %v23122_v61 = vld [vmem:[#allocation37_spill] sm:$0xff]  ;;  %v23134_v21 = vld [vmem:[#allocation71_spill] sm:$0xff] }
0x1236   : > { %12109 = vst [vmem:[#allocation11 + $0x78] sm:$0xff] %v12077_v16  ;;  %v11989_v38 = vadd.f32 %v14668_v20, %v22164_v43  ;;  %v11983_v42 = vpop.f32.mrb[217].mxu0 }
0x1237   : > { %12108 = vst [vmem:[#allocation11 + $0x70] sm:$0xff] %v12076_v5  ;;  %v11984_v0 = vadd.f32 %v22164_v43, %v11983_v42  ;;  %v23135_v5 = vld [vmem:[#allocation72_spill] sm:$0xff] }
0x1238   : > { %v12079_v52 = vadd.f32 %v11989_v38, %v23120_v34 }
0x1239   : > { %v12078_v26 = vadd.f32 %v11984_v0, %v23121_v11  ;;  %v14671_v54 = vpop.f32.mrb[218].mxu0 }
0x123a   : > { %12111 = vst [vmem:[#allocation11 + $0x88] sm:$0xff] %v12079_v52  ;;  %v11999_v14 = vadd.f32 %v14671_v54, %v22164_v43  ;;  %v11993_v49 = vpop.f32.mrb[219].mxu0 }
0x123b   : > { %12110 = vst [vmem:[#allocation11 + $0x80] sm:$0xff] %v12078_v26  ;;  %v11994_v13 = vadd.f32 %v22164_v43, %v11993_v49 }
0x123c   : > { %v12081_v7 = vadd.f32 %v11999_v14, %v23122_v61 }
0x123d   : > { %v12080_v28 = vadd.f32 %v11994_v13, %v23123_v22  ;;  %v14674_v31 = vpop.f32.mrb[220].mxu0 }
0x123e   : > { %12113 = vst [vmem:[#allocation11 + $0x98] sm:$0xff] %v12081_v7  ;;  %v12009_v32 = vadd.f32 %v14674_v31, %v22164_v43  ;;  %v12003_v30 = vpop.f32.mrb[221].mxu0 }
0x123f   : > { %12112 = vst [vmem:[#allocation11 + $0x90] sm:$0xff] %v12080_v28  ;;  %v12004_v40 = vadd.f32 %v22164_v43, %v12003_v30 }
0x1240   : > { %v12083_v3 = vadd.f32 %v12009_v32, %v23124_v62 }
0x1241   : > { %v12082_v50 = vadd.f32 %v12004_v40, %v23125_v59 }
0x1242   : > { %v14677_v41 = vpop.f32.mrb[222].mxu0  ;;  %12115 = vst [vmem:[#allocation11 + $0xa8] sm:$0xff] %v12083_v3 }
0x1243   : > { %v12019_v19 = vadd.f32 %v14677_v41, %v22164_v43  ;;  %v12013_v24 = vpop.f32.mrb[223].mxu0  ;;  %12114 = vst [vmem:[#allocation11 + $0xa0] sm:$0xff] %v12082_v50 }
0x1244   : > { %v12014_v63 = vadd.f32 %v22164_v43, %v12013_v24 }
0x1245   : > { %v12085_v9 = vadd.f32 %v12019_v19, %v23126_v56 }
0x1246   : > { %v12084_v29 = vadd.f32 %v12014_v63, %v23127_v17 }
0x1247   : > { %12117 = vst [vmem:[#allocation11 + $0xb8] sm:$0xff] %v12085_v9 }
0x1248   : > { %12116 = vst [vmem:[#allocation11 + $0xb0] sm:$0xff] %v12084_v29 }
0x124f   : > { %v14680_v57 = vpop.f32.mrb[224].mxu0 }
0x1250   : > { %v12029_v25 = vadd.f32 %v14680_v57, %v22164_v43  ;;  %v12023_v33 = vpop.f32.mrb[225].mxu0 }
0x1251   : > { %v12024_v1 = vadd.f32 %v22164_v43, %v12023_v33 }
0x1252   : > { %v12087_v18 = vadd.f32 %v12029_v25, %v23128_v44 }
0x1253   : > { %v12086_v39 = vadd.f32 %v12024_v1, %v23129_v51  ;;  %v14683_v45 = vpop.f32.mrb[226].mxu0 }
0x1254   : > { %12119 = vst [vmem:[#allocation11 + $0xc8] sm:$0xff] %v12087_v18  ;;  %v12039_v6 = vadd.f32 %v14683_v45, %v22164_v43  ;;  %v12033_v10 = vpop.f32.mrb[227].mxu0 }
0x1255   : > { %12118 = vst [vmem:[#allocation11 + $0xc0] sm:$0xff] %v12086_v39  ;;  %v12034_v15 = vadd.f32 %v22164_v43, %v12033_v10 }
0x1256   : > { %v12089_v2 = vadd.f32 %v12039_v6, %v23130_v58 }
0x1257   : > { %v12088_v27 = vadd.f32 %v12034_v15, %v23131_v60  ;;  %v14686_v46 = vpop.f32.mrb[228].mxu0 }
0x1258   : > { %12121 = vst [vmem:[#allocation11 + $0xd8] sm:$0xff] %v12089_v2  ;;  %v12049_v23 = vadd.f32 %v14686_v46, %v22164_v43  ;;  %v12043_v53 = vpop.f32.mrb[229].mxu0 }
0x1259   : > { %12120 = vst [vmem:[#allocation11 + $0xd0] sm:$0xff] %v12088_v27  ;;  %v12044_v48 = vadd.f32 %v22164_v43, %v12043_v53 }
0x125a   : > { %v12091_v4 = vadd.f32 %v12049_v23, %v23132_v37 }
0x125b   : > { %v12090_v47 = vadd.f32 %v12044_v48, %v23133_v36 }
0x125c   : > { %12123 = vst [vmem:[#allocation11 + $0xe8] sm:$0xff] %v12091_v4  ;;  %v14689_v8 = vpop.f32.mrb[230].mxu0 }
0x125d   : > { %12122 = vst [vmem:[#allocation11 + $0xe0] sm:$0xff] %v12090_v47  ;;  %v12059_v35 = vadd.f32 %v14689_v8, %v22164_v43  ;;  %v12053_v12 = vpop.f32.mrb[231].mxu0 }
0x125e   : > { %v12054_v55 = vadd.f32 %v22164_v43, %v12053_v12 }
0x125f   : > { %v12093_v16 = vadd.f32 %v12059_v35, %v23134_v21 }
0x1260   : > { %v12092_v20 = vadd.f32 %v12054_v55, %v23135_v5 }
0x1261   : > { %12125 = vst [vmem:[#allocation11 + $0xf8] sm:$0xff] %v12093_v16 }
0x1262   : > { %12124 = vst [vmem:[#allocation11 + $0xf0] sm:$0xff] %v12092_v20 }
0x1263   : > { %17129 = shalt.err (!%p17126_p9)
}
0x1264   : > { %s23136_s5 = sld [smem:[#allocation156_spill]] }
0x126a   : > { %s17130_s8 = scalar_lea.hbm %s23136_s5, 4096 }
0x126b   : > { %p17131_p8 = scmp.ne.s32.totalorder %s23136_s5, %s17130_s8  ;;  %p17136_p7 = scmp.lt.u32.totalorder %s17130_s8, %s23136_s5 }
0x126d   : > { %p17132_p1 = pnand %p17131_p8, %p15546_p10 }
0x126f   : > { %p17133_p4 = pneg %p17132_p1 }
0x1271   : > { %p17138_p5 = pnand %p17136_p7, %p17133_p4 }
0x1273   : > { %17141 = shalt.err (!%p17138_p5)
}
0x1274   : > { %s17220_s10 = smov 128   ;;  %s17221_s24 = smov 8  }
0x1275   : > { %15523 = dma.vmem_to_hbm [thread:$0]  (%p15546_p10), %s12137_s3, 4096, %s23136_s5, [#allocation4], %s17220_s10, %s17220_s10, %s17221_s24  }
0x1276   : > { %17179 = dma.done.wait (%p15546_p10), [#allocation4], 4096  }
0x1277   : > { %17181 = vsyncadd (%p15546_p10), [#allocation4], 4294963200 }
0x1278 PF: > { %s23137_s19 = sld [smem:[#allocation19_spill]]  ;;  %s23138_s25 = sld [smem:[#allocation16_spill]] }
0x1279   : > { %s23139_s26 = sld [smem:[#allocation17_spill]]  ;;  %s23140_s27 = sld [smem:[#allocation21_spill]] }
0x127a   : > { %s23141_s28 = sld [smem:[#allocation18_spill]]  ;;  %s23142_s29 = sld [smem:[#allocation20_spill]] }
0x127e   : > { %s31_s30 = sadd.s32 1, %s23137_s19  }
0x127f   : > { %p28_p11 = scmp.ge.s32.totalorder %s31_s30, 4  }
0x1281   :  { %30 = sbr.rel (!%p28_p11) target bundleno = 21 (0x15), region = 179 }
0x1288   :  { %12152 = vsyncpa [#allocation3], 1 }
0x1289   :  { %12154 = vsyncpa [#allocation3 + $0x1], 1 }
0x128a   :  { %12155 = vsyncpa [#allocation6], 1 }
0x128b   :  { %12157 = vsyncpa [#allocation6 + $0x1], 1 }
0x128c   :  { %12158 = vsyncpa [#allocation9], 1 }
0x128d   :  { %12160 = vsyncpa [#allocation9 + $0x1], 1 }
0x128e   :  { %12161 = vsyncpa [#allocation4], 1 }
0x128f   :  { %12163 = vsyncpa [#allocation4 + $0x1], 1 }

</bundles_post_ra>
